<compile_context>
chip_gen: v7x
topology: tpu7x:2x2x1
jax: 0.10.0
libtpu: 0.0.40
codegen_flags: <defaults>
</compile_context>

<pallas_src>
import math

import jax
import jax.numpy as jnp
from jax.experimental import pallas as pl
from jax.experimental.pallas import tpu as pltpu

# Layer widths of the PyTorch MLPRegressor (19 Linear layers).
LAYER_DIMS = [1, 64, 128, 256, 128, 64, 32, 16, 32, 64, 128, 256,
              128, 64, 32, 16, 32, 64, 128, 1]
NUM_LAYERS = len(LAYER_DIMS) - 1          # 19
CHUNK = 128                               # lane-block width of every matmul
BN_EPS = 1e-5
MXU_DTYPE = jnp.bfloat16                  # matmul inputs; accumulation stays f32
NUM_SUBTILES = 2                          # independent sub-chains per grid step


def _round_up(x, m):
    return (x + m - 1) // m * m


def _num_chunks(d):
    return max(1, (d + CHUNK - 1) // CHUNK)


# ----------------------------------------------------------------------------
# Static "program": layers 1..18 as a sequence of stages operating on lists of
# 128-lane activation chunks.  Layer 0 (cin=1) is special-cased on the VPU.
# Each stage: (layer_idx, apply_relu, outs) with
#   outs = tuple of (shift_chunk_idx, tuple of (in_chunk_idx, weight_block_idx))
# ----------------------------------------------------------------------------
def _build_program():
    stages = []
    w_idx = 0
    s_idx = 1                       # shift chunk 0 is reserved for layer 0
    for l in range(1, NUM_LAYERS):
        cin, cout = LAYER_DIMS[l], LAYER_DIMS[l + 1]
        n_in, n_out = _num_chunks(cin), _num_chunks(cout)
        outs = []
        for _oc in range(n_out):
            ins = []
            for ic in range(n_in):
                ins.append((ic, w_idx))
                w_idx += 1
            outs.append((s_idx, tuple(ins)))
            s_idx += 1
        stages.append((l, l < NUM_LAYERS - 1, tuple(outs)))
    return tuple(stages), w_idx, s_idx


_STAGES, NUM_WBLOCKS, NUM_SHIFT_CHUNKS = _build_program()   # 22 blocks, 21 shifts


# ----------------------------------------------------------------------------
# Fused kernel: layer-0 rank-1 broadcast + 18 layers of 128x128 MXU blocks,
# two interleaved batch sub-tiles per grid step.
# ----------------------------------------------------------------------------
def _make_kernel(tb, num_subtiles):
    half = tb // num_subtiles

    def kernel(x_ref, w0_ref, w_ref, s_ref, o_ref):
        # --- Layer 0 (cin=1): rank-1 VPU broadcast, no MXU pass. ---
        subs = []
        for t in range(num_subtiles):
            x_col = x_ref[pl.ds(t * half, half), :]                  # (half, 1) f32
            h0 = jnp.maximum(x_col * w0_ref[...] + s_ref[0], 0.0)    # (half, 128) f32
            subs.append([h0])

        # --- Layers 1..18, interleaved across the independent sub-tiles so the
        # scheduler can overlap one chain's MXU drain with the other's pushes.
        for (_layer, relu, outs) in _STAGES:
            for t in range(num_subtiles):
                chunks = subs[t]
                lhs = [c.astype(MXU_DTYPE) for c in chunks]
                new_chunks = []
                for (s_idx, ins) in outs:
                    acc = None
                    for (ci, wi) in ins:
                        p = jnp.dot(lhs[ci], w_ref[wi],
                                    preferred_element_type=jnp.float32)
                        acc = p if acc is None else acc + p
                    y = acc + s_ref[s_idx]                           # folded bias + BN
                    if relu:
                        y = jnp.maximum(y, 0.0)
                    new_chunks.append(y)
                subs[t] = new_chunks

        # Lane-dense 128-wide write; real result lives in column 0.
        for t in range(num_subtiles):
            o_ref[pl.ds(t * half, half), :] = subs[t][0]

    return kernel


# ----------------------------------------------------------------------------
# Deterministic parameter construction (PyTorch default Linear init shapes),
# BatchNorm folded into weights/bias, packed into 128x128 blocks.
# ----------------------------------------------------------------------------
def _bn_params(key, c):
    kg, kb, km, kv = jax.random.split(key, 4)
    gamma = 1.0 + 0.1 * jax.random.normal(kg, (c,), jnp.float32)
    beta = 0.1 * jax.random.normal(kb, (c,), jnp.float32)
    running_mean = 0.1 * jax.random.normal(km, (c,), jnp.float32)
    running_var = jnp.abs(1.0 + 0.1 * jax.random.normal(kv, (c,), jnp.float32))
    return gamma, beta, running_mean, running_var


def init_packed_params(key):
    """Returns (packed params dict, raw fp32 per-layer params list, key)."""
    raw = []
    w_blocks = [None] * NUM_WBLOCKS
    s_chunks = [None] * NUM_SHIFT_CHUNKS
    w0_row = None
    w_idx, s_idx = 0, 1
    for l in range(NUM_LAYERS):
        cin, cout = LAYER_DIMS[l], LAYER_DIMS[l + 1]
        key, kw, kb, kbn = jax.random.split(key, 4)
        bound = 1.0 / math.sqrt(cin)                # PyTorch nn.Linear default init
        w = jax.random.uniform(kw, (cout, cin), jnp.float32, -bound, bound)
        b = jax.random.uniform(kb, (cout,), jnp.float32, -bound, bound)
        layer_raw = dict(w=w, b=b)
        if l < NUM_LAYERS - 1:
            # TODO(synk): BatchNorm is folded in inference mode (running stats);
            # training-mode batch statistics are not reproduced.
            gamma, beta, mean, var = _bn_params(kbn, cout)
            layer_raw.update(gamma=gamma, beta=beta, mean=mean, var=var)
            scale = gamma / jnp.sqrt(var + BN_EPS)
            shift_bn = beta - mean * scale
        else:
            scale = jnp.ones((cout,), jnp.float32)
            shift_bn = jnp.zeros((cout,), jnp.float32)
        raw.append(layer_raw)

        # Fold BN: y = x @ (W^T * scale) + (b * scale + shift_bn)
        w_fold = jnp.transpose(w) * scale[None, :]                   # (cin, cout)
        s_fold = b * scale + shift_bn                                # (cout,)

        if l == 0:
            w0_row = jnp.zeros((1, CHUNK), jnp.float32).at[0, :cout].set(w_fold[0])
            s_chunks[0] = jnp.zeros((CHUNK,), jnp.float32).at[:cout].set(s_fold)
            continue

        n_in, n_out = _num_chunks(cin), _num_chunks(cout)
        for oc in range(n_out):
            c0, c1 = oc * CHUNK, min(cout, (oc + 1) * CHUNK)
            for ic in range(n_in):
                r0, r1 = ic * CHUNK, min(cin, (ic + 1) * CHUNK)
                blk = jnp.zeros((CHUNK, CHUNK), jnp.float32)
                blk = blk.at[:r1 - r0, :c1 - c0].set(w_fold[r0:r1, c0:c1])
                w_blocks[w_idx] = blk
                w_idx += 1
            sc = jnp.zeros((CHUNK,), jnp.float32).at[:c1 - c0].set(s_fold[c0:c1])
            s_chunks[s_idx] = sc
            s_idx += 1

    params = dict(
        w0_row=w0_row,                                              # (1, 128) f32
        w_slab=jnp.stack(w_blocks).astype(MXU_DTYPE),               # (22, 128, 128) bf16
        s_slab=jnp.stack(s_chunks)[:, None, :],                     # (21, 1, 128) f32
    )
    return params, raw, key


# ----------------------------------------------------------------------------
# Wrapper: pick the batch tile, launch the single fused kernel, slice result.
# ----------------------------------------------------------------------------
def mlp_regressor_forward(x, params, *, max_batch_tile=512, single_buffer_weights=True):
    """x: (B, 1) float32 -> (B, 1) float32."""
    x = x.astype(jnp.float32)
    B = x.shape[0]
    w0, w_slab, s_slab = params["w0_row"], params["w_slab"], params["s_slab"]

    # Tile: multiple of 16 (two 8-sublane sub-tiles), capped, and chosen so a
    # large batch yields at least a 2-step grid (both v7x TensorCores busy).
    max_batch_tile = _round_up(max_batch_tile, 8 * NUM_SUBTILES)
    tb = min(_round_up(max((B + 1) // 2, 1), 8 * NUM_SUBTILES), max_batch_tile)
    b_pad = _round_up(max(B, 1), tb)
    if b_pad != B:
        x_pad = jnp.zeros((b_pad, 1), jnp.float32).at[:B, :].set(x)
    else:
        x_pad = x

    const_spec_kwargs = {}
    if single_buffer_weights:
        # Grid-invariant operands: no need to double-buffer them in VMEM.
        const_spec_kwargs = dict(pipeline_mode=pl.Buffered(1))

    flops = 2 * b_pad * (NUM_WBLOCKS * CHUNK * CHUNK + CHUNK)
    bytes_accessed = (int(w_slab.size) * 2 + int(s_slab.size) * 4 + CHUNK * 4
                      + b_pad * 4 + b_pad * CHUNK * 4)
    cost = pl.CostEstimate(flops=flops, transcendentals=0,
                           bytes_accessed=bytes_accessed)

    out = pl.pallas_call(
        _make_kernel(tb, NUM_SUBTILES),
        out_shape=jax.ShapeDtypeStruct((b_pad, CHUNK), jnp.float32),
        grid_spec=pltpu.PrefetchScalarGridSpec(
            num_scalar_prefetch=0,
            grid=(b_pad // tb,),
            in_specs=[
                pl.BlockSpec((tb, 1), lambda i: (i, 0)),                        # x column
                pl.BlockSpec((1, CHUNK), lambda i: (0, 0), **const_spec_kwargs),                    # layer-0 row
                pl.BlockSpec((NUM_WBLOCKS, CHUNK, CHUNK), lambda i: (0, 0, 0), **const_spec_kwargs),  # weight blocks
                pl.BlockSpec((NUM_SHIFT_CHUNKS, 1, CHUNK), lambda i: (0, 0, 0), **const_spec_kwargs), # shift chunks
            ],
            out_specs=pl.BlockSpec((tb, CHUNK), lambda i: (i, 0)),
        ),
        compiler_params=pltpu.CompilerParams(
            dimension_semantics=("parallel",),      # batch tiles -> megacore / 2 TCs
        ),
        cost_estimate=cost,
    )(x_pad, w0, w_slab, s_slab)
    return out[:B, :1]


# ----------------------------------------------------------------------------
# References.
# ----------------------------------------------------------------------------
def _reference_matched(x, params):
    """Same folded / chunked / bf16 math as the kernel, in plain JAX."""
    x = x.astype(jnp.float32)
    w0, w, s = params["w0_row"], params["w_slab"], params["s_slab"]
    chunks = [jnp.maximum(x * w0 + s[0], 0.0)]
    for (_layer, relu, outs) in _STAGES:
        lhs = [c.astype(MXU_DTYPE) for c in chunks]
        new = []
        for (s_idx, ins) in outs:
            acc = None
            for (ci, wi) in ins:
                p = jnp.dot(lhs[ci], w[wi], preferred_element_type=jnp.float32)
                acc = p if acc is None else acc + p
            y = acc + s[s_idx]
            if relu:
                y = jnp.maximum(y, 0.0)
            new.append(y)
        chunks = new
    return chunks[0][:, :1]


def _reference_fp32(x, raw_params):
    """PyTorch eval-mode semantics in fp32 (unfolded Linear + BatchNorm + ReLU)."""
    h = x.astype(jnp.float32)
    for l, p in enumerate(raw_params):
        h = h @ p["w"].T + p["b"]
        if l < NUM_LAYERS - 1:
            inv = p["gamma"] / jnp.sqrt(p["var"] + BN_EPS)
            h = (h - p["mean"]) * inv + p["beta"]
            h = jnp.maximum(h, 0.0)
    return h


if __name__ == "__main__":
    key = jax.random.PRNGKey(0)
    params, raw_params, key = init_packed_params(key)

    key, kx, kx2 = jax.random.split(key, 3)
    x = jax.random.normal(kx, (2, 1), jnp.float32)       # batch=2, in_features=1

    # Prefer single-buffered constant operands; fall back to default buffering
    # if this JAX build rejects pipeline_mode=pl.Buffered(1).
    try:
        fwd = jax.jit(lambda xx: mlp_regressor_forward(xx, params,
                                                       single_buffer_weights=True))
        y = jax.block_until_ready(fwd(x))
    except Exception:
        fwd = jax.jit(lambda xx: mlp_regressor_forward(xx, params,
                                                       single_buffer_weights=False))
        y = jax.block_until_ready(fwd(x))

    assert y.shape == (2, 1), y.shape
    assert bool(jnp.all(jnp.isfinite(y)))

    # Exact-math check (same folded bf16 arithmetic as the kernel).
    y_matched = _reference_matched(x, params)
    assert bool(jnp.allclose(y, y_matched, rtol=1e-2, atol=1e-3)), (y, y_matched)

    # fp32 PyTorch-eval-style check (loose tolerance: bf16 weights across 19 layers).
    y_fp32 = _reference_fp32(x, raw_params)
    assert bool(jnp.allclose(y, y_fp32, rtol=1e-1, atol=5e-2)), (y, y_fp32)

    # Larger batch exercises the multi-step (>=2) grid and padding path.
    x2 = jax.random.normal(kx2, (300, 1), jnp.float32)
    y2 = jax.block_until_ready(fwd(x2))
    assert y2.shape == (300, 1), y2.shape
    assert bool(jnp.all(jnp.isfinite(y2)))
    y2_matched = _reference_matched(x2, params)
    assert bool(jnp.allclose(y2, y2_matched, rtol=1e-2, atol=1e-3))

    print("KERNEL_OK")
</pallas_src>

<mosaic_0001>
module attributes {stable_mosaic.version = 11 : i64} {
  func.func @kernel(%arg0: i32, %arg1: memref<16x1xf32, #tpu.memory_space<vmem>>, %arg2: memref<1x128xf32, #tpu.memory_space<vmem>>, %arg3: memref<22x128x128xbf16, #tpu.memory_space<vmem>>, %arg4: memref<21x1x128xf32, #tpu.memory_space<vmem>>, %arg5: memref<16x128xf32, #tpu.memory_space<vmem>>) attributes {dimension_semantics = [#tpu.dimension_semantics<parallel>], iteration_bounds = array<i64: 1>, scalar_prefetch = 0 : i64, scratch_operands = 0 : i64, tpu.core_type = #tpu.core_type<tc>, window_params = [{transform_indices = @transform_0, window_bounds = array<i64: 16, 1>}, {pipeline_mode = #tpu.pipeline_mode<synchronous>, transform_indices = @transform_1, window_bounds = array<i64: 1, 128>}, {pipeline_mode = #tpu.pipeline_mode<synchronous>, transform_indices = @transform_2, window_bounds = array<i64: 22, 128, 128>}, {pipeline_mode = #tpu.pipeline_mode<synchronous>, transform_indices = @transform_3, window_bounds = array<i64: 21, 1, 128>}, {transform_indices = @transform_4, window_bounds = array<i64: 16, 128>}]} {
    %c0 = arith.constant 0 : index
    %c0_0 = arith.constant 0 : index
    %0 = vector.load %arg1[%c0, %c0_0] : memref<16x1xf32, #tpu.memory_space<vmem>>, vector<8x1xf32>
    %c0_1 = arith.constant 0 : index
    %c0_2 = arith.constant 0 : index
    %1 = vector.load %arg2[%c0_1, %c0_2] : memref<1x128xf32, #tpu.memory_space<vmem>>, vector<1x128xf32>
    %2 = vector.broadcast %0 : vector<8x1xf32> to vector<8x128xf32>
    %3 = vector.broadcast %1 : vector<1x128xf32> to vector<8x128xf32>
    %4 = arith.mulf %2, %3 : vector<8x128xf32>
    %c0_3 = arith.constant 0 : index
    %c0_4 = arith.constant 0 : index
    %c0_5 = arith.constant 0 : index
    %5 = vector.load %arg4[%c0_3, %c0_4, %c0_5] : memref<21x1x128xf32, #tpu.memory_space<vmem>>, vector<1x1x128xf32>
    %6 = vector.shape_cast %5 : vector<1x1x128xf32> to vector<1x128xf32>
    %7 = vector.broadcast %6 : vector<1x128xf32> to vector<8x128xf32>
    %8 = arith.addf %4, %7 : vector<8x128xf32>
    %cst = arith.constant 0.000000e+00 : f32
    %9 = vector.broadcast %cst : f32 to vector<8x128xf32>
    %10 = arith.maximumf %8, %9 : vector<8x128xf32>
    %c8 = arith.constant 8 : index
    %c0_6 = arith.constant 0 : index
    %11 = vector.load %arg1[%c8, %c0_6] : memref<16x1xf32, #tpu.memory_space<vmem>>, vector<8x1xf32>
    %c0_7 = arith.constant 0 : index
    %c0_8 = arith.constant 0 : index
    %12 = vector.load %arg2[%c0_7, %c0_8] : memref<1x128xf32, #tpu.memory_space<vmem>>, vector<1x128xf32>
    %13 = vector.broadcast %11 : vector<8x1xf32> to vector<8x128xf32>
    %14 = vector.broadcast %12 : vector<1x128xf32> to vector<8x128xf32>
    %15 = arith.mulf %13, %14 : vector<8x128xf32>
    %c0_9 = arith.constant 0 : index
    %c0_10 = arith.constant 0 : index
    %c0_11 = arith.constant 0 : index
    %16 = vector.load %arg4[%c0_9, %c0_10, %c0_11] : memref<21x1x128xf32, #tpu.memory_space<vmem>>, vector<1x1x128xf32>
    %17 = vector.shape_cast %16 : vector<1x1x128xf32> to vector<1x128xf32>
    %18 = vector.broadcast %17 : vector<1x128xf32> to vector<8x128xf32>
    %19 = arith.addf %15, %18 : vector<8x128xf32>
    %cst_12 = arith.constant 0.000000e+00 : f32
    %20 = vector.broadcast %cst_12 : f32 to vector<8x128xf32>
    %21 = arith.maximumf %19, %20 : vector<8x128xf32>
    %22 = arith.truncf %10 : vector<8x128xf32> to vector<8x128xbf16>
    %c0_13 = arith.constant 0 : index
    %c0_14 = arith.constant 0 : index
    %c0_15 = arith.constant 0 : index
    %23 = vector.load %arg3[%c0_13, %c0_14, %c0_15] : memref<22x128x128xbf16, #tpu.memory_space<vmem>>, vector<1x128x128xbf16>
    %24 = vector.shape_cast %23 : vector<1x128x128xbf16> to vector<128x128xbf16>
    %cst_16 = arith.constant dense<0.000000e+00> : vector<8x128xf32>
    %25 = tpu.matmul %22, %24, %cst_16 {dimension_numbers = #tpu.dot_dimension_numbers<[1], [0], [0], [1], [0, 0, 1, 1], [], []>} : vector<8x128xbf16>, vector<128x128xbf16>, vector<8x128xf32> -> vector<8x128xf32>
    %c1 = arith.constant 1 : index
    %c0_17 = arith.constant 0 : index
    %c0_18 = arith.constant 0 : index
    %26 = vector.load %arg4[%c1, %c0_17, %c0_18] : memref<21x1x128xf32, #tpu.memory_space<vmem>>, vector<1x1x128xf32>
    %27 = vector.shape_cast %26 : vector<1x1x128xf32> to vector<1x128xf32>
    %28 = vector.broadcast %27 : vector<1x128xf32> to vector<8x128xf32>
    %29 = arith.addf %25, %28 : vector<8x128xf32>
    %cst_19 = arith.constant 0.000000e+00 : f32
    %30 = vector.broadcast %cst_19 : f32 to vector<8x128xf32>
    %31 = arith.maximumf %29, %30 : vector<8x128xf32>
    %32 = arith.truncf %21 : vector<8x128xf32> to vector<8x128xbf16>
    %c0_20 = arith.constant 0 : index
    %c0_21 = arith.constant 0 : index
    %c0_22 = arith.constant 0 : index
    %33 = vector.load %arg3[%c0_20, %c0_21, %c0_22] : memref<22x128x128xbf16, #tpu.memory_space<vmem>>, vector<1x128x128xbf16>
    %34 = vector.shape_cast %33 : vector<1x128x128xbf16> to vector<128x128xbf16>
    %cst_23 = arith.constant dense<0.000000e+00> : vector<8x128xf32>
    %35 = tpu.matmul %32, %34, %cst_23 {dimension_numbers = #tpu.dot_dimension_numbers<[1], [0], [0], [1], [0, 0, 1, 1], [], []>} : vector<8x128xbf16>, vector<128x128xbf16>, vector<8x128xf32> -> vector<8x128xf32>
    %c1_24 = arith.constant 1 : index
    %c0_25 = arith.constant 0 : index
    %c0_26 = arith.constant 0 : index
    %36 = vector.load %arg4[%c1_24, %c0_25, %c0_26] : memref<21x1x128xf32, #tpu.memory_space<vmem>>, vector<1x1x128xf32>
    %37 = vector.shape_cast %36 : vector<1x1x128xf32> to vector<1x128xf32>
    %38 = vector.broadcast %37 : vector<1x128xf32> to vector<8x128xf32>
    %39 = arith.addf %35, %38 : vector<8x128xf32>
    %cst_27 = arith.constant 0.000000e+00 : f32
    %40 = vector.broadcast %cst_27 : f32 to vector<8x128xf32>
    %41 = arith.maximumf %39, %40 : vector<8x128xf32>
    %42 = arith.truncf %31 : vector<8x128xf32> to vector<8x128xbf16>
    %c1_28 = arith.constant 1 : index
    %c0_29 = arith.constant 0 : index
    %c0_30 = arith.constant 0 : index
    %43 = vector.load %arg3[%c1_28, %c0_29, %c0_30] : memref<22x128x128xbf16, #tpu.memory_space<vmem>>, vector<1x128x128xbf16>
    %44 = vector.shape_cast %43 : vector<1x128x128xbf16> to vector<128x128xbf16>
    %cst_31 = arith.constant dense<0.000000e+00> : vector<8x128xf32>
    %45 = tpu.matmul %42, %44, %cst_31 {dimension_numbers = #tpu.dot_dimension_numbers<[1], [0], [0], [1], [0, 0, 1, 1], [], []>} : vector<8x128xbf16>, vector<128x128xbf16>, vector<8x128xf32> -> vector<8x128xf32>
    %c2 = arith.constant 2 : index
    %c0_32 = arith.constant 0 : index
    %c0_33 = arith.constant 0 : index
    %46 = vector.load %arg4[%c2, %c0_32, %c0_33] : memref<21x1x128xf32, #tpu.memory_space<vmem>>, vector<1x1x128xf32>
    %47 = vector.shape_cast %46 : vector<1x1x128xf32> to vector<1x128xf32>
    %48 = vector.broadcast %47 : vector<1x128xf32> to vector<8x128xf32>
    %49 = arith.addf %45, %48 : vector<8x128xf32>
    %cst_34 = arith.constant 0.000000e+00 : f32
    %50 = vector.broadcast %cst_34 : f32 to vector<8x128xf32>
    %51 = arith.maximumf %49, %50 : vector<8x128xf32>
    %c2_35 = arith.constant 2 : index
    %c0_36 = arith.constant 0 : index
    %c0_37 = arith.constant 0 : index
    %52 = vector.load %arg3[%c2_35, %c0_36, %c0_37] : memref<22x128x128xbf16, #tpu.memory_space<vmem>>, vector<1x128x128xbf16>
    %53 = vector.shape_cast %52 : vector<1x128x128xbf16> to vector<128x128xbf16>
    %cst_38 = arith.constant dense<0.000000e+00> : vector<8x128xf32>
    %54 = tpu.matmul %42, %53, %cst_38 {dimension_numbers = #tpu.dot_dimension_numbers<[1], [0], [0], [1], [0, 0, 1, 1], [], []>} : vector<8x128xbf16>, vector<128x128xbf16>, vector<8x128xf32> -> vector<8x128xf32>
    %c3 = arith.constant 3 : index
    %c0_39 = arith.constant 0 : index
    %c0_40 = arith.constant 0 : index
    %55 = vector.load %arg4[%c3, %c0_39, %c0_40] : memref<21x1x128xf32, #tpu.memory_space<vmem>>, vector<1x1x128xf32>
    %56 = vector.shape_cast %55 : vector<1x1x128xf32> to vector<1x128xf32>
    %57 = vector.broadcast %56 : vector<1x128xf32> to vector<8x128xf32>
    %58 = arith.addf %54, %57 : vector<8x128xf32>
    %cst_41 = arith.constant 0.000000e+00 : f32
    %59 = vector.broadcast %cst_41 : f32 to vector<8x128xf32>
    %60 = arith.maximumf %58, %59 : vector<8x128xf32>
    %61 = arith.truncf %41 : vector<8x128xf32> to vector<8x128xbf16>
    %c1_42 = arith.constant 1 : index
    %c0_43 = arith.constant 0 : index
    %c0_44 = arith.constant 0 : index
    %62 = vector.load %arg3[%c1_42, %c0_43, %c0_44] : memref<22x128x128xbf16, #tpu.memory_space<vmem>>, vector<1x128x128xbf16>
    %63 = vector.shape_cast %62 : vector<1x128x128xbf16> to vector<128x128xbf16>
    %cst_45 = arith.constant dense<0.000000e+00> : vector<8x128xf32>
    %64 = tpu.matmul %61, %63, %cst_45 {dimension_numbers = #tpu.dot_dimension_numbers<[1], [0], [0], [1], [0, 0, 1, 1], [], []>} : vector<8x128xbf16>, vector<128x128xbf16>, vector<8x128xf32> -> vector<8x128xf32>
    %c2_46 = arith.constant 2 : index
    %c0_47 = arith.constant 0 : index
    %c0_48 = arith.constant 0 : index
    %65 = vector.load %arg4[%c2_46, %c0_47, %c0_48] : memref<21x1x128xf32, #tpu.memory_space<vmem>>, vector<1x1x128xf32>
    %66 = vector.shape_cast %65 : vector<1x1x128xf32> to vector<1x128xf32>
    %67 = vector.broadcast %66 : vector<1x128xf32> to vector<8x128xf32>
    %68 = arith.addf %64, %67 : vector<8x128xf32>
    %cst_49 = arith.constant 0.000000e+00 : f32
    %69 = vector.broadcast %cst_49 : f32 to vector<8x128xf32>
    %70 = arith.maximumf %68, %69 : vector<8x128xf32>
    %c2_50 = arith.constant 2 : index
    %c0_51 = arith.constant 0 : index
    %c0_52 = arith.constant 0 : index
    %71 = vector.load %arg3[%c2_50, %c0_51, %c0_52] : memref<22x128x128xbf16, #tpu.memory_space<vmem>>, vector<1x128x128xbf16>
    %72 = vector.shape_cast %71 : vector<1x128x128xbf16> to vector<128x128xbf16>
    %cst_53 = arith.constant dense<0.000000e+00> : vector<8x128xf32>
    %73 = tpu.matmul %61, %72, %cst_53 {dimension_numbers = #tpu.dot_dimension_numbers<[1], [0], [0], [1], [0, 0, 1, 1], [], []>} : vector<8x128xbf16>, vector<128x128xbf16>, vector<8x128xf32> -> vector<8x128xf32>
    %c3_54 = arith.constant 3 : index
    %c0_55 = arith.constant 0 : index
    %c0_56 = arith.constant 0 : index
    %74 = vector.load %arg4[%c3_54, %c0_55, %c0_56] : memref<21x1x128xf32, #tpu.memory_space<vmem>>, vector<1x1x128xf32>
    %75 = vector.shape_cast %74 : vector<1x1x128xf32> to vector<1x128xf32>
    %76 = vector.broadcast %75 : vector<1x128xf32> to vector<8x128xf32>
    %77 = arith.addf %73, %76 : vector<8x128xf32>
    %cst_57 = arith.constant 0.000000e+00 : f32
    %78 = vector.broadcast %cst_57 : f32 to vector<8x128xf32>
    %79 = arith.maximumf %77, %78 : vector<8x128xf32>
    %80 = arith.truncf %51 : vector<8x128xf32> to vector<8x128xbf16>
    %81 = arith.truncf %60 : vector<8x128xf32> to vector<8x128xbf16>
    %c3_58 = arith.constant 3 : index
    %c0_59 = arith.constant 0 : index
    %c0_60 = arith.constant 0 : index
    %82 = vector.load %arg3[%c3_58, %c0_59, %c0_60] : memref<22x128x128xbf16, #tpu.memory_space<vmem>>, vector<1x128x128xbf16>
    %83 = vector.shape_cast %82 : vector<1x128x128xbf16> to vector<128x128xbf16>
    %cst_61 = arith.constant dense<0.000000e+00> : vector<8x128xf32>
    %84 = tpu.matmul %80, %83, %cst_61 {dimension_numbers = #tpu.dot_dimension_numbers<[1], [0], [0], [1], [0, 0, 1, 1], [], []>} : vector<8x128xbf16>, vector<128x128xbf16>, vector<8x128xf32> -> vector<8x128xf32>
    %c4 = arith.constant 4 : index
    %c0_62 = arith.constant 0 : index
    %c0_63 = arith.constant 0 : index
    %85 = vector.load %arg3[%c4, %c0_62, %c0_63] : memref<22x128x128xbf16, #tpu.memory_space<vmem>>, vector<1x128x128xbf16>
    %86 = vector.shape_cast %85 : vector<1x128x128xbf16> to vector<128x128xbf16>
    %cst_64 = arith.constant dense<0.000000e+00> : vector<8x128xf32>
    %87 = tpu.matmul %81, %86, %cst_64 {dimension_numbers = #tpu.dot_dimension_numbers<[1], [0], [0], [1], [0, 0, 1, 1], [], []>} : vector<8x128xbf16>, vector<128x128xbf16>, vector<8x128xf32> -> vector<8x128xf32>
    %88 = arith.addf %84, %87 : vector<8x128xf32>
    %c4_65 = arith.constant 4 : index
    %c0_66 = arith.constant 0 : index
    %c0_67 = arith.constant 0 : index
    %89 = vector.load %arg4[%c4_65, %c0_66, %c0_67] : memref<21x1x128xf32, #tpu.memory_space<vmem>>, vector<1x1x128xf32>
    %90 = vector.shape_cast %89 : vector<1x1x128xf32> to vector<1x128xf32>
    %91 = vector.broadcast %90 : vector<1x128xf32> to vector<8x128xf32>
    %92 = arith.addf %88, %91 : vector<8x128xf32>
    %cst_68 = arith.constant 0.000000e+00 : f32
    %93 = vector.broadcast %cst_68 : f32 to vector<8x128xf32>
    %94 = arith.maximumf %92, %93 : vector<8x128xf32>
    %95 = arith.truncf %70 : vector<8x128xf32> to vector<8x128xbf16>
    %96 = arith.truncf %79 : vector<8x128xf32> to vector<8x128xbf16>
    %c3_69 = arith.constant 3 : index
    %c0_70 = arith.constant 0 : index
    %c0_71 = arith.constant 0 : index
    %97 = vector.load %arg3[%c3_69, %c0_70, %c0_71] : memref<22x128x128xbf16, #tpu.memory_space<vmem>>, vector<1x128x128xbf16>
    %98 = vector.shape_cast %97 : vector<1x128x128xbf16> to vector<128x128xbf16>
    %cst_72 = arith.constant dense<0.000000e+00> : vector<8x128xf32>
    %99 = tpu.matmul %95, %98, %cst_72 {dimension_numbers = #tpu.dot_dimension_numbers<[1], [0], [0], [1], [0, 0, 1, 1], [], []>} : vector<8x128xbf16>, vector<128x128xbf16>, vector<8x128xf32> -> vector<8x128xf32>
    %c4_73 = arith.constant 4 : index
    %c0_74 = arith.constant 0 : index
    %c0_75 = arith.constant 0 : index
    %100 = vector.load %arg3[%c4_73, %c0_74, %c0_75] : memref<22x128x128xbf16, #tpu.memory_space<vmem>>, vector<1x128x128xbf16>
    %101 = vector.shape_cast %100 : vector<1x128x128xbf16> to vector<128x128xbf16>
    %cst_76 = arith.constant dense<0.000000e+00> : vector<8x128xf32>
    %102 = tpu.matmul %96, %101, %cst_76 {dimension_numbers = #tpu.dot_dimension_numbers<[1], [0], [0], [1], [0, 0, 1, 1], [], []>} : vector<8x128xbf16>, vector<128x128xbf16>, vector<8x128xf32> -> vector<8x128xf32>
    %103 = arith.addf %99, %102 : vector<8x128xf32>
    %c4_77 = arith.constant 4 : index
    %c0_78 = arith.constant 0 : index
    %c0_79 = arith.constant 0 : index
    %104 = vector.load %arg4[%c4_77, %c0_78, %c0_79] : memref<21x1x128xf32, #tpu.memory_space<vmem>>, vector<1x1x128xf32>
    %105 = vector.shape_cast %104 : vector<1x1x128xf32> to vector<1x128xf32>
    %106 = vector.broadcast %105 : vector<1x128xf32> to vector<8x128xf32>
    %107 = arith.addf %103, %106 : vector<8x128xf32>
    %cst_80 = arith.constant 0.000000e+00 : f32
    %108 = vector.broadcast %cst_80 : f32 to vector<8x128xf32>
    %109 = arith.maximumf %107, %108 : vector<8x128xf32>
    %110 = arith.truncf %94 : vector<8x128xf32> to vector<8x128xbf16>
    %c5 = arith.constant 5 : index
    %c0_81 = arith.constant 0 : index
    %c0_82 = arith.constant 0 : index
    %111 = vector.load %arg3[%c5, %c0_81, %c0_82] : memref<22x128x128xbf16, #tpu.memory_space<vmem>>, vector<1x128x128xbf16>
    %112 = vector.shape_cast %111 : vector<1x128x128xbf16> to vector<128x128xbf16>
    %cst_83 = arith.constant dense<0.000000e+00> : vector<8x128xf32>
    %113 = tpu.matmul %110, %112, %cst_83 {dimension_numbers = #tpu.dot_dimension_numbers<[1], [0], [0], [1], [0, 0, 1, 1], [], []>} : vector<8x128xbf16>, vector<128x128xbf16>, vector<8x128xf32> -> vector<8x128xf32>
    %c5_84 = arith.constant 5 : index
    %c0_85 = arith.constant 0 : index
    %c0_86 = arith.constant 0 : index
    %114 = vector.load %arg4[%c5_84, %c0_85, %c0_86] : memref<21x1x128xf32, #tpu.memory_space<vmem>>, vector<1x1x128xf32>
    %115 = vector.shape_cast %114 : vector<1x1x128xf32> to vector<1x128xf32>
    %116 = vector.broadcast %115 : vector<1x128xf32> to vector<8x128xf32>
    %117 = arith.addf %113, %116 : vector<8x128xf32>
    %cst_87 = arith.constant 0.000000e+00 : f32
    %118 = vector.broadcast %cst_87 : f32 to vector<8x128xf32>
    %119 = arith.maximumf %117, %118 : vector<8x128xf32>
    %120 = arith.truncf %109 : vector<8x128xf32> to vector<8x128xbf16>
    %c5_88 = arith.constant 5 : index
    %c0_89 = arith.constant 0 : index
    %c0_90 = arith.constant 0 : index
    %121 = vector.load %arg3[%c5_88, %c0_89, %c0_90] : memref<22x128x128xbf16, #tpu.memory_space<vmem>>, vector<1x128x128xbf16>
    %122 = vector.shape_cast %121 : vector<1x128x128xbf16> to vector<128x128xbf16>
    %cst_91 = arith.constant dense<0.000000e+00> : vector<8x128xf32>
    %123 = tpu.matmul %120, %122, %cst_91 {dimension_numbers = #tpu.dot_dimension_numbers<[1], [0], [0], [1], [0, 0, 1, 1], [], []>} : vector<8x128xbf16>, vector<128x128xbf16>, vector<8x128xf32> -> vector<8x128xf32>
    %c5_92 = arith.constant 5 : index
    %c0_93 = arith.constant 0 : index
    %c0_94 = arith.constant 0 : index
    %124 = vector.load %arg4[%c5_92, %c0_93, %c0_94] : memref<21x1x128xf32, #tpu.memory_space<vmem>>, vector<1x1x128xf32>
    %125 = vector.shape_cast %124 : vector<1x1x128xf32> to vector<1x128xf32>
    %126 = vector.broadcast %125 : vector<1x128xf32> to vector<8x128xf32>
    %127 = arith.addf %123, %126 : vector<8x128xf32>
    %cst_95 = arith.constant 0.000000e+00 : f32
    %128 = vector.broadcast %cst_95 : f32 to vector<8x128xf32>
    %129 = arith.maximumf %127, %128 : vector<8x128xf32>
    %130 = arith.truncf %119 : vector<8x128xf32> to vector<8x128xbf16>
    %c6 = arith.constant 6 : index
    %c0_96 = arith.constant 0 : index
    %c0_97 = arith.constant 0 : index
    %131 = vector.load %arg3[%c6, %c0_96, %c0_97] : memref<22x128x128xbf16, #tpu.memory_space<vmem>>, vector<1x128x128xbf16>
    %132 = vector.shape_cast %131 : vector<1x128x128xbf16> to vector<128x128xbf16>
    %cst_98 = arith.constant dense<0.000000e+00> : vector<8x128xf32>
    %133 = tpu.matmul %130, %132, %cst_98 {dimension_numbers = #tpu.dot_dimension_numbers<[1], [0], [0], [1], [0, 0, 1, 1], [], []>} : vector<8x128xbf16>, vector<128x128xbf16>, vector<8x128xf32> -> vector<8x128xf32>
    %c6_99 = arith.constant 6 : index
    %c0_100 = arith.constant 0 : index
    %c0_101 = arith.constant 0 : index
    %134 = vector.load %arg4[%c6_99, %c0_100, %c0_101] : memref<21x1x128xf32, #tpu.memory_space<vmem>>, vector<1x1x128xf32>
    %135 = vector.shape_cast %134 : vector<1x1x128xf32> to vector<1x128xf32>
    %136 = vector.broadcast %135 : vector<1x128xf32> to vector<8x128xf32>
    %137 = arith.addf %133, %136 : vector<8x128xf32>
    %cst_102 = arith.constant 0.000000e+00 : f32
    %138 = vector.broadcast %cst_102 : f32 to vector<8x128xf32>
    %139 = arith.maximumf %137, %138 : vector<8x128xf32>
    %140 = arith.truncf %129 : vector<8x128xf32> to vector<8x128xbf16>
    %c6_103 = arith.constant 6 : index
    %c0_104 = arith.constant 0 : index
    %c0_105 = arith.constant 0 : index
    %141 = vector.load %arg3[%c6_103, %c0_104, %c0_105] : memref<22x128x128xbf16, #tpu.memory_space<vmem>>, vector<1x128x128xbf16>
    %142 = vector.shape_cast %141 : vector<1x128x128xbf16> to vector<128x128xbf16>
    %cst_106 = arith.constant dense<0.000000e+00> : vector<8x128xf32>
    %143 = tpu.matmul %140, %142, %cst_106 {dimension_numbers = #tpu.dot_dimension_numbers<[1], [0], [0], [1], [0, 0, 1, 1], [], []>} : vector<8x128xbf16>, vector<128x128xbf16>, vector<8x128xf32> -> vector<8x128xf32>
    %c6_107 = arith.constant 6 : index
    %c0_108 = arith.constant 0 : index
    %c0_109 = arith.constant 0 : index
    %144 = vector.load %arg4[%c6_107, %c0_108, %c0_109] : memref<21x1x128xf32, #tpu.memory_space<vmem>>, vector<1x1x128xf32>
    %145 = vector.shape_cast %144 : vector<1x1x128xf32> to vector<1x128xf32>
    %146 = vector.broadcast %145 : vector<1x128xf32> to vector<8x128xf32>
    %147 = arith.addf %143, %146 : vector<8x128xf32>
    %cst_110 = arith.constant 0.000000e+00 : f32
    %148 = vector.broadcast %cst_110 : f32 to vector<8x128xf32>
    %149 = arith.maximumf %147, %148 : vector<8x128xf32>
    %150 = arith.truncf %139 : vector<8x128xf32> to vector<8x128xbf16>
    %c7 = arith.constant 7 : index
    %c0_111 = arith.constant 0 : index
    %c0_112 = arith.constant 0 : index
    %151 = vector.load %arg3[%c7, %c0_111, %c0_112] : memref<22x128x128xbf16, #tpu.memory_space<vmem>>, vector<1x128x128xbf16>
    %152 = vector.shape_cast %151 : vector<1x128x128xbf16> to vector<128x128xbf16>
    %cst_113 = arith.constant dense<0.000000e+00> : vector<8x128xf32>
    %153 = tpu.matmul %150, %152, %cst_113 {dimension_numbers = #tpu.dot_dimension_numbers<[1], [0], [0], [1], [0, 0, 1, 1], [], []>} : vector<8x128xbf16>, vector<128x128xbf16>, vector<8x128xf32> -> vector<8x128xf32>
    %c7_114 = arith.constant 7 : index
    %c0_115 = arith.constant 0 : index
    %c0_116 = arith.constant 0 : index
    %154 = vector.load %arg4[%c7_114, %c0_115, %c0_116] : memref<21x1x128xf32, #tpu.memory_space<vmem>>, vector<1x1x128xf32>
    %155 = vector.shape_cast %154 : vector<1x1x128xf32> to vector<1x128xf32>
    %156 = vector.broadcast %155 : vector<1x128xf32> to vector<8x128xf32>
    %157 = arith.addf %153, %156 : vector<8x128xf32>
    %cst_117 = arith.constant 0.000000e+00 : f32
    %158 = vector.broadcast %cst_117 : f32 to vector<8x128xf32>
    %159 = arith.maximumf %157, %158 : vector<8x128xf32>
    %160 = arith.truncf %149 : vector<8x128xf32> to vector<8x128xbf16>
    %c7_118 = arith.constant 7 : index
    %c0_119 = arith.constant 0 : index
    %c0_120 = arith.constant 0 : index
    %161 = vector.load %arg3[%c7_118, %c0_119, %c0_120] : memref<22x128x128xbf16, #tpu.memory_space<vmem>>, vector<1x128x128xbf16>
    %162 = vector.shape_cast %161 : vector<1x128x128xbf16> to vector<128x128xbf16>
    %cst_121 = arith.constant dense<0.000000e+00> : vector<8x128xf32>
    %163 = tpu.matmul %160, %162, %cst_121 {dimension_numbers = #tpu.dot_dimension_numbers<[1], [0], [0], [1], [0, 0, 1, 1], [], []>} : vector<8x128xbf16>, vector<128x128xbf16>, vector<8x128xf32> -> vector<8x128xf32>
    %c7_122 = arith.constant 7 : index
    %c0_123 = arith.constant 0 : index
    %c0_124 = arith.constant 0 : index
    %164 = vector.load %arg4[%c7_122, %c0_123, %c0_124] : memref<21x1x128xf32, #tpu.memory_space<vmem>>, vector<1x1x128xf32>
    %165 = vector.shape_cast %164 : vector<1x1x128xf32> to vector<1x128xf32>
    %166 = vector.broadcast %165 : vector<1x128xf32> to vector<8x128xf32>
    %167 = arith.addf %163, %166 : vector<8x128xf32>
    %cst_125 = arith.constant 0.000000e+00 : f32
    %168 = vector.broadcast %cst_125 : f32 to vector<8x128xf32>
    %169 = arith.maximumf %167, %168 : vector<8x128xf32>
    %170 = arith.truncf %159 : vector<8x128xf32> to vector<8x128xbf16>
    %c8_126 = arith.constant 8 : index
    %c0_127 = arith.constant 0 : index
    %c0_128 = arith.constant 0 : index
    %171 = vector.load %arg3[%c8_126, %c0_127, %c0_128] : memref<22x128x128xbf16, #tpu.memory_space<vmem>>, vector<1x128x128xbf16>
    %172 = vector.shape_cast %171 : vector<1x128x128xbf16> to vector<128x128xbf16>
    %cst_129 = arith.constant dense<0.000000e+00> : vector<8x128xf32>
    %173 = tpu.matmul %170, %172, %cst_129 {dimension_numbers = #tpu.dot_dimension_numbers<[1], [0], [0], [1], [0, 0, 1, 1], [], []>} : vector<8x128xbf16>, vector<128x128xbf16>, vector<8x128xf32> -> vector<8x128xf32>
    %c8_130 = arith.constant 8 : index
    %c0_131 = arith.constant 0 : index
    %c0_132 = arith.constant 0 : index
    %174 = vector.load %arg4[%c8_130, %c0_131, %c0_132] : memref<21x1x128xf32, #tpu.memory_space<vmem>>, vector<1x1x128xf32>
    %175 = vector.shape_cast %174 : vector<1x1x128xf32> to vector<1x128xf32>
    %176 = vector.broadcast %175 : vector<1x128xf32> to vector<8x128xf32>
    %177 = arith.addf %173, %176 : vector<8x128xf32>
    %cst_133 = arith.constant 0.000000e+00 : f32
    %178 = vector.broadcast %cst_133 : f32 to vector<8x128xf32>
    %179 = arith.maximumf %177, %178 : vector<8x128xf32>
    %180 = arith.truncf %169 : vector<8x128xf32> to vector<8x128xbf16>
    %c8_134 = arith.constant 8 : index
    %c0_135 = arith.constant 0 : index
    %c0_136 = arith.constant 0 : index
    %181 = vector.load %arg3[%c8_134, %c0_135, %c0_136] : memref<22x128x128xbf16, #tpu.memory_space<vmem>>, vector<1x128x128xbf16>
    %182 = vector.shape_cast %181 : vector<1x128x128xbf16> to vector<128x128xbf16>
    %cst_137 = arith.constant dense<0.000000e+00> : vector<8x128xf32>
    %183 = tpu.matmul %180, %182, %cst_137 {dimension_numbers = #tpu.dot_dimension_numbers<[1], [0], [0], [1], [0, 0, 1, 1], [], []>} : vector<8x128xbf16>, vector<128x128xbf16>, vector<8x128xf32> -> vector<8x128xf32>
    %c8_138 = arith.constant 8 : index
    %c0_139 = arith.constant 0 : index
    %c0_140 = arith.constant 0 : index
    %184 = vector.load %arg4[%c8_138, %c0_139, %c0_140] : memref<21x1x128xf32, #tpu.memory_space<vmem>>, vector<1x1x128xf32>
    %185 = vector.shape_cast %184 : vector<1x1x128xf32> to vector<1x128xf32>
    %186 = vector.broadcast %185 : vector<1x128xf32> to vector<8x128xf32>
    %187 = arith.addf %183, %186 : vector<8x128xf32>
    %cst_141 = arith.constant 0.000000e+00 : f32
    %188 = vector.broadcast %cst_141 : f32 to vector<8x128xf32>
    %189 = arith.maximumf %187, %188 : vector<8x128xf32>
    %190 = arith.truncf %179 : vector<8x128xf32> to vector<8x128xbf16>
    %c9 = arith.constant 9 : index
    %c0_142 = arith.constant 0 : index
    %c0_143 = arith.constant 0 : index
    %191 = vector.load %arg3[%c9, %c0_142, %c0_143] : memref<22x128x128xbf16, #tpu.memory_space<vmem>>, vector<1x128x128xbf16>
    %192 = vector.shape_cast %191 : vector<1x128x128xbf16> to vector<128x128xbf16>
    %cst_144 = arith.constant dense<0.000000e+00> : vector<8x128xf32>
    %193 = tpu.matmul %190, %192, %cst_144 {dimension_numbers = #tpu.dot_dimension_numbers<[1], [0], [0], [1], [0, 0, 1, 1], [], []>} : vector<8x128xbf16>, vector<128x128xbf16>, vector<8x128xf32> -> vector<8x128xf32>
    %c9_145 = arith.constant 9 : index
    %c0_146 = arith.constant 0 : index
    %c0_147 = arith.constant 0 : index
    %194 = vector.load %arg4[%c9_145, %c0_146, %c0_147] : memref<21x1x128xf32, #tpu.memory_space<vmem>>, vector<1x1x128xf32>
    %195 = vector.shape_cast %194 : vector<1x1x128xf32> to vector<1x128xf32>
    %196 = vector.broadcast %195 : vector<1x128xf32> to vector<8x128xf32>
    %197 = arith.addf %193, %196 : vector<8x128xf32>
    %cst_148 = arith.constant 0.000000e+00 : f32
    %198 = vector.broadcast %cst_148 : f32 to vector<8x128xf32>
    %199 = arith.maximumf %197, %198 : vector<8x128xf32>
    %200 = arith.truncf %189 : vector<8x128xf32> to vector<8x128xbf16>
    %c9_149 = arith.constant 9 : index
    %c0_150 = arith.constant 0 : index
    %c0_151 = arith.constant 0 : index
    %201 = vector.load %arg3[%c9_149, %c0_150, %c0_151] : memref<22x128x128xbf16, #tpu.memory_space<vmem>>, vector<1x128x128xbf16>
    %202 = vector.shape_cast %201 : vector<1x128x128xbf16> to vector<128x128xbf16>
    %cst_152 = arith.constant dense<0.000000e+00> : vector<8x128xf32>
    %203 = tpu.matmul %200, %202, %cst_152 {dimension_numbers = #tpu.dot_dimension_numbers<[1], [0], [0], [1], [0, 0, 1, 1], [], []>} : vector<8x128xbf16>, vector<128x128xbf16>, vector<8x128xf32> -> vector<8x128xf32>
    %c9_153 = arith.constant 9 : index
    %c0_154 = arith.constant 0 : index
    %c0_155 = arith.constant 0 : index
    %204 = vector.load %arg4[%c9_153, %c0_154, %c0_155] : memref<21x1x128xf32, #tpu.memory_space<vmem>>, vector<1x1x128xf32>
    %205 = vector.shape_cast %204 : vector<1x1x128xf32> to vector<1x128xf32>
    %206 = vector.broadcast %205 : vector<1x128xf32> to vector<8x128xf32>
    %207 = arith.addf %203, %206 : vector<8x128xf32>
    %cst_156 = arith.constant 0.000000e+00 : f32
    %208 = vector.broadcast %cst_156 : f32 to vector<8x128xf32>
    %209 = arith.maximumf %207, %208 : vector<8x128xf32>
    %210 = arith.truncf %199 : vector<8x128xf32> to vector<8x128xbf16>
    %c10 = arith.constant 10 : index
    %c0_157 = arith.constant 0 : index
    %c0_158 = arith.constant 0 : index
    %211 = vector.load %arg3[%c10, %c0_157, %c0_158] : memref<22x128x128xbf16, #tpu.memory_space<vmem>>, vector<1x128x128xbf16>
    %212 = vector.shape_cast %211 : vector<1x128x128xbf16> to vector<128x128xbf16>
    %cst_159 = arith.constant dense<0.000000e+00> : vector<8x128xf32>
    %213 = tpu.matmul %210, %212, %cst_159 {dimension_numbers = #tpu.dot_dimension_numbers<[1], [0], [0], [1], [0, 0, 1, 1], [], []>} : vector<8x128xbf16>, vector<128x128xbf16>, vector<8x128xf32> -> vector<8x128xf32>
    %c10_160 = arith.constant 10 : index
    %c0_161 = arith.constant 0 : index
    %c0_162 = arith.constant 0 : index
    %214 = vector.load %arg4[%c10_160, %c0_161, %c0_162] : memref<21x1x128xf32, #tpu.memory_space<vmem>>, vector<1x1x128xf32>
    %215 = vector.shape_cast %214 : vector<1x1x128xf32> to vector<1x128xf32>
    %216 = vector.broadcast %215 : vector<1x128xf32> to vector<8x128xf32>
    %217 = arith.addf %213, %216 : vector<8x128xf32>
    %cst_163 = arith.constant 0.000000e+00 : f32
    %218 = vector.broadcast %cst_163 : f32 to vector<8x128xf32>
    %219 = arith.maximumf %217, %218 : vector<8x128xf32>
    %220 = arith.truncf %209 : vector<8x128xf32> to vector<8x128xbf16>
    %c10_164 = arith.constant 10 : index
    %c0_165 = arith.constant 0 : index
    %c0_166 = arith.constant 0 : index
    %221 = vector.load %arg3[%c10_164, %c0_165, %c0_166] : memref<22x128x128xbf16, #tpu.memory_space<vmem>>, vector<1x128x128xbf16>
    %222 = vector.shape_cast %221 : vector<1x128x128xbf16> to vector<128x128xbf16>
    %cst_167 = arith.constant dense<0.000000e+00> : vector<8x128xf32>
    %223 = tpu.matmul %220, %222, %cst_167 {dimension_numbers = #tpu.dot_dimension_numbers<[1], [0], [0], [1], [0, 0, 1, 1], [], []>} : vector<8x128xbf16>, vector<128x128xbf16>, vector<8x128xf32> -> vector<8x128xf32>
    %c10_168 = arith.constant 10 : index
    %c0_169 = arith.constant 0 : index
    %c0_170 = arith.constant 0 : index
    %224 = vector.load %arg4[%c10_168, %c0_169, %c0_170] : memref<21x1x128xf32, #tpu.memory_space<vmem>>, vector<1x1x128xf32>
    %225 = vector.shape_cast %224 : vector<1x1x128xf32> to vector<1x128xf32>
    %226 = vector.broadcast %225 : vector<1x128xf32> to vector<8x128xf32>
    %227 = arith.addf %223, %226 : vector<8x128xf32>
    %cst_171 = arith.constant 0.000000e+00 : f32
    %228 = vector.broadcast %cst_171 : f32 to vector<8x128xf32>
    %229 = arith.maximumf %227, %228 : vector<8x128xf32>
    %230 = arith.truncf %219 : vector<8x128xf32> to vector<8x128xbf16>
    %c11 = arith.constant 11 : index
    %c0_172 = arith.constant 0 : index
    %c0_173 = arith.constant 0 : index
    %231 = vector.load %arg3[%c11, %c0_172, %c0_173] : memref<22x128x128xbf16, #tpu.memory_space<vmem>>, vector<1x128x128xbf16>
    %232 = vector.shape_cast %231 : vector<1x128x128xbf16> to vector<128x128xbf16>
    %cst_174 = arith.constant dense<0.000000e+00> : vector<8x128xf32>
    %233 = tpu.matmul %230, %232, %cst_174 {dimension_numbers = #tpu.dot_dimension_numbers<[1], [0], [0], [1], [0, 0, 1, 1], [], []>} : vector<8x128xbf16>, vector<128x128xbf16>, vector<8x128xf32> -> vector<8x128xf32>
    %c11_175 = arith.constant 11 : index
    %c0_176 = arith.constant 0 : index
    %c0_177 = arith.constant 0 : index
    %234 = vector.load %arg4[%c11_175, %c0_176, %c0_177] : memref<21x1x128xf32, #tpu.memory_space<vmem>>, vector<1x1x128xf32>
    %235 = vector.shape_cast %234 : vector<1x1x128xf32> to vector<1x128xf32>
    %236 = vector.broadcast %235 : vector<1x128xf32> to vector<8x128xf32>
    %237 = arith.addf %233, %236 : vector<8x128xf32>
    %cst_178 = arith.constant 0.000000e+00 : f32
    %238 = vector.broadcast %cst_178 : f32 to vector<8x128xf32>
    %239 = arith.maximumf %237, %238 : vector<8x128xf32>
    %c12 = arith.constant 12 : index
    %c0_179 = arith.constant 0 : index
    %c0_180 = arith.constant 0 : index
    %240 = vector.load %arg3[%c12, %c0_179, %c0_180] : memref<22x128x128xbf16, #tpu.memory_space<vmem>>, vector<1x128x128xbf16>
    %241 = vector.shape_cast %240 : vector<1x128x128xbf16> to vector<128x128xbf16>
    %cst_181 = arith.constant dense<0.000000e+00> : vector<8x128xf32>
    %242 = tpu.matmul %230, %241, %cst_181 {dimension_numbers = #tpu.dot_dimension_numbers<[1], [0], [0], [1], [0, 0, 1, 1], [], []>} : vector<8x128xbf16>, vector<128x128xbf16>, vector<8x128xf32> -> vector<8x128xf32>
    %c12_182 = arith.constant 12 : index
    %c0_183 = arith.constant 0 : index
    %c0_184 = arith.constant 0 : index
    %243 = vector.load %arg4[%c12_182, %c0_183, %c0_184] : memref<21x1x128xf32, #tpu.memory_space<vmem>>, vector<1x1x128xf32>
    %244 = vector.shape_cast %243 : vector<1x1x128xf32> to vector<1x128xf32>
    %245 = vector.broadcast %244 : vector<1x128xf32> to vector<8x128xf32>
    %246 = arith.addf %242, %245 : vector<8x128xf32>
    %cst_185 = arith.constant 0.000000e+00 : f32
    %247 = vector.broadcast %cst_185 : f32 to vector<8x128xf32>
    %248 = arith.maximumf %246, %247 : vector<8x128xf32>
    %249 = arith.truncf %229 : vector<8x128xf32> to vector<8x128xbf16>
    %c11_186 = arith.constant 11 : index
    %c0_187 = arith.constant 0 : index
    %c0_188 = arith.constant 0 : index
    %250 = vector.load %arg3[%c11_186, %c0_187, %c0_188] : memref<22x128x128xbf16, #tpu.memory_space<vmem>>, vector<1x128x128xbf16>
    %251 = vector.shape_cast %250 : vector<1x128x128xbf16> to vector<128x128xbf16>
    %cst_189 = arith.constant dense<0.000000e+00> : vector<8x128xf32>
    %252 = tpu.matmul %249, %251, %cst_189 {dimension_numbers = #tpu.dot_dimension_numbers<[1], [0], [0], [1], [0, 0, 1, 1], [], []>} : vector<8x128xbf16>, vector<128x128xbf16>, vector<8x128xf32> -> vector<8x128xf32>
    %c11_190 = arith.constant 11 : index
    %c0_191 = arith.constant 0 : index
    %c0_192 = arith.constant 0 : index
    %253 = vector.load %arg4[%c11_190, %c0_191, %c0_192] : memref<21x1x128xf32, #tpu.memory_space<vmem>>, vector<1x1x128xf32>
    %254 = vector.shape_cast %253 : vector<1x1x128xf32> to vector<1x128xf32>
    %255 = vector.broadcast %254 : vector<1x128xf32> to vector<8x128xf32>
    %256 = arith.addf %252, %255 : vector<8x128xf32>
    %cst_193 = arith.constant 0.000000e+00 : f32
    %257 = vector.broadcast %cst_193 : f32 to vector<8x128xf32>
    %258 = arith.maximumf %256, %257 : vector<8x128xf32>
    %c12_194 = arith.constant 12 : index
    %c0_195 = arith.constant 0 : index
    %c0_196 = arith.constant 0 : index
    %259 = vector.load %arg3[%c12_194, %c0_195, %c0_196] : memref<22x128x128xbf16, #tpu.memory_space<vmem>>, vector<1x128x128xbf16>
    %260 = vector.shape_cast %259 : vector<1x128x128xbf16> to vector<128x128xbf16>
    %cst_197 = arith.constant dense<0.000000e+00> : vector<8x128xf32>
    %261 = tpu.matmul %249, %260, %cst_197 {dimension_numbers = #tpu.dot_dimension_numbers<[1], [0], [0], [1], [0, 0, 1, 1], [], []>} : vector<8x128xbf16>, vector<128x128xbf16>, vector<8x128xf32> -> vector<8x128xf32>
    %c12_198 = arith.constant 12 : index
    %c0_199 = arith.constant 0 : index
    %c0_200 = arith.constant 0 : index
    %262 = vector.load %arg4[%c12_198, %c0_199, %c0_200] : memref<21x1x128xf32, #tpu.memory_space<vmem>>, vector<1x1x128xf32>
    %263 = vector.shape_cast %262 : vector<1x1x128xf32> to vector<1x128xf32>
    %264 = vector.broadcast %263 : vector<1x128xf32> to vector<8x128xf32>
    %265 = arith.addf %261, %264 : vector<8x128xf32>
    %cst_201 = arith.constant 0.000000e+00 : f32
    %266 = vector.broadcast %cst_201 : f32 to vector<8x128xf32>
    %267 = arith.maximumf %265, %266 : vector<8x128xf32>
    %268 = arith.truncf %239 : vector<8x128xf32> to vector<8x128xbf16>
    %269 = arith.truncf %248 : vector<8x128xf32> to vector<8x128xbf16>
    %c13 = arith.constant 13 : index
    %c0_202 = arith.constant 0 : index
    %c0_203 = arith.constant 0 : index
    %270 = vector.load %arg3[%c13, %c0_202, %c0_203] : memref<22x128x128xbf16, #tpu.memory_space<vmem>>, vector<1x128x128xbf16>
    %271 = vector.shape_cast %270 : vector<1x128x128xbf16> to vector<128x128xbf16>
    %cst_204 = arith.constant dense<0.000000e+00> : vector<8x128xf32>
    %272 = tpu.matmul %268, %271, %cst_204 {dimension_numbers = #tpu.dot_dimension_numbers<[1], [0], [0], [1], [0, 0, 1, 1], [], []>} : vector<8x128xbf16>, vector<128x128xbf16>, vector<8x128xf32> -> vector<8x128xf32>
    %c14 = arith.constant 14 : index
    %c0_205 = arith.constant 0 : index
    %c0_206 = arith.constant 0 : index
    %273 = vector.load %arg3[%c14, %c0_205, %c0_206] : memref<22x128x128xbf16, #tpu.memory_space<vmem>>, vector<1x128x128xbf16>
    %274 = vector.shape_cast %273 : vector<1x128x128xbf16> to vector<128x128xbf16>
    %cst_207 = arith.constant dense<0.000000e+00> : vector<8x128xf32>
    %275 = tpu.matmul %269, %274, %cst_207 {dimension_numbers = #tpu.dot_dimension_numbers<[1], [0], [0], [1], [0, 0, 1, 1], [], []>} : vector<8x128xbf16>, vector<128x128xbf16>, vector<8x128xf32> -> vector<8x128xf32>
    %276 = arith.addf %272, %275 : vector<8x128xf32>
    %c13_208 = arith.constant 13 : index
    %c0_209 = arith.constant 0 : index
    %c0_210 = arith.constant 0 : index
    %277 = vector.load %arg4[%c13_208, %c0_209, %c0_210] : memref<21x1x128xf32, #tpu.memory_space<vmem>>, vector<1x1x128xf32>
    %278 = vector.shape_cast %277 : vector<1x1x128xf32> to vector<1x128xf32>
    %279 = vector.broadcast %278 : vector<1x128xf32> to vector<8x128xf32>
    %280 = arith.addf %276, %279 : vector<8x128xf32>
    %cst_211 = arith.constant 0.000000e+00 : f32
    %281 = vector.broadcast %cst_211 : f32 to vector<8x128xf32>
    %282 = arith.maximumf %280, %281 : vector<8x128xf32>
    %283 = arith.truncf %258 : vector<8x128xf32> to vector<8x128xbf16>
    %284 = arith.truncf %267 : vector<8x128xf32> to vector<8x128xbf16>
    %c13_212 = arith.constant 13 : index
    %c0_213 = arith.constant 0 : index
    %c0_214 = arith.constant 0 : index
    %285 = vector.load %arg3[%c13_212, %c0_213, %c0_214] : memref<22x128x128xbf16, #tpu.memory_space<vmem>>, vector<1x128x128xbf16>
    %286 = vector.shape_cast %285 : vector<1x128x128xbf16> to vector<128x128xbf16>
    %cst_215 = arith.constant dense<0.000000e+00> : vector<8x128xf32>
    %287 = tpu.matmul %283, %286, %cst_215 {dimension_numbers = #tpu.dot_dimension_numbers<[1], [0], [0], [1], [0, 0, 1, 1], [], []>} : vector<8x128xbf16>, vector<128x128xbf16>, vector<8x128xf32> -> vector<8x128xf32>
    %c14_216 = arith.constant 14 : index
    %c0_217 = arith.constant 0 : index
    %c0_218 = arith.constant 0 : index
    %288 = vector.load %arg3[%c14_216, %c0_217, %c0_218] : memref<22x128x128xbf16, #tpu.memory_space<vmem>>, vector<1x128x128xbf16>
    %289 = vector.shape_cast %288 : vector<1x128x128xbf16> to vector<128x128xbf16>
    %cst_219 = arith.constant dense<0.000000e+00> : vector<8x128xf32>
    %290 = tpu.matmul %284, %289, %cst_219 {dimension_numbers = #tpu.dot_dimension_numbers<[1], [0], [0], [1], [0, 0, 1, 1], [], []>} : vector<8x128xbf16>, vector<128x128xbf16>, vector<8x128xf32> -> vector<8x128xf32>
    %291 = arith.addf %287, %290 : vector<8x128xf32>
    %c13_220 = arith.constant 13 : index
    %c0_221 = arith.constant 0 : index
    %c0_222 = arith.constant 0 : index
    %292 = vector.load %arg4[%c13_220, %c0_221, %c0_222] : memref<21x1x128xf32, #tpu.memory_space<vmem>>, vector<1x1x128xf32>
    %293 = vector.shape_cast %292 : vector<1x1x128xf32> to vector<1x128xf32>
    %294 = vector.broadcast %293 : vector<1x128xf32> to vector<8x128xf32>
    %295 = arith.addf %291, %294 : vector<8x128xf32>
    %cst_223 = arith.constant 0.000000e+00 : f32
    %296 = vector.broadcast %cst_223 : f32 to vector<8x128xf32>
    %297 = arith.maximumf %295, %296 : vector<8x128xf32>
    %298 = arith.truncf %282 : vector<8x128xf32> to vector<8x128xbf16>
    %c15 = arith.constant 15 : index
    %c0_224 = arith.constant 0 : index
    %c0_225 = arith.constant 0 : index
    %299 = vector.load %arg3[%c15, %c0_224, %c0_225] : memref<22x128x128xbf16, #tpu.memory_space<vmem>>, vector<1x128x128xbf16>
    %300 = vector.shape_cast %299 : vector<1x128x128xbf16> to vector<128x128xbf16>
    %cst_226 = arith.constant dense<0.000000e+00> : vector<8x128xf32>
    %301 = tpu.matmul %298, %300, %cst_226 {dimension_numbers = #tpu.dot_dimension_numbers<[1], [0], [0], [1], [0, 0, 1, 1], [], []>} : vector<8x128xbf16>, vector<128x128xbf16>, vector<8x128xf32> -> vector<8x128xf32>
    %c14_227 = arith.constant 14 : index
    %c0_228 = arith.constant 0 : index
    %c0_229 = arith.constant 0 : index
    %302 = vector.load %arg4[%c14_227, %c0_228, %c0_229] : memref<21x1x128xf32, #tpu.memory_space<vmem>>, vector<1x1x128xf32>
    %303 = vector.shape_cast %302 : vector<1x1x128xf32> to vector<1x128xf32>
    %304 = vector.broadcast %303 : vector<1x128xf32> to vector<8x128xf32>
    %305 = arith.addf %301, %304 : vector<8x128xf32>
    %cst_230 = arith.constant 0.000000e+00 : f32
    %306 = vector.broadcast %cst_230 : f32 to vector<8x128xf32>
    %307 = arith.maximumf %305, %306 : vector<8x128xf32>
    %308 = arith.truncf %297 : vector<8x128xf32> to vector<8x128xbf16>
    %c15_231 = arith.constant 15 : index
    %c0_232 = arith.constant 0 : index
    %c0_233 = arith.constant 0 : index
    %309 = vector.load %arg3[%c15_231, %c0_232, %c0_233] : memref<22x128x128xbf16, #tpu.memory_space<vmem>>, vector<1x128x128xbf16>
    %310 = vector.shape_cast %309 : vector<1x128x128xbf16> to vector<128x128xbf16>
    %cst_234 = arith.constant dense<0.000000e+00> : vector<8x128xf32>
    %311 = tpu.matmul %308, %310, %cst_234 {dimension_numbers = #tpu.dot_dimension_numbers<[1], [0], [0], [1], [0, 0, 1, 1], [], []>} : vector<8x128xbf16>, vector<128x128xbf16>, vector<8x128xf32> -> vector<8x128xf32>
    %c14_235 = arith.constant 14 : index
    %c0_236 = arith.constant 0 : index
    %c0_237 = arith.constant 0 : index
    %312 = vector.load %arg4[%c14_235, %c0_236, %c0_237] : memref<21x1x128xf32, #tpu.memory_space<vmem>>, vector<1x1x128xf32>
    %313 = vector.shape_cast %312 : vector<1x1x128xf32> to vector<1x128xf32>
    %314 = vector.broadcast %313 : vector<1x128xf32> to vector<8x128xf32>
    %315 = arith.addf %311, %314 : vector<8x128xf32>
    %cst_238 = arith.constant 0.000000e+00 : f32
    %316 = vector.broadcast %cst_238 : f32 to vector<8x128xf32>
    %317 = arith.maximumf %315, %316 : vector<8x128xf32>
    %318 = arith.truncf %307 : vector<8x128xf32> to vector<8x128xbf16>
    %c16 = arith.constant 16 : index
    %c0_239 = arith.constant 0 : index
    %c0_240 = arith.constant 0 : index
    %319 = vector.load %arg3[%c16, %c0_239, %c0_240] : memref<22x128x128xbf16, #tpu.memory_space<vmem>>, vector<1x128x128xbf16>
    %320 = vector.shape_cast %319 : vector<1x128x128xbf16> to vector<128x128xbf16>
    %cst_241 = arith.constant dense<0.000000e+00> : vector<8x128xf32>
    %321 = tpu.matmul %318, %320, %cst_241 {dimension_numbers = #tpu.dot_dimension_numbers<[1], [0], [0], [1], [0, 0, 1, 1], [], []>} : vector<8x128xbf16>, vector<128x128xbf16>, vector<8x128xf32> -> vector<8x128xf32>
    %c15_242 = arith.constant 15 : index
    %c0_243 = arith.constant 0 : index
    %c0_244 = arith.constant 0 : index
    %322 = vector.load %arg4[%c15_242, %c0_243, %c0_244] : memref<21x1x128xf32, #tpu.memory_space<vmem>>, vector<1x1x128xf32>
    %323 = vector.shape_cast %322 : vector<1x1x128xf32> to vector<1x128xf32>
    %324 = vector.broadcast %323 : vector<1x128xf32> to vector<8x128xf32>
    %325 = arith.addf %321, %324 : vector<8x128xf32>
    %cst_245 = arith.constant 0.000000e+00 : f32
    %326 = vector.broadcast %cst_245 : f32 to vector<8x128xf32>
    %327 = arith.maximumf %325, %326 : vector<8x128xf32>
    %328 = arith.truncf %317 : vector<8x128xf32> to vector<8x128xbf16>
    %c16_246 = arith.constant 16 : index
    %c0_247 = arith.constant 0 : index
    %c0_248 = arith.constant 0 : index
    %329 = vector.load %arg3[%c16_246, %c0_247, %c0_248] : memref<22x128x128xbf16, #tpu.memory_space<vmem>>, vector<1x128x128xbf16>
    %330 = vector.shape_cast %329 : vector<1x128x128xbf16> to vector<128x128xbf16>
    %cst_249 = arith.constant dense<0.000000e+00> : vector<8x128xf32>
    %331 = tpu.matmul %328, %330, %cst_249 {dimension_numbers = #tpu.dot_dimension_numbers<[1], [0], [0], [1], [0, 0, 1, 1], [], []>} : vector<8x128xbf16>, vector<128x128xbf16>, vector<8x128xf32> -> vector<8x128xf32>
    %c15_250 = arith.constant 15 : index
    %c0_251 = arith.constant 0 : index
    %c0_252 = arith.constant 0 : index
    %332 = vector.load %arg4[%c15_250, %c0_251, %c0_252] : memref<21x1x128xf32, #tpu.memory_space<vmem>>, vector<1x1x128xf32>
    %333 = vector.shape_cast %332 : vector<1x1x128xf32> to vector<1x128xf32>
    %334 = vector.broadcast %333 : vector<1x128xf32> to vector<8x128xf32>
    %335 = arith.addf %331, %334 : vector<8x128xf32>
    %cst_253 = arith.constant 0.000000e+00 : f32
    %336 = vector.broadcast %cst_253 : f32 to vector<8x128xf32>
    %337 = arith.maximumf %335, %336 : vector<8x128xf32>
    %338 = arith.truncf %327 : vector<8x128xf32> to vector<8x128xbf16>
    %c17 = arith.constant 17 : index
    %c0_254 = arith.constant 0 : index
    %c0_255 = arith.constant 0 : index
    %339 = vector.load %arg3[%c17, %c0_254, %c0_255] : memref<22x128x128xbf16, #tpu.memory_space<vmem>>, vector<1x128x128xbf16>
    %340 = vector.shape_cast %339 : vector<1x128x128xbf16> to vector<128x128xbf16>
    %cst_256 = arith.constant dense<0.000000e+00> : vector<8x128xf32>
    %341 = tpu.matmul %338, %340, %cst_256 {dimension_numbers = #tpu.dot_dimension_numbers<[1], [0], [0], [1], [0, 0, 1, 1], [], []>} : vector<8x128xbf16>, vector<128x128xbf16>, vector<8x128xf32> -> vector<8x128xf32>
    %c16_257 = arith.constant 16 : index
    %c0_258 = arith.constant 0 : index
    %c0_259 = arith.constant 0 : index
    %342 = vector.load %arg4[%c16_257, %c0_258, %c0_259] : memref<21x1x128xf32, #tpu.memory_space<vmem>>, vector<1x1x128xf32>
    %343 = vector.shape_cast %342 : vector<1x1x128xf32> to vector<1x128xf32>
    %344 = vector.broadcast %343 : vector<1x128xf32> to vector<8x128xf32>
    %345 = arith.addf %341, %344 : vector<8x128xf32>
    %cst_260 = arith.constant 0.000000e+00 : f32
    %346 = vector.broadcast %cst_260 : f32 to vector<8x128xf32>
    %347 = arith.maximumf %345, %346 : vector<8x128xf32>
    %348 = arith.truncf %337 : vector<8x128xf32> to vector<8x128xbf16>
    %c17_261 = arith.constant 17 : index
    %c0_262 = arith.constant 0 : index
    %c0_263 = arith.constant 0 : index
    %349 = vector.load %arg3[%c17_261, %c0_262, %c0_263] : memref<22x128x128xbf16, #tpu.memory_space<vmem>>, vector<1x128x128xbf16>
    %350 = vector.shape_cast %349 : vector<1x128x128xbf16> to vector<128x128xbf16>
    %cst_264 = arith.constant dense<0.000000e+00> : vector<8x128xf32>
    %351 = tpu.matmul %348, %350, %cst_264 {dimension_numbers = #tpu.dot_dimension_numbers<[1], [0], [0], [1], [0, 0, 1, 1], [], []>} : vector<8x128xbf16>, vector<128x128xbf16>, vector<8x128xf32> -> vector<8x128xf32>
    %c16_265 = arith.constant 16 : index
    %c0_266 = arith.constant 0 : index
    %c0_267 = arith.constant 0 : index
    %352 = vector.load %arg4[%c16_265, %c0_266, %c0_267] : memref<21x1x128xf32, #tpu.memory_space<vmem>>, vector<1x1x128xf32>
    %353 = vector.shape_cast %352 : vector<1x1x128xf32> to vector<1x128xf32>
    %354 = vector.broadcast %353 : vector<1x128xf32> to vector<8x128xf32>
    %355 = arith.addf %351, %354 : vector<8x128xf32>
    %cst_268 = arith.constant 0.000000e+00 : f32
    %356 = vector.broadcast %cst_268 : f32 to vector<8x128xf32>
    %357 = arith.maximumf %355, %356 : vector<8x128xf32>
    %358 = arith.truncf %347 : vector<8x128xf32> to vector<8x128xbf16>
    %c18 = arith.constant 18 : index
    %c0_269 = arith.constant 0 : index
    %c0_270 = arith.constant 0 : index
    %359 = vector.load %arg3[%c18, %c0_269, %c0_270] : memref<22x128x128xbf16, #tpu.memory_space<vmem>>, vector<1x128x128xbf16>
    %360 = vector.shape_cast %359 : vector<1x128x128xbf16> to vector<128x128xbf16>
    %cst_271 = arith.constant dense<0.000000e+00> : vector<8x128xf32>
    %361 = tpu.matmul %358, %360, %cst_271 {dimension_numbers = #tpu.dot_dimension_numbers<[1], [0], [0], [1], [0, 0, 1, 1], [], []>} : vector<8x128xbf16>, vector<128x128xbf16>, vector<8x128xf32> -> vector<8x128xf32>
    %c17_272 = arith.constant 17 : index
    %c0_273 = arith.constant 0 : index
    %c0_274 = arith.constant 0 : index
    %362 = vector.load %arg4[%c17_272, %c0_273, %c0_274] : memref<21x1x128xf32, #tpu.memory_space<vmem>>, vector<1x1x128xf32>
    %363 = vector.shape_cast %362 : vector<1x1x128xf32> to vector<1x128xf32>
    %364 = vector.broadcast %363 : vector<1x128xf32> to vector<8x128xf32>
    %365 = arith.addf %361, %364 : vector<8x128xf32>
    %cst_275 = arith.constant 0.000000e+00 : f32
    %366 = vector.broadcast %cst_275 : f32 to vector<8x128xf32>
    %367 = arith.maximumf %365, %366 : vector<8x128xf32>
    %368 = arith.truncf %357 : vector<8x128xf32> to vector<8x128xbf16>
    %c18_276 = arith.constant 18 : index
    %c0_277 = arith.constant 0 : index
    %c0_278 = arith.constant 0 : index
    %369 = vector.load %arg3[%c18_276, %c0_277, %c0_278] : memref<22x128x128xbf16, #tpu.memory_space<vmem>>, vector<1x128x128xbf16>
    %370 = vector.shape_cast %369 : vector<1x128x128xbf16> to vector<128x128xbf16>
    %cst_279 = arith.constant dense<0.000000e+00> : vector<8x128xf32>
    %371 = tpu.matmul %368, %370, %cst_279 {dimension_numbers = #tpu.dot_dimension_numbers<[1], [0], [0], [1], [0, 0, 1, 1], [], []>} : vector<8x128xbf16>, vector<128x128xbf16>, vector<8x128xf32> -> vector<8x128xf32>
    %c17_280 = arith.constant 17 : index
    %c0_281 = arith.constant 0 : index
    %c0_282 = arith.constant 0 : index
    %372 = vector.load %arg4[%c17_280, %c0_281, %c0_282] : memref<21x1x128xf32, #tpu.memory_space<vmem>>, vector<1x1x128xf32>
    %373 = vector.shape_cast %372 : vector<1x1x128xf32> to vector<1x128xf32>
    %374 = vector.broadcast %373 : vector<1x128xf32> to vector<8x128xf32>
    %375 = arith.addf %371, %374 : vector<8x128xf32>
    %cst_283 = arith.constant 0.000000e+00 : f32
    %376 = vector.broadcast %cst_283 : f32 to vector<8x128xf32>
    %377 = arith.maximumf %375, %376 : vector<8x128xf32>
    %378 = arith.truncf %367 : vector<8x128xf32> to vector<8x128xbf16>
    %c19 = arith.constant 19 : index
    %c0_284 = arith.constant 0 : index
    %c0_285 = arith.constant 0 : index
    %379 = vector.load %arg3[%c19, %c0_284, %c0_285] : memref<22x128x128xbf16, #tpu.memory_space<vmem>>, vector<1x128x128xbf16>
    %380 = vector.shape_cast %379 : vector<1x128x128xbf16> to vector<128x128xbf16>
    %cst_286 = arith.constant dense<0.000000e+00> : vector<8x128xf32>
    %381 = tpu.matmul %378, %380, %cst_286 {dimension_numbers = #tpu.dot_dimension_numbers<[1], [0], [0], [1], [0, 0, 1, 1], [], []>} : vector<8x128xbf16>, vector<128x128xbf16>, vector<8x128xf32> -> vector<8x128xf32>
    %c18_287 = arith.constant 18 : index
    %c0_288 = arith.constant 0 : index
    %c0_289 = arith.constant 0 : index
    %382 = vector.load %arg4[%c18_287, %c0_288, %c0_289] : memref<21x1x128xf32, #tpu.memory_space<vmem>>, vector<1x1x128xf32>
    %383 = vector.shape_cast %382 : vector<1x1x128xf32> to vector<1x128xf32>
    %384 = vector.broadcast %383 : vector<1x128xf32> to vector<8x128xf32>
    %385 = arith.addf %381, %384 : vector<8x128xf32>
    %cst_290 = arith.constant 0.000000e+00 : f32
    %386 = vector.broadcast %cst_290 : f32 to vector<8x128xf32>
    %387 = arith.maximumf %385, %386 : vector<8x128xf32>
    %388 = arith.truncf %377 : vector<8x128xf32> to vector<8x128xbf16>
    %c19_291 = arith.constant 19 : index
    %c0_292 = arith.constant 0 : index
    %c0_293 = arith.constant 0 : index
    %389 = vector.load %arg3[%c19_291, %c0_292, %c0_293] : memref<22x128x128xbf16, #tpu.memory_space<vmem>>, vector<1x128x128xbf16>
    %390 = vector.shape_cast %389 : vector<1x128x128xbf16> to vector<128x128xbf16>
    %cst_294 = arith.constant dense<0.000000e+00> : vector<8x128xf32>
    %391 = tpu.matmul %388, %390, %cst_294 {dimension_numbers = #tpu.dot_dimension_numbers<[1], [0], [0], [1], [0, 0, 1, 1], [], []>} : vector<8x128xbf16>, vector<128x128xbf16>, vector<8x128xf32> -> vector<8x128xf32>
    %c18_295 = arith.constant 18 : index
    %c0_296 = arith.constant 0 : index
    %c0_297 = arith.constant 0 : index
    %392 = vector.load %arg4[%c18_295, %c0_296, %c0_297] : memref<21x1x128xf32, #tpu.memory_space<vmem>>, vector<1x1x128xf32>
    %393 = vector.shape_cast %392 : vector<1x1x128xf32> to vector<1x128xf32>
    %394 = vector.broadcast %393 : vector<1x128xf32> to vector<8x128xf32>
    %395 = arith.addf %391, %394 : vector<8x128xf32>
    %cst_298 = arith.constant 0.000000e+00 : f32
    %396 = vector.broadcast %cst_298 : f32 to vector<8x128xf32>
    %397 = arith.maximumf %395, %396 : vector<8x128xf32>
    %398 = arith.truncf %387 : vector<8x128xf32> to vector<8x128xbf16>
    %c20 = arith.constant 20 : index
    %c0_299 = arith.constant 0 : index
    %c0_300 = arith.constant 0 : index
    %399 = vector.load %arg3[%c20, %c0_299, %c0_300] : memref<22x128x128xbf16, #tpu.memory_space<vmem>>, vector<1x128x128xbf16>
    %400 = vector.shape_cast %399 : vector<1x128x128xbf16> to vector<128x128xbf16>
    %cst_301 = arith.constant dense<0.000000e+00> : vector<8x128xf32>
    %401 = tpu.matmul %398, %400, %cst_301 {dimension_numbers = #tpu.dot_dimension_numbers<[1], [0], [0], [1], [0, 0, 1, 1], [], []>} : vector<8x128xbf16>, vector<128x128xbf16>, vector<8x128xf32> -> vector<8x128xf32>
    %c19_302 = arith.constant 19 : index
    %c0_303 = arith.constant 0 : index
    %c0_304 = arith.constant 0 : index
    %402 = vector.load %arg4[%c19_302, %c0_303, %c0_304] : memref<21x1x128xf32, #tpu.memory_space<vmem>>, vector<1x1x128xf32>
    %403 = vector.shape_cast %402 : vector<1x1x128xf32> to vector<1x128xf32>
    %404 = vector.broadcast %403 : vector<1x128xf32> to vector<8x128xf32>
    %405 = arith.addf %401, %404 : vector<8x128xf32>
    %cst_305 = arith.constant 0.000000e+00 : f32
    %406 = vector.broadcast %cst_305 : f32 to vector<8x128xf32>
    %407 = arith.maximumf %405, %406 : vector<8x128xf32>
    %408 = arith.truncf %397 : vector<8x128xf32> to vector<8x128xbf16>
    %c20_306 = arith.constant 20 : index
    %c0_307 = arith.constant 0 : index
    %c0_308 = arith.constant 0 : index
    %409 = vector.load %arg3[%c20_306, %c0_307, %c0_308] : memref<22x128x128xbf16, #tpu.memory_space<vmem>>, vector<1x128x128xbf16>
    %410 = vector.shape_cast %409 : vector<1x128x128xbf16> to vector<128x128xbf16>
    %cst_309 = arith.constant dense<0.000000e+00> : vector<8x128xf32>
    %411 = tpu.matmul %408, %410, %cst_309 {dimension_numbers = #tpu.dot_dimension_numbers<[1], [0], [0], [1], [0, 0, 1, 1], [], []>} : vector<8x128xbf16>, vector<128x128xbf16>, vector<8x128xf32> -> vector<8x128xf32>
    %c19_310 = arith.constant 19 : index
    %c0_311 = arith.constant 0 : index
    %c0_312 = arith.constant 0 : index
    %412 = vector.load %arg4[%c19_310, %c0_311, %c0_312] : memref<21x1x128xf32, #tpu.memory_space<vmem>>, vector<1x1x128xf32>
    %413 = vector.shape_cast %412 : vector<1x1x128xf32> to vector<1x128xf32>
    %414 = vector.broadcast %413 : vector<1x128xf32> to vector<8x128xf32>
    %415 = arith.addf %411, %414 : vector<8x128xf32>
    %cst_313 = arith.constant 0.000000e+00 : f32
    %416 = vector.broadcast %cst_313 : f32 to vector<8x128xf32>
    %417 = arith.maximumf %415, %416 : vector<8x128xf32>
    %418 = arith.truncf %407 : vector<8x128xf32> to vector<8x128xbf16>
    %c21 = arith.constant 21 : index
    %c0_314 = arith.constant 0 : index
    %c0_315 = arith.constant 0 : index
    %419 = vector.load %arg3[%c21, %c0_314, %c0_315] : memref<22x128x128xbf16, #tpu.memory_space<vmem>>, vector<1x128x128xbf16>
    %420 = vector.shape_cast %419 : vector<1x128x128xbf16> to vector<128x128xbf16>
    %cst_316 = arith.constant dense<0.000000e+00> : vector<8x128xf32>
    %421 = tpu.matmul %418, %420, %cst_316 {dimension_numbers = #tpu.dot_dimension_numbers<[1], [0], [0], [1], [0, 0, 1, 1], [], []>} : vector<8x128xbf16>, vector<128x128xbf16>, vector<8x128xf32> -> vector<8x128xf32>
    %c20_317 = arith.constant 20 : index
    %c0_318 = arith.constant 0 : index
    %c0_319 = arith.constant 0 : index
    %422 = vector.load %arg4[%c20_317, %c0_318, %c0_319] : memref<21x1x128xf32, #tpu.memory_space<vmem>>, vector<1x1x128xf32>
    %423 = vector.shape_cast %422 : vector<1x1x128xf32> to vector<1x128xf32>
    %424 = vector.broadcast %423 : vector<1x128xf32> to vector<8x128xf32>
    %425 = arith.addf %421, %424 : vector<8x128xf32>
    %426 = arith.truncf %417 : vector<8x128xf32> to vector<8x128xbf16>
    %c21_320 = arith.constant 21 : index
    %c0_321 = arith.constant 0 : index
    %c0_322 = arith.constant 0 : index
    %427 = vector.load %arg3[%c21_320, %c0_321, %c0_322] : memref<22x128x128xbf16, #tpu.memory_space<vmem>>, vector<1x128x128xbf16>
    %428 = vector.shape_cast %427 : vector<1x128x128xbf16> to vector<128x128xbf16>
    %cst_323 = arith.constant dense<0.000000e+00> : vector<8x128xf32>
    %429 = tpu.matmul %426, %428, %cst_323 {dimension_numbers = #tpu.dot_dimension_numbers<[1], [0], [0], [1], [0, 0, 1, 1], [], []>} : vector<8x128xbf16>, vector<128x128xbf16>, vector<8x128xf32> -> vector<8x128xf32>
    %c20_324 = arith.constant 20 : index
    %c0_325 = arith.constant 0 : index
    %c0_326 = arith.constant 0 : index
    %430 = vector.load %arg4[%c20_324, %c0_325, %c0_326] : memref<21x1x128xf32, #tpu.memory_space<vmem>>, vector<1x1x128xf32>
    %431 = vector.shape_cast %430 : vector<1x1x128xf32> to vector<1x128xf32>
    %432 = vector.broadcast %431 : vector<1x128xf32> to vector<8x128xf32>
    %433 = arith.addf %429, %432 : vector<8x128xf32>
    %c0_327 = arith.constant 0 : index
    %c0_328 = arith.constant 0 : index
    %434 = vector.load %arg5[%c0_327, %c0_328] : memref<16x128xf32, #tpu.memory_space<vmem>>, vector<8x128xf32>
    tpu.vector_store %arg5[%c0_327, %c0_328], %425 {strides = array<i32>} : memref<16x128xf32, #tpu.memory_space<vmem>>, vector<8x128xf32>,
    %c8_329 = arith.constant 8 : index
    %c0_330 = arith.constant 0 : index
    %435 = vector.load %arg5[%c8_329, %c0_330] : memref<16x128xf32, #tpu.memory_space<vmem>>, vector<8x128xf32>
    tpu.vector_store %arg5[%c8_329, %c0_330], %433 {strides = array<i32>} : memref<16x128xf32, #tpu.memory_space<vmem>>, vector<8x128xf32>,
    return
  }
  func.func @transform_0(%arg0: i32) -> (i32, i32) {
    %c0_i32 = arith.constant 0 : i32
    %c0_i32_0 = arith.constant 0 : i32
    return %arg0, %c0_i32 : i32, i32
  }
  func.func @transform_1(%arg0: i32) -> (i32, i32) {
    %c0_i32 = arith.constant 0 : i32
    %c0_i32_0 = arith.constant 0 : i32
    %c0_i32_1 = arith.constant 0 : i32
    return %c0_i32, %c0_i32_0 : i32, i32
  }
  func.func @transform_2(%arg0: i32) -> (i32, i32, i32) {
    %c0_i32 = arith.constant 0 : i32
    %c0_i32_0 = arith.constant 0 : i32
    %c0_i32_1 = arith.constant 0 : i32
    %c0_i32_2 = arith.constant 0 : i32
    return %c0_i32, %c0_i32_0, %c0_i32_1 : i32, i32, i32
  }
  func.func @transform_3(%arg0: i32) -> (i32, i32, i32) {
    %c0_i32 = arith.constant 0 : i32
    %c0_i32_0 = arith.constant 0 : i32
    %c0_i32_1 = arith.constant 0 : i32
    %c0_i32_2 = arith.constant 0 : i32
    return %c0_i32, %c0_i32_0, %c0_i32_1 : i32, i32, i32
  }
  func.func @transform_4(%arg0: i32) -> (i32, i32) {
    %c0_i32 = arith.constant 0 : i32
    %c0_i32_0 = arith.constant 0 : i32
    return %arg0, %c0_i32 : i32, i32
  }
}

module attributes {stable_mosaic.version = 11 : i64} {
  func.func @kernel(%arg0: i32, %arg1: memref<16x1xf32, #tpu.memory_space<vmem>>, %arg2: memref<1x128xf32, #tpu.memory_space<vmem>>, %arg3: memref<22x128x128xbf16, #tpu.memory_space<vmem>>, %arg4: memref<21x1x128xf32, #tpu.memory_space<vmem>>, %arg5: memref<16x128xf32, #tpu.memory_space<vmem>>) attributes {dimension_semantics = [#tpu.dimension_semantics<parallel>], iteration_bounds = array<i64: 1>, scalar_prefetch = 0 : i64, scratch_operands = 0 : i64, tpu.core_type = #tpu.core_type<tc>, window_params = [{transform_indices = @transform_0, window_bounds = array<i64: 16, 1>}, {pipeline_mode = #tpu.pipeline_mode<synchronous>, transform_indices = @transform_1, window_bounds = array<i64: 1, 128>}, {pipeline_mode = #tpu.pipeline_mode<synchronous>, transform_indices = @transform_2, window_bounds = array<i64: 22, 128, 128>}, {pipeline_mode = #tpu.pipeline_mode<synchronous>, transform_indices = @transform_3, window_bounds = array<i64: 21, 1, 128>}, {transform_indices = @transform_4, window_bounds = array<i64: 16, 128>}]} {
    %c0 = arith.constant 0 : index
    %c0_0 = arith.constant 0 : index
    %0 = vector.load %arg1[%c0, %c0_0] : memref<16x1xf32, #tpu.memory_space<vmem>>, vector<8x1xf32>
    %c0_1 = arith.constant 0 : index
    %c0_2 = arith.constant 0 : index
    %1 = vector.load %arg2[%c0_1, %c0_2] : memref<1x128xf32, #tpu.memory_space<vmem>>, vector<1x128xf32>
    %2 = vector.broadcast %0 : vector<8x1xf32> to vector<8x128xf32>
    %3 = vector.broadcast %1 : vector<1x128xf32> to vector<8x128xf32>
    %4 = arith.mulf %2, %3 : vector<8x128xf32>
    %c0_3 = arith.constant 0 : index
    %c0_4 = arith.constant 0 : index
    %c0_5 = arith.constant 0 : index
    %5 = vector.load %arg4[%c0_3, %c0_4, %c0_5] : memref<21x1x128xf32, #tpu.memory_space<vmem>>, vector<1x1x128xf32>
    %6 = vector.shape_cast %5 : vector<1x1x128xf32> to vector<1x128xf32>
    %7 = vector.broadcast %6 : vector<1x128xf32> to vector<8x128xf32>
    %8 = arith.addf %4, %7 : vector<8x128xf32>
    %cst = arith.constant 0.000000e+00 : f32
    %9 = vector.broadcast %cst : f32 to vector<8x128xf32>
    %10 = arith.maximumf %8, %9 : vector<8x128xf32>
    %c8 = arith.constant 8 : index
    %c0_6 = arith.constant 0 : index
    %11 = vector.load %arg1[%c8, %c0_6] : memref<16x1xf32, #tpu.memory_space<vmem>>, vector<8x1xf32>
    %c0_7 = arith.constant 0 : index
    %c0_8 = arith.constant 0 : index
    %12 = vector.load %arg2[%c0_7, %c0_8] : memref<1x128xf32, #tpu.memory_space<vmem>>, vector<1x128xf32>
    %13 = vector.broadcast %11 : vector<8x1xf32> to vector<8x128xf32>
    %14 = vector.broadcast %12 : vector<1x128xf32> to vector<8x128xf32>
    %15 = arith.mulf %13, %14 : vector<8x128xf32>
    %c0_9 = arith.constant 0 : index
    %c0_10 = arith.constant 0 : index
    %c0_11 = arith.constant 0 : index
    %16 = vector.load %arg4[%c0_9, %c0_10, %c0_11] : memref<21x1x128xf32, #tpu.memory_space<vmem>>, vector<1x1x128xf32>
    %17 = vector.shape_cast %16 : vector<1x1x128xf32> to vector<1x128xf32>
    %18 = vector.broadcast %17 : vector<1x128xf32> to vector<8x128xf32>
    %19 = arith.addf %15, %18 : vector<8x128xf32>
    %cst_12 = arith.constant 0.000000e+00 : f32
    %20 = vector.broadcast %cst_12 : f32 to vector<8x128xf32>
    %21 = arith.maximumf %19, %20 : vector<8x128xf32>
    %22 = arith.truncf %10 : vector<8x128xf32> to vector<8x128xbf16>
    %c0_13 = arith.constant 0 : index
    %c0_14 = arith.constant 0 : index
    %c0_15 = arith.constant 0 : index
    %23 = vector.load %arg3[%c0_13, %c0_14, %c0_15] : memref<22x128x128xbf16, #tpu.memory_space<vmem>>, vector<1x128x128xbf16>
    %24 = vector.shape_cast %23 : vector<1x128x128xbf16> to vector<128x128xbf16>
    %cst_16 = arith.constant dense<0.000000e+00> : vector<8x128xf32>
    %25 = tpu.matmul %22, %24, %cst_16 {dimension_numbers = #tpu.dot_dimension_numbers<[1], [0], [0], [1], [0, 0, 1, 1], [], []>} : vector<8x128xbf16>, vector<128x128xbf16>, vector<8x128xf32> -> vector<8x128xf32>
    %c1 = arith.constant 1 : index
    %c0_17 = arith.constant 0 : index
    %c0_18 = arith.constant 0 : index
    %26 = vector.load %arg4[%c1, %c0_17, %c0_18] : memref<21x1x128xf32, #tpu.memory_space<vmem>>, vector<1x1x128xf32>
    %27 = vector.shape_cast %26 : vector<1x1x128xf32> to vector<1x128xf32>
    %28 = vector.broadcast %27 : vector<1x128xf32> to vector<8x128xf32>
    %29 = arith.addf %25, %28 : vector<8x128xf32>
    %cst_19 = arith.constant 0.000000e+00 : f32
    %30 = vector.broadcast %cst_19 : f32 to vector<8x128xf32>
    %31 = arith.maximumf %29, %30 : vector<8x128xf32>
    %32 = arith.truncf %21 : vector<8x128xf32> to vector<8x128xbf16>
    %c0_20 = arith.constant 0 : index
    %c0_21 = arith.constant 0 : index
    %c0_22 = arith.constant 0 : index
    %33 = vector.load %arg3[%c0_20, %c0_21, %c0_22] : memref<22x128x128xbf16, #tpu.memory_space<vmem>>, vector<1x128x128xbf16>
    %34 = vector.shape_cast %33 : vector<1x128x128xbf16> to vector<128x128xbf16>
    %cst_23 = arith.constant dense<0.000000e+00> : vector<8x128xf32>
    %35 = tpu.matmul %32, %34, %cst_23 {dimension_numbers = #tpu.dot_dimension_numbers<[1], [0], [0], [1], [0, 0, 1, 1], [], []>} : vector<8x128xbf16>, vector<128x128xbf16>, vector<8x128xf32> -> vector<8x128xf32>
    %c1_24 = arith.constant 1 : index
    %c0_25 = arith.constant 0 : index
    %c0_26 = arith.constant 0 : index
    %36 = vector.load %arg4[%c1_24, %c0_25, %c0_26] : memref<21x1x128xf32, #tpu.memory_space<vmem>>, vector<1x1x128xf32>
    %37 = vector.shape_cast %36 : vector<1x1x128xf32> to vector<1x128xf32>
    %38 = vector.broadcast %37 : vector<1x128xf32> to vector<8x128xf32>
    %39 = arith.addf %35, %38 : vector<8x128xf32>
    %cst_27 = arith.constant 0.000000e+00 : f32
    %40 = vector.broadcast %cst_27 : f32 to vector<8x128xf32>
    %41 = arith.maximumf %39, %40 : vector<8x128xf32>
    %42 = arith.truncf %31 : vector<8x128xf32> to vector<8x128xbf16>
    %c1_28 = arith.constant 1 : index
    %c0_29 = arith.constant 0 : index
    %c0_30 = arith.constant 0 : index
    %43 = vector.load %arg3[%c1_28, %c0_29, %c0_30] : memref<22x128x128xbf16, #tpu.memory_space<vmem>>, vector<1x128x128xbf16>
    %44 = vector.shape_cast %43 : vector<1x128x128xbf16> to vector<128x128xbf16>
    %cst_31 = arith.constant dense<0.000000e+00> : vector<8x128xf32>
    %45 = tpu.matmul %42, %44, %cst_31 {dimension_numbers = #tpu.dot_dimension_numbers<[1], [0], [0], [1], [0, 0, 1, 1], [], []>} : vector<8x128xbf16>, vector<128x128xbf16>, vector<8x128xf32> -> vector<8x128xf32>
    %c2 = arith.constant 2 : index
    %c0_32 = arith.constant 0 : index
    %c0_33 = arith.constant 0 : index
    %46 = vector.load %arg4[%c2, %c0_32, %c0_33] : memref<21x1x128xf32, #tpu.memory_space<vmem>>, vector<1x1x128xf32>
    %47 = vector.shape_cast %46 : vector<1x1x128xf32> to vector<1x128xf32>
    %48 = vector.broadcast %47 : vector<1x128xf32> to vector<8x128xf32>
    %49 = arith.addf %45, %48 : vector<8x128xf32>
    %cst_34 = arith.constant 0.000000e+00 : f32
    %50 = vector.broadcast %cst_34 : f32 to vector<8x128xf32>
    %51 = arith.maximumf %49, %50 : vector<8x128xf32>
    %c2_35 = arith.constant 2 : index
    %c0_36 = arith.constant 0 : index
    %c0_37 = arith.constant 0 : index
    %52 = vector.load %arg3[%c2_35, %c0_36, %c0_37] : memref<22x128x128xbf16, #tpu.memory_space<vmem>>, vector<1x128x128xbf16>
    %53 = vector.shape_cast %52 : vector<1x128x128xbf16> to vector<128x128xbf16>
    %cst_38 = arith.constant dense<0.000000e+00> : vector<8x128xf32>
    %54 = tpu.matmul %42, %53, %cst_38 {dimension_numbers = #tpu.dot_dimension_numbers<[1], [0], [0], [1], [0, 0, 1, 1], [], []>} : vector<8x128xbf16>, vector<128x128xbf16>, vector<8x128xf32> -> vector<8x128xf32>
    %c3 = arith.constant 3 : index
    %c0_39 = arith.constant 0 : index
    %c0_40 = arith.constant 0 : index
    %55 = vector.load %arg4[%c3, %c0_39, %c0_40] : memref<21x1x128xf32, #tpu.memory_space<vmem>>, vector<1x1x128xf32>
    %56 = vector.shape_cast %55 : vector<1x1x128xf32> to vector<1x128xf32>
    %57 = vector.broadcast %56 : vector<1x128xf32> to vector<8x128xf32>
    %58 = arith.addf %54, %57 : vector<8x128xf32>
    %cst_41 = arith.constant 0.000000e+00 : f32
    %59 = vector.broadcast %cst_41 : f32 to vector<8x128xf32>
    %60 = arith.maximumf %58, %59 : vector<8x128xf32>
    %61 = arith.truncf %41 : vector<8x128xf32> to vector<8x128xbf16>
    %c1_42 = arith.constant 1 : index
    %c0_43 = arith.constant 0 : index
    %c0_44 = arith.constant 0 : index
    %62 = vector.load %arg3[%c1_42, %c0_43, %c0_44] : memref<22x128x128xbf16, #tpu.memory_space<vmem>>, vector<1x128x128xbf16>
    %63 = vector.shape_cast %62 : vector<1x128x128xbf16> to vector<128x128xbf16>
    %cst_45 = arith.constant dense<0.000000e+00> : vector<8x128xf32>
    %64 = tpu.matmul %61, %63, %cst_45 {dimension_numbers = #tpu.dot_dimension_numbers<[1], [0], [0], [1], [0, 0, 1, 1], [], []>} : vector<8x128xbf16>, vector<128x128xbf16>, vector<8x128xf32> -> vector<8x128xf32>
    %c2_46 = arith.constant 2 : index
    %c0_47 = arith.constant 0 : index
    %c0_48 = arith.constant 0 : index
    %65 = vector.load %arg4[%c2_46, %c0_47, %c0_48] : memref<21x1x128xf32, #tpu.memory_space<vmem>>, vector<1x1x128xf32>
    %66 = vector.shape_cast %65 : vector<1x1x128xf32> to vector<1x128xf32>
    %67 = vector.broadcast %66 : vector<1x128xf32> to vector<8x128xf32>
    %68 = arith.addf %64, %67 : vector<8x128xf32>
    %cst_49 = arith.constant 0.000000e+00 : f32
    %69 = vector.broadcast %cst_49 : f32 to vector<8x128xf32>
    %70 = arith.maximumf %68, %69 : vector<8x128xf32>
    %c2_50 = arith.constant 2 : index
    %c0_51 = arith.constant 0 : index
    %c0_52 = arith.constant 0 : index
    %71 = vector.load %arg3[%c2_50, %c0_51, %c0_52] : memref<22x128x128xbf16, #tpu.memory_space<vmem>>, vector<1x128x128xbf16>
    %72 = vector.shape_cast %71 : vector<1x128x128xbf16> to vector<128x128xbf16>
    %cst_53 = arith.constant dense<0.000000e+00> : vector<8x128xf32>
    %73 = tpu.matmul %61, %72, %cst_53 {dimension_numbers = #tpu.dot_dimension_numbers<[1], [0], [0], [1], [0, 0, 1, 1], [], []>} : vector<8x128xbf16>, vector<128x128xbf16>, vector<8x128xf32> -> vector<8x128xf32>
    %c3_54 = arith.constant 3 : index
    %c0_55 = arith.constant 0 : index
    %c0_56 = arith.constant 0 : index
    %74 = vector.load %arg4[%c3_54, %c0_55, %c0_56] : memref<21x1x128xf32, #tpu.memory_space<vmem>>, vector<1x1x128xf32>
    %75 = vector.shape_cast %74 : vector<1x1x128xf32> to vector<1x128xf32>
    %76 = vector.broadcast %75 : vector<1x128xf32> to vector<8x128xf32>
    %77 = arith.addf %73, %76 : vector<8x128xf32>
    %cst_57 = arith.constant 0.000000e+00 : f32
    %78 = vector.broadcast %cst_57 : f32 to vector<8x128xf32>
    %79 = arith.maximumf %77, %78 : vector<8x128xf32>
    %80 = arith.truncf %51 : vector<8x128xf32> to vector<8x128xbf16>
    %81 = arith.truncf %60 : vector<8x128xf32> to vector<8x128xbf16>
    %c3_58 = arith.constant 3 : index
    %c0_59 = arith.constant 0 : index
    %c0_60 = arith.constant 0 : index
    %82 = vector.load %arg3[%c3_58, %c0_59, %c0_60] : memref<22x128x128xbf16, #tpu.memory_space<vmem>>, vector<1x128x128xbf16>
    %83 = vector.shape_cast %82 : vector<1x128x128xbf16> to vector<128x128xbf16>
    %cst_61 = arith.constant dense<0.000000e+00> : vector<8x128xf32>
    %84 = tpu.matmul %80, %83, %cst_61 {dimension_numbers = #tpu.dot_dimension_numbers<[1], [0], [0], [1], [0, 0, 1, 1], [], []>} : vector<8x128xbf16>, vector<128x128xbf16>, vector<8x128xf32> -> vector<8x128xf32>
    %c4 = arith.constant 4 : index
    %c0_62 = arith.constant 0 : index
    %c0_63 = arith.constant 0 : index
    %85 = vector.load %arg3[%c4, %c0_62, %c0_63] : memref<22x128x128xbf16, #tpu.memory_space<vmem>>, vector<1x128x128xbf16>
    %86 = vector.shape_cast %85 : vector<1x128x128xbf16> to vector<128x128xbf16>
    %cst_64 = arith.constant dense<0.000000e+00> : vector<8x128xf32>
    %87 = tpu.matmul %81, %86, %cst_64 {dimension_numbers = #tpu.dot_dimension_numbers<[1], [0], [0], [1], [0, 0, 1, 1], [], []>} : vector<8x128xbf16>, vector<128x128xbf16>, vector<8x128xf32> -> vector<8x128xf32>
    %88 = arith.addf %84, %87 : vector<8x128xf32>
    %c4_65 = arith.constant 4 : index
    %c0_66 = arith.constant 0 : index
    %c0_67 = arith.constant 0 : index
    %89 = vector.load %arg4[%c4_65, %c0_66, %c0_67] : memref<21x1x128xf32, #tpu.memory_space<vmem>>, vector<1x1x128xf32>
    %90 = vector.shape_cast %89 : vector<1x1x128xf32> to vector<1x128xf32>
    %91 = vector.broadcast %90 : vector<1x128xf32> to vector<8x128xf32>
    %92 = arith.addf %88, %91 : vector<8x128xf32>
    %cst_68 = arith.constant 0.000000e+00 : f32
    %93 = vector.broadcast %cst_68 : f32 to vector<8x128xf32>
    %94 = arith.maximumf %92, %93 : vector<8x128xf32>
    %95 = arith.truncf %70 : vector<8x128xf32> to vector<8x128xbf16>
    %96 = arith.truncf %79 : vector<8x128xf32> to vector<8x128xbf16>
    %c3_69 = arith.constant 3 : index
    %c0_70 = arith.constant 0 : index
    %c0_71 = arith.constant 0 : index
    %97 = vector.load %arg3[%c3_69, %c0_70, %c0_71] : memref<22x128x128xbf16, #tpu.memory_space<vmem>>, vector<1x128x128xbf16>
    %98 = vector.shape_cast %97 : vector<1x128x128xbf16> to vector<128x128xbf16>
    %cst_72 = arith.constant dense<0.000000e+00> : vector<8x128xf32>
    %99 = tpu.matmul %95, %98, %cst_72 {dimension_numbers = #tpu.dot_dimension_numbers<[1], [0], [0], [1], [0, 0, 1, 1], [], []>} : vector<8x128xbf16>, vector<128x128xbf16>, vector<8x128xf32> -> vector<8x128xf32>
    %c4_73 = arith.constant 4 : index
    %c0_74 = arith.constant 0 : index
    %c0_75 = arith.constant 0 : index
    %100 = vector.load %arg3[%c4_73, %c0_74, %c0_75] : memref<22x128x128xbf16, #tpu.memory_space<vmem>>, vector<1x128x128xbf16>
    %101 = vector.shape_cast %100 : vector<1x128x128xbf16> to vector<128x128xbf16>
    %cst_76 = arith.constant dense<0.000000e+00> : vector<8x128xf32>
    %102 = tpu.matmul %96, %101, %cst_76 {dimension_numbers = #tpu.dot_dimension_numbers<[1], [0], [0], [1], [0, 0, 1, 1], [], []>} : vector<8x128xbf16>, vector<128x128xbf16>, vector<8x128xf32> -> vector<8x128xf32>
    %103 = arith.addf %99, %102 : vector<8x128xf32>
    %c4_77 = arith.constant 4 : index
    %c0_78 = arith.constant 0 : index
    %c0_79 = arith.constant 0 : index
    %104 = vector.load %arg4[%c4_77, %c0_78, %c0_79] : memref<21x1x128xf32, #tpu.memory_space<vmem>>, vector<1x1x128xf32>
    %105 = vector.shape_cast %104 : vector<1x1x128xf32> to vector<1x128xf32>
    %106 = vector.broadcast %105 : vector<1x128xf32> to vector<8x128xf32>
    %107 = arith.addf %103, %106 : vector<8x128xf32>
    %cst_80 = arith.constant 0.000000e+00 : f32
    %108 = vector.broadcast %cst_80 : f32 to vector<8x128xf32>
    %109 = arith.maximumf %107, %108 : vector<8x128xf32>
    %110 = arith.truncf %94 : vector<8x128xf32> to vector<8x128xbf16>
    %c5 = arith.constant 5 : index
    %c0_81 = arith.constant 0 : index
    %c0_82 = arith.constant 0 : index
    %111 = vector.load %arg3[%c5, %c0_81, %c0_82] : memref<22x128x128xbf16, #tpu.memory_space<vmem>>, vector<1x128x128xbf16>
    %112 = vector.shape_cast %111 : vector<1x128x128xbf16> to vector<128x128xbf16>
    %cst_83 = arith.constant dense<0.000000e+00> : vector<8x128xf32>
    %113 = tpu.matmul %110, %112, %cst_83 {dimension_numbers = #tpu.dot_dimension_numbers<[1], [0], [0], [1], [0, 0, 1, 1], [], []>} : vector<8x128xbf16>, vector<128x128xbf16>, vector<8x128xf32> -> vector<8x128xf32>
    %c5_84 = arith.constant 5 : index
    %c0_85 = arith.constant 0 : index
    %c0_86 = arith.constant 0 : index
    %114 = vector.load %arg4[%c5_84, %c0_85, %c0_86] : memref<21x1x128xf32, #tpu.memory_space<vmem>>, vector<1x1x128xf32>
    %115 = vector.shape_cast %114 : vector<1x1x128xf32> to vector<1x128xf32>
    %116 = vector.broadcast %115 : vector<1x128xf32> to vector<8x128xf32>
    %117 = arith.addf %113, %116 : vector<8x128xf32>
    %cst_87 = arith.constant 0.000000e+00 : f32
    %118 = vector.broadcast %cst_87 : f32 to vector<8x128xf32>
    %119 = arith.maximumf %117, %118 : vector<8x128xf32>
    %120 = arith.truncf %109 : vector<8x128xf32> to vector<8x128xbf16>
    %c5_88 = arith.constant 5 : index
    %c0_89 = arith.constant 0 : index
    %c0_90 = arith.constant 0 : index
    %121 = vector.load %arg3[%c5_88, %c0_89, %c0_90] : memref<22x128x128xbf16, #tpu.memory_space<vmem>>, vector<1x128x128xbf16>
    %122 = vector.shape_cast %121 : vector<1x128x128xbf16> to vector<128x128xbf16>
    %cst_91 = arith.constant dense<0.000000e+00> : vector<8x128xf32>
    %123 = tpu.matmul %120, %122, %cst_91 {dimension_numbers = #tpu.dot_dimension_numbers<[1], [0], [0], [1], [0, 0, 1, 1], [], []>} : vector<8x128xbf16>, vector<128x128xbf16>, vector<8x128xf32> -> vector<8x128xf32>
    %c5_92 = arith.constant 5 : index
    %c0_93 = arith.constant 0 : index
    %c0_94 = arith.constant 0 : index
    %124 = vector.load %arg4[%c5_92, %c0_93, %c0_94] : memref<21x1x128xf32, #tpu.memory_space<vmem>>, vector<1x1x128xf32>
    %125 = vector.shape_cast %124 : vector<1x1x128xf32> to vector<1x128xf32>
    %126 = vector.broadcast %125 : vector<1x128xf32> to vector<8x128xf32>
    %127 = arith.addf %123, %126 : vector<8x128xf32>
    %cst_95 = arith.constant 0.000000e+00 : f32
    %128 = vector.broadcast %cst_95 : f32 to vector<8x128xf32>
    %129 = arith.maximumf %127, %128 : vector<8x128xf32>
    %130 = arith.truncf %119 : vector<8x128xf32> to vector<8x128xbf16>
    %c6 = arith.constant 6 : index
    %c0_96 = arith.constant 0 : index
    %c0_97 = arith.constant 0 : index
    %131 = vector.load %arg3[%c6, %c0_96, %c0_97] : memref<22x128x128xbf16, #tpu.memory_space<vmem>>, vector<1x128x128xbf16>
    %132 = vector.shape_cast %131 : vector<1x128x128xbf16> to vector<128x128xbf16>
    %cst_98 = arith.constant dense<0.000000e+00> : vector<8x128xf32>
    %133 = tpu.matmul %130, %132, %cst_98 {dimension_numbers = #tpu.dot_dimension_numbers<[1], [0], [0], [1], [0, 0, 1, 1], [], []>} : vector<8x128xbf16>, vector<128x128xbf16>, vector<8x128xf32> -> vector<8x128xf32>
    %c6_99 = arith.constant 6 : index
    %c0_100 = arith.constant 0 : index
    %c0_101 = arith.constant 0 : index
    %134 = vector.load %arg4[%c6_99, %c0_100, %c0_101] : memref<21x1x128xf32, #tpu.memory_space<vmem>>, vector<1x1x128xf32>
    %135 = vector.shape_cast %134 : vector<1x1x128xf32> to vector<1x128xf32>
    %136 = vector.broadcast %135 : vector<1x128xf32> to vector<8x128xf32>
    %137 = arith.addf %133, %136 : vector<8x128xf32>
    %cst_102 = arith.constant 0.000000e+00 : f32
    %138 = vector.broadcast %cst_102 : f32 to vector<8x128xf32>
    %139 = arith.maximumf %137, %138 : vector<8x128xf32>
    %140 = arith.truncf %129 : vector<8x128xf32> to vector<8x128xbf16>
    %c6_103 = arith.constant 6 : index
    %c0_104 = arith.constant 0 : index
    %c0_105 = arith.constant 0 : index
    %141 = vector.load %arg3[%c6_103, %c0_104, %c0_105] : memref<22x128x128xbf16, #tpu.memory_space<vmem>>, vector<1x128x128xbf16>
    %142 = vector.shape_cast %141 : vector<1x128x128xbf16> to vector<128x128xbf16>
    %cst_106 = arith.constant dense<0.000000e+00> : vector<8x128xf32>
    %143 = tpu.matmul %140, %142, %cst_106 {dimension_numbers = #tpu.dot_dimension_numbers<[1], [0], [0], [1], [0, 0, 1, 1], [], []>} : vector<8x128xbf16>, vector<128x128xbf16>, vector<8x128xf32> -> vector<8x128xf32>
    %c6_107 = arith.constant 6 : index
    %c0_108 = arith.constant 0 : index
    %c0_109 = arith.constant 0 : index
    %144 = vector.load %arg4[%c6_107, %c0_108, %c0_109] : memref<21x1x128xf32, #tpu.memory_space<vmem>>, vector<1x1x128xf32>
    %145 = vector.shape_cast %144 : vector<1x1x128xf32> to vector<1x128xf32>
    %146 = vector.broadcast %145 : vector<1x128xf32> to vector<8x128xf32>
    %147 = arith.addf %143, %146 : vector<8x128xf32>
    %cst_110 = arith.constant 0.000000e+00 : f32
    %148 = vector.broadcast %cst_110 : f32 to vector<8x128xf32>
    %149 = arith.maximumf %147, %148 : vector<8x128xf32>
    %150 = arith.truncf %139 : vector<8x128xf32> to vector<8x128xbf16>
    %c7 = arith.constant 7 : index
    %c0_111 = arith.constant 0 : index
    %c0_112 = arith.constant 0 : index
    %151 = vector.load %arg3[%c7, %c0_111, %c0_112] : memref<22x128x128xbf16, #tpu.memory_space<vmem>>, vector<1x128x128xbf16>
    %152 = vector.shape_cast %151 : vector<1x128x128xbf16> to vector<128x128xbf16>
    %cst_113 = arith.constant dense<0.000000e+00> : vector<8x128xf32>
    %153 = tpu.matmul %150, %152, %cst_113 {dimension_numbers = #tpu.dot_dimension_numbers<[1], [0], [0], [1], [0, 0, 1, 1], [], []>} : vector<8x128xbf16>, vector<128x128xbf16>, vector<8x128xf32> -> vector<8x128xf32>
    %c7_114 = arith.constant 7 : index
    %c0_115 = arith.constant 0 : index
    %c0_116 = arith.constant 0 : index
    %154 = vector.load %arg4[%c7_114, %c0_115, %c0_116] : memref<21x1x128xf32, #tpu.memory_space<vmem>>, vector<1x1x128xf32>
    %155 = vector.shape_cast %154 : vector<1x1x128xf32> to vector<1x128xf32>
    %156 = vector.broadcast %155 : vector<1x128xf32> to vector<8x128xf32>
    %157 = arith.addf %153, %156 : vector<8x128xf32>
    %cst_117 = arith.constant 0.000000e+00 : f32
    %158 = vector.broadcast %cst_117 : f32 to vector<8x128xf32>
    %159 = arith.maximumf %157, %158 : vector<8x128xf32>
    %160 = arith.truncf %149 : vector<8x128xf32> to vector<8x128xbf16>
    %c7_118 = arith.constant 7 : index
    %c0_119 = arith.constant 0 : index
    %c0_120 = arith.constant 0 : index
    %161 = vector.load %arg3[%c7_118, %c0_119, %c0_120] : memref<22x128x128xbf16, #tpu.memory_space<vmem>>, vector<1x128x128xbf16>
    %162 = vector.shape_cast %161 : vector<1x128x128xbf16> to vector<128x128xbf16>
    %cst_121 = arith.constant dense<0.000000e+00> : vector<8x128xf32>
    %163 = tpu.matmul %160, %162, %cst_121 {dimension_numbers = #tpu.dot_dimension_numbers<[1], [0], [0], [1], [0, 0, 1, 1], [], []>} : vector<8x128xbf16>, vector<128x128xbf16>, vector<8x128xf32> -> vector<8x128xf32>
    %c7_122 = arith.constant 7 : index
    %c0_123 = arith.constant 0 : index
    %c0_124 = arith.constant 0 : index
    %164 = vector.load %arg4[%c7_122, %c0_123, %c0_124] : memref<21x1x128xf32, #tpu.memory_space<vmem>>, vector<1x1x128xf32>
    %165 = vector.shape_cast %164 : vector<1x1x128xf32> to vector<1x128xf32>
    %166 = vector.broadcast %165 : vector<1x128xf32> to vector<8x128xf32>
    %167 = arith.addf %163, %166 : vector<8x128xf32>
    %cst_125 = arith.constant 0.000000e+00 : f32
    %168 = vector.broadcast %cst_125 : f32 to vector<8x128xf32>
    %169 = arith.maximumf %167, %168 : vector<8x128xf32>
    %170 = arith.truncf %159 : vector<8x128xf32> to vector<8x128xbf16>
    %c8_126 = arith.constant 8 : index
    %c0_127 = arith.constant 0 : index
    %c0_128 = arith.constant 0 : index
    %171 = vector.load %arg3[%c8_126, %c0_127, %c0_128] : memref<22x128x128xbf16, #tpu.memory_space<vmem>>, vector<1x128x128xbf16>
    %172 = vector.shape_cast %171 : vector<1x128x128xbf16> to vector<128x128xbf16>
    %cst_129 = arith.constant dense<0.000000e+00> : vector<8x128xf32>
    %173 = tpu.matmul %170, %172, %cst_129 {dimension_numbers = #tpu.dot_dimension_numbers<[1], [0], [0], [1], [0, 0, 1, 1], [], []>} : vector<8x128xbf16>, vector<128x128xbf16>, vector<8x128xf32> -> vector<8x128xf32>
    %c8_130 = arith.constant 8 : index
    %c0_131 = arith.constant 0 : index
    %c0_132 = arith.constant 0 : index
    %174 = vector.load %arg4[%c8_130, %c0_131, %c0_132] : memref<21x1x128xf32, #tpu.memory_space<vmem>>, vector<1x1x128xf32>
    %175 = vector.shape_cast %174 : vector<1x1x128xf32> to vector<1x128xf32>
    %176 = vector.broadcast %175 : vector<1x128xf32> to vector<8x128xf32>
    %177 = arith.addf %173, %176 : vector<8x128xf32>
    %cst_133 = arith.constant 0.000000e+00 : f32
    %178 = vector.broadcast %cst_133 : f32 to vector<8x128xf32>
    %179 = arith.maximumf %177, %178 : vector<8x128xf32>
    %180 = arith.truncf %169 : vector<8x128xf32> to vector<8x128xbf16>
    %c8_134 = arith.constant 8 : index
    %c0_135 = arith.constant 0 : index
    %c0_136 = arith.constant 0 : index
    %181 = vector.load %arg3[%c8_134, %c0_135, %c0_136] : memref<22x128x128xbf16, #tpu.memory_space<vmem>>, vector<1x128x128xbf16>
    %182 = vector.shape_cast %181 : vector<1x128x128xbf16> to vector<128x128xbf16>
    %cst_137 = arith.constant dense<0.000000e+00> : vector<8x128xf32>
    %183 = tpu.matmul %180, %182, %cst_137 {dimension_numbers = #tpu.dot_dimension_numbers<[1], [0], [0], [1], [0, 0, 1, 1], [], []>} : vector<8x128xbf16>, vector<128x128xbf16>, vector<8x128xf32> -> vector<8x128xf32>
    %c8_138 = arith.constant 8 : index
    %c0_139 = arith.constant 0 : index
    %c0_140 = arith.constant 0 : index
    %184 = vector.load %arg4[%c8_138, %c0_139, %c0_140] : memref<21x1x128xf32, #tpu.memory_space<vmem>>, vector<1x1x128xf32>
    %185 = vector.shape_cast %184 : vector<1x1x128xf32> to vector<1x128xf32>
    %186 = vector.broadcast %185 : vector<1x128xf32> to vector<8x128xf32>
    %187 = arith.addf %183, %186 : vector<8x128xf32>
    %cst_141 = arith.constant 0.000000e+00 : f32
    %188 = vector.broadcast %cst_141 : f32 to vector<8x128xf32>
    %189 = arith.maximumf %187, %188 : vector<8x128xf32>
    %190 = arith.truncf %179 : vector<8x128xf32> to vector<8x128xbf16>
    %c9 = arith.constant 9 : index
    %c0_142 = arith.constant 0 : index
    %c0_143 = arith.constant 0 : index
    %191 = vector.load %arg3[%c9, %c0_142, %c0_143] : memref<22x128x128xbf16, #tpu.memory_space<vmem>>, vector<1x128x128xbf16>
    %192 = vector.shape_cast %191 : vector<1x128x128xbf16> to vector<128x128xbf16>
    %cst_144 = arith.constant dense<0.000000e+00> : vector<8x128xf32>
    %193 = tpu.matmul %190, %192, %cst_144 {dimension_numbers = #tpu.dot_dimension_numbers<[1], [0], [0], [1], [0, 0, 1, 1], [], []>} : vector<8x128xbf16>, vector<128x128xbf16>, vector<8x128xf32> -> vector<8x128xf32>
    %c9_145 = arith.constant 9 : index
    %c0_146 = arith.constant 0 : index
    %c0_147 = arith.constant 0 : index
    %194 = vector.load %arg4[%c9_145, %c0_146, %c0_147] : memref<21x1x128xf32, #tpu.memory_space<vmem>>, vector<1x1x128xf32>
    %195 = vector.shape_cast %194 : vector<1x1x128xf32> to vector<1x128xf32>
    %196 = vector.broadcast %195 : vector<1x128xf32> to vector<8x128xf32>
    %197 = arith.addf %193, %196 : vector<8x128xf32>
    %cst_148 = arith.constant 0.000000e+00 : f32
    %198 = vector.broadcast %cst_148 : f32 to vector<8x128xf32>
    %199 = arith.maximumf %197, %198 : vector<8x128xf32>
    %200 = arith.truncf %189 : vector<8x128xf32> to vector<8x128xbf16>
    %c9_149 = arith.constant 9 : index
    %c0_150 = arith.constant 0 : index
    %c0_151 = arith.constant 0 : index
    %201 = vector.load %arg3[%c9_149, %c0_150, %c0_151] : memref<22x128x128xbf16, #tpu.memory_space<vmem>>, vector<1x128x128xbf16>
    %202 = vector.shape_cast %201 : vector<1x128x128xbf16> to vector<128x128xbf16>
    %cst_152 = arith.constant dense<0.000000e+00> : vector<8x128xf32>
    %203 = tpu.matmul %200, %202, %cst_152 {dimension_numbers = #tpu.dot_dimension_numbers<[1], [0], [0], [1], [0, 0, 1, 1], [], []>} : vector<8x128xbf16>, vector<128x128xbf16>, vector<8x128xf32> -> vector<8x128xf32>
    %c9_153 = arith.constant 9 : index
    %c0_154 = arith.constant 0 : index
    %c0_155 = arith.constant 0 : index
    %204 = vector.load %arg4[%c9_153, %c0_154, %c0_155] : memref<21x1x128xf32, #tpu.memory_space<vmem>>, vector<1x1x128xf32>
    %205 = vector.shape_cast %204 : vector<1x1x128xf32> to vector<1x128xf32>
    %206 = vector.broadcast %205 : vector<1x128xf32> to vector<8x128xf32>
    %207 = arith.addf %203, %206 : vector<8x128xf32>
    %cst_156 = arith.constant 0.000000e+00 : f32
    %208 = vector.broadcast %cst_156 : f32 to vector<8x128xf32>
    %209 = arith.maximumf %207, %208 : vector<8x128xf32>
    %210 = arith.truncf %199 : vector<8x128xf32> to vector<8x128xbf16>
    %c10 = arith.constant 10 : index
    %c0_157 = arith.constant 0 : index
    %c0_158 = arith.constant 0 : index
    %211 = vector.load %arg3[%c10, %c0_157, %c0_158] : memref<22x128x128xbf16, #tpu.memory_space<vmem>>, vector<1x128x128xbf16>
    %212 = vector.shape_cast %211 : vector<1x128x128xbf16> to vector<128x128xbf16>
    %cst_159 = arith.constant dense<0.000000e+00> : vector<8x128xf32>
    %213 = tpu.matmul %210, %212, %cst_159 {dimension_numbers = #tpu.dot_dimension_numbers<[1], [0], [0], [1], [0, 0, 1, 1], [], []>} : vector<8x128xbf16>, vector<128x128xbf16>, vector<8x128xf32> -> vector<8x128xf32>
    %c10_160 = arith.constant 10 : index
    %c0_161 = arith.constant 0 : index
    %c0_162 = arith.constant 0 : index
    %214 = vector.load %arg4[%c10_160, %c0_161, %c0_162] : memref<21x1x128xf32, #tpu.memory_space<vmem>>, vector<1x1x128xf32>
    %215 = vector.shape_cast %214 : vector<1x1x128xf32> to vector<1x128xf32>
    %216 = vector.broadcast %215 : vector<1x128xf32> to vector<8x128xf32>
    %217 = arith.addf %213, %216 : vector<8x128xf32>
    %cst_163 = arith.constant 0.000000e+00 : f32
    %218 = vector.broadcast %cst_163 : f32 to vector<8x128xf32>
    %219 = arith.maximumf %217, %218 : vector<8x128xf32>
    %220 = arith.truncf %209 : vector<8x128xf32> to vector<8x128xbf16>
    %c10_164 = arith.constant 10 : index
    %c0_165 = arith.constant 0 : index
    %c0_166 = arith.constant 0 : index
    %221 = vector.load %arg3[%c10_164, %c0_165, %c0_166] : memref<22x128x128xbf16, #tpu.memory_space<vmem>>, vector<1x128x128xbf16>
    %222 = vector.shape_cast %221 : vector<1x128x128xbf16> to vector<128x128xbf16>
    %cst_167 = arith.constant dense<0.000000e+00> : vector<8x128xf32>
    %223 = tpu.matmul %220, %222, %cst_167 {dimension_numbers = #tpu.dot_dimension_numbers<[1], [0], [0], [1], [0, 0, 1, 1], [], []>} : vector<8x128xbf16>, vector<128x128xbf16>, vector<8x128xf32> -> vector<8x128xf32>
    %c10_168 = arith.constant 10 : index
    %c0_169 = arith.constant 0 : index
    %c0_170 = arith.constant 0 : index
    %224 = vector.load %arg4[%c10_168, %c0_169, %c0_170] : memref<21x1x128xf32, #tpu.memory_space<vmem>>, vector<1x1x128xf32>
    %225 = vector.shape_cast %224 : vector<1x1x128xf32> to vector<1x128xf32>
    %226 = vector.broadcast %225 : vector<1x128xf32> to vector<8x128xf32>
    %227 = arith.addf %223, %226 : vector<8x128xf32>
    %cst_171 = arith.constant 0.000000e+00 : f32
    %228 = vector.broadcast %cst_171 : f32 to vector<8x128xf32>
    %229 = arith.maximumf %227, %228 : vector<8x128xf32>
    %230 = arith.truncf %219 : vector<8x128xf32> to vector<8x128xbf16>
    %c11 = arith.constant 11 : index
    %c0_172 = arith.constant 0 : index
    %c0_173 = arith.constant 0 : index
    %231 = vector.load %arg3[%c11, %c0_172, %c0_173] : memref<22x128x128xbf16, #tpu.memory_space<vmem>>, vector<1x128x128xbf16>
    %232 = vector.shape_cast %231 : vector<1x128x128xbf16> to vector<128x128xbf16>
    %cst_174 = arith.constant dense<0.000000e+00> : vector<8x128xf32>
    %233 = tpu.matmul %230, %232, %cst_174 {dimension_numbers = #tpu.dot_dimension_numbers<[1], [0], [0], [1], [0, 0, 1, 1], [], []>} : vector<8x128xbf16>, vector<128x128xbf16>, vector<8x128xf32> -> vector<8x128xf32>
    %c11_175 = arith.constant 11 : index
    %c0_176 = arith.constant 0 : index
    %c0_177 = arith.constant 0 : index
    %234 = vector.load %arg4[%c11_175, %c0_176, %c0_177] : memref<21x1x128xf32, #tpu.memory_space<vmem>>, vector<1x1x128xf32>
    %235 = vector.shape_cast %234 : vector<1x1x128xf32> to vector<1x128xf32>
    %236 = vector.broadcast %235 : vector<1x128xf32> to vector<8x128xf32>
    %237 = arith.addf %233, %236 : vector<8x128xf32>
    %cst_178 = arith.constant 0.000000e+00 : f32
    %238 = vector.broadcast %cst_178 : f32 to vector<8x128xf32>
    %239 = arith.maximumf %237, %238 : vector<8x128xf32>
    %c12 = arith.constant 12 : index
    %c0_179 = arith.constant 0 : index
    %c0_180 = arith.constant 0 : index
    %240 = vector.load %arg3[%c12, %c0_179, %c0_180] : memref<22x128x128xbf16, #tpu.memory_space<vmem>>, vector<1x128x128xbf16>
    %241 = vector.shape_cast %240 : vector<1x128x128xbf16> to vector<128x128xbf16>
    %cst_181 = arith.constant dense<0.000000e+00> : vector<8x128xf32>
    %242 = tpu.matmul %230, %241, %cst_181 {dimension_numbers = #tpu.dot_dimension_numbers<[1], [0], [0], [1], [0, 0, 1, 1], [], []>} : vector<8x128xbf16>, vector<128x128xbf16>, vector<8x128xf32> -> vector<8x128xf32>
    %c12_182 = arith.constant 12 : index
    %c0_183 = arith.constant 0 : index
    %c0_184 = arith.constant 0 : index
    %243 = vector.load %arg4[%c12_182, %c0_183, %c0_184] : memref<21x1x128xf32, #tpu.memory_space<vmem>>, vector<1x1x128xf32>
    %244 = vector.shape_cast %243 : vector<1x1x128xf32> to vector<1x128xf32>
    %245 = vector.broadcast %244 : vector<1x128xf32> to vector<8x128xf32>
    %246 = arith.addf %242, %245 : vector<8x128xf32>
    %cst_185 = arith.constant 0.000000e+00 : f32
    %247 = vector.broadcast %cst_185 : f32 to vector<8x128xf32>
    %248 = arith.maximumf %246, %247 : vector<8x128xf32>
    %249 = arith.truncf %229 : vector<8x128xf32> to vector<8x128xbf16>
    %c11_186 = arith.constant 11 : index
    %c0_187 = arith.constant 0 : index
    %c0_188 = arith.constant 0 : index
    %250 = vector.load %arg3[%c11_186, %c0_187, %c0_188] : memref<22x128x128xbf16, #tpu.memory_space<vmem>>, vector<1x128x128xbf16>
    %251 = vector.shape_cast %250 : vector<1x128x128xbf16> to vector<128x128xbf16>
    %cst_189 = arith.constant dense<0.000000e+00> : vector<8x128xf32>
    %252 = tpu.matmul %249, %251, %cst_189 {dimension_numbers = #tpu.dot_dimension_numbers<[1], [0], [0], [1], [0, 0, 1, 1], [], []>} : vector<8x128xbf16>, vector<128x128xbf16>, vector<8x128xf32> -> vector<8x128xf32>
    %c11_190 = arith.constant 11 : index
    %c0_191 = arith.constant 0 : index
    %c0_192 = arith.constant 0 : index
    %253 = vector.load %arg4[%c11_190, %c0_191, %c0_192] : memref<21x1x128xf32, #tpu.memory_space<vmem>>, vector<1x1x128xf32>
    %254 = vector.shape_cast %253 : vector<1x1x128xf32> to vector<1x128xf32>
    %255 = vector.broadcast %254 : vector<1x128xf32> to vector<8x128xf32>
    %256 = arith.addf %252, %255 : vector<8x128xf32>
    %cst_193 = arith.constant 0.000000e+00 : f32
    %257 = vector.broadcast %cst_193 : f32 to vector<8x128xf32>
    %258 = arith.maximumf %256, %257 : vector<8x128xf32>
    %c12_194 = arith.constant 12 : index
    %c0_195 = arith.constant 0 : index
    %c0_196 = arith.constant 0 : index
    %259 = vector.load %arg3[%c12_194, %c0_195, %c0_196] : memref<22x128x128xbf16, #tpu.memory_space<vmem>>, vector<1x128x128xbf16>
    %260 = vector.shape_cast %259 : vector<1x128x128xbf16> to vector<128x128xbf16>
    %cst_197 = arith.constant dense<0.000000e+00> : vector<8x128xf32>
    %261 = tpu.matmul %249, %260, %cst_197 {dimension_numbers = #tpu.dot_dimension_numbers<[1], [0], [0], [1], [0, 0, 1, 1], [], []>} : vector<8x128xbf16>, vector<128x128xbf16>, vector<8x128xf32> -> vector<8x128xf32>
    %c12_198 = arith.constant 12 : index
    %c0_199 = arith.constant 0 : index
    %c0_200 = arith.constant 0 : index
    %262 = vector.load %arg4[%c12_198, %c0_199, %c0_200] : memref<21x1x128xf32, #tpu.memory_space<vmem>>, vector<1x1x128xf32>
    %263 = vector.shape_cast %262 : vector<1x1x128xf32> to vector<1x128xf32>
    %264 = vector.broadcast %263 : vector<1x128xf32> to vector<8x128xf32>
    %265 = arith.addf %261, %264 : vector<8x128xf32>
    %cst_201 = arith.constant 0.000000e+00 : f32
    %266 = vector.broadcast %cst_201 : f32 to vector<8x128xf32>
    %267 = arith.maximumf %265, %266 : vector<8x128xf32>
    %268 = arith.truncf %239 : vector<8x128xf32> to vector<8x128xbf16>
    %269 = arith.truncf %248 : vector<8x128xf32> to vector<8x128xbf16>
    %c13 = arith.constant 13 : index
    %c0_202 = arith.constant 0 : index
    %c0_203 = arith.constant 0 : index
    %270 = vector.load %arg3[%c13, %c0_202, %c0_203] : memref<22x128x128xbf16, #tpu.memory_space<vmem>>, vector<1x128x128xbf16>
    %271 = vector.shape_cast %270 : vector<1x128x128xbf16> to vector<128x128xbf16>
    %cst_204 = arith.constant dense<0.000000e+00> : vector<8x128xf32>
    %272 = tpu.matmul %268, %271, %cst_204 {dimension_numbers = #tpu.dot_dimension_numbers<[1], [0], [0], [1], [0, 0, 1, 1], [], []>} : vector<8x128xbf16>, vector<128x128xbf16>, vector<8x128xf32> -> vector<8x128xf32>
    %c14 = arith.constant 14 : index
    %c0_205 = arith.constant 0 : index
    %c0_206 = arith.constant 0 : index
    %273 = vector.load %arg3[%c14, %c0_205, %c0_206] : memref<22x128x128xbf16, #tpu.memory_space<vmem>>, vector<1x128x128xbf16>
    %274 = vector.shape_cast %273 : vector<1x128x128xbf16> to vector<128x128xbf16>
    %cst_207 = arith.constant dense<0.000000e+00> : vector<8x128xf32>
    %275 = tpu.matmul %269, %274, %cst_207 {dimension_numbers = #tpu.dot_dimension_numbers<[1], [0], [0], [1], [0, 0, 1, 1], [], []>} : vector<8x128xbf16>, vector<128x128xbf16>, vector<8x128xf32> -> vector<8x128xf32>
    %276 = arith.addf %272, %275 : vector<8x128xf32>
    %c13_208 = arith.constant 13 : index
    %c0_209 = arith.constant 0 : index
    %c0_210 = arith.constant 0 : index
    %277 = vector.load %arg4[%c13_208, %c0_209, %c0_210] : memref<21x1x128xf32, #tpu.memory_space<vmem>>, vector<1x1x128xf32>
    %278 = vector.shape_cast %277 : vector<1x1x128xf32> to vector<1x128xf32>
    %279 = vector.broadcast %278 : vector<1x128xf32> to vector<8x128xf32>
    %280 = arith.addf %276, %279 : vector<8x128xf32>
    %cst_211 = arith.constant 0.000000e+00 : f32
    %281 = vector.broadcast %cst_211 : f32 to vector<8x128xf32>
    %282 = arith.maximumf %280, %281 : vector<8x128xf32>
    %283 = arith.truncf %258 : vector<8x128xf32> to vector<8x128xbf16>
    %284 = arith.truncf %267 : vector<8x128xf32> to vector<8x128xbf16>
    %c13_212 = arith.constant 13 : index
    %c0_213 = arith.constant 0 : index
    %c0_214 = arith.constant 0 : index
    %285 = vector.load %arg3[%c13_212, %c0_213, %c0_214] : memref<22x128x128xbf16, #tpu.memory_space<vmem>>, vector<1x128x128xbf16>
    %286 = vector.shape_cast %285 : vector<1x128x128xbf16> to vector<128x128xbf16>
    %cst_215 = arith.constant dense<0.000000e+00> : vector<8x128xf32>
    %287 = tpu.matmul %283, %286, %cst_215 {dimension_numbers = #tpu.dot_dimension_numbers<[1], [0], [0], [1], [0, 0, 1, 1], [], []>} : vector<8x128xbf16>, vector<128x128xbf16>, vector<8x128xf32> -> vector<8x128xf32>
    %c14_216 = arith.constant 14 : index
    %c0_217 = arith.constant 0 : index
    %c0_218 = arith.constant 0 : index
    %288 = vector.load %arg3[%c14_216, %c0_217, %c0_218] : memref<22x128x128xbf16, #tpu.memory_space<vmem>>, vector<1x128x128xbf16>
    %289 = vector.shape_cast %288 : vector<1x128x128xbf16> to vector<128x128xbf16>
    %cst_219 = arith.constant dense<0.000000e+00> : vector<8x128xf32>
    %290 = tpu.matmul %284, %289, %cst_219 {dimension_numbers = #tpu.dot_dimension_numbers<[1], [0], [0], [1], [0, 0, 1, 1], [], []>} : vector<8x128xbf16>, vector<128x128xbf16>, vector<8x128xf32> -> vector<8x128xf32>
    %291 = arith.addf %287, %290 : vector<8x128xf32>
    %c13_220 = arith.constant 13 : index
    %c0_221 = arith.constant 0 : index
    %c0_222 = arith.constant 0 : index
    %292 = vector.load %arg4[%c13_220, %c0_221, %c0_222] : memref<21x1x128xf32, #tpu.memory_space<vmem>>, vector<1x1x128xf32>
    %293 = vector.shape_cast %292 : vector<1x1x128xf32> to vector<1x128xf32>
    %294 = vector.broadcast %293 : vector<1x128xf32> to vector<8x128xf32>
    %295 = arith.addf %291, %294 : vector<8x128xf32>
    %cst_223 = arith.constant 0.000000e+00 : f32
    %296 = vector.broadcast %cst_223 : f32 to vector<8x128xf32>
    %297 = arith.maximumf %295, %296 : vector<8x128xf32>
    %298 = arith.truncf %282 : vector<8x128xf32> to vector<8x128xbf16>
    %c15 = arith.constant 15 : index
    %c0_224 = arith.constant 0 : index
    %c0_225 = arith.constant 0 : index
    %299 = vector.load %arg3[%c15, %c0_224, %c0_225] : memref<22x128x128xbf16, #tpu.memory_space<vmem>>, vector<1x128x128xbf16>
    %300 = vector.shape_cast %299 : vector<1x128x128xbf16> to vector<128x128xbf16>
    %cst_226 = arith.constant dense<0.000000e+00> : vector<8x128xf32>
    %301 = tpu.matmul %298, %300, %cst_226 {dimension_numbers = #tpu.dot_dimension_numbers<[1], [0], [0], [1], [0, 0, 1, 1], [], []>} : vector<8x128xbf16>, vector<128x128xbf16>, vector<8x128xf32> -> vector<8x128xf32>
    %c14_227 = arith.constant 14 : index
    %c0_228 = arith.constant 0 : index
    %c0_229 = arith.constant 0 : index
    %302 = vector.load %arg4[%c14_227, %c0_228, %c0_229] : memref<21x1x128xf32, #tpu.memory_space<vmem>>, vector<1x1x128xf32>
    %303 = vector.shape_cast %302 : vector<1x1x128xf32> to vector<1x128xf32>
    %304 = vector.broadcast %303 : vector<1x128xf32> to vector<8x128xf32>
    %305 = arith.addf %301, %304 : vector<8x128xf32>
    %cst_230 = arith.constant 0.000000e+00 : f32
    %306 = vector.broadcast %cst_230 : f32 to vector<8x128xf32>
    %307 = arith.maximumf %305, %306 : vector<8x128xf32>
    %308 = arith.truncf %297 : vector<8x128xf32> to vector<8x128xbf16>
    %c15_231 = arith.constant 15 : index
    %c0_232 = arith.constant 0 : index
    %c0_233 = arith.constant 0 : index
    %309 = vector.load %arg3[%c15_231, %c0_232, %c0_233] : memref<22x128x128xbf16, #tpu.memory_space<vmem>>, vector<1x128x128xbf16>
    %310 = vector.shape_cast %309 : vector<1x128x128xbf16> to vector<128x128xbf16>
    %cst_234 = arith.constant dense<0.000000e+00> : vector<8x128xf32>
    %311 = tpu.matmul %308, %310, %cst_234 {dimension_numbers = #tpu.dot_dimension_numbers<[1], [0], [0], [1], [0, 0, 1, 1], [], []>} : vector<8x128xbf16>, vector<128x128xbf16>, vector<8x128xf32> -> vector<8x128xf32>
    %c14_235 = arith.constant 14 : index
    %c0_236 = arith.constant 0 : index
    %c0_237 = arith.constant 0 : index
    %312 = vector.load %arg4[%c14_235, %c0_236, %c0_237] : memref<21x1x128xf32, #tpu.memory_space<vmem>>, vector<1x1x128xf32>
    %313 = vector.shape_cast %312 : vector<1x1x128xf32> to vector<1x128xf32>
    %314 = vector.broadcast %313 : vector<1x128xf32> to vector<8x128xf32>
    %315 = arith.addf %311, %314 : vector<8x128xf32>
    %cst_238 = arith.constant 0.000000e+00 : f32
    %316 = vector.broadcast %cst_238 : f32 to vector<8x128xf32>
    %317 = arith.maximumf %315, %316 : vector<8x128xf32>
    %318 = arith.truncf %307 : vector<8x128xf32> to vector<8x128xbf16>
    %c16 = arith.constant 16 : index
    %c0_239 = arith.constant 0 : index
    %c0_240 = arith.constant 0 : index
    %319 = vector.load %arg3[%c16, %c0_239, %c0_240] : memref<22x128x128xbf16, #tpu.memory_space<vmem>>, vector<1x128x128xbf16>
    %320 = vector.shape_cast %319 : vector<1x128x128xbf16> to vector<128x128xbf16>
    %cst_241 = arith.constant dense<0.000000e+00> : vector<8x128xf32>
    %321 = tpu.matmul %318, %320, %cst_241 {dimension_numbers = #tpu.dot_dimension_numbers<[1], [0], [0], [1], [0, 0, 1, 1], [], []>} : vector<8x128xbf16>, vector<128x128xbf16>, vector<8x128xf32> -> vector<8x128xf32>
    %c15_242 = arith.constant 15 : index
    %c0_243 = arith.constant 0 : index
    %c0_244 = arith.constant 0 : index
    %322 = vector.load %arg4[%c15_242, %c0_243, %c0_244] : memref<21x1x128xf32, #tpu.memory_space<vmem>>, vector<1x1x128xf32>
    %323 = vector.shape_cast %322 : vector<1x1x128xf32> to vector<1x128xf32>
    %324 = vector.broadcast %323 : vector<1x128xf32> to vector<8x128xf32>
    %325 = arith.addf %321, %324 : vector<8x128xf32>
    %cst_245 = arith.constant 0.000000e+00 : f32
    %326 = vector.broadcast %cst_245 : f32 to vector<8x128xf32>
    %327 = arith.maximumf %325, %326 : vector<8x128xf32>
    %328 = arith.truncf %317 : vector<8x128xf32> to vector<8x128xbf16>
    %c16_246 = arith.constant 16 : index
    %c0_247 = arith.constant 0 : index
    %c0_248 = arith.constant 0 : index
    %329 = vector.load %arg3[%c16_246, %c0_247, %c0_248] : memref<22x128x128xbf16, #tpu.memory_space<vmem>>, vector<1x128x128xbf16>
    %330 = vector.shape_cast %329 : vector<1x128x128xbf16> to vector<128x128xbf16>
    %cst_249 = arith.constant dense<0.000000e+00> : vector<8x128xf32>
    %331 = tpu.matmul %328, %330, %cst_249 {dimension_numbers = #tpu.dot_dimension_numbers<[1], [0], [0], [1], [0, 0, 1, 1], [], []>} : vector<8x128xbf16>, vector<128x128xbf16>, vector<8x128xf32> -> vector<8x128xf32>
    %c15_250 = arith.constant 15 : index
    %c0_251 = arith.constant 0 : index
    %c0_252 = arith.constant 0 : index
    %332 = vector.load %arg4[%c15_250, %c0_251, %c0_252] : memref<21x1x128xf32, #tpu.memory_space<vmem>>, vector<1x1x128xf32>
    %333 = vector.shape_cast %332 : vector<1x1x128xf32> to vector<1x128xf32>
    %334 = vector.broadcast %333 : vector<1x128xf32> to vector<8x128xf32>
    %335 = arith.addf %331, %334 : vector<8x128xf32>
    %cst_253 = arith.constant 0.000000e+00 : f32
    %336 = vector.broadcast %cst_253 : f32 to vector<8x128xf32>
    %337 = arith.maximumf %335, %336 : vector<8x128xf32>
    %338 = arith.truncf %327 : vector<8x128xf32> to vector<8x128xbf16>
    %c17 = arith.constant 17 : index
    %c0_254 = arith.constant 0 : index
    %c0_255 = arith.constant 0 : index
    %339 = vector.load %arg3[%c17, %c0_254, %c0_255] : memref<22x128x128xbf16, #tpu.memory_space<vmem>>, vector<1x128x128xbf16>
    %340 = vector.shape_cast %339 : vector<1x128x128xbf16> to vector<128x128xbf16>
    %cst_256 = arith.constant dense<0.000000e+00> : vector<8x128xf32>
    %341 = tpu.matmul %338, %340, %cst_256 {dimension_numbers = #tpu.dot_dimension_numbers<[1], [0], [0], [1], [0, 0, 1, 1], [], []>} : vector<8x128xbf16>, vector<128x128xbf16>, vector<8x128xf32> -> vector<8x128xf32>
    %c16_257 = arith.constant 16 : index
    %c0_258 = arith.constant 0 : index
    %c0_259 = arith.constant 0 : index
    %342 = vector.load %arg4[%c16_257, %c0_258, %c0_259] : memref<21x1x128xf32, #tpu.memory_space<vmem>>, vector<1x1x128xf32>
    %343 = vector.shape_cast %342 : vector<1x1x128xf32> to vector<1x128xf32>
    %344 = vector.broadcast %343 : vector<1x128xf32> to vector<8x128xf32>
    %345 = arith.addf %341, %344 : vector<8x128xf32>
    %cst_260 = arith.constant 0.000000e+00 : f32
    %346 = vector.broadcast %cst_260 : f32 to vector<8x128xf32>
    %347 = arith.maximumf %345, %346 : vector<8x128xf32>
    %348 = arith.truncf %337 : vector<8x128xf32> to vector<8x128xbf16>
    %c17_261 = arith.constant 17 : index
    %c0_262 = arith.constant 0 : index
    %c0_263 = arith.constant 0 : index
    %349 = vector.load %arg3[%c17_261, %c0_262, %c0_263] : memref<22x128x128xbf16, #tpu.memory_space<vmem>>, vector<1x128x128xbf16>
    %350 = vector.shape_cast %349 : vector<1x128x128xbf16> to vector<128x128xbf16>
    %cst_264 = arith.constant dense<0.000000e+00> : vector<8x128xf32>
    %351 = tpu.matmul %348, %350, %cst_264 {dimension_numbers = #tpu.dot_dimension_numbers<[1], [0], [0], [1], [0, 0, 1, 1], [], []>} : vector<8x128xbf16>, vector<128x128xbf16>, vector<8x128xf32> -> vector<8x128xf32>
    %c16_265 = arith.constant 16 : index
    %c0_266 = arith.constant 0 : index
    %c0_267 = arith.constant 0 : index
    %352 = vector.load %arg4[%c16_265, %c0_266, %c0_267] : memref<21x1x128xf32, #tpu.memory_space<vmem>>, vector<1x1x128xf32>
    %353 = vector.shape_cast %352 : vector<1x1x128xf32> to vector<1x128xf32>
    %354 = vector.broadcast %353 : vector<1x128xf32> to vector<8x128xf32>
    %355 = arith.addf %351, %354 : vector<8x128xf32>
    %cst_268 = arith.constant 0.000000e+00 : f32
    %356 = vector.broadcast %cst_268 : f32 to vector<8x128xf32>
    %357 = arith.maximumf %355, %356 : vector<8x128xf32>
    %358 = arith.truncf %347 : vector<8x128xf32> to vector<8x128xbf16>
    %c18 = arith.constant 18 : index
    %c0_269 = arith.constant 0 : index
    %c0_270 = arith.constant 0 : index
    %359 = vector.load %arg3[%c18, %c0_269, %c0_270] : memref<22x128x128xbf16, #tpu.memory_space<vmem>>, vector<1x128x128xbf16>
    %360 = vector.shape_cast %359 : vector<1x128x128xbf16> to vector<128x128xbf16>
    %cst_271 = arith.constant dense<0.000000e+00> : vector<8x128xf32>
    %361 = tpu.matmul %358, %360, %cst_271 {dimension_numbers = #tpu.dot_dimension_numbers<[1], [0], [0], [1], [0, 0, 1, 1], [], []>} : vector<8x128xbf16>, vector<128x128xbf16>, vector<8x128xf32> -> vector<8x128xf32>
    %c17_272 = arith.constant 17 : index
    %c0_273 = arith.constant 0 : index
    %c0_274 = arith.constant 0 : index
    %362 = vector.load %arg4[%c17_272, %c0_273, %c0_274] : memref<21x1x128xf32, #tpu.memory_space<vmem>>, vector<1x1x128xf32>
    %363 = vector.shape_cast %362 : vector<1x1x128xf32> to vector<1x128xf32>
    %364 = vector.broadcast %363 : vector<1x128xf32> to vector<8x128xf32>
    %365 = arith.addf %361, %364 : vector<8x128xf32>
    %cst_275 = arith.constant 0.000000e+00 : f32
    %366 = vector.broadcast %cst_275 : f32 to vector<8x128xf32>
    %367 = arith.maximumf %365, %366 : vector<8x128xf32>
    %368 = arith.truncf %357 : vector<8x128xf32> to vector<8x128xbf16>
    %c18_276 = arith.constant 18 : index
    %c0_277 = arith.constant 0 : index
    %c0_278 = arith.constant 0 : index
    %369 = vector.load %arg3[%c18_276, %c0_277, %c0_278] : memref<22x128x128xbf16, #tpu.memory_space<vmem>>, vector<1x128x128xbf16>
    %370 = vector.shape_cast %369 : vector<1x128x128xbf16> to vector<128x128xbf16>
    %cst_279 = arith.constant dense<0.000000e+00> : vector<8x128xf32>
    %371 = tpu.matmul %368, %370, %cst_279 {dimension_numbers = #tpu.dot_dimension_numbers<[1], [0], [0], [1], [0, 0, 1, 1], [], []>} : vector<8x128xbf16>, vector<128x128xbf16>, vector<8x128xf32> -> vector<8x128xf32>
    %c17_280 = arith.constant 17 : index
    %c0_281 = arith.constant 0 : index
    %c0_282 = arith.constant 0 : index
    %372 = vector.load %arg4[%c17_280, %c0_281, %c0_282] : memref<21x1x128xf32, #tpu.memory_space<vmem>>, vector<1x1x128xf32>
    %373 = vector.shape_cast %372 : vector<1x1x128xf32> to vector<1x128xf32>
    %374 = vector.broadcast %373 : vector<1x128xf32> to vector<8x128xf32>
    %375 = arith.addf %371, %374 : vector<8x128xf32>
    %cst_283 = arith.constant 0.000000e+00 : f32
    %376 = vector.broadcast %cst_283 : f32 to vector<8x128xf32>
    %377 = arith.maximumf %375, %376 : vector<8x128xf32>
    %378 = arith.truncf %367 : vector<8x128xf32> to vector<8x128xbf16>
    %c19 = arith.constant 19 : index
    %c0_284 = arith.constant 0 : index
    %c0_285 = arith.constant 0 : index
    %379 = vector.load %arg3[%c19, %c0_284, %c0_285] : memref<22x128x128xbf16, #tpu.memory_space<vmem>>, vector<1x128x128xbf16>
    %380 = vector.shape_cast %379 : vector<1x128x128xbf16> to vector<128x128xbf16>
    %cst_286 = arith.constant dense<0.000000e+00> : vector<8x128xf32>
    %381 = tpu.matmul %378, %380, %cst_286 {dimension_numbers = #tpu.dot_dimension_numbers<[1], [0], [0], [1], [0, 0, 1, 1], [], []>} : vector<8x128xbf16>, vector<128x128xbf16>, vector<8x128xf32> -> vector<8x128xf32>
    %c18_287 = arith.constant 18 : index
    %c0_288 = arith.constant 0 : index
    %c0_289 = arith.constant 0 : index
    %382 = vector.load %arg4[%c18_287, %c0_288, %c0_289] : memref<21x1x128xf32, #tpu.memory_space<vmem>>, vector<1x1x128xf32>
    %383 = vector.shape_cast %382 : vector<1x1x128xf32> to vector<1x128xf32>
    %384 = vector.broadcast %383 : vector<1x128xf32> to vector<8x128xf32>
    %385 = arith.addf %381, %384 : vector<8x128xf32>
    %cst_290 = arith.constant 0.000000e+00 : f32
    %386 = vector.broadcast %cst_290 : f32 to vector<8x128xf32>
    %387 = arith.maximumf %385, %386 : vector<8x128xf32>
    %388 = arith.truncf %377 : vector<8x128xf32> to vector<8x128xbf16>
    %c19_291 = arith.constant 19 : index
    %c0_292 = arith.constant 0 : index
    %c0_293 = arith.constant 0 : index
    %389 = vector.load %arg3[%c19_291, %c0_292, %c0_293] : memref<22x128x128xbf16, #tpu.memory_space<vmem>>, vector<1x128x128xbf16>
    %390 = vector.shape_cast %389 : vector<1x128x128xbf16> to vector<128x128xbf16>
    %cst_294 = arith.constant dense<0.000000e+00> : vector<8x128xf32>
    %391 = tpu.matmul %388, %390, %cst_294 {dimension_numbers = #tpu.dot_dimension_numbers<[1], [0], [0], [1], [0, 0, 1, 1], [], []>} : vector<8x128xbf16>, vector<128x128xbf16>, vector<8x128xf32> -> vector<8x128xf32>
    %c18_295 = arith.constant 18 : index
    %c0_296 = arith.constant 0 : index
    %c0_297 = arith.constant 0 : index
    %392 = vector.load %arg4[%c18_295, %c0_296, %c0_297] : memref<21x1x128xf32, #tpu.memory_space<vmem>>, vector<1x1x128xf32>
    %393 = vector.shape_cast %392 : vector<1x1x128xf32> to vector<1x128xf32>
    %394 = vector.broadcast %393 : vector<1x128xf32> to vector<8x128xf32>
    %395 = arith.addf %391, %394 : vector<8x128xf32>
    %cst_298 = arith.constant 0.000000e+00 : f32
    %396 = vector.broadcast %cst_298 : f32 to vector<8x128xf32>
    %397 = arith.maximumf %395, %396 : vector<8x128xf32>
    %398 = arith.truncf %387 : vector<8x128xf32> to vector<8x128xbf16>
    %c20 = arith.constant 20 : index
    %c0_299 = arith.constant 0 : index
    %c0_300 = arith.constant 0 : index
    %399 = vector.load %arg3[%c20, %c0_299, %c0_300] : memref<22x128x128xbf16, #tpu.memory_space<vmem>>, vector<1x128x128xbf16>
    %400 = vector.shape_cast %399 : vector<1x128x128xbf16> to vector<128x128xbf16>
    %cst_301 = arith.constant dense<0.000000e+00> : vector<8x128xf32>
    %401 = tpu.matmul %398, %400, %cst_301 {dimension_numbers = #tpu.dot_dimension_numbers<[1], [0], [0], [1], [0, 0, 1, 1], [], []>} : vector<8x128xbf16>, vector<128x128xbf16>, vector<8x128xf32> -> vector<8x128xf32>
    %c19_302 = arith.constant 19 : index
    %c0_303 = arith.constant 0 : index
    %c0_304 = arith.constant 0 : index
    %402 = vector.load %arg4[%c19_302, %c0_303, %c0_304] : memref<21x1x128xf32, #tpu.memory_space<vmem>>, vector<1x1x128xf32>
    %403 = vector.shape_cast %402 : vector<1x1x128xf32> to vector<1x128xf32>
    %404 = vector.broadcast %403 : vector<1x128xf32> to vector<8x128xf32>
    %405 = arith.addf %401, %404 : vector<8x128xf32>
    %cst_305 = arith.constant 0.000000e+00 : f32
    %406 = vector.broadcast %cst_305 : f32 to vector<8x128xf32>
    %407 = arith.maximumf %405, %406 : vector<8x128xf32>
    %408 = arith.truncf %397 : vector<8x128xf32> to vector<8x128xbf16>
    %c20_306 = arith.constant 20 : index
    %c0_307 = arith.constant 0 : index
    %c0_308 = arith.constant 0 : index
    %409 = vector.load %arg3[%c20_306, %c0_307, %c0_308] : memref<22x128x128xbf16, #tpu.memory_space<vmem>>, vector<1x128x128xbf16>
    %410 = vector.shape_cast %409 : vector<1x128x128xbf16> to vector<128x128xbf16>
    %cst_309 = arith.constant dense<0.000000e+00> : vector<8x128xf32>
    %411 = tpu.matmul %408, %410, %cst_309 {dimension_numbers = #tpu.dot_dimension_numbers<[1], [0], [0], [1], [0, 0, 1, 1], [], []>} : vector<8x128xbf16>, vector<128x128xbf16>, vector<8x128xf32> -> vector<8x128xf32>
    %c19_310 = arith.constant 19 : index
    %c0_311 = arith.constant 0 : index
    %c0_312 = arith.constant 0 : index
    %412 = vector.load %arg4[%c19_310, %c0_311, %c0_312] : memref<21x1x128xf32, #tpu.memory_space<vmem>>, vector<1x1x128xf32>
    %413 = vector.shape_cast %412 : vector<1x1x128xf32> to vector<1x128xf32>
    %414 = vector.broadcast %413 : vector<1x128xf32> to vector<8x128xf32>
    %415 = arith.addf %411, %414 : vector<8x128xf32>
    %cst_313 = arith.constant 0.000000e+00 : f32
    %416 = vector.broadcast %cst_313 : f32 to vector<8x128xf32>
    %417 = arith.maximumf %415, %416 : vector<8x128xf32>
    %418 = arith.truncf %407 : vector<8x128xf32> to vector<8x128xbf16>
    %c21 = arith.constant 21 : index
    %c0_314 = arith.constant 0 : index
    %c0_315 = arith.constant 0 : index
    %419 = vector.load %arg3[%c21, %c0_314, %c0_315] : memref<22x128x128xbf16, #tpu.memory_space<vmem>>, vector<1x128x128xbf16>
    %420 = vector.shape_cast %419 : vector<1x128x128xbf16> to vector<128x128xbf16>
    %cst_316 = arith.constant dense<0.000000e+00> : vector<8x128xf32>
    %421 = tpu.matmul %418, %420, %cst_316 {dimension_numbers = #tpu.dot_dimension_numbers<[1], [0], [0], [1], [0, 0, 1, 1], [], []>} : vector<8x128xbf16>, vector<128x128xbf16>, vector<8x128xf32> -> vector<8x128xf32>
    %c20_317 = arith.constant 20 : index
    %c0_318 = arith.constant 0 : index
    %c0_319 = arith.constant 0 : index
    %422 = vector.load %arg4[%c20_317, %c0_318, %c0_319] : memref<21x1x128xf32, #tpu.memory_space<vmem>>, vector<1x1x128xf32>
    %423 = vector.shape_cast %422 : vector<1x1x128xf32> to vector<1x128xf32>
    %424 = vector.broadcast %423 : vector<1x128xf32> to vector<8x128xf32>
    %425 = arith.addf %421, %424 : vector<8x128xf32>
    %426 = arith.truncf %417 : vector<8x128xf32> to vector<8x128xbf16>
    %c21_320 = arith.constant 21 : index
    %c0_321 = arith.constant 0 : index
    %c0_322 = arith.constant 0 : index
    %427 = vector.load %arg3[%c21_320, %c0_321, %c0_322] : memref<22x128x128xbf16, #tpu.memory_space<vmem>>, vector<1x128x128xbf16>
    %428 = vector.shape_cast %427 : vector<1x128x128xbf16> to vector<128x128xbf16>
    %cst_323 = arith.constant dense<0.000000e+00> : vector<8x128xf32>
    %429 = tpu.matmul %426, %428, %cst_323 {dimension_numbers = #tpu.dot_dimension_numbers<[1], [0], [0], [1], [0, 0, 1, 1], [], []>} : vector<8x128xbf16>, vector<128x128xbf16>, vector<8x128xf32> -> vector<8x128xf32>
    %c20_324 = arith.constant 20 : index
    %c0_325 = arith.constant 0 : index
    %c0_326 = arith.constant 0 : index
    %430 = vector.load %arg4[%c20_324, %c0_325, %c0_326] : memref<21x1x128xf32, #tpu.memory_space<vmem>>, vector<1x1x128xf32>
    %431 = vector.shape_cast %430 : vector<1x1x128xf32> to vector<1x128xf32>
    %432 = vector.broadcast %431 : vector<1x128xf32> to vector<8x128xf32>
    %433 = arith.addf %429, %432 : vector<8x128xf32>
    %c0_327 = arith.constant 0 : index
    %c0_328 = arith.constant 0 : index
    %434 = vector.load %arg5[%c0_327, %c0_328] : memref<16x128xf32, #tpu.memory_space<vmem>>, vector<8x128xf32>
    tpu.vector_store %arg5[%c0_327, %c0_328], %425 {strides = array<i32>} : memref<16x128xf32, #tpu.memory_space<vmem>>, vector<8x128xf32>,
    %c8_329 = arith.constant 8 : index
    %c0_330 = arith.constant 0 : index
    %435 = vector.load %arg5[%c8_329, %c0_330] : memref<16x128xf32, #tpu.memory_space<vmem>>, vector<8x128xf32>
    tpu.vector_store %arg5[%c8_329, %c0_330], %433 {strides = array<i32>} : memref<16x128xf32, #tpu.memory_space<vmem>>, vector<8x128xf32>,
    return
  }
  func.func @transform_0(%arg0: i32) -> (i32, i32) {
    %c0_i32 = arith.constant 0 : i32
    %c0_i32_0 = arith.constant 0 : i32
    return %arg0, %c0_i32 : i32, i32
  }
  func.func @transform_1(%arg0: i32) -> (i32, i32) {
    %c0_i32 = arith.constant 0 : i32
    %c0_i32_0 = arith.constant 0 : i32
    %c0_i32_1 = arith.constant 0 : i32
    return %c0_i32, %c0_i32_0 : i32, i32
  }
  func.func @transform_2(%arg0: i32) -> (i32, i32, i32) {
    %c0_i32 = arith.constant 0 : i32
    %c0_i32_0 = arith.constant 0 : i32
    %c0_i32_1 = arith.constant 0 : i32
    %c0_i32_2 = arith.constant 0 : i32
    return %c0_i32, %c0_i32_0, %c0_i32_1 : i32, i32, i32
  }
  func.func @transform_3(%arg0: i32) -> (i32, i32, i32) {
    %c0_i32 = arith.constant 0 : i32
    %c0_i32_0 = arith.constant 0 : i32
    %c0_i32_1 = arith.constant 0 : i32
    %c0_i32_2 = arith.constant 0 : i32
    return %c0_i32, %c0_i32_0, %c0_i32_1 : i32, i32, i32
  }
  func.func @transform_4(%arg0: i32) -> (i32, i32) {
    %c0_i32 = arith.constant 0 : i32
    %c0_i32_0 = arith.constant 0 : i32
    return %arg0, %c0_i32 : i32, i32
  }
}

</mosaic_0001>

<bundles_post_ra>
// kernel: _lambda_.1
= control target key start
LH: loop header
LB: loop body
LE: loop exit
PB: predicated region body
PF: predicated region fallthrough
CT: control target
= control target key end

     0   :  { %9 = vsyncpa [#allocation3], 0  ;;  %s5203_s15 = smov [#allocation2]   ;;  %s5888_s0 = inlined_call_operand.vmem [shape: f32[16,1], index: 0, kind: input, shape index: {}]   ;;  %s5889_s1 = inlined_call_operand.vmem [shape: f32[1,128], index: 1, kind: input, shape index: {}]   ;;  %s5890_s2 = inlined_call_operand.hbm [shape: bf16[22,128,128], index: 2, kind: input, shape index: {}]   ;;  %s5891_s3 = inlined_call_operand.vmem [shape: f32[21,1,128], index: 3, kind: input, shape index: {}]   ;;  %s5892_s4 = inlined_call_operand.vmem [shape: f32[16,128], index: 4, kind: output, shape index: {}]  }
   0x1   :  { %s19_s16 = sshll.u32 %s5203_s15, 4  ;;  %s5179_s19 = scalar_lea.hbm %s5890_s2, 22528  ;;  %s20_s16 = int_to_ptr.vmem [resolvable:$true] %s19_s16 }
   0x2   :  { %p5180_p0 = scmp.ne.s32.totalorder %s5890_s2, %s5179_s19  ;;  %p5183_p1 = scmp.lt.u32.totalorder %s5179_s19, %s5890_s2 }
   0x4   :  { %p5185_p2 = pnand %p5183_p1, %p5180_p0 }
   0x6   :  { %5188 = shalt.err (!%p5185_p2)
}
   0x7   :  { %s5189_s24 = scalar_lea.vmem %s20_s16, 22528  ;;  %p5194_p4 = scmp.lt.s32.totalorder %s20_s16, %s20_s16 }
   0x8   :  { %p5190_p3 = scmp.ne.s32.totalorder %s20_s16, %s5189_s24  ;;  %p5195_p5 = scmp.lt.s32.totalorder %s5189_s24, %s5189_s24 }
   0xa   :  { %p5196_p6 = por %p5195_p5, %p5194_p4 }
   0xc   :  { %p5197_p7 = pnand %p5196_p6, %p5190_p3 }
   0xe   :  { %5200 = shalt.err (!%p5197_p7)
}
   0xf   :  { %s5204_s25 = smov 64   ;;  %s5205_s26 = smov 4  }
  0x10   :  { %25 = dma.hbm_to_vmem [thread:$0]  %s5890_s2, 22528, %s20_s16, [#allocation3], %s5204_s25, %s5204_s25, %s5205_s26  }
  0x11   :  { %5201 = dma.done.wait [#allocation3], 22528  }
  0x12   :  { %5202 = vsyncadd [#allocation3], 4294944768  ;;  %v5206_v0 = vmov 0   ;;  %v5207_v1 = vmov 0.0   ;;  %v32_v2 = vld [vmem:[%s5888_s0] sm:$0xff]  ;;  %v55_v4 = vld [vmem:[%s5888_s0 + $0x8] sm:$0xff] }
  0x13   :  { %5002 = vset.pattern.permute.xlu0 %v5206_v0  ;;  %4116 = vmatprep.subr.bf16.mxu0 %v5207_v1  ;;  %v5003_v3 = vld [vmem:[#allocation2] sm:$0xff]   ;;  %v5004_v5 = vld [vmem:[#allocation2 + $0x8] sm:$0xff]   ;;  %v5005_v6 = vld [vmem:[#allocation2 + $0x10] sm:$0xff]   ;;  %vm5208_vm0 = vmmov 0  }
  0x14   :  { %4136 = vmatprep.subr.bf16.mxu1 %v5207_v1  ;;  %36 = vperm.xlu0 %5002, %v32_v2   ;;  %v5006_v7 = vld [vmem:[#allocation2 + $0x18] sm:$0xff]   ;;  %v5007_v8 = vld [vmem:[#allocation2 + $0x20] sm:$0xff]   ;;  %v5008_v9 = vld [vmem:[#allocation2 + $0x28] sm:$0xff]  }
  0x15   :  { %4117 = vmatpush3.bf16.msra.mxu0 %v5003_v3  ;;  %4137 = vmatpush3.bf16.msra.mxu1 %v5003_v3  ;;  %v5009_v10 = vld [vmem:[#allocation2 + $0x30] sm:$0xff]   ;;  %v5010_v11 = vld [vmem:[#allocation2 + $0x38] sm:$0xff]   ;;  %v3502_v12 = vld [vmem:[%s5889_s1] ss:$0 sm:$0xff] }
  0x16   :  { %4118 = vmatprep.subr.bf16.mxu0 %v5207_v1  ;;  %4138 = vmatprep.subr.bf16.mxu1 %v5207_v1  ;;  %v3503_v13 = vld [vmem:[%s5891_s3] ss:$0 sm:$0xff]  ;;  %v5285_v25 = vld [vmem:[#allocation2 + $0x48] sm:$0xff]   ;;  %v5292_v28 = vld [vmem:[#allocation2 + $0x50] sm:$0xff]  }
  0x17   :  { %4132 = vmatprep.mubr.msk.bf16.mxu0 %vm5208_vm0, %v5207_v1  ;;  %4152 = vmatprep.mubr.msk.bf16.mxu1 %vm5208_vm0, %v5207_v1  ;;  %v5280_v20 = vld [vmem:[#allocation2 + $0x40] sm:$0xff]   ;;  %v5014_v27 = vld [vmem:[#allocation2 + $0x88] sm:$0xff]   ;;  %v5016_v29 = vld [vmem:[#allocation2 + $0x90] sm:$0xff]  }
  0x18   :  { %58 = vperm.xlu0 %5002, %v55_v4   ;;  %v5283_v24 = vld [vmem:[#allocation2 + $0x80] sm:$0xff]   ;;  %v5017_v30 = vld [vmem:[#allocation2 + $0x58] sm:$0xff]   ;;  %v5021_v34 = vld [vmem:[#allocation2 + $0x68] sm:$0xff]  }
  0x19   :  { %4119 = vmatpush3.bf16.msra.mxu0 %v5004_v5  ;;  %4139 = vmatpush3.bf16.msra.mxu1 %v5004_v5  ;;  %v5018_v31 = vld [vmem:[#allocation2 + $0x98] sm:$0xff]   ;;  %v5019_v32 = vld [vmem:[#allocation2 + $0x60] sm:$0xff]   ;;  %v5022_v35 = vld [vmem:[#allocation2 + $0xa8] sm:$0xff]  }
  0x1a   :  { %4120 = vmatprep.subr.bf16.mxu0 %v5207_v1  ;;  %4140 = vmatprep.subr.bf16.mxu1 %v5207_v1  ;;  %v5020_v33 = vld [vmem:[#allocation2 + $0xa0] sm:$0xff]   ;;  %v5023_v36 = vld [vmem:[#allocation2 + $0x70] sm:$0xff]   ;;  %v5025_v38 = vld [vmem:[#allocation2 + $0x78] sm:$0xff]  }
  0x1b   :  { %v5024_v37 = vld [vmem:[#allocation2 + $0xb0] sm:$0xff]   ;;  %v5026_v39 = vld [vmem:[#allocation2 + $0xb8] sm:$0xff]   ;;  %v3505_v40 = vld [vmem:[%s5891_s3 + $0x1] ss:$0 sm:$0xff] }
  0x1c   :  { %v5337_v54 = vld [vmem:[#allocation2 + $0x100] sm:$0xff]   ;;  %v5345_v57 = vld [vmem:[#allocation2 + $0x108] sm:$0xff]   ;;  %v5357_v59 = vld [vmem:[#allocation2 + $0x110] sm:$0xff]  }
  0x1d   :  { %4121 = vmatpush3.bf16.msra.mxu0 %v5005_v6  ;;  %4141 = vmatpush3.bf16.msra.mxu1 %v5005_v6  ;;  %v5339_v55 = vld [vmem:[#allocation2 + $0xc0] sm:$0xff]   ;;  %v5347_v58 = vld [vmem:[#allocation2 + $0xc8] sm:$0xff]   ;;  %v5359_v60 = vld [vmem:[#allocation2 + $0xd0] sm:$0xff]  }
  0x1e   :  { %4122 = vmatprep.subr.bf16.mxu0 %v5207_v1  ;;  %4142 = vmatprep.subr.bf16.mxu1 %v5207_v1  ;;  %v5365_v61 = vld [vmem:[#allocation2 + $0x118] sm:$0xff]   ;;  %v5035_v63 = vld [vmem:[#allocation2 + $0x120] sm:$0xff]   ;;  %v5037_v2 = vld [vmem:[#allocation2 + $0x128] sm:$0xff]  }
  0x1f   :  { %v5367_v62 = vld [vmem:[#allocation2 + $0xd8] sm:$0xff]   ;;  %v5036_v0 = vld [vmem:[#allocation2 + $0xe0] sm:$0xff]   ;;  %v5038_v3 = vld [vmem:[#allocation2 + $0xe8] sm:$0xff]  }
  0x20   :  { %v5039_v4 = vld [vmem:[#allocation2 + $0x130] sm:$0xff]   ;;  %v5381_v6 = vld [vmem:[#allocation2 + $0x138] sm:$0xff]  }
  0x21   :  { %4123 = vmatpush3.bf16.msra.mxu0 %v5006_v7  ;;  %4143 = vmatpush3.bf16.msra.mxu1 %v5006_v7  ;;  %v5040_v5 = vld [vmem:[#allocation2 + $0xf0] sm:$0xff]   ;;  %v5383_v7 = vld [vmem:[#allocation2 + $0xf8] sm:$0xff]  }
  0x22   :  { %4124 = vmatprep.subr.bf16.mxu0 %v5207_v1  ;;  %4144 = vmatprep.subr.bf16.mxu1 %v5207_v1 }
  0x25   :  { %4125 = vmatpush3.bf16.msra.mxu0 %v5007_v8  ;;  %4145 = vmatpush3.bf16.msra.mxu1 %v5007_v8  ;;  %v3515_v8 = vld [vmem:[%s5891_s3 + $0x2] ss:$0 sm:$0xff] }
  0x26   :  { %4126 = vmatprep.subr.bf16.mxu0 %v5207_v1  ;;  %4146 = vmatprep.subr.bf16.mxu1 %v5207_v1 }
  0x29   :  { %4127 = vmatpush3.bf16.msra.mxu0 %v5008_v9  ;;  %4147 = vmatpush3.bf16.msra.mxu1 %v5008_v9  ;;  %v3525_v9 = vld [vmem:[%s5891_s3 + $0x3] ss:$0 sm:$0xff] }
  0x2a   :  { %4128 = vmatprep.subr.bf16.mxu0 %v5207_v1  ;;  %4148 = vmatprep.subr.bf16.mxu1 %v5207_v1 }
  0x2d   :  { %4129 = vmatpush3.bf16.msra.mxu0 %v5009_v10  ;;  %4149 = vmatpush3.bf16.msra.mxu1 %v5009_v10 }
  0x2e   :  { %4130 = vmatprep.subr.bf16.mxu0 %v5207_v1  ;;  %4150 = vmatprep.subr.bf16.mxu1 %v5207_v1 }
  0x31   :  { %4131 = vmatpush3.bf16.msra.mxu0 %v5010_v11  ;;  %4151 = vmatpush3.bf16.msra.mxu1 %v5010_v11 }
  0x32   :  { %4156 = vmatprep.subr.bf16.mxu0 %v5207_v1  ;;  %4176 = vmatprep.subr.bf16.mxu1 %v5207_v1 }
  0x93   :  { %v37_v14 = vpop.permute.xlu0 %36 }
  0x94   :  { %v45_v15 = vmul.f32 %v3502_v12, %v37_v14 }
  0x96   :  { %v53_v16 = vadd.f32 %v3503_v13, %v45_v15 }
  0x97   :  { %v59_v17 = vpop.permute.xlu0 %58 }
  0x98   :  { %v54_v18 = vmax.f32 %v53_v16, 0.0  ;;  %v61_v19 = vmul.f32 %v3502_v12, %v59_v17 }
  0x9a   :  { %v64_v21 = vpack.c.bf16 %v54_v18, %v54_v18  ;;  %v62_v22 = vadd.f32 %v3503_v13, %v61_v19 }
  0x9c   :  { %v63_v23 = vmax.f32 %v62_v22, 0.0  ;;  %4133 = vmatmul.mubr.bf16.vlgmr.msra.gmra.mrb[0].mxu0 %v64_v21 }
  0x9d   :  { %4157 = vmatpush3.bf16.msra.mxu0 %v5280_v20  ;;  %4172 = vmatprep.mubr.msk.bf16.mxu0 %vm5208_vm0, %v5207_v1 }
  0x9e   :  { %v178_v26 = vpack.c.bf16 %v63_v23, %v63_v23  ;;  %4158 = vmatprep.subr.bf16.mxu0 %v5207_v1 }
  0xa0   :  { %4153 = vmatmul.mubr.bf16.vlgmr.msra.gmra.mrb[0].mxu1 %v178_v26 }
  0xa1   :  { %4177 = vmatpush3.bf16.msra.mxu1 %v5283_v24  ;;  %4159 = vmatpush3.bf16.msra.mxu0 %v5285_v25 }
  0xa2   :  { %4178 = vmatprep.subr.bf16.mxu1 %v5207_v1  ;;  %4160 = vmatprep.subr.bf16.mxu0 %v5207_v1 }
  0xa3   :  { %4192 = vmatprep.mubr.msk.bf16.mxu1 %vm5208_vm0, %v5207_v1 }
  0xa5   :  { %4179 = vmatpush3.bf16.msra.mxu1 %v5014_v27  ;;  %4161 = vmatpush3.bf16.msra.mxu0 %v5292_v28 }
  0xa6   :  { %4180 = vmatprep.subr.bf16.mxu1 %v5207_v1  ;;  %4162 = vmatprep.subr.bf16.mxu0 %v5207_v1 }
  0xa9   :  { %4181 = vmatpush3.bf16.msra.mxu1 %v5016_v29  ;;  %4163 = vmatpush3.bf16.msra.mxu0 %v5017_v30 }
  0xaa   :  { %4182 = vmatprep.subr.bf16.mxu1 %v5207_v1  ;;  %4164 = vmatprep.subr.bf16.mxu0 %v5207_v1 }
  0xad   :  { %4183 = vmatpush3.bf16.msra.mxu1 %v5018_v31  ;;  %4165 = vmatpush3.bf16.msra.mxu0 %v5019_v32 }
  0xae   :  { %4184 = vmatprep.subr.bf16.mxu1 %v5207_v1  ;;  %4166 = vmatprep.subr.bf16.mxu0 %v5207_v1 }
  0xb1   :  { %4185 = vmatpush3.bf16.msra.mxu1 %v5020_v33  ;;  %4167 = vmatpush3.bf16.msra.mxu0 %v5021_v34 }
  0xb2   :  { %4186 = vmatprep.subr.bf16.mxu1 %v5207_v1  ;;  %4168 = vmatprep.subr.bf16.mxu0 %v5207_v1 }
  0xb5   :  { %4187 = vmatpush3.bf16.msra.mxu1 %v5022_v35  ;;  %4169 = vmatpush3.bf16.msra.mxu0 %v5023_v36 }
  0xb6   :  { %4188 = vmatprep.subr.bf16.mxu1 %v5207_v1  ;;  %4170 = vmatprep.subr.bf16.mxu0 %v5207_v1 }
  0xb9   :  { %4189 = vmatpush3.bf16.msra.mxu1 %v5024_v37  ;;  %4171 = vmatpush3.bf16.msra.mxu0 %v5025_v38 }
  0xba   :  { %4190 = vmatprep.subr.bf16.mxu1 %v5207_v1  ;;  %4196 = vmatprep.subr.bf16.mxu0 %v5207_v1 }
  0xbd   :  { %4191 = vmatpush3.bf16.msra.mxu1 %v5026_v39 }
  0xbe   :  { %4216 = vmatprep.subr.bf16.mxu1 %v5207_v1 }
 0x16f   :  { %v171_v41 = vpop.f32.mrb[0].mxu0 }
 0x170   :  { %v172_v42 = vadd.f32 %v3505_v40, %v171_v41  ;;  %v4134_v43 = vpop.f32.mrb[1].mxu0  ;;  %v5046_v41 = vld [vmem:[#allocation2 + $0x158] sm:$0xff]  }
 0x171   :  { %v174_v44 = vpop.f32.mrb[2].mxu0  ;;  %v5048_v43 = vld [vmem:[#allocation2 + $0x168] sm:$0xff]  }
 0x172   :  { %v177_v45 = vmax.f32 %v172_v42, 0.0  ;;  %v4135_v46 = vpop.f32.mrb[3].mxu0  ;;  %v5047_v42 = vld [vmem:[#allocation2 + $0x160] sm:$0xff]   ;;  %v5049_v44 = vld [vmem:[#allocation2 + $0x170] sm:$0xff]  }
 0x173   :  { %v213_v47 = vpop.f32.mrb[0].mxu1 }
 0x174   :  { %v220_v48 = vpack.c.bf16 %v177_v45, %v177_v45  ;;  %v4154_v49 = vpop.f32.mrb[1].mxu1  ;;  %v214_v52 = vadd.f32 %v3505_v40, %v213_v47  ;;  %v5045_v40 = vld [vmem:[#allocation2 + $0x150] sm:$0xff]   ;;  %v5050_v45 = vld [vmem:[#allocation2 + $0x178] sm:$0xff]  }
 0x175   :  { %v216_v50 = vpop.f32.mrb[2].mxu1 }
 0x176   :  { %v4155_v51 = vpop.f32.mrb[3].mxu1  ;;  %4173 = vmatmul.mubr.bf16.vlgmr.msra.gmra.mrb[4].mxu0 %v220_v48  ;;  %4193 = vmatmul.mubr.bf16.vlgmr.msra.gmra.mrb[4].mxu1 %v220_v48  ;;  %v219_v53 = vmax.f32 %v214_v52, 0.0  ;;  %v3551_v48 = vld [vmem:[%s5891_s3 + $0x4] ss:$0 sm:$0xff] }
 0x177   :  { %4197 = vmatpush3.bf16.msra.mxu0 %v5280_v20  ;;  %4217 = vmatpush3.bf16.msra.mxu1 %v5283_v24 }
 0x178   :  { %4198 = vmatprep.subr.bf16.mxu0 %v5207_v1  ;;  %4218 = vmatprep.subr.bf16.mxu1 %v5207_v1  ;;  %v449_v56 = vpack.c.bf16 %v219_v53, %v219_v53 }
 0x179   :  { %4212 = vmatprep.mubr.msk.bf16.mxu0 %vm5208_vm0, %v5207_v1  ;;  %4232 = vmatprep.mubr.msk.bf16.mxu1 %vm5208_vm0, %v5207_v1 }
 0x17b   :  { %4199 = vmatpush3.bf16.msra.mxu0 %v5285_v25  ;;  %4219 = vmatpush3.bf16.msra.mxu1 %v5014_v27 }
 0x17c   :  { %4200 = vmatprep.subr.bf16.mxu0 %v5207_v1  ;;  %4220 = vmatprep.subr.bf16.mxu1 %v5207_v1 }
 0x17f   :  { %4201 = vmatpush3.bf16.msra.mxu0 %v5292_v28  ;;  %4221 = vmatpush3.bf16.msra.mxu1 %v5016_v29 }
 0x180   :  { %4202 = vmatprep.subr.bf16.mxu0 %v5207_v1  ;;  %4222 = vmatprep.subr.bf16.mxu1 %v5207_v1 }
 0x183   :  { %4203 = vmatpush3.bf16.msra.mxu0 %v5017_v30  ;;  %4223 = vmatpush3.bf16.msra.mxu1 %v5018_v31 }
 0x184   :  { %4204 = vmatprep.subr.bf16.mxu0 %v5207_v1  ;;  %4224 = vmatprep.subr.bf16.mxu1 %v5207_v1 }
 0x187   :  { %4205 = vmatpush3.bf16.msra.mxu0 %v5019_v32  ;;  %4225 = vmatpush3.bf16.msra.mxu1 %v5020_v33 }
 0x188   :  { %4206 = vmatprep.subr.bf16.mxu0 %v5207_v1  ;;  %4226 = vmatprep.subr.bf16.mxu1 %v5207_v1 }
 0x18b   :  { %4207 = vmatpush3.bf16.msra.mxu0 %v5021_v34  ;;  %4227 = vmatpush3.bf16.msra.mxu1 %v5022_v35 }
 0x18c   :  { %4208 = vmatprep.subr.bf16.mxu0 %v5207_v1  ;;  %4228 = vmatprep.subr.bf16.mxu1 %v5207_v1 }
 0x18f   :  { %4209 = vmatpush3.bf16.msra.mxu0 %v5023_v36  ;;  %4229 = vmatpush3.bf16.msra.mxu1 %v5024_v37  ;;  %v5043_v36 = vld [vmem:[#allocation2 + $0x140] sm:$0xff]  }
 0x190   :  { %4210 = vmatprep.subr.bf16.mxu0 %v5207_v1  ;;  %4230 = vmatprep.subr.bf16.mxu1 %v5207_v1 }
 0x193   :  { %4211 = vmatpush3.bf16.msra.mxu0 %v5025_v38  ;;  %4231 = vmatpush3.bf16.msra.mxu1 %v5026_v39  ;;  %v5044_v39 = vld [vmem:[#allocation2 + $0x148] sm:$0xff]  }
 0x194   :  { %4236 = vmatprep.subr.bf16.mxu0 %v5207_v1  ;;  %4256 = vmatprep.subr.bf16.mxu1 %v5207_v1 }
 0x196   :  { %4213 = vmatmul.mubr.bf16.vlgmr.msra.gmra.mrb[8].mxu0 %v449_v56  ;;  %4233 = vmatmul.mubr.bf16.vlgmr.msra.gmra.mrb[8].mxu1 %v449_v56 }
 0x197   :  { %4237 = vmatpush3.bf16.msra.mxu0 %v5337_v54  ;;  %4257 = vmatpush3.bf16.msra.mxu1 %v5339_v55 }
 0x198   :  { %4238 = vmatprep.subr.bf16.mxu0 %v5207_v1  ;;  %4258 = vmatprep.subr.bf16.mxu1 %v5207_v1 }
 0x199   :  { %4252 = vmatprep.mubr.msk.bf16.mxu0 %vm5208_vm0, %v5207_v1  ;;  %4272 = vmatprep.mubr.msk.bf16.mxu1 %vm5208_vm0, %v5207_v1 }
 0x19b   :  { %4239 = vmatpush3.bf16.msra.mxu0 %v5345_v57  ;;  %4259 = vmatpush3.bf16.msra.mxu1 %v5347_v58 }
 0x19c   :  { %4240 = vmatprep.subr.bf16.mxu0 %v5207_v1  ;;  %4260 = vmatprep.subr.bf16.mxu1 %v5207_v1 }
 0x19f   :  { %4241 = vmatpush3.bf16.msra.mxu0 %v5357_v59  ;;  %4261 = vmatpush3.bf16.msra.mxu1 %v5359_v60 }
 0x1a0   :  { %4242 = vmatprep.subr.bf16.mxu0 %v5207_v1  ;;  %4262 = vmatprep.subr.bf16.mxu1 %v5207_v1 }
 0x1a3   :  { %4243 = vmatpush3.bf16.msra.mxu0 %v5365_v61  ;;  %4263 = vmatpush3.bf16.msra.mxu1 %v5367_v62 }
 0x1a4   :  { %4244 = vmatprep.subr.bf16.mxu0 %v5207_v1  ;;  %4264 = vmatprep.subr.bf16.mxu1 %v5207_v1 }
 0x1a7   :  { %4245 = vmatpush3.bf16.msra.mxu0 %v5035_v63  ;;  %4265 = vmatpush3.bf16.msra.mxu1 %v5036_v0 }
 0x1a8   :  { %4246 = vmatprep.subr.bf16.mxu0 %v5207_v1  ;;  %4266 = vmatprep.subr.bf16.mxu1 %v5207_v1 }
 0x1ab   :  { %4247 = vmatpush3.bf16.msra.mxu0 %v5037_v2  ;;  %4267 = vmatpush3.bf16.msra.mxu1 %v5038_v3 }
 0x1ac   :  { %4248 = vmatprep.subr.bf16.mxu0 %v5207_v1  ;;  %4268 = vmatprep.subr.bf16.mxu1 %v5207_v1 }
 0x1af   :  { %4249 = vmatpush3.bf16.msra.mxu0 %v5039_v4  ;;  %4269 = vmatpush3.bf16.msra.mxu1 %v5040_v5 }
 0x1b0   :  { %4250 = vmatprep.subr.bf16.mxu0 %v5207_v1  ;;  %4270 = vmatprep.subr.bf16.mxu1 %v5207_v1 }
 0x1b3   :  { %4251 = vmatpush3.bf16.msra.mxu0 %v5381_v6  ;;  %4271 = vmatpush3.bf16.msra.mxu1 %v5383_v7 }
 0x1b4   :  { %4276 = vmatprep.subr.bf16.mxu0 %v5207_v1  ;;  %4296 = vmatprep.subr.bf16.mxu1 %v5207_v1 }
 0x249   :  { %v328_v10 = vpop.f32.mrb[4].mxu0  ;;  %v442_v11 = vpop.f32.mrb[4].mxu1 }
 0x24a   :  { %v329_v12 = vadd.f32 %v3515_v8, %v328_v10  ;;  %v443_v13 = vadd.f32 %v3525_v9, %v442_v11  ;;  %v4174_v14 = vpop.f32.mrb[5].mxu0  ;;  %v4194_v15 = vpop.f32.mrb[5].mxu1 }
 0x24b   :  { %v331_v16 = vpop.f32.mrb[6].mxu0  ;;  %v445_v17 = vpop.f32.mrb[6].mxu1  ;;  %v5057_v14 = vld [vmem:[#allocation2 + $0x1b0] sm:$0xff]   ;;  %v5058_v15 = vld [vmem:[#allocation2 + $0x1b8] sm:$0xff]  }
 0x24c   :  { %v334_v18 = vmax.f32 %v329_v12, 0.0  ;;  %v448_v19 = vmax.f32 %v443_v13, 0.0  ;;  %v4175_v20 = vpop.f32.mrb[7].mxu0  ;;  %v4195_v21 = vpop.f32.mrb[7].mxu1  ;;  %v3553_v16 = vld [vmem:[%s5891_s3 + $0x5] ss:$0 sm:$0xff] }
 0x24e   :  { %v532_v22 = vpack.c.bf16 %v334_v18, %v334_v18  ;;  %v533_v23 = vpack.c.bf16 %v448_v19, %v448_v19 }
 0x250   :  { %4253 = vmatmul.mubr.bf16.vlgmr.msra.gmra.mrb[12].mxu0 %v533_v23  ;;  %4273 = vmatmul.mubr.bf16.vlgmr.msra.gmra.mrb[12].mxu1 %v532_v22  ;;  %v5059_v23 = vld [vmem:[#allocation2 + $0x1c0] sm:$0xff]  }
 0x251   :  { %4277 = vmatpush3.bf16.msra.mxu0 %v5337_v54  ;;  %4297 = vmatpush3.bf16.msra.mxu1 %v5339_v55 }
 0x252   :  { %4278 = vmatprep.subr.bf16.mxu0 %v5207_v1  ;;  %4298 = vmatprep.subr.bf16.mxu1 %v5207_v1 }
 0x253   :  { %4292 = vmatprep.mubr.msk.bf16.mxu0 %vm5208_vm0, %v5207_v1  ;;  %4312 = vmatprep.mubr.msk.bf16.mxu1 %vm5208_vm0, %v5207_v1 }
 0x255   :  { %4279 = vmatpush3.bf16.msra.mxu0 %v5345_v57  ;;  %4299 = vmatpush3.bf16.msra.mxu1 %v5347_v58  ;;  %v5051_v58 = vld [vmem:[#allocation2 + $0x180] sm:$0xff]  }
 0x256   :  { %4280 = vmatprep.subr.bf16.mxu0 %v5207_v1  ;;  %4300 = vmatprep.subr.bf16.mxu1 %v5207_v1 }
 0x259   :  { %4281 = vmatpush3.bf16.msra.mxu0 %v5357_v59  ;;  %4301 = vmatpush3.bf16.msra.mxu1 %v5359_v60  ;;  %v5052_v60 = vld [vmem:[#allocation2 + $0x188] sm:$0xff]  }
 0x25a   :  { %4282 = vmatprep.subr.bf16.mxu0 %v5207_v1  ;;  %4302 = vmatprep.subr.bf16.mxu1 %v5207_v1 }
 0x25d   :  { %4283 = vmatpush3.bf16.msra.mxu0 %v5365_v61  ;;  %4303 = vmatpush3.bf16.msra.mxu1 %v5367_v62  ;;  %v5053_v61 = vld [vmem:[#allocation2 + $0x190] sm:$0xff]   ;;  %v5054_v62 = vld [vmem:[#allocation2 + $0x198] sm:$0xff]  }
 0x25e   :  { %4284 = vmatprep.subr.bf16.mxu0 %v5207_v1  ;;  %4304 = vmatprep.subr.bf16.mxu1 %v5207_v1 }
 0x261   :  { %4285 = vmatpush3.bf16.msra.mxu0 %v5035_v63  ;;  %4305 = vmatpush3.bf16.msra.mxu1 %v5036_v0  ;;  %v5055_v63 = vld [vmem:[#allocation2 + $0x1a0] sm:$0xff]   ;;  %v5056_v0 = vld [vmem:[#allocation2 + $0x1a8] sm:$0xff]  }
 0x262   :  { %4286 = vmatprep.subr.bf16.mxu0 %v5207_v1  ;;  %4306 = vmatprep.subr.bf16.mxu1 %v5207_v1 }
 0x265   :  { %4287 = vmatpush3.bf16.msra.mxu0 %v5037_v2  ;;  %4307 = vmatpush3.bf16.msra.mxu1 %v5038_v3 }
 0x266   :  { %4288 = vmatprep.subr.bf16.mxu0 %v5207_v1  ;;  %4308 = vmatprep.subr.bf16.mxu1 %v5207_v1 }
 0x269   :  { %v484_v24 = vpop.f32.mrb[8].mxu0  ;;  %v525_v25 = vpop.f32.mrb[8].mxu1  ;;  %4289 = vmatpush3.bf16.msra.mxu0 %v5039_v4  ;;  %4309 = vmatpush3.bf16.msra.mxu1 %v5040_v5 }
 0x26a   :  { %v485_v26 = vadd.f32 %v3515_v8, %v484_v24  ;;  %v526_v27 = vadd.f32 %v3525_v9, %v525_v25  ;;  %v4214_v28 = vpop.f32.mrb[9].mxu0  ;;  %v4234_v29 = vpop.f32.mrb[9].mxu1  ;;  %4290 = vmatprep.subr.bf16.mxu0 %v5207_v1  ;;  %4310 = vmatprep.subr.bf16.mxu1 %v5207_v1  ;;  %v5060_v25 = vld [vmem:[#allocation2 + $0x1c8] sm:$0xff]  }
 0x26b   :  { %v487_v30 = vpop.f32.mrb[10].mxu0  ;;  %v528_v31 = vpop.f32.mrb[10].mxu1  ;;  %v5063_v28 = vld [vmem:[#allocation2 + $0x1e0] sm:$0xff]   ;;  %v5064_v29 = vld [vmem:[#allocation2 + $0x1e8] sm:$0xff]  }
 0x26c   :  { %v490_v32 = vmax.f32 %v485_v26, 0.0  ;;  %v531_v33 = vmax.f32 %v526_v27, 0.0  ;;  %v4215_v34 = vpop.f32.mrb[11].mxu0  ;;  %v4235_v35 = vpop.f32.mrb[11].mxu1  ;;  %v5061_v26 = vld [vmem:[#allocation2 + $0x1d0] sm:$0xff]   ;;  %v5062_v27 = vld [vmem:[#allocation2 + $0x1d8] sm:$0xff]  }
 0x26d   :  { %4291 = vmatpush3.bf16.msra.mxu0 %v5381_v6  ;;  %4311 = vmatpush3.bf16.msra.mxu1 %v5383_v7 }
 0x26e   :  { %v754_v37 = vpack.c.bf16 %v490_v32, %v490_v32  ;;  %v755_v38 = vpack.c.bf16 %v531_v33, %v531_v33  ;;  %4316 = vmatprep.subr.bf16.mxu0 %v5207_v1  ;;  %4336 = vmatprep.subr.bf16.mxu1 %v5207_v1 }
 0x270   :  { %4293 = vmatmul.mubr.bf16.vlgmr.msra.gmra.mrb[16].mxu0 %v755_v38  ;;  %4313 = vmatmul.mubr.bf16.vlgmr.msra.gmra.mrb[16].mxu1 %v754_v37  ;;  %v5065_v37 = vld [vmem:[#allocation2 + $0x1f0] sm:$0xff]   ;;  %v5066_v38 = vld [vmem:[#allocation2 + $0x1f8] sm:$0xff]  }
 0x271   :  { %4317 = vmatpush3.bf16.msra.mxu0 %v5043_v36  ;;  %4332 = vmatprep.mubr.msk.bf16.mxu0 %vm5208_vm0, %v5207_v1 }
 0x272   :  { %4318 = vmatprep.subr.bf16.mxu0 %v5207_v1  ;;  %4337 = vmatpush3.bf16.msra.mxu1 %v5043_v36 }
 0x273   :  { %4338 = vmatprep.subr.bf16.mxu1 %v5207_v1  ;;  %4352 = vmatprep.mubr.msk.bf16.mxu1 %vm5208_vm0, %v5207_v1 }
 0x275   :  { %4319 = vmatpush3.bf16.msra.mxu0 %v5044_v39 }
 0x276   :  { %4320 = vmatprep.subr.bf16.mxu0 %v5207_v1  ;;  %4339 = vmatpush3.bf16.msra.mxu1 %v5044_v39  ;;  %v3563_v39 = vld [vmem:[%s5891_s3 + $0x6] ss:$0 sm:$0xff] }
 0x277   :  { %4340 = vmatprep.subr.bf16.mxu1 %v5207_v1 }
 0x279   :  { %4321 = vmatpush3.bf16.msra.mxu0 %v5045_v40 }
 0x27a   :  { %4322 = vmatprep.subr.bf16.mxu0 %v5207_v1  ;;  %4341 = vmatpush3.bf16.msra.mxu1 %v5045_v40 }
 0x27b   :  { %4342 = vmatprep.subr.bf16.mxu1 %v5207_v1 }
 0x27d   :  { %4323 = vmatpush3.bf16.msra.mxu0 %v5046_v41 }
 0x27e   :  { %4324 = vmatprep.subr.bf16.mxu0 %v5207_v1  ;;  %4343 = vmatpush3.bf16.msra.mxu1 %v5046_v41 }
 0x27f   :  { %4344 = vmatprep.subr.bf16.mxu1 %v5207_v1 }
 0x281   :  { %4325 = vmatpush3.bf16.msra.mxu0 %v5047_v42 }
 0x282   :  { %4326 = vmatprep.subr.bf16.mxu0 %v5207_v1  ;;  %4345 = vmatpush3.bf16.msra.mxu1 %v5047_v42 }
 0x283   :  { %4346 = vmatprep.subr.bf16.mxu1 %v5207_v1 }
 0x285   :  { %4327 = vmatpush3.bf16.msra.mxu0 %v5048_v43 }
 0x286   :  { %4328 = vmatprep.subr.bf16.mxu0 %v5207_v1  ;;  %4347 = vmatpush3.bf16.msra.mxu1 %v5048_v43 }
 0x287   :  { %4348 = vmatprep.subr.bf16.mxu1 %v5207_v1 }
 0x289   :  { %4329 = vmatpush3.bf16.msra.mxu0 %v5049_v44 }
 0x28a   :  { %4349 = vmatpush3.bf16.msra.mxu1 %v5049_v44  ;;  %4330 = vmatprep.subr.bf16.mxu0 %v5207_v1 }
 0x28b   :  { %4350 = vmatprep.subr.bf16.mxu1 %v5207_v1 }
 0x28d   :  { %4331 = vmatpush3.bf16.msra.mxu0 %v5050_v45 }
 0x28e   :  { %4351 = vmatpush3.bf16.msra.mxu1 %v5050_v45  ;;  %4356 = vmatprep.subr.bf16.mxu0 %v5207_v1 }
 0x28f   :  { %4376 = vmatprep.subr.bf16.mxu1 %v5207_v1 }
 0x323   :  { %v650_v46 = vpop.f32.mrb[12].mxu0  ;;  %v738_v47 = vpop.f32.mrb[12].mxu1 }
 0x324   :  { %v739_v49 = vadd.f32 %v738_v47, %v650_v46  ;;  %v4254_v50 = vpop.f32.mrb[13].mxu0  ;;  %v4274_v51 = vpop.f32.mrb[13].mxu1  ;;  %v5067_v46 = vld [vmem:[#allocation2 + $0x200] sm:$0xff]  }
 0x325   :  { %v653_v52 = vpop.f32.mrb[14].mxu0  ;;  %v741_v53 = vpop.f32.mrb[14].mxu1  ;;  %v5070_v50 = vld [vmem:[#allocation2 + $0x218] sm:$0xff]   ;;  %v5071_v51 = vld [vmem:[#allocation2 + $0x220] sm:$0xff]  }
 0x326   :  { %v752_v54 = vadd.f32 %v3551_v48, %v739_v49  ;;  %v4255_v55 = vpop.f32.mrb[15].mxu0  ;;  %v4275_v56 = vpop.f32.mrb[15].mxu1  ;;  %v5069_v49 = vld [vmem:[#allocation2 + $0x210] sm:$0xff]   ;;  %v5072_v52 = vld [vmem:[#allocation2 + $0x228] sm:$0xff]  }
 0x328   :  { %v753_v57 = vmax.f32 %v752_v54, 0.0 }
 0x32a   :  { %v838_v59 = vpack.c.bf16 %v753_v57, %v753_v57 }
 0x32c   :  { %4333 = vmatmul.mubr.bf16.vlgmr.msra.gmra.mrb[20].mxu0 %v838_v59 }
 0x32d   :  { %4357 = vmatpush3.bf16.msra.mxu0 %v5051_v58  ;;  %4372 = vmatprep.mubr.msk.bf16.mxu0 %vm5208_vm0, %v5207_v1 }
 0x32e   :  { %4358 = vmatprep.subr.bf16.mxu0 %v5207_v1 }
 0x331   :  { %4359 = vmatpush3.bf16.msra.mxu0 %v5052_v60 }
 0x332   :  { %4360 = vmatprep.subr.bf16.mxu0 %v5207_v1 }
 0x335   :  { %4361 = vmatpush3.bf16.msra.mxu0 %v5053_v61 }
 0x336   :  { %4362 = vmatprep.subr.bf16.mxu0 %v5207_v1 }
 0x339   :  { %4363 = vmatpush3.bf16.msra.mxu0 %v5054_v62 }
 0x33a   :  { %4364 = vmatprep.subr.bf16.mxu0 %v5207_v1 }
 0x33d   :  { %4365 = vmatpush3.bf16.msra.mxu0 %v5055_v63 }
 0x33e   :  { %4366 = vmatprep.subr.bf16.mxu0 %v5207_v1 }
 0x341   :  { %4367 = vmatpush3.bf16.msra.mxu0 %v5056_v0 }
 0x342   :  { %4368 = vmatprep.subr.bf16.mxu0 %v5207_v1 }
 0x343   :  { %v790_v2 = vpop.f32.mrb[16].mxu0  ;;  %v830_v3 = vpop.f32.mrb[16].mxu1 }
 0x344   :  { %v831_v4 = vadd.f32 %v830_v3, %v790_v2  ;;  %v4294_v5 = vpop.f32.mrb[17].mxu0  ;;  %v4314_v6 = vpop.f32.mrb[17].mxu1 }
 0x345   :  { %v793_v7 = vpop.f32.mrb[18].mxu0  ;;  %v833_v8 = vpop.f32.mrb[18].mxu1  ;;  %4369 = vmatpush3.bf16.msra.mxu0 %v5057_v14  ;;  %v5075_v6 = vld [vmem:[#allocation2 + $0x240] sm:$0xff]  }
 0x346   :  { %v836_v9 = vadd.f32 %v3551_v48, %v831_v4  ;;  %v4295_v10 = vpop.f32.mrb[19].mxu0  ;;  %v4315_v11 = vpop.f32.mrb[19].mxu1  ;;  %4370 = vmatprep.subr.bf16.mxu0 %v5207_v1  ;;  %v5068_v48 = vld [vmem:[#allocation2 + $0x208] sm:$0xff]  }
 0x347   :  { %v5076_v8 = vld [vmem:[#allocation2 + $0x248] sm:$0xff]   ;;  %v5078_v10 = vld [vmem:[#allocation2 + $0x258] sm:$0xff]   ;;  %v5079_v11 = vld [vmem:[#allocation2 + $0x260] sm:$0xff]  }
 0x348   :  { %v837_v12 = vmax.f32 %v836_v9, 0.0  ;;  %v5077_v9 = vld [vmem:[#allocation2 + $0x250] sm:$0xff]  }
 0x349   :  { %4371 = vmatpush3.bf16.msra.mxu0 %v5058_v15 }
 0x34a   :  { %v953_v13 = vpack.c.bf16 %v837_v12, %v837_v12  ;;  %4396 = vmatprep.subr.bf16.mxu0 %v5207_v1  ;;  %v5080_v12 = vld [vmem:[#allocation2 + $0x268] sm:$0xff]  }
 0x34c   :  { %4353 = vmatmul.mubr.bf16.vlgmr.msra.gmra.mrb[20].mxu1 %v953_v13 }
 0x34d   :  { %4377 = vmatpush3.bf16.msra.mxu1 %v5051_v58  ;;  %4392 = vmatprep.mubr.msk.bf16.mxu1 %vm5208_vm0, %v5207_v1 }
 0x34e   :  { %4378 = vmatprep.subr.bf16.mxu1 %v5207_v1 }
 0x351   :  { %4379 = vmatpush3.bf16.msra.mxu1 %v5052_v60  ;;  %v5073_v60 = vld [vmem:[#allocation2 + $0x230] sm:$0xff]  }
 0x352   :  { %4380 = vmatprep.subr.bf16.mxu1 %v5207_v1 }
 0x355   :  { %4381 = vmatpush3.bf16.msra.mxu1 %v5053_v61  ;;  %v5074_v61 = vld [vmem:[#allocation2 + $0x238] sm:$0xff]  }
 0x356   :  { %4382 = vmatprep.subr.bf16.mxu1 %v5207_v1 }
 0x359   :  { %4383 = vmatpush3.bf16.msra.mxu1 %v5054_v62  ;;  %v3573_v62 = vld [vmem:[%s5891_s3 + $0x7] ss:$0 sm:$0xff] }
 0x35a   :  { %4384 = vmatprep.subr.bf16.mxu1 %v5207_v1 }
 0x35d   :  { %4385 = vmatpush3.bf16.msra.mxu1 %v5055_v63 }
 0x35e   :  { %4386 = vmatprep.subr.bf16.mxu1 %v5207_v1 }
 0x361   :  { %4387 = vmatpush3.bf16.msra.mxu1 %v5056_v0 }
 0x362   :  { %4388 = vmatprep.subr.bf16.mxu1 %v5207_v1 }
 0x365   :  { %4389 = vmatpush3.bf16.msra.mxu1 %v5057_v14 }
 0x366   :  { %4390 = vmatprep.subr.bf16.mxu1 %v5207_v1 }
 0x369   :  { %4391 = vmatpush3.bf16.msra.mxu1 %v5058_v15 }
 0x36a   :  { %4416 = vmatprep.subr.bf16.mxu1 %v5207_v1 }
 0x3ff   :  { %v946_v17 = vpop.f32.mrb[20].mxu0 }
 0x400   :  { %v947_v18 = vadd.f32 %v3553_v16, %v946_v17  ;;  %v4334_v19 = vpop.f32.mrb[21].mxu0 }
 0x401   :  { %v949_v20 = vpop.f32.mrb[22].mxu0 }
 0x402   :  { %v952_v21 = vmax.f32 %v947_v18, 0.0  ;;  %v4335_v22 = vpop.f32.mrb[23].mxu0  ;;  %v5081_v20 = vld [vmem:[#allocation2 + $0x270] sm:$0xff]  }
 0x403   :  { %v3583_v22 = vld [vmem:[%s5891_s3 + $0x8] ss:$0 sm:$0xff] }
 0x404   :  { %v995_v24 = vpack.c.bf16 %v952_v21, %v952_v21  ;;  %v5082_v21 = vld [vmem:[#allocation2 + $0x278] sm:$0xff]  }
 0x406   :  { %4373 = vmatmul.mubr.bf16.vlgmr.msra.gmra.mrb[24].mxu0 %v995_v24 }
 0x407   :  { %4397 = vmatpush3.bf16.msra.mxu0 %v5059_v23  ;;  %4412 = vmatprep.mubr.msk.bf16.mxu0 %vm5208_vm0, %v5207_v1 }
 0x408   :  { %4398 = vmatprep.subr.bf16.mxu0 %v5207_v1 }
 0x40b   :  { %4399 = vmatpush3.bf16.msra.mxu0 %v5060_v25 }
 0x40c   :  { %4400 = vmatprep.subr.bf16.mxu0 %v5207_v1 }
 0x40f   :  { %4401 = vmatpush3.bf16.msra.mxu0 %v5061_v26 }
 0x410   :  { %4402 = vmatprep.subr.bf16.mxu0 %v5207_v1 }
 0x413   :  { %4403 = vmatpush3.bf16.msra.mxu0 %v5062_v27 }
 0x414   :  { %4404 = vmatprep.subr.bf16.mxu0 %v5207_v1 }
 0x417   :  { %4405 = vmatpush3.bf16.msra.mxu0 %v5063_v28 }
 0x418   :  { %4406 = vmatprep.subr.bf16.mxu0 %v5207_v1 }
 0x41b   :  { %4407 = vmatpush3.bf16.msra.mxu0 %v5064_v29 }
 0x41c   :  { %4408 = vmatprep.subr.bf16.mxu0 %v5207_v1 }
 0x41f   :  { %v988_v30 = vpop.f32.mrb[20].mxu1  ;;  %4409 = vmatpush3.bf16.msra.mxu0 %v5065_v37 }
 0x420   :  { %v989_v31 = vadd.f32 %v3553_v16, %v988_v30  ;;  %v4354_v32 = vpop.f32.mrb[21].mxu1  ;;  %4410 = vmatprep.subr.bf16.mxu0 %v5207_v1 }
 0x421   :  { %v991_v33 = vpop.f32.mrb[22].mxu1  ;;  %v5085_v32 = vld [vmem:[#allocation2 + $0x290] sm:$0xff]  }
 0x422   :  { %v994_v34 = vmax.f32 %v989_v31, 0.0  ;;  %v4355_v35 = vpop.f32.mrb[23].mxu1  ;;  %v5084_v31 = vld [vmem:[#allocation2 + $0x288] sm:$0xff]   ;;  %v5086_v33 = vld [vmem:[#allocation2 + $0x298] sm:$0xff]  }
 0x423   :  { %4411 = vmatpush3.bf16.msra.mxu0 %v5066_v38  ;;  %v5088_v35 = vld [vmem:[#allocation2 + $0x2a8] sm:$0xff]  }
 0x424   :  { %v1110_v36 = vpack.c.bf16 %v994_v34, %v994_v34  ;;  %4436 = vmatprep.subr.bf16.mxu0 %v5207_v1  ;;  %v5087_v34 = vld [vmem:[#allocation2 + $0x2a0] sm:$0xff]  }
 0x426   :  { %4393 = vmatmul.mubr.bf16.vlgmr.msra.gmra.mrb[24].mxu1 %v1110_v36 }
 0x427   :  { %4417 = vmatpush3.bf16.msra.mxu1 %v5059_v23  ;;  %4432 = vmatprep.mubr.msk.bf16.mxu1 %vm5208_vm0, %v5207_v1 }
 0x428   :  { %4418 = vmatprep.subr.bf16.mxu1 %v5207_v1 }
 0x42b   :  { %4419 = vmatpush3.bf16.msra.mxu1 %v5060_v25 }
 0x42c   :  { %4420 = vmatprep.subr.bf16.mxu1 %v5207_v1 }
 0x42f   :  { %4421 = vmatpush3.bf16.msra.mxu1 %v5061_v26 }
 0x430   :  { %4422 = vmatprep.subr.bf16.mxu1 %v5207_v1 }
 0x433   :  { %4423 = vmatpush3.bf16.msra.mxu1 %v5062_v27 }
 0x434   :  { %4424 = vmatprep.subr.bf16.mxu1 %v5207_v1 }
 0x437   :  { %4425 = vmatpush3.bf16.msra.mxu1 %v5063_v28 }
 0x438   :  { %4426 = vmatprep.subr.bf16.mxu1 %v5207_v1 }
 0x43b   :  { %4427 = vmatpush3.bf16.msra.mxu1 %v5064_v29  ;;  %v5083_v29 = vld [vmem:[#allocation2 + $0x280] sm:$0xff]  }
 0x43c   :  { %4428 = vmatprep.subr.bf16.mxu1 %v5207_v1 }
 0x43f   :  { %4429 = vmatpush3.bf16.msra.mxu1 %v5065_v37 }
 0x440   :  { %4430 = vmatprep.subr.bf16.mxu1 %v5207_v1 }
 0x443   :  { %4431 = vmatpush3.bf16.msra.mxu1 %v5066_v38 }
 0x444   :  { %4456 = vmatprep.subr.bf16.mxu1 %v5207_v1 }
 0x4d9   :  { %v1103_v40 = vpop.f32.mrb[24].mxu0 }
 0x4da   :  { %v1104_v41 = vadd.f32 %v3563_v39, %v1103_v40  ;;  %v4374_v42 = vpop.f32.mrb[25].mxu0 }
 0x4db   :  { %v1106_v43 = vpop.f32.mrb[26].mxu0 }
 0x4dc   :  { %v1109_v44 = vmax.f32 %v1104_v41, 0.0  ;;  %v4375_v45 = vpop.f32.mrb[27].mxu0  ;;  %v5089_v43 = vld [vmem:[#allocation2 + $0x2b0] sm:$0xff]  }
 0x4dd   :  { %v3593_v45 = vld [vmem:[%s5891_s3 + $0x9] ss:$0 sm:$0xff] }
 0x4de   :  { %v1152_v47 = vpack.c.bf16 %v1109_v44, %v1109_v44  ;;  %v5090_v44 = vld [vmem:[#allocation2 + $0x2b8] sm:$0xff]  }
 0x4e0   :  { %4413 = vmatmul.mubr.bf16.vlgmr.msra.gmra.mrb[28].mxu0 %v1152_v47 }
 0x4e1   :  { %4437 = vmatpush3.bf16.msra.mxu0 %v5067_v46  ;;  %4452 = vmatprep.mubr.msk.bf16.mxu0 %vm5208_vm0, %v5207_v1 }
 0x4e2   :  { %4438 = vmatprep.subr.bf16.mxu0 %v5207_v1 }
 0x4e5   :  { %4439 = vmatpush3.bf16.msra.mxu0 %v5068_v48 }
 0x4e6   :  { %4440 = vmatprep.subr.bf16.mxu0 %v5207_v1 }
 0x4e9   :  { %4441 = vmatpush3.bf16.msra.mxu0 %v5069_v49 }
 0x4ea   :  { %4442 = vmatprep.subr.bf16.mxu0 %v5207_v1 }
 0x4ed   :  { %4443 = vmatpush3.bf16.msra.mxu0 %v5070_v50 }
 0x4ee   :  { %4444 = vmatprep.subr.bf16.mxu0 %v5207_v1 }
 0x4f1   :  { %4445 = vmatpush3.bf16.msra.mxu0 %v5071_v51 }
 0x4f2   :  { %4446 = vmatprep.subr.bf16.mxu0 %v5207_v1 }
 0x4f5   :  { %4447 = vmatpush3.bf16.msra.mxu0 %v5072_v52 }
 0x4f6   :  { %4448 = vmatprep.subr.bf16.mxu0 %v5207_v1 }
 0x4f9   :  { %v1145_v53 = vpop.f32.mrb[24].mxu1  ;;  %4449 = vmatpush3.bf16.msra.mxu0 %v5073_v60 }
 0x4fa   :  { %v1146_v54 = vadd.f32 %v3563_v39, %v1145_v53  ;;  %v4394_v55 = vpop.f32.mrb[25].mxu1  ;;  %4450 = vmatprep.subr.bf16.mxu0 %v5207_v1 }
 0x4fb   :  { %v1148_v56 = vpop.f32.mrb[26].mxu1  ;;  %v5572_v55 = vld [vmem:[#allocation2 + $0x2d0] sm:$0xff]  }
 0x4fc   :  { %v1151_v57 = vmax.f32 %v1146_v54, 0.0  ;;  %v4395_v58 = vpop.f32.mrb[27].mxu1  ;;  %v5566_v54 = vld [vmem:[#allocation2 + $0x2c8] sm:$0xff]   ;;  %v5576_v56 = vld [vmem:[#allocation2 + $0x2d8] sm:$0xff]  }
 0x4fd   :  { %4451 = vmatpush3.bf16.msra.mxu0 %v5074_v61  ;;  %v5584_v58 = vld [vmem:[#allocation2 + $0x2e8] sm:$0xff]  }
 0x4fe   :  { %v1267_v59 = vpack.c.bf16 %v1151_v57, %v1151_v57  ;;  %4476 = vmatprep.subr.bf16.mxu0 %v5207_v1  ;;  %v5580_v57 = vld [vmem:[#allocation2 + $0x2e0] sm:$0xff]  }
 0x500   :  { %4433 = vmatmul.mubr.bf16.vlgmr.msra.gmra.mrb[28].mxu1 %v1267_v59  ;;  %v5588_v59 = vld [vmem:[#allocation2 + $0x2f0] sm:$0xff]  }
 0x501   :  { %4457 = vmatpush3.bf16.msra.mxu1 %v5067_v46  ;;  %4472 = vmatprep.mubr.msk.bf16.mxu1 %vm5208_vm0, %v5207_v1 }
 0x502   :  { %4458 = vmatprep.subr.bf16.mxu1 %v5207_v1 }
 0x505   :  { %4459 = vmatpush3.bf16.msra.mxu1 %v5068_v48 }
 0x506   :  { %4460 = vmatprep.subr.bf16.mxu1 %v5207_v1 }
 0x509   :  { %4461 = vmatpush3.bf16.msra.mxu1 %v5069_v49 }
 0x50a   :  { %4462 = vmatprep.subr.bf16.mxu1 %v5207_v1 }
 0x50d   :  { %4463 = vmatpush3.bf16.msra.mxu1 %v5070_v50 }
 0x50e   :  { %4464 = vmatprep.subr.bf16.mxu1 %v5207_v1 }
 0x511   :  { %4465 = vmatpush3.bf16.msra.mxu1 %v5071_v51 }
 0x512   :  { %4466 = vmatprep.subr.bf16.mxu1 %v5207_v1 }
 0x515   :  { %4467 = vmatpush3.bf16.msra.mxu1 %v5072_v52  ;;  %v5563_v52 = vld [vmem:[#allocation2 + $0x2c0] sm:$0xff]  }
 0x516   :  { %4468 = vmatprep.subr.bf16.mxu1 %v5207_v1 }
 0x519   :  { %4469 = vmatpush3.bf16.msra.mxu1 %v5073_v60 }
 0x51a   :  { %4470 = vmatprep.subr.bf16.mxu1 %v5207_v1 }
 0x51d   :  { %4471 = vmatpush3.bf16.msra.mxu1 %v5074_v61 }
 0x51e   :  { %4496 = vmatprep.subr.bf16.mxu1 %v5207_v1 }
 0x5b3   :  { %v1260_v63 = vpop.f32.mrb[28].mxu0 }
 0x5b4   :  { %v1261_v0 = vadd.f32 %v3573_v62, %v1260_v63  ;;  %v4414_v2 = vpop.f32.mrb[29].mxu0 }
 0x5b5   :  { %v1263_v3 = vpop.f32.mrb[30].mxu0 }
 0x5b6   :  { %v1266_v4 = vmax.f32 %v1261_v0, 0.0  ;;  %v4415_v5 = vpop.f32.mrb[31].mxu0  ;;  %v5092_v3 = vld [vmem:[#allocation2 + $0x300] sm:$0xff]  }
 0x5b7   :  { %v5094_v5 = vld [vmem:[#allocation2 + $0x308] sm:$0xff]  }
 0x5b8   :  { %v1309_v7 = vpack.c.bf16 %v1266_v4, %v1266_v4 }
 0x5ba   :  { %4453 = vmatmul.mubr.bf16.vlgmr.msra.gmra.mrb[32].mxu0 %v1309_v7  ;;  %v5098_v7 = vld [vmem:[#allocation2 + $0x318] sm:$0xff]  }
 0x5bb   :  { %4477 = vmatpush3.bf16.msra.mxu0 %v5075_v6  ;;  %4492 = vmatprep.mubr.msk.bf16.mxu0 %vm5208_vm0, %v5207_v1 }
 0x5bc   :  { %4478 = vmatprep.subr.bf16.mxu0 %v5207_v1 }
 0x5bf   :  { %4479 = vmatpush3.bf16.msra.mxu0 %v5076_v8 }
 0x5c0   :  { %4480 = vmatprep.subr.bf16.mxu0 %v5207_v1 }
 0x5c3   :  { %4481 = vmatpush3.bf16.msra.mxu0 %v5077_v9 }
 0x5c4   :  { %4482 = vmatprep.subr.bf16.mxu0 %v5207_v1 }
 0x5c7   :  { %4483 = vmatpush3.bf16.msra.mxu0 %v5078_v10 }
 0x5c8   :  { %4484 = vmatprep.subr.bf16.mxu0 %v5207_v1 }
 0x5cb   :  { %4485 = vmatpush3.bf16.msra.mxu0 %v5079_v11 }
 0x5cc   :  { %4486 = vmatprep.subr.bf16.mxu0 %v5207_v1 }
 0x5cf   :  { %4487 = vmatpush3.bf16.msra.mxu0 %v5080_v12 }
 0x5d0   :  { %4488 = vmatprep.subr.bf16.mxu0 %v5207_v1 }
 0x5d3   :  { %v1302_v13 = vpop.f32.mrb[28].mxu1  ;;  %4489 = vmatpush3.bf16.msra.mxu0 %v5081_v20 }
 0x5d4   :  { %v1303_v14 = vadd.f32 %v3573_v62, %v1302_v13  ;;  %v4434_v15 = vpop.f32.mrb[29].mxu1  ;;  %4490 = vmatprep.subr.bf16.mxu0 %v5207_v1  ;;  %v3603_v13 = vld [vmem:[%s5891_s3 + $0xa] ss:$0 sm:$0xff] }
 0x5d5   :  { %v1305_v16 = vpop.f32.mrb[30].mxu1 }
 0x5d6   :  { %v1308_v17 = vmax.f32 %v1303_v14, 0.0  ;;  %v4435_v18 = vpop.f32.mrb[31].mxu1 }
 0x5d7   :  { %4491 = vmatpush3.bf16.msra.mxu0 %v5082_v21 }
 0x5d8   :  { %v1424_v19 = vpack.c.bf16 %v1308_v17, %v1308_v17  ;;  %4516 = vmatprep.subr.bf16.mxu0 %v5207_v1 }
 0x5da   :  { %4473 = vmatmul.mubr.bf16.vlgmr.msra.gmra.mrb[32].mxu1 %v1424_v19 }
 0x5db   :  { %4497 = vmatpush3.bf16.msra.mxu1 %v5075_v6  ;;  %4512 = vmatprep.mubr.msk.bf16.mxu1 %vm5208_vm0, %v5207_v1  ;;  %v5096_v6 = vld [vmem:[#allocation2 + $0x310] sm:$0xff]  }
 0x5dc   :  { %4498 = vmatprep.subr.bf16.mxu1 %v5207_v1 }
 0x5df   :  { %4499 = vmatpush3.bf16.msra.mxu1 %v5076_v8  ;;  %v5100_v8 = vld [vmem:[#allocation2 + $0x320] sm:$0xff]  }
 0x5e0   :  { %4500 = vmatprep.subr.bf16.mxu1 %v5207_v1 }
 0x5e3   :  { %4501 = vmatpush3.bf16.msra.mxu1 %v5077_v9  ;;  %v5102_v9 = vld [vmem:[#allocation2 + $0x328] sm:$0xff]  }
 0x5e4   :  { %4502 = vmatprep.subr.bf16.mxu1 %v5207_v1 }
 0x5e7   :  { %4503 = vmatpush3.bf16.msra.mxu1 %v5078_v10  ;;  %v5104_v10 = vld [vmem:[#allocation2 + $0x330] sm:$0xff]  }
 0x5e8   :  { %4504 = vmatprep.subr.bf16.mxu1 %v5207_v1 }
 0x5eb   :  { %4505 = vmatpush3.bf16.msra.mxu1 %v5079_v11  ;;  %v5105_v11 = vld [vmem:[#allocation2 + $0x2f8] sm:$0xff]  }
 0x5ec   :  { %4506 = vmatprep.subr.bf16.mxu1 %v5207_v1 }
 0x5ef   :  { %4507 = vmatpush3.bf16.msra.mxu1 %v5080_v12  ;;  %v5106_v12 = vld [vmem:[#allocation2 + $0x338] sm:$0xff]  }
 0x5f0   :  { %4508 = vmatprep.subr.bf16.mxu1 %v5207_v1 }
 0x5f3   :  { %4509 = vmatpush3.bf16.msra.mxu1 %v5081_v20 }
 0x5f4   :  { %4510 = vmatprep.subr.bf16.mxu1 %v5207_v1 }
 0x5f7   :  { %4511 = vmatpush3.bf16.msra.mxu1 %v5082_v21 }
 0x5f8   :  { %4536 = vmatprep.subr.bf16.mxu1 %v5207_v1 }
 0x68d   :  { %v1417_v23 = vpop.f32.mrb[32].mxu0 }
 0x68e   :  { %v1418_v24 = vadd.f32 %v3583_v22, %v1417_v23  ;;  %v4454_v25 = vpop.f32.mrb[33].mxu0 }
 0x68f   :  { %v1420_v26 = vpop.f32.mrb[34].mxu0 }
 0x690   :  { %v1423_v27 = vmax.f32 %v1418_v24, 0.0  ;;  %v4455_v28 = vpop.f32.mrb[35].mxu0 }
 0x691   :  { %v5634_v28 = vld [vmem:[#allocation2 + $0x340] sm:$0xff]  }
 0x692   :  { %v1466_v30 = vpack.c.bf16 %v1423_v27, %v1423_v27  ;;  %v5632_v27 = vld [vmem:[#allocation2 + $0x380] sm:$0xff]  }
 0x694   :  { %4493 = vmatmul.mubr.bf16.vlgmr.msra.gmra.mrb[36].mxu0 %v1466_v30  ;;  %v5640_v30 = vld [vmem:[#allocation2 + $0x388] sm:$0xff]  }
 0x695   :  { %4517 = vmatpush3.bf16.msra.mxu0 %v5083_v29  ;;  %4532 = vmatprep.mubr.msk.bf16.mxu0 %vm5208_vm0, %v5207_v1 }
 0x696   :  { %4518 = vmatprep.subr.bf16.mxu0 %v5207_v1 }
 0x699   :  { %4519 = vmatpush3.bf16.msra.mxu0 %v5084_v31 }
 0x69a   :  { %4520 = vmatprep.subr.bf16.mxu0 %v5207_v1 }
 0x69d   :  { %4521 = vmatpush3.bf16.msra.mxu0 %v5085_v32 }
 0x69e   :  { %4522 = vmatprep.subr.bf16.mxu0 %v5207_v1 }
 0x6a1   :  { %4523 = vmatpush3.bf16.msra.mxu0 %v5086_v33 }
 0x6a2   :  { %4524 = vmatprep.subr.bf16.mxu0 %v5207_v1 }
 0x6a5   :  { %4525 = vmatpush3.bf16.msra.mxu0 %v5087_v34 }
 0x6a6   :  { %4526 = vmatprep.subr.bf16.mxu0 %v5207_v1 }
 0x6a9   :  { %4527 = vmatpush3.bf16.msra.mxu0 %v5088_v35 }
 0x6aa   :  { %4528 = vmatprep.subr.bf16.mxu0 %v5207_v1 }
 0x6ad   :  { %v1459_v36 = vpop.f32.mrb[32].mxu1  ;;  %4529 = vmatpush3.bf16.msra.mxu0 %v5089_v43 }
 0x6ae   :  { %v1460_v37 = vadd.f32 %v3583_v22, %v1459_v36  ;;  %v4474_v38 = vpop.f32.mrb[33].mxu1  ;;  %4530 = vmatprep.subr.bf16.mxu0 %v5207_v1  ;;  %v5115_v36 = vld [vmem:[#allocation2 + $0x3a0] sm:$0xff]  }
 0x6af   :  { %v1462_v39 = vpop.f32.mrb[34].mxu1  ;;  %v5117_v38 = vld [vmem:[#allocation2 + $0x3a8] sm:$0xff]  }
 0x6b0   :  { %v1465_v40 = vmax.f32 %v1460_v37, 0.0  ;;  %v4475_v41 = vpop.f32.mrb[35].mxu1  ;;  %v5116_v37 = vld [vmem:[#allocation2 + $0x360] sm:$0xff]   ;;  %v5118_v39 = vld [vmem:[#allocation2 + $0x368] sm:$0xff]  }
 0x6b1   :  { %4531 = vmatpush3.bf16.msra.mxu0 %v5090_v44  ;;  %v5120_v41 = vld [vmem:[#allocation2 + $0x370] sm:$0xff]  }
 0x6b2   :  { %v1581_v42 = vpack.c.bf16 %v1465_v40, %v1465_v40  ;;  %4556 = vmatprep.subr.bf16.mxu0 %v5207_v1  ;;  %v5119_v40 = vld [vmem:[#allocation2 + $0x3b0] sm:$0xff]  }
 0x6b4   :  { %4513 = vmatmul.mubr.bf16.vlgmr.msra.gmra.mrb[36].mxu1 %v1581_v42  ;;  %v5676_v42 = vld [vmem:[#allocation2 + $0x3b8] sm:$0xff]  }
 0x6b5   :  { %4537 = vmatpush3.bf16.msra.mxu1 %v5083_v29  ;;  %4552 = vmatprep.mubr.msk.bf16.mxu1 %vm5208_vm0, %v5207_v1 }
 0x6b6   :  { %4538 = vmatprep.subr.bf16.mxu1 %v5207_v1 }
 0x6b9   :  { %4539 = vmatpush3.bf16.msra.mxu1 %v5084_v31  ;;  %v5642_v31 = vld [vmem:[#allocation2 + $0x348] sm:$0xff]  }
 0x6ba   :  { %4540 = vmatprep.subr.bf16.mxu1 %v5207_v1 }
 0x6bd   :  { %4541 = vmatpush3.bf16.msra.mxu1 %v5085_v32  ;;  %v5652_v32 = vld [vmem:[#allocation2 + $0x390] sm:$0xff]  }
 0x6be   :  { %4542 = vmatprep.subr.bf16.mxu1 %v5207_v1 }
 0x6c1   :  { %4543 = vmatpush3.bf16.msra.mxu1 %v5086_v33  ;;  %v5654_v33 = vld [vmem:[#allocation2 + $0x350] sm:$0xff]  }
 0x6c2   :  { %4544 = vmatprep.subr.bf16.mxu1 %v5207_v1 }
 0x6c5   :  { %4545 = vmatpush3.bf16.msra.mxu1 %v5087_v34  ;;  %v5660_v34 = vld [vmem:[#allocation2 + $0x398] sm:$0xff]  }
 0x6c6   :  { %4546 = vmatprep.subr.bf16.mxu1 %v5207_v1 }
 0x6c9   :  { %4547 = vmatpush3.bf16.msra.mxu1 %v5088_v35  ;;  %v5662_v35 = vld [vmem:[#allocation2 + $0x358] sm:$0xff]  }
 0x6ca   :  { %4548 = vmatprep.subr.bf16.mxu1 %v5207_v1 }
 0x6cd   :  { %4549 = vmatpush3.bf16.msra.mxu1 %v5089_v43  ;;  %v5678_v43 = vld [vmem:[#allocation2 + $0x378] sm:$0xff]  }
 0x6ce   :  { %4550 = vmatprep.subr.bf16.mxu1 %v5207_v1 }
 0x6d1   :  { %4551 = vmatpush3.bf16.msra.mxu1 %v5090_v44  ;;  %v3613_v44 = vld [vmem:[%s5891_s3 + $0xb] ss:$0 sm:$0xff] }
 0x6d2   :  { %4576 = vmatprep.subr.bf16.mxu1 %v5207_v1 }
 0x767   :  { %v1574_v46 = vpop.f32.mrb[36].mxu0 }
 0x768   :  { %v1575_v47 = vadd.f32 %v3593_v45, %v1574_v46  ;;  %v4494_v48 = vpop.f32.mrb[37].mxu0 }
 0x769   :  { %v1577_v49 = vpop.f32.mrb[38].mxu0 }
 0x76a   :  { %v1580_v50 = vmax.f32 %v1575_v47, 0.0  ;;  %v4495_v51 = vpop.f32.mrb[39].mxu0 }
 0x76c   :  { %v1623_v53 = vpack.c.bf16 %v1580_v50, %v1580_v50 }
 0x76e   :  { %4533 = vmatmul.mubr.bf16.vlgmr.msra.gmra.mrb[40].mxu0 %v1623_v53 }
 0x76f   :  { %4557 = vmatpush3.bf16.msra.mxu0 %v5563_v52  ;;  %4572 = vmatprep.mubr.msk.bf16.mxu0 %vm5208_vm0, %v5207_v1 }
 0x770   :  { %4558 = vmatprep.subr.bf16.mxu0 %v5207_v1 }
 0x773   :  { %4559 = vmatpush3.bf16.msra.mxu0 %v5566_v54 }
 0x774   :  { %4560 = vmatprep.subr.bf16.mxu0 %v5207_v1 }
 0x777   :  { %4561 = vmatpush3.bf16.msra.mxu0 %v5572_v55 }
 0x778   :  { %4562 = vmatprep.subr.bf16.mxu0 %v5207_v1 }
 0x77b   :  { %4563 = vmatpush3.bf16.msra.mxu0 %v5576_v56 }
 0x77c   :  { %4564 = vmatprep.subr.bf16.mxu0 %v5207_v1 }
 0x77f   :  { %4565 = vmatpush3.bf16.msra.mxu0 %v5580_v57 }
 0x780   :  { %4566 = vmatprep.subr.bf16.mxu0 %v5207_v1 }
 0x783   :  { %4567 = vmatpush3.bf16.msra.mxu0 %v5584_v58 }
 0x784   :  { %4568 = vmatprep.subr.bf16.mxu0 %v5207_v1 }
 0x787   :  { %v1616_v60 = vpop.f32.mrb[36].mxu1  ;;  %4569 = vmatpush3.bf16.msra.mxu0 %v5588_v59 }
 0x788   :  { %v1617_v61 = vadd.f32 %v3593_v45, %v1616_v60  ;;  %v4514_v62 = vpop.f32.mrb[37].mxu1  ;;  %4570 = vmatprep.subr.bf16.mxu0 %v5207_v1  ;;  %v3623_v45 = vld [vmem:[%s5891_s3 + $0xc] ss:$0 sm:$0xff] }
 0x789   :  { %v1619_v63 = vpop.f32.mrb[38].mxu1 }
 0x78a   :  { %v1622_v0 = vmax.f32 %v1617_v61, 0.0  ;;  %v4515_v2 = vpop.f32.mrb[39].mxu1 }
 0x78b   :  { %4571 = vmatpush3.bf16.msra.mxu0 %v5105_v11 }
 0x78c   :  { %v1738_v4 = vpack.c.bf16 %v1622_v0, %v1622_v0  ;;  %4596 = vmatprep.subr.bf16.mxu0 %v5207_v1 }
 0x78e   :  { %4553 = vmatmul.mubr.bf16.vlgmr.msra.gmra.mrb[40].mxu1 %v1738_v4 }
 0x78f   :  { %4577 = vmatpush3.bf16.msra.mxu1 %v5092_v3  ;;  %4592 = vmatprep.mubr.msk.bf16.mxu1 %vm5208_vm0, %v5207_v1 }
 0x790   :  { %4578 = vmatprep.subr.bf16.mxu1 %v5207_v1 }
 0x793   :  { %4579 = vmatpush3.bf16.msra.mxu1 %v5094_v5 }
 0x794   :  { %4580 = vmatprep.subr.bf16.mxu1 %v5207_v1 }
 0x797   :  { %4581 = vmatpush3.bf16.msra.mxu1 %v5096_v6 }
 0x798   :  { %4582 = vmatprep.subr.bf16.mxu1 %v5207_v1 }
 0x79b   :  { %4583 = vmatpush3.bf16.msra.mxu1 %v5098_v7 }
 0x79c   :  { %4584 = vmatprep.subr.bf16.mxu1 %v5207_v1 }
 0x79f   :  { %4585 = vmatpush3.bf16.msra.mxu1 %v5100_v8 }
 0x7a0   :  { %4586 = vmatprep.subr.bf16.mxu1 %v5207_v1 }
 0x7a3   :  { %4587 = vmatpush3.bf16.msra.mxu1 %v5102_v9 }
 0x7a4   :  { %4588 = vmatprep.subr.bf16.mxu1 %v5207_v1 }
 0x7a7   :  { %4589 = vmatpush3.bf16.msra.mxu1 %v5104_v10 }
 0x7a8   :  { %4590 = vmatprep.subr.bf16.mxu1 %v5207_v1 }
 0x7ab   :  { %4591 = vmatpush3.bf16.msra.mxu1 %v5106_v12 }
 0x7ac   :  { %4616 = vmatprep.subr.bf16.mxu1 %v5207_v1 }
 0x841   :  { %v1731_v14 = vpop.f32.mrb[40].mxu0 }
 0x842   :  { %v1732_v15 = vadd.f32 %v3603_v13, %v1731_v14  ;;  %v4534_v16 = vpop.f32.mrb[41].mxu0  ;;  %v5126_v14 = vld [vmem:[#allocation2 + $0x3d8] sm:$0xff]  }
 0x843   :  { %v1734_v17 = vpop.f32.mrb[42].mxu0  ;;  %v5128_v16 = vld [vmem:[#allocation2 + $0x3e8] sm:$0xff]  }
 0x844   :  { %v1737_v18 = vmax.f32 %v1732_v15, 0.0  ;;  %v4535_v19 = vpop.f32.mrb[43].mxu0  ;;  %v5127_v15 = vld [vmem:[#allocation2 + $0x3e0] sm:$0xff]   ;;  %v5129_v17 = vld [vmem:[#allocation2 + $0x3f0] sm:$0xff]  }
 0x846   :  { %v1780_v20 = vpack.c.bf16 %v1737_v18, %v1737_v18  ;;  %v5130_v18 = vld [vmem:[#allocation2 + $0x3f8] sm:$0xff]  }
 0x848   :  { %4573 = vmatmul.mubr.bf16.vlgmr.msra.gmra.mrb[44].mxu0 %v1780_v20  ;;  %4593 = vmatmul.mubr.bf16.vlgmr.msra.gmra.mrb[44].mxu1 %v1780_v20 }
 0x849   :  { %4597 = vmatpush3.bf16.msra.mxu0 %v5563_v52  ;;  %4617 = vmatpush3.bf16.msra.mxu1 %v5092_v3 }
 0x84a   :  { %4598 = vmatprep.subr.bf16.mxu0 %v5207_v1  ;;  %4618 = vmatprep.subr.bf16.mxu1 %v5207_v1 }
 0x84b   :  { %4612 = vmatprep.mubr.msk.bf16.mxu0 %vm5208_vm0, %v5207_v1  ;;  %4632 = vmatprep.mubr.msk.bf16.mxu1 %vm5208_vm0, %v5207_v1 }
 0x84d   :  { %4599 = vmatpush3.bf16.msra.mxu0 %v5566_v54  ;;  %4619 = vmatpush3.bf16.msra.mxu1 %v5094_v5 }
 0x84e   :  { %4600 = vmatprep.subr.bf16.mxu0 %v5207_v1  ;;  %4620 = vmatprep.subr.bf16.mxu1 %v5207_v1 }
 0x851   :  { %4601 = vmatpush3.bf16.msra.mxu0 %v5572_v55  ;;  %4621 = vmatpush3.bf16.msra.mxu1 %v5096_v6 }
 0x852   :  { %4602 = vmatprep.subr.bf16.mxu0 %v5207_v1  ;;  %4622 = vmatprep.subr.bf16.mxu1 %v5207_v1 }
 0x855   :  { %4603 = vmatpush3.bf16.msra.mxu0 %v5576_v56  ;;  %4623 = vmatpush3.bf16.msra.mxu1 %v5098_v7 }
 0x856   :  { %4604 = vmatprep.subr.bf16.mxu0 %v5207_v1  ;;  %4624 = vmatprep.subr.bf16.mxu1 %v5207_v1 }
 0x859   :  { %4605 = vmatpush3.bf16.msra.mxu0 %v5580_v57  ;;  %4625 = vmatpush3.bf16.msra.mxu1 %v5100_v8 }
 0x85a   :  { %4606 = vmatprep.subr.bf16.mxu0 %v5207_v1  ;;  %4626 = vmatprep.subr.bf16.mxu1 %v5207_v1 }
 0x85d   :  { %4607 = vmatpush3.bf16.msra.mxu0 %v5584_v58  ;;  %4627 = vmatpush3.bf16.msra.mxu1 %v5102_v9  ;;  %v5123_v9 = vld [vmem:[#allocation2 + $0x3c0] sm:$0xff]  }
 0x85e   :  { %4608 = vmatprep.subr.bf16.mxu0 %v5207_v1  ;;  %4628 = vmatprep.subr.bf16.mxu1 %v5207_v1 }
 0x861   :  { %v1773_v21 = vpop.f32.mrb[40].mxu1  ;;  %4609 = vmatpush3.bf16.msra.mxu0 %v5588_v59  ;;  %4629 = vmatpush3.bf16.msra.mxu1 %v5104_v10 }
 0x862   :  { %v1774_v22 = vadd.f32 %v3603_v13, %v1773_v21  ;;  %v4554_v23 = vpop.f32.mrb[41].mxu1  ;;  %4610 = vmatprep.subr.bf16.mxu0 %v5207_v1  ;;  %4630 = vmatprep.subr.bf16.mxu1 %v5207_v1  ;;  %v5125_v13 = vld [vmem:[#allocation2 + $0x3d0] sm:$0xff]   ;;  %v3649_v21 = vld [vmem:[%s5891_s3 + $0xd] ss:$0 sm:$0xff] }
 0x863   :  { %v1776_v24 = vpop.f32.mrb[42].mxu1 }
 0x864   :  { %v1779_v25 = vmax.f32 %v1774_v22, 0.0  ;;  %v4555_v26 = vpop.f32.mrb[43].mxu1 }
 0x865   :  { %4611 = vmatpush3.bf16.msra.mxu0 %v5105_v11  ;;  %4631 = vmatpush3.bf16.msra.mxu1 %v5106_v12  ;;  %v5124_v12 = vld [vmem:[#allocation2 + $0x3c8] sm:$0xff]  }
 0x866   :  { %v2009_v29 = vpack.c.bf16 %v1779_v25, %v1779_v25  ;;  %4636 = vmatprep.subr.bf16.mxu0 %v5207_v1  ;;  %4656 = vmatprep.subr.bf16.mxu1 %v5207_v1 }
 0x868   :  { %4613 = vmatmul.mubr.bf16.vlgmr.msra.gmra.mrb[48].mxu0 %v2009_v29  ;;  %4633 = vmatmul.mubr.bf16.vlgmr.msra.gmra.mrb[48].mxu1 %v2009_v29 }
 0x869   :  { %4637 = vmatpush3.bf16.msra.mxu0 %v5632_v27  ;;  %4657 = vmatpush3.bf16.msra.mxu1 %v5634_v28 }
 0x86a   :  { %4638 = vmatprep.subr.bf16.mxu0 %v5207_v1  ;;  %4658 = vmatprep.subr.bf16.mxu1 %v5207_v1 }
 0x86b   :  { %4652 = vmatprep.mubr.msk.bf16.mxu0 %vm5208_vm0, %v5207_v1  ;;  %4672 = vmatprep.mubr.msk.bf16.mxu1 %vm5208_vm0, %v5207_v1 }
 0x86d   :  { %4639 = vmatpush3.bf16.msra.mxu0 %v5640_v30  ;;  %4659 = vmatpush3.bf16.msra.mxu1 %v5642_v31 }
 0x86e   :  { %4640 = vmatprep.subr.bf16.mxu0 %v5207_v1  ;;  %4660 = vmatprep.subr.bf16.mxu1 %v5207_v1 }
 0x871   :  { %4641 = vmatpush3.bf16.msra.mxu0 %v5652_v32  ;;  %4661 = vmatpush3.bf16.msra.mxu1 %v5654_v33 }
 0x872   :  { %4642 = vmatprep.subr.bf16.mxu0 %v5207_v1  ;;  %4662 = vmatprep.subr.bf16.mxu1 %v5207_v1 }
 0x875   :  { %4643 = vmatpush3.bf16.msra.mxu0 %v5660_v34  ;;  %4663 = vmatpush3.bf16.msra.mxu1 %v5662_v35 }
 0x876   :  { %4644 = vmatprep.subr.bf16.mxu0 %v5207_v1  ;;  %4664 = vmatprep.subr.bf16.mxu1 %v5207_v1 }
 0x879   :  { %4645 = vmatpush3.bf16.msra.mxu0 %v5115_v36  ;;  %4665 = vmatpush3.bf16.msra.mxu1 %v5116_v37 }
 0x87a   :  { %4646 = vmatprep.subr.bf16.mxu0 %v5207_v1  ;;  %4666 = vmatprep.subr.bf16.mxu1 %v5207_v1 }
 0x87d   :  { %4647 = vmatpush3.bf16.msra.mxu0 %v5117_v38  ;;  %4667 = vmatpush3.bf16.msra.mxu1 %v5118_v39 }
 0x87e   :  { %4648 = vmatprep.subr.bf16.mxu0 %v5207_v1  ;;  %4668 = vmatprep.subr.bf16.mxu1 %v5207_v1 }
 0x881   :  { %4649 = vmatpush3.bf16.msra.mxu0 %v5119_v40  ;;  %4669 = vmatpush3.bf16.msra.mxu1 %v5120_v41 }
 0x882   :  { %4650 = vmatprep.subr.bf16.mxu0 %v5207_v1  ;;  %4670 = vmatprep.subr.bf16.mxu1 %v5207_v1 }
 0x885   :  { %4651 = vmatpush3.bf16.msra.mxu0 %v5676_v42  ;;  %4671 = vmatpush3.bf16.msra.mxu1 %v5678_v43 }
 0x886   :  { %4676 = vmatprep.subr.bf16.mxu0 %v5207_v1  ;;  %4696 = vmatprep.subr.bf16.mxu1 %v5207_v1 }
 0x91b   :  { %v1888_v46 = vpop.f32.mrb[44].mxu0  ;;  %v2002_v47 = vpop.f32.mrb[44].mxu1 }
 0x91c   :  { %v1889_v48 = vadd.f32 %v3613_v44, %v1888_v46  ;;  %v2003_v49 = vadd.f32 %v3623_v45, %v2002_v47  ;;  %v4574_v50 = vpop.f32.mrb[45].mxu0  ;;  %v4594_v51 = vpop.f32.mrb[45].mxu1 }
 0x91d   :  { %v1891_v52 = vpop.f32.mrb[46].mxu0  ;;  %v2005_v53 = vpop.f32.mrb[46].mxu1  ;;  %v5137_v50 = vld [vmem:[#allocation2 + $0x430] sm:$0xff]   ;;  %v5138_v51 = vld [vmem:[#allocation2 + $0x438] sm:$0xff]  }
 0x91e   :  { %v1894_v54 = vmax.f32 %v1889_v48, 0.0  ;;  %v2008_v55 = vmax.f32 %v2003_v49, 0.0  ;;  %v4575_v56 = vpop.f32.mrb[47].mxu0  ;;  %v4595_v57 = vpop.f32.mrb[47].mxu1  ;;  %v3651_v52 = vld [vmem:[%s5891_s3 + $0xe] ss:$0 sm:$0xff] }
 0x920   :  { %v2092_v58 = vpack.c.bf16 %v1894_v54, %v1894_v54  ;;  %v2093_v59 = vpack.c.bf16 %v2008_v55, %v2008_v55 }
 0x922   :  { %4653 = vmatmul.mubr.bf16.vlgmr.msra.gmra.mrb[52].mxu0 %v2093_v59  ;;  %4673 = vmatmul.mubr.bf16.vlgmr.msra.gmra.mrb[52].mxu1 %v2092_v58  ;;  %v5139_v59 = vld [vmem:[#allocation2 + $0x440] sm:$0xff]  }
 0x923   :  { %4677 = vmatpush3.bf16.msra.mxu0 %v5632_v27  ;;  %4697 = vmatpush3.bf16.msra.mxu1 %v5634_v28 }
 0x924   :  { %4678 = vmatprep.subr.bf16.mxu0 %v5207_v1  ;;  %4698 = vmatprep.subr.bf16.mxu1 %v5207_v1 }
 0x925   :  { %4692 = vmatprep.mubr.msk.bf16.mxu0 %vm5208_vm0, %v5207_v1  ;;  %4712 = vmatprep.mubr.msk.bf16.mxu1 %vm5208_vm0, %v5207_v1 }
 0x927   :  { %4679 = vmatpush3.bf16.msra.mxu0 %v5640_v30  ;;  %4699 = vmatpush3.bf16.msra.mxu1 %v5642_v31  ;;  %v5131_v31 = vld [vmem:[#allocation2 + $0x400] sm:$0xff]  }
 0x928   :  { %4680 = vmatprep.subr.bf16.mxu0 %v5207_v1  ;;  %4700 = vmatprep.subr.bf16.mxu1 %v5207_v1 }
 0x92b   :  { %4681 = vmatpush3.bf16.msra.mxu0 %v5652_v32  ;;  %4701 = vmatpush3.bf16.msra.mxu1 %v5654_v33  ;;  %v5132_v33 = vld [vmem:[#allocation2 + $0x408] sm:$0xff]  }
 0x92c   :  { %4682 = vmatprep.subr.bf16.mxu0 %v5207_v1  ;;  %4702 = vmatprep.subr.bf16.mxu1 %v5207_v1 }
 0x92f   :  { %4683 = vmatpush3.bf16.msra.mxu0 %v5660_v34  ;;  %4703 = vmatpush3.bf16.msra.mxu1 %v5662_v35  ;;  %v5133_v34 = vld [vmem:[#allocation2 + $0x410] sm:$0xff]   ;;  %v5134_v35 = vld [vmem:[#allocation2 + $0x418] sm:$0xff]  }
 0x930   :  { %4684 = vmatprep.subr.bf16.mxu0 %v5207_v1  ;;  %4704 = vmatprep.subr.bf16.mxu1 %v5207_v1 }
 0x933   :  { %4685 = vmatpush3.bf16.msra.mxu0 %v5115_v36  ;;  %4705 = vmatpush3.bf16.msra.mxu1 %v5116_v37  ;;  %v5135_v36 = vld [vmem:[#allocation2 + $0x420] sm:$0xff]   ;;  %v5136_v37 = vld [vmem:[#allocation2 + $0x428] sm:$0xff]  }
 0x934   :  { %4686 = vmatprep.subr.bf16.mxu0 %v5207_v1  ;;  %4706 = vmatprep.subr.bf16.mxu1 %v5207_v1 }
 0x937   :  { %4687 = vmatpush3.bf16.msra.mxu0 %v5117_v38  ;;  %4707 = vmatpush3.bf16.msra.mxu1 %v5118_v39 }
 0x938   :  { %4688 = vmatprep.subr.bf16.mxu0 %v5207_v1  ;;  %4708 = vmatprep.subr.bf16.mxu1 %v5207_v1 }
 0x93b   :  { %v2044_v60 = vpop.f32.mrb[48].mxu0  ;;  %v2085_v61 = vpop.f32.mrb[48].mxu1  ;;  %4689 = vmatpush3.bf16.msra.mxu0 %v5119_v40  ;;  %4709 = vmatpush3.bf16.msra.mxu1 %v5120_v41 }
 0x93c   :  { %v2045_v62 = vadd.f32 %v3613_v44, %v2044_v60  ;;  %v2086_v63 = vadd.f32 %v3623_v45, %v2085_v61  ;;  %v4614_v0 = vpop.f32.mrb[49].mxu0  ;;  %v4634_v2 = vpop.f32.mrb[49].mxu1  ;;  %4690 = vmatprep.subr.bf16.mxu0 %v5207_v1  ;;  %4710 = vmatprep.subr.bf16.mxu1 %v5207_v1  ;;  %v5140_v61 = vld [vmem:[#allocation2 + $0x448] sm:$0xff]  }
 0x93d   :  { %v2047_v3 = vpop.f32.mrb[50].mxu0  ;;  %v2088_v4 = vpop.f32.mrb[50].mxu1  ;;  %v5143_v0 = vld [vmem:[#allocation2 + $0x460] sm:$0xff]   ;;  %v5144_v2 = vld [vmem:[#allocation2 + $0x468] sm:$0xff]  }
 0x93e   :  { %v2050_v5 = vmax.f32 %v2045_v62, 0.0  ;;  %v2091_v6 = vmax.f32 %v2086_v63, 0.0  ;;  %v4615_v7 = vpop.f32.mrb[51].mxu0  ;;  %v4635_v8 = vpop.f32.mrb[51].mxu1  ;;  %v5141_v62 = vld [vmem:[#allocation2 + $0x450] sm:$0xff]   ;;  %v5142_v63 = vld [vmem:[#allocation2 + $0x458] sm:$0xff]  }
 0x93f   :  { %4691 = vmatpush3.bf16.msra.mxu0 %v5676_v42  ;;  %4711 = vmatpush3.bf16.msra.mxu1 %v5678_v43 }
 0x940   :  { %v2314_v10 = vpack.c.bf16 %v2050_v5, %v2050_v5  ;;  %v2315_v11 = vpack.c.bf16 %v2091_v6, %v2091_v6  ;;  %4716 = vmatprep.subr.bf16.mxu0 %v5207_v1  ;;  %4736 = vmatprep.subr.bf16.mxu1 %v5207_v1 }
 0x942   :  { %4693 = vmatmul.mubr.bf16.vlgmr.msra.gmra.mrb[56].mxu0 %v2315_v11  ;;  %4713 = vmatmul.mubr.bf16.vlgmr.msra.gmra.mrb[56].mxu1 %v2314_v10  ;;  %v5145_v10 = vld [vmem:[#allocation2 + $0x470] sm:$0xff]   ;;  %v5146_v11 = vld [vmem:[#allocation2 + $0x478] sm:$0xff]  }
 0x943   :  { %4717 = vmatpush3.bf16.msra.mxu0 %v5123_v9  ;;  %4732 = vmatprep.mubr.msk.bf16.mxu0 %vm5208_vm0, %v5207_v1 }
 0x944   :  { %4718 = vmatprep.subr.bf16.mxu0 %v5207_v1  ;;  %4737 = vmatpush3.bf16.msra.mxu1 %v5123_v9 }
 0x945   :  { %4738 = vmatprep.subr.bf16.mxu1 %v5207_v1  ;;  %4752 = vmatprep.mubr.msk.bf16.mxu1 %vm5208_vm0, %v5207_v1 }
 0x947   :  { %4719 = vmatpush3.bf16.msra.mxu0 %v5124_v12 }
 0x948   :  { %4720 = vmatprep.subr.bf16.mxu0 %v5207_v1  ;;  %4739 = vmatpush3.bf16.msra.mxu1 %v5124_v12  ;;  %v3661_v12 = vld [vmem:[%s5891_s3 + $0xf] ss:$0 sm:$0xff] }
 0x949   :  { %4740 = vmatprep.subr.bf16.mxu1 %v5207_v1 }
 0x94b   :  { %4721 = vmatpush3.bf16.msra.mxu0 %v5125_v13 }
 0x94c   :  { %4722 = vmatprep.subr.bf16.mxu0 %v5207_v1  ;;  %4741 = vmatpush3.bf16.msra.mxu1 %v5125_v13 }
 0x94d   :  { %4742 = vmatprep.subr.bf16.mxu1 %v5207_v1 }
 0x94f   :  { %4723 = vmatpush3.bf16.msra.mxu0 %v5126_v14 }
 0x950   :  { %4724 = vmatprep.subr.bf16.mxu0 %v5207_v1  ;;  %4743 = vmatpush3.bf16.msra.mxu1 %v5126_v14 }
 0x951   :  { %4744 = vmatprep.subr.bf16.mxu1 %v5207_v1 }
 0x953   :  { %4725 = vmatpush3.bf16.msra.mxu0 %v5127_v15 }
 0x954   :  { %4726 = vmatprep.subr.bf16.mxu0 %v5207_v1  ;;  %4745 = vmatpush3.bf16.msra.mxu1 %v5127_v15 }
 0x955   :  { %4746 = vmatprep.subr.bf16.mxu1 %v5207_v1 }
 0x957   :  { %4727 = vmatpush3.bf16.msra.mxu0 %v5128_v16 }
 0x958   :  { %4728 = vmatprep.subr.bf16.mxu0 %v5207_v1  ;;  %4747 = vmatpush3.bf16.msra.mxu1 %v5128_v16 }
 0x959   :  { %4748 = vmatprep.subr.bf16.mxu1 %v5207_v1 }
 0x95b   :  { %4729 = vmatpush3.bf16.msra.mxu0 %v5129_v17 }
 0x95c   :  { %4749 = vmatpush3.bf16.msra.mxu1 %v5129_v17  ;;  %4730 = vmatprep.subr.bf16.mxu0 %v5207_v1 }
 0x95d   :  { %4750 = vmatprep.subr.bf16.mxu1 %v5207_v1 }
 0x95f   :  { %4731 = vmatpush3.bf16.msra.mxu0 %v5130_v18 }
 0x960   :  { %4751 = vmatpush3.bf16.msra.mxu1 %v5130_v18  ;;  %4756 = vmatprep.subr.bf16.mxu0 %v5207_v1 }
 0x961   :  { %4776 = vmatprep.subr.bf16.mxu1 %v5207_v1 }
 0x9f5   :  { %v2210_v19 = vpop.f32.mrb[52].mxu0  ;;  %v2298_v20 = vpop.f32.mrb[52].mxu1 }
 0x9f6   :  { %v2299_v22 = vadd.f32 %v2298_v20, %v2210_v19  ;;  %v4654_v23 = vpop.f32.mrb[53].mxu0  ;;  %v4674_v24 = vpop.f32.mrb[53].mxu1  ;;  %v5147_v19 = vld [vmem:[#allocation2 + $0x480] sm:$0xff]  }
 0x9f7   :  { %v2213_v25 = vpop.f32.mrb[54].mxu0  ;;  %v2301_v26 = vpop.f32.mrb[54].mxu1  ;;  %v5150_v23 = vld [vmem:[#allocation2 + $0x498] sm:$0xff]   ;;  %v5151_v24 = vld [vmem:[#allocation2 + $0x4a0] sm:$0xff]  }
 0x9f8   :  { %v2312_v27 = vadd.f32 %v3649_v21, %v2299_v22  ;;  %v4655_v28 = vpop.f32.mrb[55].mxu0  ;;  %v4675_v29 = vpop.f32.mrb[55].mxu1  ;;  %v5149_v22 = vld [vmem:[#allocation2 + $0x490] sm:$0xff]   ;;  %v5152_v25 = vld [vmem:[#allocation2 + $0x4a8] sm:$0xff]  }
 0x9fa   :  { %v2313_v30 = vmax.f32 %v2312_v27, 0.0 }
 0x9fc   :  { %v2398_v32 = vpack.c.bf16 %v2313_v30, %v2313_v30 }
 0x9fe   :  { %4733 = vmatmul.mubr.bf16.vlgmr.msra.gmra.mrb[60].mxu0 %v2398_v32 }
 0x9ff   :  { %4757 = vmatpush3.bf16.msra.mxu0 %v5131_v31  ;;  %4772 = vmatprep.mubr.msk.bf16.mxu0 %vm5208_vm0, %v5207_v1 }
 0xa00   :  { %4758 = vmatprep.subr.bf16.mxu0 %v5207_v1 }
 0xa03   :  { %4759 = vmatpush3.bf16.msra.mxu0 %v5132_v33 }
 0xa04   :  { %4760 = vmatprep.subr.bf16.mxu0 %v5207_v1 }
 0xa07   :  { %4761 = vmatpush3.bf16.msra.mxu0 %v5133_v34 }
 0xa08   :  { %4762 = vmatprep.subr.bf16.mxu0 %v5207_v1 }
 0xa0b   :  { %4763 = vmatpush3.bf16.msra.mxu0 %v5134_v35 }
 0xa0c   :  { %4764 = vmatprep.subr.bf16.mxu0 %v5207_v1 }
 0xa0f   :  { %4765 = vmatpush3.bf16.msra.mxu0 %v5135_v36 }
 0xa10   :  { %4766 = vmatprep.subr.bf16.mxu0 %v5207_v1 }
 0xa13   :  { %4767 = vmatpush3.bf16.msra.mxu0 %v5136_v37 }
 0xa14   :  { %4768 = vmatprep.subr.bf16.mxu0 %v5207_v1 }
 0xa15   :  { %v2350_v38 = vpop.f32.mrb[56].mxu0  ;;  %v2390_v39 = vpop.f32.mrb[56].mxu1 }
 0xa16   :  { %v2391_v40 = vadd.f32 %v2390_v39, %v2350_v38  ;;  %v4694_v41 = vpop.f32.mrb[57].mxu0  ;;  %v4714_v42 = vpop.f32.mrb[57].mxu1 }
 0xa17   :  { %v2353_v43 = vpop.f32.mrb[58].mxu0  ;;  %v2393_v44 = vpop.f32.mrb[58].mxu1  ;;  %4769 = vmatpush3.bf16.msra.mxu0 %v5137_v50  ;;  %v5155_v42 = vld [vmem:[#allocation2 + $0x4c0] sm:$0xff]  }
 0xa18   :  { %v2396_v45 = vadd.f32 %v3649_v21, %v2391_v40  ;;  %v4695_v46 = vpop.f32.mrb[59].mxu0  ;;  %v4715_v47 = vpop.f32.mrb[59].mxu1  ;;  %4770 = vmatprep.subr.bf16.mxu0 %v5207_v1  ;;  %v5148_v21 = vld [vmem:[#allocation2 + $0x488] sm:$0xff]  }
 0xa19   :  { %v5156_v44 = vld [vmem:[#allocation2 + $0x4c8] sm:$0xff]   ;;  %v5158_v46 = vld [vmem:[#allocation2 + $0x4d8] sm:$0xff]   ;;  %v5159_v47 = vld [vmem:[#allocation2 + $0x4e0] sm:$0xff]  }
 0xa1a   :  { %v2397_v48 = vmax.f32 %v2396_v45, 0.0  ;;  %v5157_v45 = vld [vmem:[#allocation2 + $0x4d0] sm:$0xff]  }
 0xa1b   :  { %4771 = vmatpush3.bf16.msra.mxu0 %v5138_v51 }
 0xa1c   :  { %v2513_v49 = vpack.c.bf16 %v2397_v48, %v2397_v48  ;;  %4796 = vmatprep.subr.bf16.mxu0 %v5207_v1  ;;  %v5160_v48 = vld [vmem:[#allocation2 + $0x4e8] sm:$0xff]  }
 0xa1e   :  { %4753 = vmatmul.mubr.bf16.vlgmr.msra.gmra.mrb[60].mxu1 %v2513_v49 }
 0xa1f   :  { %4777 = vmatpush3.bf16.msra.mxu1 %v5131_v31  ;;  %4792 = vmatprep.mubr.msk.bf16.mxu1 %vm5208_vm0, %v5207_v1 }
 0xa20   :  { %4778 = vmatprep.subr.bf16.mxu1 %v5207_v1 }
 0xa23   :  { %4779 = vmatpush3.bf16.msra.mxu1 %v5132_v33  ;;  %v5153_v33 = vld [vmem:[#allocation2 + $0x4b0] sm:$0xff]  }
 0xa24   :  { %4780 = vmatprep.subr.bf16.mxu1 %v5207_v1 }
 0xa27   :  { %4781 = vmatpush3.bf16.msra.mxu1 %v5133_v34  ;;  %v5154_v34 = vld [vmem:[#allocation2 + $0x4b8] sm:$0xff]  }
 0xa28   :  { %4782 = vmatprep.subr.bf16.mxu1 %v5207_v1 }
 0xa2b   :  { %4783 = vmatpush3.bf16.msra.mxu1 %v5134_v35  ;;  %v3671_v35 = vld [vmem:[%s5891_s3 + $0x10] ss:$0 sm:$0xff] }
 0xa2c   :  { %4784 = vmatprep.subr.bf16.mxu1 %v5207_v1 }
 0xa2f   :  { %4785 = vmatpush3.bf16.msra.mxu1 %v5135_v36 }
 0xa30   :  { %4786 = vmatprep.subr.bf16.mxu1 %v5207_v1 }
 0xa33   :  { %4787 = vmatpush3.bf16.msra.mxu1 %v5136_v37 }
 0xa34   :  { %4788 = vmatprep.subr.bf16.mxu1 %v5207_v1 }
 0xa37   :  { %4789 = vmatpush3.bf16.msra.mxu1 %v5137_v50 }
 0xa38   :  { %4790 = vmatprep.subr.bf16.mxu1 %v5207_v1 }
 0xa3b   :  { %4791 = vmatpush3.bf16.msra.mxu1 %v5138_v51 }
 0xa3c   :  { %4816 = vmatprep.subr.bf16.mxu1 %v5207_v1 }
 0xad1   :  { %v2506_v53 = vpop.f32.mrb[60].mxu0 }
 0xad2   :  { %v2507_v54 = vadd.f32 %v3651_v52, %v2506_v53  ;;  %v4734_v55 = vpop.f32.mrb[61].mxu0 }
 0xad3   :  { %v2509_v56 = vpop.f32.mrb[62].mxu0 }
 0xad4   :  { %v2512_v57 = vmax.f32 %v2507_v54, 0.0  ;;  %v4735_v58 = vpop.f32.mrb[63].mxu0  ;;  %v5161_v56 = vld [vmem:[#allocation2 + $0x4f0] sm:$0xff]  }
 0xad5   :  { %v3681_v58 = vld [vmem:[%s5891_s3 + $0x11] ss:$0 sm:$0xff] }
 0xad6   :  { %v2555_v60 = vpack.c.bf16 %v2512_v57, %v2512_v57  ;;  %v5162_v57 = vld [vmem:[#allocation2 + $0x4f8] sm:$0xff]  }
 0xad8   :  { %4773 = vmatmul.mubr.bf16.vlgmr.msra.gmra.mrb[64].mxu0 %v2555_v60 }
 0xad9   :  { %4797 = vmatpush3.bf16.msra.mxu0 %v5139_v59  ;;  %4812 = vmatprep.mubr.msk.bf16.mxu0 %vm5208_vm0, %v5207_v1 }
 0xada   :  { %4798 = vmatprep.subr.bf16.mxu0 %v5207_v1 }
 0xadd   :  { %4799 = vmatpush3.bf16.msra.mxu0 %v5140_v61 }
 0xade   :  { %4800 = vmatprep.subr.bf16.mxu0 %v5207_v1 }
 0xae1   :  { %4801 = vmatpush3.bf16.msra.mxu0 %v5141_v62 }
 0xae2   :  { %4802 = vmatprep.subr.bf16.mxu0 %v5207_v1 }
 0xae5   :  { %4803 = vmatpush3.bf16.msra.mxu0 %v5142_v63 }
 0xae6   :  { %4804 = vmatprep.subr.bf16.mxu0 %v5207_v1 }
 0xae9   :  { %4805 = vmatpush3.bf16.msra.mxu0 %v5143_v0 }
 0xaea   :  { %4806 = vmatprep.subr.bf16.mxu0 %v5207_v1 }
 0xaed   :  { %4807 = vmatpush3.bf16.msra.mxu0 %v5144_v2 }
 0xaee   :  { %4808 = vmatprep.subr.bf16.mxu0 %v5207_v1 }
 0xaf1   :  { %v2548_v3 = vpop.f32.mrb[60].mxu1  ;;  %4809 = vmatpush3.bf16.msra.mxu0 %v5145_v10 }
 0xaf2   :  { %v2549_v4 = vadd.f32 %v3651_v52, %v2548_v3  ;;  %v4754_v5 = vpop.f32.mrb[61].mxu1  ;;  %4810 = vmatprep.subr.bf16.mxu0 %v5207_v1 }
 0xaf3   :  { %v2551_v6 = vpop.f32.mrb[62].mxu1  ;;  %v5165_v5 = vld [vmem:[#allocation2 + $0x510] sm:$0xff]  }
 0xaf4   :  { %v2554_v7 = vmax.f32 %v2549_v4, 0.0  ;;  %v4755_v8 = vpop.f32.mrb[63].mxu1  ;;  %v5164_v4 = vld [vmem:[#allocation2 + $0x508] sm:$0xff]   ;;  %v5166_v6 = vld [vmem:[#allocation2 + $0x518] sm:$0xff]  }
 0xaf5   :  { %4811 = vmatpush3.bf16.msra.mxu0 %v5146_v11  ;;  %v5168_v8 = vld [vmem:[#allocation2 + $0x528] sm:$0xff]  }
 0xaf6   :  { %v2670_v9 = vpack.c.bf16 %v2554_v7, %v2554_v7  ;;  %4836 = vmatprep.subr.bf16.mxu0 %v5207_v1  ;;  %v5167_v7 = vld [vmem:[#allocation2 + $0x520] sm:$0xff]  }
 0xaf8   :  { %4793 = vmatmul.mubr.bf16.vlgmr.msra.gmra.mrb[64].mxu1 %v2670_v9 }
 0xaf9   :  { %4817 = vmatpush3.bf16.msra.mxu1 %v5139_v59  ;;  %4832 = vmatprep.mubr.msk.bf16.mxu1 %vm5208_vm0, %v5207_v1 }
 0xafa   :  { %4818 = vmatprep.subr.bf16.mxu1 %v5207_v1 }
 0xafd   :  { %4819 = vmatpush3.bf16.msra.mxu1 %v5140_v61 }
 0xafe   :  { %4820 = vmatprep.subr.bf16.mxu1 %v5207_v1 }
 0xb01   :  { %4821 = vmatpush3.bf16.msra.mxu1 %v5141_v62 }
 0xb02   :  { %4822 = vmatprep.subr.bf16.mxu1 %v5207_v1 }
 0xb05   :  { %4823 = vmatpush3.bf16.msra.mxu1 %v5142_v63 }
 0xb06   :  { %4824 = vmatprep.subr.bf16.mxu1 %v5207_v1 }
 0xb09   :  { %4825 = vmatpush3.bf16.msra.mxu1 %v5143_v0 }
 0xb0a   :  { %4826 = vmatprep.subr.bf16.mxu1 %v5207_v1 }
 0xb0d   :  { %4827 = vmatpush3.bf16.msra.mxu1 %v5144_v2  ;;  %v5163_v2 = vld [vmem:[#allocation2 + $0x500] sm:$0xff]  }
 0xb0e   :  { %4828 = vmatprep.subr.bf16.mxu1 %v5207_v1 }
 0xb11   :  { %4829 = vmatpush3.bf16.msra.mxu1 %v5145_v10 }
 0xb12   :  { %4830 = vmatprep.subr.bf16.mxu1 %v5207_v1 }
 0xb15   :  { %4831 = vmatpush3.bf16.msra.mxu1 %v5146_v11 }
 0xb16   :  { %4856 = vmatprep.subr.bf16.mxu1 %v5207_v1 }
 0xbab   :  { %v2663_v13 = vpop.f32.mrb[64].mxu0 }
 0xbac   :  { %v2664_v14 = vadd.f32 %v3661_v12, %v2663_v13  ;;  %v4774_v15 = vpop.f32.mrb[65].mxu0 }
 0xbad   :  { %v2666_v16 = vpop.f32.mrb[66].mxu0 }
 0xbae   :  { %v2669_v17 = vmax.f32 %v2664_v14, 0.0  ;;  %v4775_v18 = vpop.f32.mrb[67].mxu0  ;;  %v5169_v16 = vld [vmem:[#allocation2 + $0x530] sm:$0xff]  }
 0xbaf   :  { %v3691_v18 = vld [vmem:[%s5891_s3 + $0x12] ss:$0 sm:$0xff] }
 0xbb0   :  { %v2712_v20 = vpack.c.bf16 %v2669_v17, %v2669_v17  ;;  %v5170_v17 = vld [vmem:[#allocation2 + $0x538] sm:$0xff]  }
 0xbb2   :  { %4813 = vmatmul.mubr.bf16.vlgmr.msra.gmra.mrb[68].mxu0 %v2712_v20 }
 0xbb3   :  { %4837 = vmatpush3.bf16.msra.mxu0 %v5147_v19  ;;  %4852 = vmatprep.mubr.msk.bf16.mxu0 %vm5208_vm0, %v5207_v1 }
 0xbb4   :  { %4838 = vmatprep.subr.bf16.mxu0 %v5207_v1 }
 0xbb7   :  { %4839 = vmatpush3.bf16.msra.mxu0 %v5148_v21 }
 0xbb8   :  { %4840 = vmatprep.subr.bf16.mxu0 %v5207_v1 }
 0xbbb   :  { %4841 = vmatpush3.bf16.msra.mxu0 %v5149_v22 }
 0xbbc   :  { %4842 = vmatprep.subr.bf16.mxu0 %v5207_v1 }
 0xbbf   :  { %4843 = vmatpush3.bf16.msra.mxu0 %v5150_v23 }
 0xbc0   :  { %4844 = vmatprep.subr.bf16.mxu0 %v5207_v1 }
 0xbc3   :  { %4845 = vmatpush3.bf16.msra.mxu0 %v5151_v24 }
 0xbc4   :  { %4846 = vmatprep.subr.bf16.mxu0 %v5207_v1 }
 0xbc7   :  { %4847 = vmatpush3.bf16.msra.mxu0 %v5152_v25 }
 0xbc8   :  { %4848 = vmatprep.subr.bf16.mxu0 %v5207_v1 }
 0xbcb   :  { %v2705_v26 = vpop.f32.mrb[64].mxu1  ;;  %4849 = vmatpush3.bf16.msra.mxu0 %v5153_v33 }
 0xbcc   :  { %v2706_v27 = vadd.f32 %v3661_v12, %v2705_v26  ;;  %v4794_v28 = vpop.f32.mrb[65].mxu1  ;;  %4850 = vmatprep.subr.bf16.mxu0 %v5207_v1 }
 0xbcd   :  { %v2708_v29 = vpop.f32.mrb[66].mxu1  ;;  %v5173_v28 = vld [vmem:[#allocation2 + $0x550] sm:$0xff]  }
 0xbce   :  { %v2711_v30 = vmax.f32 %v2706_v27, 0.0  ;;  %v4795_v31 = vpop.f32.mrb[67].mxu1  ;;  %v5172_v27 = vld [vmem:[#allocation2 + $0x548] sm:$0xff]   ;;  %v5174_v29 = vld [vmem:[#allocation2 + $0x558] sm:$0xff]  }
 0xbcf   :  { %4851 = vmatpush3.bf16.msra.mxu0 %v5154_v34  ;;  %v5176_v31 = vld [vmem:[#allocation2 + $0x568] sm:$0xff]  }
 0xbd0   :  { %v2827_v32 = vpack.c.bf16 %v2711_v30, %v2711_v30  ;;  %4876 = vmatprep.subr.bf16.mxu0 %v5207_v1  ;;  %v5175_v30 = vld [vmem:[#allocation2 + $0x560] sm:$0xff]  }
 0xbd2   :  { %4833 = vmatmul.mubr.bf16.vlgmr.msra.gmra.mrb[68].mxu1 %v2827_v32 }
 0xbd3   :  { %4857 = vmatpush3.bf16.msra.mxu1 %v5147_v19  ;;  %4872 = vmatprep.mubr.msk.bf16.mxu1 %vm5208_vm0, %v5207_v1 }
 0xbd4   :  { %4858 = vmatprep.subr.bf16.mxu1 %v5207_v1 }
 0xbd7   :  { %4859 = vmatpush3.bf16.msra.mxu1 %v5148_v21 }
 0xbd8   :  { %4860 = vmatprep.subr.bf16.mxu1 %v5207_v1 }
 0xbdb   :  { %4861 = vmatpush3.bf16.msra.mxu1 %v5149_v22 }
 0xbdc   :  { %4862 = vmatprep.subr.bf16.mxu1 %v5207_v1 }
 0xbdf   :  { %4863 = vmatpush3.bf16.msra.mxu1 %v5150_v23 }
 0xbe0   :  { %4864 = vmatprep.subr.bf16.mxu1 %v5207_v1 }
 0xbe3   :  { %4865 = vmatpush3.bf16.msra.mxu1 %v5151_v24 }
 0xbe4   :  { %4866 = vmatprep.subr.bf16.mxu1 %v5207_v1 }
 0xbe7   :  { %4867 = vmatpush3.bf16.msra.mxu1 %v5152_v25  ;;  %v5171_v25 = vld [vmem:[#allocation2 + $0x540] sm:$0xff]  }
 0xbe8   :  { %4868 = vmatprep.subr.bf16.mxu1 %v5207_v1 }
 0xbeb   :  { %4869 = vmatpush3.bf16.msra.mxu1 %v5153_v33 }
 0xbec   :  { %4870 = vmatprep.subr.bf16.mxu1 %v5207_v1 }
 0xbef   :  { %4871 = vmatpush3.bf16.msra.mxu1 %v5154_v34 }
 0xbf0   :  { %4896 = vmatprep.subr.bf16.mxu1 %v5207_v1 }
 0xc85   :  { %v2820_v36 = vpop.f32.mrb[68].mxu0 }
 0xc86   :  { %v2821_v37 = vadd.f32 %v3671_v35, %v2820_v36  ;;  %v4814_v38 = vpop.f32.mrb[69].mxu0 }
 0xc87   :  { %v2823_v39 = vpop.f32.mrb[70].mxu0 }
 0xc88   :  { %v2826_v40 = vmax.f32 %v2821_v37, 0.0  ;;  %v4815_v41 = vpop.f32.mrb[71].mxu0  ;;  %v5177_v39 = vld [vmem:[#allocation2 + $0x570] sm:$0xff]  }
 0xc89   :  { %v3701_v41 = vld [vmem:[%s5891_s3 + $0x13] ss:$0 sm:$0xff] }
 0xc8a   :  { %v2869_v43 = vpack.c.bf16 %v2826_v40, %v2826_v40  ;;  %v5178_v40 = vld [vmem:[#allocation2 + $0x578] sm:$0xff]  }
 0xc8c   :  { %4853 = vmatmul.mubr.bf16.vlgmr.msra.gmra.mrb[72].mxu0 %v2869_v43 }
 0xc8d   :  { %4877 = vmatpush3.bf16.msra.mxu0 %v5155_v42  ;;  %4892 = vmatprep.mubr.msk.bf16.mxu0 %vm5208_vm0, %v5207_v1 }
 0xc8e   :  { %4878 = vmatprep.subr.bf16.mxu0 %v5207_v1 }
 0xc91   :  { %4879 = vmatpush3.bf16.msra.mxu0 %v5156_v44 }
 0xc92   :  { %4880 = vmatprep.subr.bf16.mxu0 %v5207_v1 }
 0xc95   :  { %4881 = vmatpush3.bf16.msra.mxu0 %v5157_v45 }
 0xc96   :  { %4882 = vmatprep.subr.bf16.mxu0 %v5207_v1 }
 0xc99   :  { %4883 = vmatpush3.bf16.msra.mxu0 %v5158_v46 }
 0xc9a   :  { %4884 = vmatprep.subr.bf16.mxu0 %v5207_v1 }
 0xc9d   :  { %4885 = vmatpush3.bf16.msra.mxu0 %v5159_v47 }
 0xc9e   :  { %4886 = vmatprep.subr.bf16.mxu0 %v5207_v1 }
 0xca1   :  { %4887 = vmatpush3.bf16.msra.mxu0 %v5160_v48 }
 0xca2   :  { %4888 = vmatprep.subr.bf16.mxu0 %v5207_v1 }
 0xca5   :  { %v2862_v49 = vpop.f32.mrb[68].mxu1  ;;  %4889 = vmatpush3.bf16.msra.mxu0 %v5161_v56 }
 0xca6   :  { %v2863_v50 = vadd.f32 %v3671_v35, %v2862_v49  ;;  %v4834_v51 = vpop.f32.mrb[69].mxu1  ;;  %4890 = vmatprep.subr.bf16.mxu0 %v5207_v1 }
 0xca7   :  { %v2865_v52 = vpop.f32.mrb[70].mxu1 }
 0xca8   :  { %v2868_v53 = vmax.f32 %v2863_v50, 0.0  ;;  %v4835_v54 = vpop.f32.mrb[71].mxu1 }
 0xca9   :  { %4891 = vmatpush3.bf16.msra.mxu0 %v5162_v57 }
 0xcaa   :  { %v2984_v55 = vpack.c.bf16 %v2868_v53, %v2868_v53  ;;  %4916 = vmatprep.subr.bf16.mxu0 %v5207_v1 }
 0xcac   :  { %4873 = vmatmul.mubr.bf16.vlgmr.msra.gmra.mrb[72].mxu1 %v2984_v55  ;;  %v3711_v55 = vld [vmem:[%s5891_s3 + $0x14] ss:$0 sm:$0xff] }
 0xcad   :  { %4897 = vmatpush3.bf16.msra.mxu1 %v5155_v42  ;;  %4912 = vmatprep.mubr.msk.bf16.mxu1 %vm5208_vm0, %v5207_v1 }
 0xcae   :  { %4898 = vmatprep.subr.bf16.mxu1 %v5207_v1 }
 0xcb1   :  { %4899 = vmatpush3.bf16.msra.mxu1 %v5156_v44 }
 0xcb2   :  { %4900 = vmatprep.subr.bf16.mxu1 %v5207_v1 }
 0xcb5   :  { %4901 = vmatpush3.bf16.msra.mxu1 %v5157_v45 }
 0xcb6   :  { %4902 = vmatprep.subr.bf16.mxu1 %v5207_v1 }
 0xcb9   :  { %4903 = vmatpush3.bf16.msra.mxu1 %v5158_v46 }
 0xcba   :  { %4904 = vmatprep.subr.bf16.mxu1 %v5207_v1 }
 0xcbd   :  { %4905 = vmatpush3.bf16.msra.mxu1 %v5159_v47 }
 0xcbe   :  { %4906 = vmatprep.subr.bf16.mxu1 %v5207_v1 }
 0xcc1   :  { %4907 = vmatpush3.bf16.msra.mxu1 %v5160_v48 }
 0xcc2   :  { %4908 = vmatprep.subr.bf16.mxu1 %v5207_v1 }
 0xcc5   :  { %4909 = vmatpush3.bf16.msra.mxu1 %v5161_v56 }
 0xcc6   :  { %4910 = vmatprep.subr.bf16.mxu1 %v5207_v1 }
 0xcc9   :  { %4911 = vmatpush3.bf16.msra.mxu1 %v5162_v57 }
 0xcca   :  { %4936 = vmatprep.subr.bf16.mxu1 %v5207_v1 }
 0xd5f   :  { %v2977_v59 = vpop.f32.mrb[72].mxu0 }
 0xd60   :  { %v2978_v60 = vadd.f32 %v3681_v58, %v2977_v59  ;;  %v4854_v61 = vpop.f32.mrb[73].mxu0 }
 0xd61   :  { %v2980_v62 = vpop.f32.mrb[74].mxu0 }
 0xd62   :  { %v2983_v63 = vmax.f32 %v2978_v60, 0.0  ;;  %v4855_v0 = vpop.f32.mrb[75].mxu0 }
 0xd64   :  { %v3026_v3 = vpack.c.bf16 %v2983_v63, %v2983_v63 }
 0xd66   :  { %4893 = vmatmul.mubr.bf16.vlgmr.msra.gmra.mrb[76].mxu0 %v3026_v3 }
 0xd67   :  { %4917 = vmatpush3.bf16.msra.mxu0 %v5163_v2  ;;  %4932 = vmatprep.mubr.msk.bf16.mxu0 %vm5208_vm0, %v5207_v1 }
 0xd68   :  { %4918 = vmatprep.subr.bf16.mxu0 %v5207_v1 }
 0xd6b   :  { %4919 = vmatpush3.bf16.msra.mxu0 %v5164_v4 }
 0xd6c   :  { %4920 = vmatprep.subr.bf16.mxu0 %v5207_v1 }
 0xd6f   :  { %4921 = vmatpush3.bf16.msra.mxu0 %v5165_v5 }
 0xd70   :  { %4922 = vmatprep.subr.bf16.mxu0 %v5207_v1 }
 0xd73   :  { %4923 = vmatpush3.bf16.msra.mxu0 %v5166_v6 }
 0xd74   :  { %4924 = vmatprep.subr.bf16.mxu0 %v5207_v1 }
 0xd77   :  { %4925 = vmatpush3.bf16.msra.mxu0 %v5167_v7 }
 0xd78   :  { %4926 = vmatprep.subr.bf16.mxu0 %v5207_v1 }
 0xd7b   :  { %4927 = vmatpush3.bf16.msra.mxu0 %v5168_v8 }
 0xd7c   :  { %4928 = vmatprep.subr.bf16.mxu0 %v5207_v1 }
 0xd7f   :  { %v3019_v9 = vpop.f32.mrb[72].mxu1  ;;  %4929 = vmatpush3.bf16.msra.mxu0 %v5169_v16 }
 0xd80   :  { %v3020_v10 = vadd.f32 %v3681_v58, %v3019_v9  ;;  %v4874_v11 = vpop.f32.mrb[73].mxu1  ;;  %4930 = vmatprep.subr.bf16.mxu0 %v5207_v1 }
 0xd81   :  { %v3022_v12 = vpop.f32.mrb[74].mxu1 }
 0xd82   :  { %v3025_v13 = vmax.f32 %v3020_v10, 0.0  ;;  %v4875_v14 = vpop.f32.mrb[75].mxu1 }
 0xd83   :  { %4931 = vmatpush3.bf16.msra.mxu0 %v5170_v17 }
 0xd84   :  { %v3141_v15 = vpack.c.bf16 %v3025_v13, %v3025_v13  ;;  %4956 = vmatprep.subr.bf16.mxu0 %v5207_v1 }
 0xd86   :  { %4913 = vmatmul.mubr.bf16.vlgmr.msra.gmra.mrb[76].mxu1 %v3141_v15 }
 0xd87   :  { %4937 = vmatpush3.bf16.msra.mxu1 %v5163_v2  ;;  %4952 = vmatprep.mubr.msk.bf16.mxu1 %vm5208_vm0, %v5207_v1 }
 0xd88   :  { %4938 = vmatprep.subr.bf16.mxu1 %v5207_v1 }
 0xd8b   :  { %4939 = vmatpush3.bf16.msra.mxu1 %v5164_v4 }
 0xd8c   :  { %4940 = vmatprep.subr.bf16.mxu1 %v5207_v1 }
 0xd8f   :  { %4941 = vmatpush3.bf16.msra.mxu1 %v5165_v5 }
 0xd90   :  { %4942 = vmatprep.subr.bf16.mxu1 %v5207_v1 }
 0xd93   :  { %4943 = vmatpush3.bf16.msra.mxu1 %v5166_v6 }
 0xd94   :  { %4944 = vmatprep.subr.bf16.mxu1 %v5207_v1 }
 0xd97   :  { %4945 = vmatpush3.bf16.msra.mxu1 %v5167_v7 }
 0xd98   :  { %4946 = vmatprep.subr.bf16.mxu1 %v5207_v1 }
 0xd9b   :  { %4947 = vmatpush3.bf16.msra.mxu1 %v5168_v8 }
 0xd9c   :  { %4948 = vmatprep.subr.bf16.mxu1 %v5207_v1 }
 0xd9f   :  { %4949 = vmatpush3.bf16.msra.mxu1 %v5169_v16 }
 0xda0   :  { %4950 = vmatprep.subr.bf16.mxu1 %v5207_v1 }
 0xda3   :  { %4951 = vmatpush3.bf16.msra.mxu1 %v5170_v17 }
 0xda4   :  { %4976 = vmatprep.subr.bf16.mxu1 %v5207_v1 }
 0xe39   :  { %v3134_v19 = vpop.f32.mrb[76].mxu0 }
 0xe3a   :  { %v3135_v20 = vadd.f32 %v3691_v18, %v3134_v19  ;;  %v4894_v21 = vpop.f32.mrb[77].mxu0 }
 0xe3b   :  { %v3137_v22 = vpop.f32.mrb[78].mxu0 }
 0xe3c   :  { %v3140_v23 = vmax.f32 %v3135_v20, 0.0  ;;  %v4895_v24 = vpop.f32.mrb[79].mxu0 }
 0xe3e   :  { %v3183_v26 = vpack.c.bf16 %v3140_v23, %v3140_v23 }
 0xe40   :  { %4933 = vmatmul.mubr.bf16.vlgmr.msra.gmra.mrb[80].mxu0 %v3183_v26 }
 0xe41   :  { %4957 = vmatpush3.bf16.msra.mxu0 %v5171_v25  ;;  %4972 = vmatprep.mubr.msk.bf16.mxu0 %vm5208_vm0, %v5207_v1 }
 0xe42   :  { %4958 = vmatprep.subr.bf16.mxu0 %v5207_v1 }
 0xe45   :  { %4959 = vmatpush3.bf16.msra.mxu0 %v5172_v27 }
 0xe46   :  { %4960 = vmatprep.subr.bf16.mxu0 %v5207_v1 }
 0xe49   :  { %4961 = vmatpush3.bf16.msra.mxu0 %v5173_v28 }
 0xe4a   :  { %4962 = vmatprep.subr.bf16.mxu0 %v5207_v1 }
 0xe4d   :  { %4963 = vmatpush3.bf16.msra.mxu0 %v5174_v29 }
 0xe4e   :  { %4964 = vmatprep.subr.bf16.mxu0 %v5207_v1 }
 0xe51   :  { %4965 = vmatpush3.bf16.msra.mxu0 %v5175_v30 }
 0xe52   :  { %4966 = vmatprep.subr.bf16.mxu0 %v5207_v1 }
 0xe55   :  { %4967 = vmatpush3.bf16.msra.mxu0 %v5176_v31 }
 0xe56   :  { %4968 = vmatprep.subr.bf16.mxu0 %v5207_v1 }
 0xe59   :  { %v3176_v32 = vpop.f32.mrb[76].mxu1  ;;  %4969 = vmatpush3.bf16.msra.mxu0 %v5177_v39 }
 0xe5a   :  { %v3177_v33 = vadd.f32 %v3691_v18, %v3176_v32  ;;  %v4914_v34 = vpop.f32.mrb[77].mxu1  ;;  %4970 = vmatprep.subr.bf16.mxu0 %v5207_v1 }
 0xe5b   :  { %v3179_v35 = vpop.f32.mrb[78].mxu1 }
 0xe5c   :  { %v3182_v36 = vmax.f32 %v3177_v33, 0.0  ;;  %v4915_v37 = vpop.f32.mrb[79].mxu1 }
 0xe5d   :  { %4971 = vmatpush3.bf16.msra.mxu0 %v5178_v40 }
 0xe5e   :  { %v3298_v38 = vpack.c.bf16 %v3182_v36, %v3182_v36 }
 0xe60   :  { %4953 = vmatmul.mubr.bf16.vlgmr.msra.gmra.mrb[80].mxu1 %v3298_v38 }
 0xe61   :  { %4977 = vmatpush3.bf16.msra.mxu1 %v5171_v25  ;;  %4992 = vmatprep.mubr.msk.bf16.mxu1 %vm5208_vm0, %v5207_v1 }
 0xe62   :  { %4978 = vmatprep.subr.bf16.mxu1 %v5207_v1 }
 0xe65   :  { %4979 = vmatpush3.bf16.msra.mxu1 %v5172_v27 }
 0xe66   :  { %4980 = vmatprep.subr.bf16.mxu1 %v5207_v1 }
 0xe69   :  { %4981 = vmatpush3.bf16.msra.mxu1 %v5173_v28 }
 0xe6a   :  { %4982 = vmatprep.subr.bf16.mxu1 %v5207_v1 }
 0xe6d   :  { %4983 = vmatpush3.bf16.msra.mxu1 %v5174_v29 }
 0xe6e   :  { %4984 = vmatprep.subr.bf16.mxu1 %v5207_v1 }
 0xe71   :  { %4985 = vmatpush3.bf16.msra.mxu1 %v5175_v30 }
 0xe72   :  { %4986 = vmatprep.subr.bf16.mxu1 %v5207_v1 }
 0xe75   :  { %4987 = vmatpush3.bf16.msra.mxu1 %v5176_v31 }
 0xe76   :  { %4988 = vmatprep.subr.bf16.mxu1 %v5207_v1 }
 0xe79   :  { %4989 = vmatpush3.bf16.msra.mxu1 %v5177_v39 }
 0xe7a   :  { %4990 = vmatprep.subr.bf16.mxu1 %v5207_v1 }
 0xe7d   :  { %4991 = vmatpush3.bf16.msra.mxu1 %v5178_v40 }
 0xf13   :  { %v3291_v42 = vpop.f32.mrb[80].mxu0 }
 0xf14   :  { %v3292_v43 = vadd.f32 %v3701_v41, %v3291_v42  ;;  %v4934_v44 = vpop.f32.mrb[81].mxu0 }
 0xf15   :  { %v3294_v45 = vpop.f32.mrb[82].mxu0 }
 0xf16   :  { %v3297_v46 = vmax.f32 %v3292_v43, 0.0  ;;  %v4935_v47 = vpop.f32.mrb[83].mxu0 }
 0xf18   :  { %v3340_v48 = vpack.c.bf16 %v3297_v46, %v3297_v46 }
 0xf1a   :  { %4973 = vmatmul.mubr.bf16.vlgmr.msra.gmra.mrb[84].mxu0 %v3340_v48 }
 0xf33   :  { %v3333_v49 = vpop.f32.mrb[80].mxu1 }
 0xf34   :  { %v3334_v50 = vadd.f32 %v3701_v41, %v3333_v49  ;;  %v4954_v51 = vpop.f32.mrb[81].mxu1 }
 0xf35   :  { %v3336_v52 = vpop.f32.mrb[82].mxu1 }
 0xf36   :  { %v3339_v1 = vmax.f32 %v3334_v50, 0.0  ;;  %v4955_v53 = vpop.f32.mrb[83].mxu1 }
 0xf38   :  { %v3454_v54 = vpack.c.bf16 %v3339_v1, %v3339_v1 }
 0xf3a   :  { %4993 = vmatmul.mubr.bf16.vlgmr.msra.gmra.mrb[84].mxu1 %v3454_v54 }
 0xfed   :  { %v3448_v56 = vpop.f32.mrb[84].mxu0 }
 0xfee   :  { %v3449_v57 = vadd.f32 %v3711_v55, %v3448_v56  ;;  %v4974_v58 = vpop.f32.mrb[85].mxu0 }
 0xfef   :  { %v3451_v59 = vpop.f32.mrb[86].mxu0 }
 0xff0   :  { %3495 = vst [vmem:[%s5892_s4] sm:$0xff] %v3449_v57  ;;  %v4975_v60 = vpop.f32.mrb[87].mxu0 }
0x100d   :  { %v3489_v61 = vpop.f32.mrb[84].mxu1 }
0x100e   :  { %v3490_v62 = vadd.f32 %v3711_v55, %v3489_v61  ;;  %v4994_v63 = vpop.f32.mrb[85].mxu1 }
0x100f   :  { %v3492_v0 = vpop.f32.mrb[86].mxu1 }
0x1010   :  { %3496 = vst [vmem:[%s5892_s4 + $0x8] sm:$0xff] %v3490_v62  ;;  %v4995_v2 = vpop.f32.mrb[87].mxu1 }
0x1011   :  { %3501 = vsyncpa [#allocation3], 1 }

// kernel: _lambda_.1
= control target key start
LH: loop header
LB: loop body
LE: loop exit
PB: predicated region body
PF: predicated region fallthrough
CT: control target
= control target key end

     0   :  { %9 = vsyncpa [#allocation3], 0  ;;  %s5203_s15 = smov [#allocation2]   ;;  %s5888_s0 = inlined_call_operand.vmem [shape: f32[16,1], index: 0, kind: input, shape index: {}]   ;;  %s5889_s1 = inlined_call_operand.vmem [shape: f32[1,128], index: 1, kind: input, shape index: {}]   ;;  %s5890_s2 = inlined_call_operand.hbm [shape: bf16[22,128,128], index: 2, kind: input, shape index: {}]   ;;  %s5891_s3 = inlined_call_operand.vmem [shape: f32[21,1,128], index: 3, kind: input, shape index: {}]   ;;  %s5892_s4 = inlined_call_operand.vmem [shape: f32[16,128], index: 4, kind: output, shape index: {}]  }
   0x1   :  { %s19_s16 = sshll.u32 %s5203_s15, 4  ;;  %s5179_s19 = scalar_lea.hbm %s5890_s2, 22528  ;;  %s20_s16 = int_to_ptr.vmem [resolvable:$true] %s19_s16 }
   0x2   :  { %p5180_p0 = scmp.ne.s32.totalorder %s5890_s2, %s5179_s19  ;;  %p5183_p1 = scmp.lt.u32.totalorder %s5179_s19, %s5890_s2 }
   0x4   :  { %p5185_p2 = pnand %p5183_p1, %p5180_p0 }
   0x6   :  { %5188 = shalt.err (!%p5185_p2)
}
   0x7   :  { %s5189_s24 = scalar_lea.vmem %s20_s16, 22528  ;;  %p5194_p4 = scmp.lt.s32.totalorder %s20_s16, %s20_s16 }
   0x8   :  { %p5190_p3 = scmp.ne.s32.totalorder %s20_s16, %s5189_s24  ;;  %p5195_p5 = scmp.lt.s32.totalorder %s5189_s24, %s5189_s24 }
   0xa   :  { %p5196_p6 = por %p5195_p5, %p5194_p4 }
   0xc   :  { %p5197_p7 = pnand %p5196_p6, %p5190_p3 }
   0xe   :  { %5200 = shalt.err (!%p5197_p7)
}
   0xf   :  { %s5204_s25 = smov 64   ;;  %s5205_s26 = smov 4  }
  0x10   :  { %25 = dma.hbm_to_vmem [thread:$0]  %s5890_s2, 22528, %s20_s16, [#allocation3], %s5204_s25, %s5204_s25, %s5205_s26  }
  0x11   :  { %5201 = dma.done.wait [#allocation3], 22528  }
  0x12   :  { %5202 = vsyncadd [#allocation3], 4294944768  ;;  %v5206_v0 = vmov 0   ;;  %v5207_v1 = vmov 0.0   ;;  %v32_v2 = vld [vmem:[%s5888_s0] sm:$0xff]  ;;  %v55_v4 = vld [vmem:[%s5888_s0 + $0x8] sm:$0xff] }
  0x13   :  { %5002 = vset.pattern.permute.xlu0 %v5206_v0  ;;  %4116 = vmatprep.subr.bf16.mxu0 %v5207_v1  ;;  %v5003_v3 = vld [vmem:[#allocation2] sm:$0xff]   ;;  %v5004_v5 = vld [vmem:[#allocation2 + $0x8] sm:$0xff]   ;;  %v5005_v6 = vld [vmem:[#allocation2 + $0x10] sm:$0xff]   ;;  %vm5208_vm0 = vmmov 0  }
  0x14   :  { %4136 = vmatprep.subr.bf16.mxu1 %v5207_v1  ;;  %36 = vperm.xlu0 %5002, %v32_v2   ;;  %v5006_v7 = vld [vmem:[#allocation2 + $0x18] sm:$0xff]   ;;  %v5007_v8 = vld [vmem:[#allocation2 + $0x20] sm:$0xff]   ;;  %v5008_v9 = vld [vmem:[#allocation2 + $0x28] sm:$0xff]  }
  0x15   :  { %4117 = vmatpush3.bf16.msra.mxu0 %v5003_v3  ;;  %4137 = vmatpush3.bf16.msra.mxu1 %v5003_v3  ;;  %v5009_v10 = vld [vmem:[#allocation2 + $0x30] sm:$0xff]   ;;  %v5010_v11 = vld [vmem:[#allocation2 + $0x38] sm:$0xff]   ;;  %v3502_v12 = vld [vmem:[%s5889_s1] ss:$0 sm:$0xff] }
  0x16   :  { %4118 = vmatprep.subr.bf16.mxu0 %v5207_v1  ;;  %4138 = vmatprep.subr.bf16.mxu1 %v5207_v1  ;;  %v3503_v13 = vld [vmem:[%s5891_s3] ss:$0 sm:$0xff]  ;;  %v5285_v25 = vld [vmem:[#allocation2 + $0x48] sm:$0xff]   ;;  %v5292_v28 = vld [vmem:[#allocation2 + $0x50] sm:$0xff]  }
  0x17   :  { %4132 = vmatprep.mubr.msk.bf16.mxu0 %vm5208_vm0, %v5207_v1  ;;  %4152 = vmatprep.mubr.msk.bf16.mxu1 %vm5208_vm0, %v5207_v1  ;;  %v5280_v20 = vld [vmem:[#allocation2 + $0x40] sm:$0xff]   ;;  %v5014_v27 = vld [vmem:[#allocation2 + $0x88] sm:$0xff]   ;;  %v5016_v29 = vld [vmem:[#allocation2 + $0x90] sm:$0xff]  }
  0x18   :  { %58 = vperm.xlu0 %5002, %v55_v4   ;;  %v5283_v24 = vld [vmem:[#allocation2 + $0x80] sm:$0xff]   ;;  %v5017_v30 = vld [vmem:[#allocation2 + $0x58] sm:$0xff]   ;;  %v5021_v34 = vld [vmem:[#allocation2 + $0x68] sm:$0xff]  }
  0x19   :  { %4119 = vmatpush3.bf16.msra.mxu0 %v5004_v5  ;;  %4139 = vmatpush3.bf16.msra.mxu1 %v5004_v5  ;;  %v5018_v31 = vld [vmem:[#allocation2 + $0x98] sm:$0xff]   ;;  %v5019_v32 = vld [vmem:[#allocation2 + $0x60] sm:$0xff]   ;;  %v5022_v35 = vld [vmem:[#allocation2 + $0xa8] sm:$0xff]  }
  0x1a   :  { %4120 = vmatprep.subr.bf16.mxu0 %v5207_v1  ;;  %4140 = vmatprep.subr.bf16.mxu1 %v5207_v1  ;;  %v5020_v33 = vld [vmem:[#allocation2 + $0xa0] sm:$0xff]   ;;  %v5023_v36 = vld [vmem:[#allocation2 + $0x70] sm:$0xff]   ;;  %v5025_v38 = vld [vmem:[#allocation2 + $0x78] sm:$0xff]  }
  0x1b   :  { %v5024_v37 = vld [vmem:[#allocation2 + $0xb0] sm:$0xff]   ;;  %v5026_v39 = vld [vmem:[#allocation2 + $0xb8] sm:$0xff]   ;;  %v3505_v40 = vld [vmem:[%s5891_s3 + $0x1] ss:$0 sm:$0xff] }
  0x1c   :  { %v5337_v54 = vld [vmem:[#allocation2 + $0x100] sm:$0xff]   ;;  %v5345_v57 = vld [vmem:[#allocation2 + $0x108] sm:$0xff]   ;;  %v5357_v59 = vld [vmem:[#allocation2 + $0x110] sm:$0xff]  }
  0x1d   :  { %4121 = vmatpush3.bf16.msra.mxu0 %v5005_v6  ;;  %4141 = vmatpush3.bf16.msra.mxu1 %v5005_v6  ;;  %v5339_v55 = vld [vmem:[#allocation2 + $0xc0] sm:$0xff]   ;;  %v5347_v58 = vld [vmem:[#allocation2 + $0xc8] sm:$0xff]   ;;  %v5359_v60 = vld [vmem:[#allocation2 + $0xd0] sm:$0xff]  }
  0x1e   :  { %4122 = vmatprep.subr.bf16.mxu0 %v5207_v1  ;;  %4142 = vmatprep.subr.bf16.mxu1 %v5207_v1  ;;  %v5365_v61 = vld [vmem:[#allocation2 + $0x118] sm:$0xff]   ;;  %v5035_v63 = vld [vmem:[#allocation2 + $0x120] sm:$0xff]   ;;  %v5037_v2 = vld [vmem:[#allocation2 + $0x128] sm:$0xff]  }
  0x1f   :  { %v5367_v62 = vld [vmem:[#allocation2 + $0xd8] sm:$0xff]   ;;  %v5036_v0 = vld [vmem:[#allocation2 + $0xe0] sm:$0xff]   ;;  %v5038_v3 = vld [vmem:[#allocation2 + $0xe8] sm:$0xff]  }
  0x20   :  { %v5039_v4 = vld [vmem:[#allocation2 + $0x130] sm:$0xff]   ;;  %v5381_v6 = vld [vmem:[#allocation2 + $0x138] sm:$0xff]  }
  0x21   :  { %4123 = vmatpush3.bf16.msra.mxu0 %v5006_v7  ;;  %4143 = vmatpush3.bf16.msra.mxu1 %v5006_v7  ;;  %v5040_v5 = vld [vmem:[#allocation2 + $0xf0] sm:$0xff]   ;;  %v5383_v7 = vld [vmem:[#allocation2 + $0xf8] sm:$0xff]  }
  0x22   :  { %4124 = vmatprep.subr.bf16.mxu0 %v5207_v1  ;;  %4144 = vmatprep.subr.bf16.mxu1 %v5207_v1 }
  0x25   :  { %4125 = vmatpush3.bf16.msra.mxu0 %v5007_v8  ;;  %4145 = vmatpush3.bf16.msra.mxu1 %v5007_v8  ;;  %v3515_v8 = vld [vmem:[%s5891_s3 + $0x2] ss:$0 sm:$0xff] }
  0x26   :  { %4126 = vmatprep.subr.bf16.mxu0 %v5207_v1  ;;  %4146 = vmatprep.subr.bf16.mxu1 %v5207_v1 }
  0x29   :  { %4127 = vmatpush3.bf16.msra.mxu0 %v5008_v9  ;;  %4147 = vmatpush3.bf16.msra.mxu1 %v5008_v9  ;;  %v3525_v9 = vld [vmem:[%s5891_s3 + $0x3] ss:$0 sm:$0xff] }
  0x2a   :  { %4128 = vmatprep.subr.bf16.mxu0 %v5207_v1  ;;  %4148 = vmatprep.subr.bf16.mxu1 %v5207_v1 }
  0x2d   :  { %4129 = vmatpush3.bf16.msra.mxu0 %v5009_v10  ;;  %4149 = vmatpush3.bf16.msra.mxu1 %v5009_v10 }
  0x2e   :  { %4130 = vmatprep.subr.bf16.mxu0 %v5207_v1  ;;  %4150 = vmatprep.subr.bf16.mxu1 %v5207_v1 }
  0x31   :  { %4131 = vmatpush3.bf16.msra.mxu0 %v5010_v11  ;;  %4151 = vmatpush3.bf16.msra.mxu1 %v5010_v11 }
  0x32   :  { %4156 = vmatprep.subr.bf16.mxu0 %v5207_v1  ;;  %4176 = vmatprep.subr.bf16.mxu1 %v5207_v1 }
  0x93   :  { %v37_v14 = vpop.permute.xlu0 %36 }
  0x94   :  { %v45_v15 = vmul.f32 %v3502_v12, %v37_v14 }
  0x96   :  { %v53_v16 = vadd.f32 %v3503_v13, %v45_v15 }
  0x97   :  { %v59_v17 = vpop.permute.xlu0 %58 }
  0x98   :  { %v54_v18 = vmax.f32 %v53_v16, 0.0  ;;  %v61_v19 = vmul.f32 %v3502_v12, %v59_v17 }
  0x9a   :  { %v64_v21 = vpack.c.bf16 %v54_v18, %v54_v18  ;;  %v62_v22 = vadd.f32 %v3503_v13, %v61_v19 }
  0x9c   :  { %v63_v23 = vmax.f32 %v62_v22, 0.0  ;;  %4133 = vmatmul.mubr.bf16.vlgmr.msra.gmra.mrb[0].mxu0 %v64_v21 }
  0x9d   :  { %4157 = vmatpush3.bf16.msra.mxu0 %v5280_v20  ;;  %4172 = vmatprep.mubr.msk.bf16.mxu0 %vm5208_vm0, %v5207_v1 }
  0x9e   :  { %v178_v26 = vpack.c.bf16 %v63_v23, %v63_v23  ;;  %4158 = vmatprep.subr.bf16.mxu0 %v5207_v1 }
  0xa0   :  { %4153 = vmatmul.mubr.bf16.vlgmr.msra.gmra.mrb[0].mxu1 %v178_v26 }
  0xa1   :  { %4177 = vmatpush3.bf16.msra.mxu1 %v5283_v24  ;;  %4159 = vmatpush3.bf16.msra.mxu0 %v5285_v25 }
  0xa2   :  { %4178 = vmatprep.subr.bf16.mxu1 %v5207_v1  ;;  %4160 = vmatprep.subr.bf16.mxu0 %v5207_v1 }
  0xa3   :  { %4192 = vmatprep.mubr.msk.bf16.mxu1 %vm5208_vm0, %v5207_v1 }
  0xa5   :  { %4179 = vmatpush3.bf16.msra.mxu1 %v5014_v27  ;;  %4161 = vmatpush3.bf16.msra.mxu0 %v5292_v28 }
  0xa6   :  { %4180 = vmatprep.subr.bf16.mxu1 %v5207_v1  ;;  %4162 = vmatprep.subr.bf16.mxu0 %v5207_v1 }
  0xa9   :  { %4181 = vmatpush3.bf16.msra.mxu1 %v5016_v29  ;;  %4163 = vmatpush3.bf16.msra.mxu0 %v5017_v30 }
  0xaa   :  { %4182 = vmatprep.subr.bf16.mxu1 %v5207_v1  ;;  %4164 = vmatprep.subr.bf16.mxu0 %v5207_v1 }
  0xad   :  { %4183 = vmatpush3.bf16.msra.mxu1 %v5018_v31  ;;  %4165 = vmatpush3.bf16.msra.mxu0 %v5019_v32 }
  0xae   :  { %4184 = vmatprep.subr.bf16.mxu1 %v5207_v1  ;;  %4166 = vmatprep.subr.bf16.mxu0 %v5207_v1 }
  0xb1   :  { %4185 = vmatpush3.bf16.msra.mxu1 %v5020_v33  ;;  %4167 = vmatpush3.bf16.msra.mxu0 %v5021_v34 }
  0xb2   :  { %4186 = vmatprep.subr.bf16.mxu1 %v5207_v1  ;;  %4168 = vmatprep.subr.bf16.mxu0 %v5207_v1 }
  0xb5   :  { %4187 = vmatpush3.bf16.msra.mxu1 %v5022_v35  ;;  %4169 = vmatpush3.bf16.msra.mxu0 %v5023_v36 }
  0xb6   :  { %4188 = vmatprep.subr.bf16.mxu1 %v5207_v1  ;;  %4170 = vmatprep.subr.bf16.mxu0 %v5207_v1 }
  0xb9   :  { %4189 = vmatpush3.bf16.msra.mxu1 %v5024_v37  ;;  %4171 = vmatpush3.bf16.msra.mxu0 %v5025_v38 }
  0xba   :  { %4190 = vmatprep.subr.bf16.mxu1 %v5207_v1  ;;  %4196 = vmatprep.subr.bf16.mxu0 %v5207_v1 }
  0xbd   :  { %4191 = vmatpush3.bf16.msra.mxu1 %v5026_v39 }
  0xbe   :  { %4216 = vmatprep.subr.bf16.mxu1 %v5207_v1 }
 0x16f   :  { %v171_v41 = vpop.f32.mrb[0].mxu0 }
 0x170   :  { %v172_v42 = vadd.f32 %v3505_v40, %v171_v41  ;;  %v4134_v43 = vpop.f32.mrb[1].mxu0  ;;  %v5046_v41 = vld [vmem:[#allocation2 + $0x158] sm:$0xff]  }
 0x171   :  { %v174_v44 = vpop.f32.mrb[2].mxu0  ;;  %v5048_v43 = vld [vmem:[#allocation2 + $0x168] sm:$0xff]  }
 0x172   :  { %v177_v45 = vmax.f32 %v172_v42, 0.0  ;;  %v4135_v46 = vpop.f32.mrb[3].mxu0  ;;  %v5047_v42 = vld [vmem:[#allocation2 + $0x160] sm:$0xff]   ;;  %v5049_v44 = vld [vmem:[#allocation2 + $0x170] sm:$0xff]  }
 0x173   :  { %v213_v47 = vpop.f32.mrb[0].mxu1 }
 0x174   :  { %v220_v48 = vpack.c.bf16 %v177_v45, %v177_v45  ;;  %v4154_v49 = vpop.f32.mrb[1].mxu1  ;;  %v214_v52 = vadd.f32 %v3505_v40, %v213_v47  ;;  %v5045_v40 = vld [vmem:[#allocation2 + $0x150] sm:$0xff]   ;;  %v5050_v45 = vld [vmem:[#allocation2 + $0x178] sm:$0xff]  }
 0x175   :  { %v216_v50 = vpop.f32.mrb[2].mxu1 }
 0x176   :  { %v4155_v51 = vpop.f32.mrb[3].mxu1  ;;  %4173 = vmatmul.mubr.bf16.vlgmr.msra.gmra.mrb[4].mxu0 %v220_v48  ;;  %4193 = vmatmul.mubr.bf16.vlgmr.msra.gmra.mrb[4].mxu1 %v220_v48  ;;  %v219_v53 = vmax.f32 %v214_v52, 0.0  ;;  %v3551_v48 = vld [vmem:[%s5891_s3 + $0x4] ss:$0 sm:$0xff] }
 0x177   :  { %4197 = vmatpush3.bf16.msra.mxu0 %v5280_v20  ;;  %4217 = vmatpush3.bf16.msra.mxu1 %v5283_v24 }
 0x178   :  { %4198 = vmatprep.subr.bf16.mxu0 %v5207_v1  ;;  %4218 = vmatprep.subr.bf16.mxu1 %v5207_v1  ;;  %v449_v56 = vpack.c.bf16 %v219_v53, %v219_v53 }
 0x179   :  { %4212 = vmatprep.mubr.msk.bf16.mxu0 %vm5208_vm0, %v5207_v1  ;;  %4232 = vmatprep.mubr.msk.bf16.mxu1 %vm5208_vm0, %v5207_v1 }
 0x17b   :  { %4199 = vmatpush3.bf16.msra.mxu0 %v5285_v25  ;;  %4219 = vmatpush3.bf16.msra.mxu1 %v5014_v27 }
 0x17c   :  { %4200 = vmatprep.subr.bf16.mxu0 %v5207_v1  ;;  %4220 = vmatprep.subr.bf16.mxu1 %v5207_v1 }
 0x17f   :  { %4201 = vmatpush3.bf16.msra.mxu0 %v5292_v28  ;;  %4221 = vmatpush3.bf16.msra.mxu1 %v5016_v29 }
 0x180   :  { %4202 = vmatprep.subr.bf16.mxu0 %v5207_v1  ;;  %4222 = vmatprep.subr.bf16.mxu1 %v5207_v1 }
 0x183   :  { %4203 = vmatpush3.bf16.msra.mxu0 %v5017_v30  ;;  %4223 = vmatpush3.bf16.msra.mxu1 %v5018_v31 }
 0x184   :  { %4204 = vmatprep.subr.bf16.mxu0 %v5207_v1  ;;  %4224 = vmatprep.subr.bf16.mxu1 %v5207_v1 }
 0x187   :  { %4205 = vmatpush3.bf16.msra.mxu0 %v5019_v32  ;;  %4225 = vmatpush3.bf16.msra.mxu1 %v5020_v33 }
 0x188   :  { %4206 = vmatprep.subr.bf16.mxu0 %v5207_v1  ;;  %4226 = vmatprep.subr.bf16.mxu1 %v5207_v1 }
 0x18b   :  { %4207 = vmatpush3.bf16.msra.mxu0 %v5021_v34  ;;  %4227 = vmatpush3.bf16.msra.mxu1 %v5022_v35 }
 0x18c   :  { %4208 = vmatprep.subr.bf16.mxu0 %v5207_v1  ;;  %4228 = vmatprep.subr.bf16.mxu1 %v5207_v1 }
 0x18f   :  { %4209 = vmatpush3.bf16.msra.mxu0 %v5023_v36  ;;  %4229 = vmatpush3.bf16.msra.mxu1 %v5024_v37  ;;  %v5043_v36 = vld [vmem:[#allocation2 + $0x140] sm:$0xff]  }
 0x190   :  { %4210 = vmatprep.subr.bf16.mxu0 %v5207_v1  ;;  %4230 = vmatprep.subr.bf16.mxu1 %v5207_v1 }
 0x193   :  { %4211 = vmatpush3.bf16.msra.mxu0 %v5025_v38  ;;  %4231 = vmatpush3.bf16.msra.mxu1 %v5026_v39  ;;  %v5044_v39 = vld [vmem:[#allocation2 + $0x148] sm:$0xff]  }
 0x194   :  { %4236 = vmatprep.subr.bf16.mxu0 %v5207_v1  ;;  %4256 = vmatprep.subr.bf16.mxu1 %v5207_v1 }
 0x196   :  { %4213 = vmatmul.mubr.bf16.vlgmr.msra.gmra.mrb[8].mxu0 %v449_v56  ;;  %4233 = vmatmul.mubr.bf16.vlgmr.msra.gmra.mrb[8].mxu1 %v449_v56 }
 0x197   :  { %4237 = vmatpush3.bf16.msra.mxu0 %v5337_v54  ;;  %4257 = vmatpush3.bf16.msra.mxu1 %v5339_v55 }
 0x198   :  { %4238 = vmatprep.subr.bf16.mxu0 %v5207_v1  ;;  %4258 = vmatprep.subr.bf16.mxu1 %v5207_v1 }
 0x199   :  { %4252 = vmatprep.mubr.msk.bf16.mxu0 %vm5208_vm0, %v5207_v1  ;;  %4272 = vmatprep.mubr.msk.bf16.mxu1 %vm5208_vm0, %v5207_v1 }
 0x19b   :  { %4239 = vmatpush3.bf16.msra.mxu0 %v5345_v57  ;;  %4259 = vmatpush3.bf16.msra.mxu1 %v5347_v58 }
 0x19c   :  { %4240 = vmatprep.subr.bf16.mxu0 %v5207_v1  ;;  %4260 = vmatprep.subr.bf16.mxu1 %v5207_v1 }
 0x19f   :  { %4241 = vmatpush3.bf16.msra.mxu0 %v5357_v59  ;;  %4261 = vmatpush3.bf16.msra.mxu1 %v5359_v60 }
 0x1a0   :  { %4242 = vmatprep.subr.bf16.mxu0 %v5207_v1  ;;  %4262 = vmatprep.subr.bf16.mxu1 %v5207_v1 }
 0x1a3   :  { %4243 = vmatpush3.bf16.msra.mxu0 %v5365_v61  ;;  %4263 = vmatpush3.bf16.msra.mxu1 %v5367_v62 }
 0x1a4   :  { %4244 = vmatprep.subr.bf16.mxu0 %v5207_v1  ;;  %4264 = vmatprep.subr.bf16.mxu1 %v5207_v1 }
 0x1a7   :  { %4245 = vmatpush3.bf16.msra.mxu0 %v5035_v63  ;;  %4265 = vmatpush3.bf16.msra.mxu1 %v5036_v0 }
 0x1a8   :  { %4246 = vmatprep.subr.bf16.mxu0 %v5207_v1  ;;  %4266 = vmatprep.subr.bf16.mxu1 %v5207_v1 }
 0x1ab   :  { %4247 = vmatpush3.bf16.msra.mxu0 %v5037_v2  ;;  %4267 = vmatpush3.bf16.msra.mxu1 %v5038_v3 }
 0x1ac   :  { %4248 = vmatprep.subr.bf16.mxu0 %v5207_v1  ;;  %4268 = vmatprep.subr.bf16.mxu1 %v5207_v1 }
 0x1af   :  { %4249 = vmatpush3.bf16.msra.mxu0 %v5039_v4  ;;  %4269 = vmatpush3.bf16.msra.mxu1 %v5040_v5 }
 0x1b0   :  { %4250 = vmatprep.subr.bf16.mxu0 %v5207_v1  ;;  %4270 = vmatprep.subr.bf16.mxu1 %v5207_v1 }
 0x1b3   :  { %4251 = vmatpush3.bf16.msra.mxu0 %v5381_v6  ;;  %4271 = vmatpush3.bf16.msra.mxu1 %v5383_v7 }
 0x1b4   :  { %4276 = vmatprep.subr.bf16.mxu0 %v5207_v1  ;;  %4296 = vmatprep.subr.bf16.mxu1 %v5207_v1 }
 0x249   :  { %v328_v10 = vpop.f32.mrb[4].mxu0  ;;  %v442_v11 = vpop.f32.mrb[4].mxu1 }
 0x24a   :  { %v329_v12 = vadd.f32 %v3515_v8, %v328_v10  ;;  %v443_v13 = vadd.f32 %v3525_v9, %v442_v11  ;;  %v4174_v14 = vpop.f32.mrb[5].mxu0  ;;  %v4194_v15 = vpop.f32.mrb[5].mxu1 }
 0x24b   :  { %v331_v16 = vpop.f32.mrb[6].mxu0  ;;  %v445_v17 = vpop.f32.mrb[6].mxu1  ;;  %v5057_v14 = vld [vmem:[#allocation2 + $0x1b0] sm:$0xff]   ;;  %v5058_v15 = vld [vmem:[#allocation2 + $0x1b8] sm:$0xff]  }
 0x24c   :  { %v334_v18 = vmax.f32 %v329_v12, 0.0  ;;  %v448_v19 = vmax.f32 %v443_v13, 0.0  ;;  %v4175_v20 = vpop.f32.mrb[7].mxu0  ;;  %v4195_v21 = vpop.f32.mrb[7].mxu1  ;;  %v3553_v16 = vld [vmem:[%s5891_s3 + $0x5] ss:$0 sm:$0xff] }
 0x24e   :  { %v532_v22 = vpack.c.bf16 %v334_v18, %v334_v18  ;;  %v533_v23 = vpack.c.bf16 %v448_v19, %v448_v19 }
 0x250   :  { %4253 = vmatmul.mubr.bf16.vlgmr.msra.gmra.mrb[12].mxu0 %v533_v23  ;;  %4273 = vmatmul.mubr.bf16.vlgmr.msra.gmra.mrb[12].mxu1 %v532_v22  ;;  %v5059_v23 = vld [vmem:[#allocation2 + $0x1c0] sm:$0xff]  }
 0x251   :  { %4277 = vmatpush3.bf16.msra.mxu0 %v5337_v54  ;;  %4297 = vmatpush3.bf16.msra.mxu1 %v5339_v55 }
 0x252   :  { %4278 = vmatprep.subr.bf16.mxu0 %v5207_v1  ;;  %4298 = vmatprep.subr.bf16.mxu1 %v5207_v1 }
 0x253   :  { %4292 = vmatprep.mubr.msk.bf16.mxu0 %vm5208_vm0, %v5207_v1  ;;  %4312 = vmatprep.mubr.msk.bf16.mxu1 %vm5208_vm0, %v5207_v1 }
 0x255   :  { %4279 = vmatpush3.bf16.msra.mxu0 %v5345_v57  ;;  %4299 = vmatpush3.bf16.msra.mxu1 %v5347_v58  ;;  %v5051_v58 = vld [vmem:[#allocation2 + $0x180] sm:$0xff]  }
 0x256   :  { %4280 = vmatprep.subr.bf16.mxu0 %v5207_v1  ;;  %4300 = vmatprep.subr.bf16.mxu1 %v5207_v1 }
 0x259   :  { %4281 = vmatpush3.bf16.msra.mxu0 %v5357_v59  ;;  %4301 = vmatpush3.bf16.msra.mxu1 %v5359_v60  ;;  %v5052_v60 = vld [vmem:[#allocation2 + $0x188] sm:$0xff]  }
 0x25a   :  { %4282 = vmatprep.subr.bf16.mxu0 %v5207_v1  ;;  %4302 = vmatprep.subr.bf16.mxu1 %v5207_v1 }
 0x25d   :  { %4283 = vmatpush3.bf16.msra.mxu0 %v5365_v61  ;;  %4303 = vmatpush3.bf16.msra.mxu1 %v5367_v62  ;;  %v5053_v61 = vld [vmem:[#allocation2 + $0x190] sm:$0xff]   ;;  %v5054_v62 = vld [vmem:[#allocation2 + $0x198] sm:$0xff]  }
 0x25e   :  { %4284 = vmatprep.subr.bf16.mxu0 %v5207_v1  ;;  %4304 = vmatprep.subr.bf16.mxu1 %v5207_v1 }
 0x261   :  { %4285 = vmatpush3.bf16.msra.mxu0 %v5035_v63  ;;  %4305 = vmatpush3.bf16.msra.mxu1 %v5036_v0  ;;  %v5055_v63 = vld [vmem:[#allocation2 + $0x1a0] sm:$0xff]   ;;  %v5056_v0 = vld [vmem:[#allocation2 + $0x1a8] sm:$0xff]  }
 0x262   :  { %4286 = vmatprep.subr.bf16.mxu0 %v5207_v1  ;;  %4306 = vmatprep.subr.bf16.mxu1 %v5207_v1 }
 0x265   :  { %4287 = vmatpush3.bf16.msra.mxu0 %v5037_v2  ;;  %4307 = vmatpush3.bf16.msra.mxu1 %v5038_v3 }
 0x266   :  { %4288 = vmatprep.subr.bf16.mxu0 %v5207_v1  ;;  %4308 = vmatprep.subr.bf16.mxu1 %v5207_v1 }
 0x269   :  { %v484_v24 = vpop.f32.mrb[8].mxu0  ;;  %v525_v25 = vpop.f32.mrb[8].mxu1  ;;  %4289 = vmatpush3.bf16.msra.mxu0 %v5039_v4  ;;  %4309 = vmatpush3.bf16.msra.mxu1 %v5040_v5 }
 0x26a   :  { %v485_v26 = vadd.f32 %v3515_v8, %v484_v24  ;;  %v526_v27 = vadd.f32 %v3525_v9, %v525_v25  ;;  %v4214_v28 = vpop.f32.mrb[9].mxu0  ;;  %v4234_v29 = vpop.f32.mrb[9].mxu1  ;;  %4290 = vmatprep.subr.bf16.mxu0 %v5207_v1  ;;  %4310 = vmatprep.subr.bf16.mxu1 %v5207_v1  ;;  %v5060_v25 = vld [vmem:[#allocation2 + $0x1c8] sm:$0xff]  }
 0x26b   :  { %v487_v30 = vpop.f32.mrb[10].mxu0  ;;  %v528_v31 = vpop.f32.mrb[10].mxu1  ;;  %v5063_v28 = vld [vmem:[#allocation2 + $0x1e0] sm:$0xff]   ;;  %v5064_v29 = vld [vmem:[#allocation2 + $0x1e8] sm:$0xff]  }
 0x26c   :  { %v490_v32 = vmax.f32 %v485_v26, 0.0  ;;  %v531_v33 = vmax.f32 %v526_v27, 0.0  ;;  %v4215_v34 = vpop.f32.mrb[11].mxu0  ;;  %v4235_v35 = vpop.f32.mrb[11].mxu1  ;;  %v5061_v26 = vld [vmem:[#allocation2 + $0x1d0] sm:$0xff]   ;;  %v5062_v27 = vld [vmem:[#allocation2 + $0x1d8] sm:$0xff]  }
 0x26d   :  { %4291 = vmatpush3.bf16.msra.mxu0 %v5381_v6  ;;  %4311 = vmatpush3.bf16.msra.mxu1 %v5383_v7 }
 0x26e   :  { %v754_v37 = vpack.c.bf16 %v490_v32, %v490_v32  ;;  %v755_v38 = vpack.c.bf16 %v531_v33, %v531_v33  ;;  %4316 = vmatprep.subr.bf16.mxu0 %v5207_v1  ;;  %4336 = vmatprep.subr.bf16.mxu1 %v5207_v1 }
 0x270   :  { %4293 = vmatmul.mubr.bf16.vlgmr.msra.gmra.mrb[16].mxu0 %v755_v38  ;;  %4313 = vmatmul.mubr.bf16.vlgmr.msra.gmra.mrb[16].mxu1 %v754_v37  ;;  %v5065_v37 = vld [vmem:[#allocation2 + $0x1f0] sm:$0xff]   ;;  %v5066_v38 = vld [vmem:[#allocation2 + $0x1f8] sm:$0xff]  }
 0x271   :  { %4317 = vmatpush3.bf16.msra.mxu0 %v5043_v36  ;;  %4332 = vmatprep.mubr.msk.bf16.mxu0 %vm5208_vm0, %v5207_v1 }
 0x272   :  { %4318 = vmatprep.subr.bf16.mxu0 %v5207_v1  ;;  %4337 = vmatpush3.bf16.msra.mxu1 %v5043_v36 }
 0x273   :  { %4338 = vmatprep.subr.bf16.mxu1 %v5207_v1  ;;  %4352 = vmatprep.mubr.msk.bf16.mxu1 %vm5208_vm0, %v5207_v1 }
 0x275   :  { %4319 = vmatpush3.bf16.msra.mxu0 %v5044_v39 }
 0x276   :  { %4320 = vmatprep.subr.bf16.mxu0 %v5207_v1  ;;  %4339 = vmatpush3.bf16.msra.mxu1 %v5044_v39  ;;  %v3563_v39 = vld [vmem:[%s5891_s3 + $0x6] ss:$0 sm:$0xff] }
 0x277   :  { %4340 = vmatprep.subr.bf16.mxu1 %v5207_v1 }
 0x279   :  { %4321 = vmatpush3.bf16.msra.mxu0 %v5045_v40 }
 0x27a   :  { %4322 = vmatprep.subr.bf16.mxu0 %v5207_v1  ;;  %4341 = vmatpush3.bf16.msra.mxu1 %v5045_v40 }
 0x27b   :  { %4342 = vmatprep.subr.bf16.mxu1 %v5207_v1 }
 0x27d   :  { %4323 = vmatpush3.bf16.msra.mxu0 %v5046_v41 }
 0x27e   :  { %4324 = vmatprep.subr.bf16.mxu0 %v5207_v1  ;;  %4343 = vmatpush3.bf16.msra.mxu1 %v5046_v41 }
 0x27f   :  { %4344 = vmatprep.subr.bf16.mxu1 %v5207_v1 }
 0x281   :  { %4325 = vmatpush3.bf16.msra.mxu0 %v5047_v42 }
 0x282   :  { %4326 = vmatprep.subr.bf16.mxu0 %v5207_v1  ;;  %4345 = vmatpush3.bf16.msra.mxu1 %v5047_v42 }
 0x283   :  { %4346 = vmatprep.subr.bf16.mxu1 %v5207_v1 }
 0x285   :  { %4327 = vmatpush3.bf16.msra.mxu0 %v5048_v43 }
 0x286   :  { %4328 = vmatprep.subr.bf16.mxu0 %v5207_v1  ;;  %4347 = vmatpush3.bf16.msra.mxu1 %v5048_v43 }
 0x287   :  { %4348 = vmatprep.subr.bf16.mxu1 %v5207_v1 }
 0x289   :  { %4329 = vmatpush3.bf16.msra.mxu0 %v5049_v44 }
 0x28a   :  { %4349 = vmatpush3.bf16.msra.mxu1 %v5049_v44  ;;  %4330 = vmatprep.subr.bf16.mxu0 %v5207_v1 }
 0x28b   :  { %4350 = vmatprep.subr.bf16.mxu1 %v5207_v1 }
 0x28d   :  { %4331 = vmatpush3.bf16.msra.mxu0 %v5050_v45 }
 0x28e   :  { %4351 = vmatpush3.bf16.msra.mxu1 %v5050_v45  ;;  %4356 = vmatprep.subr.bf16.mxu0 %v5207_v1 }
 0x28f   :  { %4376 = vmatprep.subr.bf16.mxu1 %v5207_v1 }
 0x323   :  { %v650_v46 = vpop.f32.mrb[12].mxu0  ;;  %v738_v47 = vpop.f32.mrb[12].mxu1 }
 0x324   :  { %v739_v49 = vadd.f32 %v738_v47, %v650_v46  ;;  %v4254_v50 = vpop.f32.mrb[13].mxu0  ;;  %v4274_v51 = vpop.f32.mrb[13].mxu1  ;;  %v5067_v46 = vld [vmem:[#allocation2 + $0x200] sm:$0xff]  }
 0x325   :  { %v653_v52 = vpop.f32.mrb[14].mxu0  ;;  %v741_v53 = vpop.f32.mrb[14].mxu1  ;;  %v5070_v50 = vld [vmem:[#allocation2 + $0x218] sm:$0xff]   ;;  %v5071_v51 = vld [vmem:[#allocation2 + $0x220] sm:$0xff]  }
 0x326   :  { %v752_v54 = vadd.f32 %v3551_v48, %v739_v49  ;;  %v4255_v55 = vpop.f32.mrb[15].mxu0  ;;  %v4275_v56 = vpop.f32.mrb[15].mxu1  ;;  %v5069_v49 = vld [vmem:[#allocation2 + $0x210] sm:$0xff]   ;;  %v5072_v52 = vld [vmem:[#allocation2 + $0x228] sm:$0xff]  }
 0x328   :  { %v753_v57 = vmax.f32 %v752_v54, 0.0 }
 0x32a   :  { %v838_v59 = vpack.c.bf16 %v753_v57, %v753_v57 }
 0x32c   :  { %4333 = vmatmul.mubr.bf16.vlgmr.msra.gmra.mrb[20].mxu0 %v838_v59 }
 0x32d   :  { %4357 = vmatpush3.bf16.msra.mxu0 %v5051_v58  ;;  %4372 = vmatprep.mubr.msk.bf16.mxu0 %vm5208_vm0, %v5207_v1 }
 0x32e   :  { %4358 = vmatprep.subr.bf16.mxu0 %v5207_v1 }
 0x331   :  { %4359 = vmatpush3.bf16.msra.mxu0 %v5052_v60 }
 0x332   :  { %4360 = vmatprep.subr.bf16.mxu0 %v5207_v1 }
 0x335   :  { %4361 = vmatpush3.bf16.msra.mxu0 %v5053_v61 }
 0x336   :  { %4362 = vmatprep.subr.bf16.mxu0 %v5207_v1 }
 0x339   :  { %4363 = vmatpush3.bf16.msra.mxu0 %v5054_v62 }
 0x33a   :  { %4364 = vmatprep.subr.bf16.mxu0 %v5207_v1 }
 0x33d   :  { %4365 = vmatpush3.bf16.msra.mxu0 %v5055_v63 }
 0x33e   :  { %4366 = vmatprep.subr.bf16.mxu0 %v5207_v1 }
 0x341   :  { %4367 = vmatpush3.bf16.msra.mxu0 %v5056_v0 }
 0x342   :  { %4368 = vmatprep.subr.bf16.mxu0 %v5207_v1 }
 0x343   :  { %v790_v2 = vpop.f32.mrb[16].mxu0  ;;  %v830_v3 = vpop.f32.mrb[16].mxu1 }
 0x344   :  { %v831_v4 = vadd.f32 %v830_v3, %v790_v2  ;;  %v4294_v5 = vpop.f32.mrb[17].mxu0  ;;  %v4314_v6 = vpop.f32.mrb[17].mxu1 }
 0x345   :  { %v793_v7 = vpop.f32.mrb[18].mxu0  ;;  %v833_v8 = vpop.f32.mrb[18].mxu1  ;;  %4369 = vmatpush3.bf16.msra.mxu0 %v5057_v14  ;;  %v5075_v6 = vld [vmem:[#allocation2 + $0x240] sm:$0xff]  }
 0x346   :  { %v836_v9 = vadd.f32 %v3551_v48, %v831_v4  ;;  %v4295_v10 = vpop.f32.mrb[19].mxu0  ;;  %v4315_v11 = vpop.f32.mrb[19].mxu1  ;;  %4370 = vmatprep.subr.bf16.mxu0 %v5207_v1  ;;  %v5068_v48 = vld [vmem:[#allocation2 + $0x208] sm:$0xff]  }
 0x347   :  { %v5076_v8 = vld [vmem:[#allocation2 + $0x248] sm:$0xff]   ;;  %v5078_v10 = vld [vmem:[#allocation2 + $0x258] sm:$0xff]   ;;  %v5079_v11 = vld [vmem:[#allocation2 + $0x260] sm:$0xff]  }
 0x348   :  { %v837_v12 = vmax.f32 %v836_v9, 0.0  ;;  %v5077_v9 = vld [vmem:[#allocation2 + $0x250] sm:$0xff]  }
 0x349   :  { %4371 = vmatpush3.bf16.msra.mxu0 %v5058_v15 }
 0x34a   :  { %v953_v13 = vpack.c.bf16 %v837_v12, %v837_v12  ;;  %4396 = vmatprep.subr.bf16.mxu0 %v5207_v1  ;;  %v5080_v12 = vld [vmem:[#allocation2 + $0x268] sm:$0xff]  }
 0x34c   :  { %4353 = vmatmul.mubr.bf16.vlgmr.msra.gmra.mrb[20].mxu1 %v953_v13 }
 0x34d   :  { %4377 = vmatpush3.bf16.msra.mxu1 %v5051_v58  ;;  %4392 = vmatprep.mubr.msk.bf16.mxu1 %vm5208_vm0, %v5207_v1 }
 0x34e   :  { %4378 = vmatprep.subr.bf16.mxu1 %v5207_v1 }
 0x351   :  { %4379 = vmatpush3.bf16.msra.mxu1 %v5052_v60  ;;  %v5073_v60 = vld [vmem:[#allocation2 + $0x230] sm:$0xff]  }
 0x352   :  { %4380 = vmatprep.subr.bf16.mxu1 %v5207_v1 }
 0x355   :  { %4381 = vmatpush3.bf16.msra.mxu1 %v5053_v61  ;;  %v5074_v61 = vld [vmem:[#allocation2 + $0x238] sm:$0xff]  }
 0x356   :  { %4382 = vmatprep.subr.bf16.mxu1 %v5207_v1 }
 0x359   :  { %4383 = vmatpush3.bf16.msra.mxu1 %v5054_v62  ;;  %v3573_v62 = vld [vmem:[%s5891_s3 + $0x7] ss:$0 sm:$0xff] }
 0x35a   :  { %4384 = vmatprep.subr.bf16.mxu1 %v5207_v1 }
 0x35d   :  { %4385 = vmatpush3.bf16.msra.mxu1 %v5055_v63 }
 0x35e   :  { %4386 = vmatprep.subr.bf16.mxu1 %v5207_v1 }
 0x361   :  { %4387 = vmatpush3.bf16.msra.mxu1 %v5056_v0 }
 0x362   :  { %4388 = vmatprep.subr.bf16.mxu1 %v5207_v1 }
 0x365   :  { %4389 = vmatpush3.bf16.msra.mxu1 %v5057_v14 }
 0x366   :  { %4390 = vmatprep.subr.bf16.mxu1 %v5207_v1 }
 0x369   :  { %4391 = vmatpush3.bf16.msra.mxu1 %v5058_v15 }
 0x36a   :  { %4416 = vmatprep.subr.bf16.mxu1 %v5207_v1 }
 0x3ff   :  { %v946_v17 = vpop.f32.mrb[20].mxu0 }
 0x400   :  { %v947_v18 = vadd.f32 %v3553_v16, %v946_v17  ;;  %v4334_v19 = vpop.f32.mrb[21].mxu0 }
 0x401   :  { %v949_v20 = vpop.f32.mrb[22].mxu0 }
 0x402   :  { %v952_v21 = vmax.f32 %v947_v18, 0.0  ;;  %v4335_v22 = vpop.f32.mrb[23].mxu0  ;;  %v5081_v20 = vld [vmem:[#allocation2 + $0x270] sm:$0xff]  }
 0x403   :  { %v3583_v22 = vld [vmem:[%s5891_s3 + $0x8] ss:$0 sm:$0xff] }
 0x404   :  { %v995_v24 = vpack.c.bf16 %v952_v21, %v952_v21  ;;  %v5082_v21 = vld [vmem:[#allocation2 + $0x278] sm:$0xff]  }
 0x406   :  { %4373 = vmatmul.mubr.bf16.vlgmr.msra.gmra.mrb[24].mxu0 %v995_v24 }
 0x407   :  { %4397 = vmatpush3.bf16.msra.mxu0 %v5059_v23  ;;  %4412 = vmatprep.mubr.msk.bf16.mxu0 %vm5208_vm0, %v5207_v1 }
 0x408   :  { %4398 = vmatprep.subr.bf16.mxu0 %v5207_v1 }
 0x40b   :  { %4399 = vmatpush3.bf16.msra.mxu0 %v5060_v25 }
 0x40c   :  { %4400 = vmatprep.subr.bf16.mxu0 %v5207_v1 }
 0x40f   :  { %4401 = vmatpush3.bf16.msra.mxu0 %v5061_v26 }
 0x410   :  { %4402 = vmatprep.subr.bf16.mxu0 %v5207_v1 }
 0x413   :  { %4403 = vmatpush3.bf16.msra.mxu0 %v5062_v27 }
 0x414   :  { %4404 = vmatprep.subr.bf16.mxu0 %v5207_v1 }
 0x417   :  { %4405 = vmatpush3.bf16.msra.mxu0 %v5063_v28 }
 0x418   :  { %4406 = vmatprep.subr.bf16.mxu0 %v5207_v1 }
 0x41b   :  { %4407 = vmatpush3.bf16.msra.mxu0 %v5064_v29 }
 0x41c   :  { %4408 = vmatprep.subr.bf16.mxu0 %v5207_v1 }
 0x41f   :  { %v988_v30 = vpop.f32.mrb[20].mxu1  ;;  %4409 = vmatpush3.bf16.msra.mxu0 %v5065_v37 }
 0x420   :  { %v989_v31 = vadd.f32 %v3553_v16, %v988_v30  ;;  %v4354_v32 = vpop.f32.mrb[21].mxu1  ;;  %4410 = vmatprep.subr.bf16.mxu0 %v5207_v1 }
 0x421   :  { %v991_v33 = vpop.f32.mrb[22].mxu1  ;;  %v5085_v32 = vld [vmem:[#allocation2 + $0x290] sm:$0xff]  }
 0x422   :  { %v994_v34 = vmax.f32 %v989_v31, 0.0  ;;  %v4355_v35 = vpop.f32.mrb[23].mxu1  ;;  %v5084_v31 = vld [vmem:[#allocation2 + $0x288] sm:$0xff]   ;;  %v5086_v33 = vld [vmem:[#allocation2 + $0x298] sm:$0xff]  }
 0x423   :  { %4411 = vmatpush3.bf16.msra.mxu0 %v5066_v38  ;;  %v5088_v35 = vld [vmem:[#allocation2 + $0x2a8] sm:$0xff]  }
 0x424   :  { %v1110_v36 = vpack.c.bf16 %v994_v34, %v994_v34  ;;  %4436 = vmatprep.subr.bf16.mxu0 %v5207_v1  ;;  %v5087_v34 = vld [vmem:[#allocation2 + $0x2a0] sm:$0xff]  }
 0x426   :  { %4393 = vmatmul.mubr.bf16.vlgmr.msra.gmra.mrb[24].mxu1 %v1110_v36 }
 0x427   :  { %4417 = vmatpush3.bf16.msra.mxu1 %v5059_v23  ;;  %4432 = vmatprep.mubr.msk.bf16.mxu1 %vm5208_vm0, %v5207_v1 }
 0x428   :  { %4418 = vmatprep.subr.bf16.mxu1 %v5207_v1 }
 0x42b   :  { %4419 = vmatpush3.bf16.msra.mxu1 %v5060_v25 }
 0x42c   :  { %4420 = vmatprep.subr.bf16.mxu1 %v5207_v1 }
 0x42f   :  { %4421 = vmatpush3.bf16.msra.mxu1 %v5061_v26 }
 0x430   :  { %4422 = vmatprep.subr.bf16.mxu1 %v5207_v1 }
 0x433   :  { %4423 = vmatpush3.bf16.msra.mxu1 %v5062_v27 }
 0x434   :  { %4424 = vmatprep.subr.bf16.mxu1 %v5207_v1 }
 0x437   :  { %4425 = vmatpush3.bf16.msra.mxu1 %v5063_v28 }
 0x438   :  { %4426 = vmatprep.subr.bf16.mxu1 %v5207_v1 }
 0x43b   :  { %4427 = vmatpush3.bf16.msra.mxu1 %v5064_v29  ;;  %v5083_v29 = vld [vmem:[#allocation2 + $0x280] sm:$0xff]  }
 0x43c   :  { %4428 = vmatprep.subr.bf16.mxu1 %v5207_v1 }
 0x43f   :  { %4429 = vmatpush3.bf16.msra.mxu1 %v5065_v37 }
 0x440   :  { %4430 = vmatprep.subr.bf16.mxu1 %v5207_v1 }
 0x443   :  { %4431 = vmatpush3.bf16.msra.mxu1 %v5066_v38 }
 0x444   :  { %4456 = vmatprep.subr.bf16.mxu1 %v5207_v1 }
 0x4d9   :  { %v1103_v40 = vpop.f32.mrb[24].mxu0 }
 0x4da   :  { %v1104_v41 = vadd.f32 %v3563_v39, %v1103_v40  ;;  %v4374_v42 = vpop.f32.mrb[25].mxu0 }
 0x4db   :  { %v1106_v43 = vpop.f32.mrb[26].mxu0 }
 0x4dc   :  { %v1109_v44 = vmax.f32 %v1104_v41, 0.0  ;;  %v4375_v45 = vpop.f32.mrb[27].mxu0  ;;  %v5089_v43 = vld [vmem:[#allocation2 + $0x2b0] sm:$0xff]  }
 0x4dd   :  { %v3593_v45 = vld [vmem:[%s5891_s3 + $0x9] ss:$0 sm:$0xff] }
 0x4de   :  { %v1152_v47 = vpack.c.bf16 %v1109_v44, %v1109_v44  ;;  %v5090_v44 = vld [vmem:[#allocation2 + $0x2b8] sm:$0xff]  }
 0x4e0   :  { %4413 = vmatmul.mubr.bf16.vlgmr.msra.gmra.mrb[28].mxu0 %v1152_v47 }
 0x4e1   :  { %4437 = vmatpush3.bf16.msra.mxu0 %v5067_v46  ;;  %4452 = vmatprep.mubr.msk.bf16.mxu0 %vm5208_vm0, %v5207_v1 }
 0x4e2   :  { %4438 = vmatprep.subr.bf16.mxu0 %v5207_v1 }
 0x4e5   :  { %4439 = vmatpush3.bf16.msra.mxu0 %v5068_v48 }
 0x4e6   :  { %4440 = vmatprep.subr.bf16.mxu0 %v5207_v1 }
 0x4e9   :  { %4441 = vmatpush3.bf16.msra.mxu0 %v5069_v49 }
 0x4ea   :  { %4442 = vmatprep.subr.bf16.mxu0 %v5207_v1 }
 0x4ed   :  { %4443 = vmatpush3.bf16.msra.mxu0 %v5070_v50 }
 0x4ee   :  { %4444 = vmatprep.subr.bf16.mxu0 %v5207_v1 }
 0x4f1   :  { %4445 = vmatpush3.bf16.msra.mxu0 %v5071_v51 }
 0x4f2   :  { %4446 = vmatprep.subr.bf16.mxu0 %v5207_v1 }
 0x4f5   :  { %4447 = vmatpush3.bf16.msra.mxu0 %v5072_v52 }
 0x4f6   :  { %4448 = vmatprep.subr.bf16.mxu0 %v5207_v1 }
 0x4f9   :  { %v1145_v53 = vpop.f32.mrb[24].mxu1  ;;  %4449 = vmatpush3.bf16.msra.mxu0 %v5073_v60 }
 0x4fa   :  { %v1146_v54 = vadd.f32 %v3563_v39, %v1145_v53  ;;  %v4394_v55 = vpop.f32.mrb[25].mxu1  ;;  %4450 = vmatprep.subr.bf16.mxu0 %v5207_v1 }
 0x4fb   :  { %v1148_v56 = vpop.f32.mrb[26].mxu1  ;;  %v5572_v55 = vld [vmem:[#allocation2 + $0x2d0] sm:$0xff]  }
 0x4fc   :  { %v1151_v57 = vmax.f32 %v1146_v54, 0.0  ;;  %v4395_v58 = vpop.f32.mrb[27].mxu1  ;;  %v5566_v54 = vld [vmem:[#allocation2 + $0x2c8] sm:$0xff]   ;;  %v5576_v56 = vld [vmem:[#allocation2 + $0x2d8] sm:$0xff]  }
 0x4fd   :  { %4451 = vmatpush3.bf16.msra.mxu0 %v5074_v61  ;;  %v5584_v58 = vld [vmem:[#allocation2 + $0x2e8] sm:$0xff]  }
 0x4fe   :  { %v1267_v59 = vpack.c.bf16 %v1151_v57, %v1151_v57  ;;  %4476 = vmatprep.subr.bf16.mxu0 %v5207_v1  ;;  %v5580_v57 = vld [vmem:[#allocation2 + $0x2e0] sm:$0xff]  }
 0x500   :  { %4433 = vmatmul.mubr.bf16.vlgmr.msra.gmra.mrb[28].mxu1 %v1267_v59  ;;  %v5588_v59 = vld [vmem:[#allocation2 + $0x2f0] sm:$0xff]  }
 0x501   :  { %4457 = vmatpush3.bf16.msra.mxu1 %v5067_v46  ;;  %4472 = vmatprep.mubr.msk.bf16.mxu1 %vm5208_vm0, %v5207_v1 }
 0x502   :  { %4458 = vmatprep.subr.bf16.mxu1 %v5207_v1 }
 0x505   :  { %4459 = vmatpush3.bf16.msra.mxu1 %v5068_v48 }
 0x506   :  { %4460 = vmatprep.subr.bf16.mxu1 %v5207_v1 }
 0x509   :  { %4461 = vmatpush3.bf16.msra.mxu1 %v5069_v49 }
 0x50a   :  { %4462 = vmatprep.subr.bf16.mxu1 %v5207_v1 }
 0x50d   :  { %4463 = vmatpush3.bf16.msra.mxu1 %v5070_v50 }
 0x50e   :  { %4464 = vmatprep.subr.bf16.mxu1 %v5207_v1 }
 0x511   :  { %4465 = vmatpush3.bf16.msra.mxu1 %v5071_v51 }
 0x512   :  { %4466 = vmatprep.subr.bf16.mxu1 %v5207_v1 }
 0x515   :  { %4467 = vmatpush3.bf16.msra.mxu1 %v5072_v52  ;;  %v5563_v52 = vld [vmem:[#allocation2 + $0x2c0] sm:$0xff]  }
 0x516   :  { %4468 = vmatprep.subr.bf16.mxu1 %v5207_v1 }
 0x519   :  { %4469 = vmatpush3.bf16.msra.mxu1 %v5073_v60 }
 0x51a   :  { %4470 = vmatprep.subr.bf16.mxu1 %v5207_v1 }
 0x51d   :  { %4471 = vmatpush3.bf16.msra.mxu1 %v5074_v61 }
 0x51e   :  { %4496 = vmatprep.subr.bf16.mxu1 %v5207_v1 }
 0x5b3   :  { %v1260_v63 = vpop.f32.mrb[28].mxu0 }
 0x5b4   :  { %v1261_v0 = vadd.f32 %v3573_v62, %v1260_v63  ;;  %v4414_v2 = vpop.f32.mrb[29].mxu0 }
 0x5b5   :  { %v1263_v3 = vpop.f32.mrb[30].mxu0 }
 0x5b6   :  { %v1266_v4 = vmax.f32 %v1261_v0, 0.0  ;;  %v4415_v5 = vpop.f32.mrb[31].mxu0  ;;  %v5092_v3 = vld [vmem:[#allocation2 + $0x300] sm:$0xff]  }
 0x5b7   :  { %v5094_v5 = vld [vmem:[#allocation2 + $0x308] sm:$0xff]  }
 0x5b8   :  { %v1309_v7 = vpack.c.bf16 %v1266_v4, %v1266_v4 }
 0x5ba   :  { %4453 = vmatmul.mubr.bf16.vlgmr.msra.gmra.mrb[32].mxu0 %v1309_v7  ;;  %v5098_v7 = vld [vmem:[#allocation2 + $0x318] sm:$0xff]  }
 0x5bb   :  { %4477 = vmatpush3.bf16.msra.mxu0 %v5075_v6  ;;  %4492 = vmatprep.mubr.msk.bf16.mxu0 %vm5208_vm0, %v5207_v1 }
 0x5bc   :  { %4478 = vmatprep.subr.bf16.mxu0 %v5207_v1 }
 0x5bf   :  { %4479 = vmatpush3.bf16.msra.mxu0 %v5076_v8 }
 0x5c0   :  { %4480 = vmatprep.subr.bf16.mxu0 %v5207_v1 }
 0x5c3   :  { %4481 = vmatpush3.bf16.msra.mxu0 %v5077_v9 }
 0x5c4   :  { %4482 = vmatprep.subr.bf16.mxu0 %v5207_v1 }
 0x5c7   :  { %4483 = vmatpush3.bf16.msra.mxu0 %v5078_v10 }
 0x5c8   :  { %4484 = vmatprep.subr.bf16.mxu0 %v5207_v1 }
 0x5cb   :  { %4485 = vmatpush3.bf16.msra.mxu0 %v5079_v11 }
 0x5cc   :  { %4486 = vmatprep.subr.bf16.mxu0 %v5207_v1 }
 0x5cf   :  { %4487 = vmatpush3.bf16.msra.mxu0 %v5080_v12 }
 0x5d0   :  { %4488 = vmatprep.subr.bf16.mxu0 %v5207_v1 }
 0x5d3   :  { %v1302_v13 = vpop.f32.mrb[28].mxu1  ;;  %4489 = vmatpush3.bf16.msra.mxu0 %v5081_v20 }
 0x5d4   :  { %v1303_v14 = vadd.f32 %v3573_v62, %v1302_v13  ;;  %v4434_v15 = vpop.f32.mrb[29].mxu1  ;;  %4490 = vmatprep.subr.bf16.mxu0 %v5207_v1  ;;  %v3603_v13 = vld [vmem:[%s5891_s3 + $0xa] ss:$0 sm:$0xff] }
 0x5d5   :  { %v1305_v16 = vpop.f32.mrb[30].mxu1 }
 0x5d6   :  { %v1308_v17 = vmax.f32 %v1303_v14, 0.0  ;;  %v4435_v18 = vpop.f32.mrb[31].mxu1 }
 0x5d7   :  { %4491 = vmatpush3.bf16.msra.mxu0 %v5082_v21 }
 0x5d8   :  { %v1424_v19 = vpack.c.bf16 %v1308_v17, %v1308_v17  ;;  %4516 = vmatprep.subr.bf16.mxu0 %v5207_v1 }
 0x5da   :  { %4473 = vmatmul.mubr.bf16.vlgmr.msra.gmra.mrb[32].mxu1 %v1424_v19 }
 0x5db   :  { %4497 = vmatpush3.bf16.msra.mxu1 %v5075_v6  ;;  %4512 = vmatprep.mubr.msk.bf16.mxu1 %vm5208_vm0, %v5207_v1  ;;  %v5096_v6 = vld [vmem:[#allocation2 + $0x310] sm:$0xff]  }
 0x5dc   :  { %4498 = vmatprep.subr.bf16.mxu1 %v5207_v1 }
 0x5df   :  { %4499 = vmatpush3.bf16.msra.mxu1 %v5076_v8  ;;  %v5100_v8 = vld [vmem:[#allocation2 + $0x320] sm:$0xff]  }
 0x5e0   :  { %4500 = vmatprep.subr.bf16.mxu1 %v5207_v1 }
 0x5e3   :  { %4501 = vmatpush3.bf16.msra.mxu1 %v5077_v9  ;;  %v5102_v9 = vld [vmem:[#allocation2 + $0x328] sm:$0xff]  }
 0x5e4   :  { %4502 = vmatprep.subr.bf16.mxu1 %v5207_v1 }
 0x5e7   :  { %4503 = vmatpush3.bf16.msra.mxu1 %v5078_v10  ;;  %v5104_v10 = vld [vmem:[#allocation2 + $0x330] sm:$0xff]  }
 0x5e8   :  { %4504 = vmatprep.subr.bf16.mxu1 %v5207_v1 }
 0x5eb   :  { %4505 = vmatpush3.bf16.msra.mxu1 %v5079_v11  ;;  %v5105_v11 = vld [vmem:[#allocation2 + $0x2f8] sm:$0xff]  }
 0x5ec   :  { %4506 = vmatprep.subr.bf16.mxu1 %v5207_v1 }
 0x5ef   :  { %4507 = vmatpush3.bf16.msra.mxu1 %v5080_v12  ;;  %v5106_v12 = vld [vmem:[#allocation2 + $0x338] sm:$0xff]  }
 0x5f0   :  { %4508 = vmatprep.subr.bf16.mxu1 %v5207_v1 }
 0x5f3   :  { %4509 = vmatpush3.bf16.msra.mxu1 %v5081_v20 }
 0x5f4   :  { %4510 = vmatprep.subr.bf16.mxu1 %v5207_v1 }
 0x5f7   :  { %4511 = vmatpush3.bf16.msra.mxu1 %v5082_v21 }
 0x5f8   :  { %4536 = vmatprep.subr.bf16.mxu1 %v5207_v1 }
 0x68d   :  { %v1417_v23 = vpop.f32.mrb[32].mxu0 }
 0x68e   :  { %v1418_v24 = vadd.f32 %v3583_v22, %v1417_v23  ;;  %v4454_v25 = vpop.f32.mrb[33].mxu0 }
 0x68f   :  { %v1420_v26 = vpop.f32.mrb[34].mxu0 }
 0x690   :  { %v1423_v27 = vmax.f32 %v1418_v24, 0.0  ;;  %v4455_v28 = vpop.f32.mrb[35].mxu0 }
 0x691   :  { %v5634_v28 = vld [vmem:[#allocation2 + $0x340] sm:$0xff]  }
 0x692   :  { %v1466_v30 = vpack.c.bf16 %v1423_v27, %v1423_v27  ;;  %v5632_v27 = vld [vmem:[#allocation2 + $0x380] sm:$0xff]  }
 0x694   :  { %4493 = vmatmul.mubr.bf16.vlgmr.msra.gmra.mrb[36].mxu0 %v1466_v30  ;;  %v5640_v30 = vld [vmem:[#allocation2 + $0x388] sm:$0xff]  }
 0x695   :  { %4517 = vmatpush3.bf16.msra.mxu0 %v5083_v29  ;;  %4532 = vmatprep.mubr.msk.bf16.mxu0 %vm5208_vm0, %v5207_v1 }
 0x696   :  { %4518 = vmatprep.subr.bf16.mxu0 %v5207_v1 }
 0x699   :  { %4519 = vmatpush3.bf16.msra.mxu0 %v5084_v31 }
 0x69a   :  { %4520 = vmatprep.subr.bf16.mxu0 %v5207_v1 }
 0x69d   :  { %4521 = vmatpush3.bf16.msra.mxu0 %v5085_v32 }
 0x69e   :  { %4522 = vmatprep.subr.bf16.mxu0 %v5207_v1 }
 0x6a1   :  { %4523 = vmatpush3.bf16.msra.mxu0 %v5086_v33 }
 0x6a2   :  { %4524 = vmatprep.subr.bf16.mxu0 %v5207_v1 }
 0x6a5   :  { %4525 = vmatpush3.bf16.msra.mxu0 %v5087_v34 }
 0x6a6   :  { %4526 = vmatprep.subr.bf16.mxu0 %v5207_v1 }
 0x6a9   :  { %4527 = vmatpush3.bf16.msra.mxu0 %v5088_v35 }
 0x6aa   :  { %4528 = vmatprep.subr.bf16.mxu0 %v5207_v1 }
 0x6ad   :  { %v1459_v36 = vpop.f32.mrb[32].mxu1  ;;  %4529 = vmatpush3.bf16.msra.mxu0 %v5089_v43 }
 0x6ae   :  { %v1460_v37 = vadd.f32 %v3583_v22, %v1459_v36  ;;  %v4474_v38 = vpop.f32.mrb[33].mxu1  ;;  %4530 = vmatprep.subr.bf16.mxu0 %v5207_v1  ;;  %v5115_v36 = vld [vmem:[#allocation2 + $0x3a0] sm:$0xff]  }
 0x6af   :  { %v1462_v39 = vpop.f32.mrb[34].mxu1  ;;  %v5117_v38 = vld [vmem:[#allocation2 + $0x3a8] sm:$0xff]  }
 0x6b0   :  { %v1465_v40 = vmax.f32 %v1460_v37, 0.0  ;;  %v4475_v41 = vpop.f32.mrb[35].mxu1  ;;  %v5116_v37 = vld [vmem:[#allocation2 + $0x360] sm:$0xff]   ;;  %v5118_v39 = vld [vmem:[#allocation2 + $0x368] sm:$0xff]  }
 0x6b1   :  { %4531 = vmatpush3.bf16.msra.mxu0 %v5090_v44  ;;  %v5120_v41 = vld [vmem:[#allocation2 + $0x370] sm:$0xff]  }
 0x6b2   :  { %v1581_v42 = vpack.c.bf16 %v1465_v40, %v1465_v40  ;;  %4556 = vmatprep.subr.bf16.mxu0 %v5207_v1  ;;  %v5119_v40 = vld [vmem:[#allocation2 + $0x3b0] sm:$0xff]  }
 0x6b4   :  { %4513 = vmatmul.mubr.bf16.vlgmr.msra.gmra.mrb[36].mxu1 %v1581_v42  ;;  %v5676_v42 = vld [vmem:[#allocation2 + $0x3b8] sm:$0xff]  }
 0x6b5   :  { %4537 = vmatpush3.bf16.msra.mxu1 %v5083_v29  ;;  %4552 = vmatprep.mubr.msk.bf16.mxu1 %vm5208_vm0, %v5207_v1 }
 0x6b6   :  { %4538 = vmatprep.subr.bf16.mxu1 %v5207_v1 }
 0x6b9   :  { %4539 = vmatpush3.bf16.msra.mxu1 %v5084_v31  ;;  %v5642_v31 = vld [vmem:[#allocation2 + $0x348] sm:$0xff]  }
 0x6ba   :  { %4540 = vmatprep.subr.bf16.mxu1 %v5207_v1 }
 0x6bd   :  { %4541 = vmatpush3.bf16.msra.mxu1 %v5085_v32  ;;  %v5652_v32 = vld [vmem:[#allocation2 + $0x390] sm:$0xff]  }
 0x6be   :  { %4542 = vmatprep.subr.bf16.mxu1 %v5207_v1 }
 0x6c1   :  { %4543 = vmatpush3.bf16.msra.mxu1 %v5086_v33  ;;  %v5654_v33 = vld [vmem:[#allocation2 + $0x350] sm:$0xff]  }
 0x6c2   :  { %4544 = vmatprep.subr.bf16.mxu1 %v5207_v1 }
 0x6c5   :  { %4545 = vmatpush3.bf16.msra.mxu1 %v5087_v34  ;;  %v5660_v34 = vld [vmem:[#allocation2 + $0x398] sm:$0xff]  }
 0x6c6   :  { %4546 = vmatprep.subr.bf16.mxu1 %v5207_v1 }
 0x6c9   :  { %4547 = vmatpush3.bf16.msra.mxu1 %v5088_v35  ;;  %v5662_v35 = vld [vmem:[#allocation2 + $0x358] sm:$0xff]  }
 0x6ca   :  { %4548 = vmatprep.subr.bf16.mxu1 %v5207_v1 }
 0x6cd   :  { %4549 = vmatpush3.bf16.msra.mxu1 %v5089_v43  ;;  %v5678_v43 = vld [vmem:[#allocation2 + $0x378] sm:$0xff]  }
 0x6ce   :  { %4550 = vmatprep.subr.bf16.mxu1 %v5207_v1 }
 0x6d1   :  { %4551 = vmatpush3.bf16.msra.mxu1 %v5090_v44  ;;  %v3613_v44 = vld [vmem:[%s5891_s3 + $0xb] ss:$0 sm:$0xff] }
 0x6d2   :  { %4576 = vmatprep.subr.bf16.mxu1 %v5207_v1 }
 0x767   :  { %v1574_v46 = vpop.f32.mrb[36].mxu0 }
 0x768   :  { %v1575_v47 = vadd.f32 %v3593_v45, %v1574_v46  ;;  %v4494_v48 = vpop.f32.mrb[37].mxu0 }
 0x769   :  { %v1577_v49 = vpop.f32.mrb[38].mxu0 }
 0x76a   :  { %v1580_v50 = vmax.f32 %v1575_v47, 0.0  ;;  %v4495_v51 = vpop.f32.mrb[39].mxu0 }
 0x76c   :  { %v1623_v53 = vpack.c.bf16 %v1580_v50, %v1580_v50 }
 0x76e   :  { %4533 = vmatmul.mubr.bf16.vlgmr.msra.gmra.mrb[40].mxu0 %v1623_v53 }
 0x76f   :  { %4557 = vmatpush3.bf16.msra.mxu0 %v5563_v52  ;;  %4572 = vmatprep.mubr.msk.bf16.mxu0 %vm5208_vm0, %v5207_v1 }
 0x770   :  { %4558 = vmatprep.subr.bf16.mxu0 %v5207_v1 }
 0x773   :  { %4559 = vmatpush3.bf16.msra.mxu0 %v5566_v54 }
 0x774   :  { %4560 = vmatprep.subr.bf16.mxu0 %v5207_v1 }
 0x777   :  { %4561 = vmatpush3.bf16.msra.mxu0 %v5572_v55 }
 0x778   :  { %4562 = vmatprep.subr.bf16.mxu0 %v5207_v1 }
 0x77b   :  { %4563 = vmatpush3.bf16.msra.mxu0 %v5576_v56 }
 0x77c   :  { %4564 = vmatprep.subr.bf16.mxu0 %v5207_v1 }
 0x77f   :  { %4565 = vmatpush3.bf16.msra.mxu0 %v5580_v57 }
 0x780   :  { %4566 = vmatprep.subr.bf16.mxu0 %v5207_v1 }
 0x783   :  { %4567 = vmatpush3.bf16.msra.mxu0 %v5584_v58 }
 0x784   :  { %4568 = vmatprep.subr.bf16.mxu0 %v5207_v1 }
 0x787   :  { %v1616_v60 = vpop.f32.mrb[36].mxu1  ;;  %4569 = vmatpush3.bf16.msra.mxu0 %v5588_v59 }
 0x788   :  { %v1617_v61 = vadd.f32 %v3593_v45, %v1616_v60  ;;  %v4514_v62 = vpop.f32.mrb[37].mxu1  ;;  %4570 = vmatprep.subr.bf16.mxu0 %v5207_v1  ;;  %v3623_v45 = vld [vmem:[%s5891_s3 + $0xc] ss:$0 sm:$0xff] }
 0x789   :  { %v1619_v63 = vpop.f32.mrb[38].mxu1 }
 0x78a   :  { %v1622_v0 = vmax.f32 %v1617_v61, 0.0  ;;  %v4515_v2 = vpop.f32.mrb[39].mxu1 }
 0x78b   :  { %4571 = vmatpush3.bf16.msra.mxu0 %v5105_v11 }
 0x78c   :  { %v1738_v4 = vpack.c.bf16 %v1622_v0, %v1622_v0  ;;  %4596 = vmatprep.subr.bf16.mxu0 %v5207_v1 }
 0x78e   :  { %4553 = vmatmul.mubr.bf16.vlgmr.msra.gmra.mrb[40].mxu1 %v1738_v4 }
 0x78f   :  { %4577 = vmatpush3.bf16.msra.mxu1 %v5092_v3  ;;  %4592 = vmatprep.mubr.msk.bf16.mxu1 %vm5208_vm0, %v5207_v1 }
 0x790   :  { %4578 = vmatprep.subr.bf16.mxu1 %v5207_v1 }
 0x793   :  { %4579 = vmatpush3.bf16.msra.mxu1 %v5094_v5 }
 0x794   :  { %4580 = vmatprep.subr.bf16.mxu1 %v5207_v1 }
 0x797   :  { %4581 = vmatpush3.bf16.msra.mxu1 %v5096_v6 }
 0x798   :  { %4582 = vmatprep.subr.bf16.mxu1 %v5207_v1 }
 0x79b   :  { %4583 = vmatpush3.bf16.msra.mxu1 %v5098_v7 }
 0x79c   :  { %4584 = vmatprep.subr.bf16.mxu1 %v5207_v1 }
 0x79f   :  { %4585 = vmatpush3.bf16.msra.mxu1 %v5100_v8 }
 0x7a0   :  { %4586 = vmatprep.subr.bf16.mxu1 %v5207_v1 }
 0x7a3   :  { %4587 = vmatpush3.bf16.msra.mxu1 %v5102_v9 }
 0x7a4   :  { %4588 = vmatprep.subr.bf16.mxu1 %v5207_v1 }
 0x7a7   :  { %4589 = vmatpush3.bf16.msra.mxu1 %v5104_v10 }
 0x7a8   :  { %4590 = vmatprep.subr.bf16.mxu1 %v5207_v1 }
 0x7ab   :  { %4591 = vmatpush3.bf16.msra.mxu1 %v5106_v12 }
 0x7ac   :  { %4616 = vmatprep.subr.bf16.mxu1 %v5207_v1 }
 0x841   :  { %v1731_v14 = vpop.f32.mrb[40].mxu0 }
 0x842   :  { %v1732_v15 = vadd.f32 %v3603_v13, %v1731_v14  ;;  %v4534_v16 = vpop.f32.mrb[41].mxu0  ;;  %v5126_v14 = vld [vmem:[#allocation2 + $0x3d8] sm:$0xff]  }
 0x843   :  { %v1734_v17 = vpop.f32.mrb[42].mxu0  ;;  %v5128_v16 = vld [vmem:[#allocation2 + $0x3e8] sm:$0xff]  }
 0x844   :  { %v1737_v18 = vmax.f32 %v1732_v15, 0.0  ;;  %v4535_v19 = vpop.f32.mrb[43].mxu0  ;;  %v5127_v15 = vld [vmem:[#allocation2 + $0x3e0] sm:$0xff]   ;;  %v5129_v17 = vld [vmem:[#allocation2 + $0x3f0] sm:$0xff]  }
 0x846   :  { %v1780_v20 = vpack.c.bf16 %v1737_v18, %v1737_v18  ;;  %v5130_v18 = vld [vmem:[#allocation2 + $0x3f8] sm:$0xff]  }
 0x848   :  { %4573 = vmatmul.mubr.bf16.vlgmr.msra.gmra.mrb[44].mxu0 %v1780_v20  ;;  %4593 = vmatmul.mubr.bf16.vlgmr.msra.gmra.mrb[44].mxu1 %v1780_v20 }
 0x849   :  { %4597 = vmatpush3.bf16.msra.mxu0 %v5563_v52  ;;  %4617 = vmatpush3.bf16.msra.mxu1 %v5092_v3 }
 0x84a   :  { %4598 = vmatprep.subr.bf16.mxu0 %v5207_v1  ;;  %4618 = vmatprep.subr.bf16.mxu1 %v5207_v1 }
 0x84b   :  { %4612 = vmatprep.mubr.msk.bf16.mxu0 %vm5208_vm0, %v5207_v1  ;;  %4632 = vmatprep.mubr.msk.bf16.mxu1 %vm5208_vm0, %v5207_v1 }
 0x84d   :  { %4599 = vmatpush3.bf16.msra.mxu0 %v5566_v54  ;;  %4619 = vmatpush3.bf16.msra.mxu1 %v5094_v5 }
 0x84e   :  { %4600 = vmatprep.subr.bf16.mxu0 %v5207_v1  ;;  %4620 = vmatprep.subr.bf16.mxu1 %v5207_v1 }
 0x851   :  { %4601 = vmatpush3.bf16.msra.mxu0 %v5572_v55  ;;  %4621 = vmatpush3.bf16.msra.mxu1 %v5096_v6 }
 0x852   :  { %4602 = vmatprep.subr.bf16.mxu0 %v5207_v1  ;;  %4622 = vmatprep.subr.bf16.mxu1 %v5207_v1 }
 0x855   :  { %4603 = vmatpush3.bf16.msra.mxu0 %v5576_v56  ;;  %4623 = vmatpush3.bf16.msra.mxu1 %v5098_v7 }
 0x856   :  { %4604 = vmatprep.subr.bf16.mxu0 %v5207_v1  ;;  %4624 = vmatprep.subr.bf16.mxu1 %v5207_v1 }
 0x859   :  { %4605 = vmatpush3.bf16.msra.mxu0 %v5580_v57  ;;  %4625 = vmatpush3.bf16.msra.mxu1 %v5100_v8 }
 0x85a   :  { %4606 = vmatprep.subr.bf16.mxu0 %v5207_v1  ;;  %4626 = vmatprep.subr.bf16.mxu1 %v5207_v1 }
 0x85d   :  { %4607 = vmatpush3.bf16.msra.mxu0 %v5584_v58  ;;  %4627 = vmatpush3.bf16.msra.mxu1 %v5102_v9  ;;  %v5123_v9 = vld [vmem:[#allocation2 + $0x3c0] sm:$0xff]  }
 0x85e   :  { %4608 = vmatprep.subr.bf16.mxu0 %v5207_v1  ;;  %4628 = vmatprep.subr.bf16.mxu1 %v5207_v1 }
 0x861   :  { %v1773_v21 = vpop.f32.mrb[40].mxu1  ;;  %4609 = vmatpush3.bf16.msra.mxu0 %v5588_v59  ;;  %4629 = vmatpush3.bf16.msra.mxu1 %v5104_v10 }
 0x862   :  { %v1774_v22 = vadd.f32 %v3603_v13, %v1773_v21  ;;  %v4554_v23 = vpop.f32.mrb[41].mxu1  ;;  %4610 = vmatprep.subr.bf16.mxu0 %v5207_v1  ;;  %4630 = vmatprep.subr.bf16.mxu1 %v5207_v1  ;;  %v5125_v13 = vld [vmem:[#allocation2 + $0x3d0] sm:$0xff]   ;;  %v3649_v21 = vld [vmem:[%s5891_s3 + $0xd] ss:$0 sm:$0xff] }
 0x863   :  { %v1776_v24 = vpop.f32.mrb[42].mxu1 }
 0x864   :  { %v1779_v25 = vmax.f32 %v1774_v22, 0.0  ;;  %v4555_v26 = vpop.f32.mrb[43].mxu1 }
 0x865   :  { %4611 = vmatpush3.bf16.msra.mxu0 %v5105_v11  ;;  %4631 = vmatpush3.bf16.msra.mxu1 %v5106_v12  ;;  %v5124_v12 = vld [vmem:[#allocation2 + $0x3c8] sm:$0xff]  }
 0x866   :  { %v2009_v29 = vpack.c.bf16 %v1779_v25, %v1779_v25  ;;  %4636 = vmatprep.subr.bf16.mxu0 %v5207_v1  ;;  %4656 = vmatprep.subr.bf16.mxu1 %v5207_v1 }
 0x868   :  { %4613 = vmatmul.mubr.bf16.vlgmr.msra.gmra.mrb[48].mxu0 %v2009_v29  ;;  %4633 = vmatmul.mubr.bf16.vlgmr.msra.gmra.mrb[48].mxu1 %v2009_v29 }
 0x869   :  { %4637 = vmatpush3.bf16.msra.mxu0 %v5632_v27  ;;  %4657 = vmatpush3.bf16.msra.mxu1 %v5634_v28 }
 0x86a   :  { %4638 = vmatprep.subr.bf16.mxu0 %v5207_v1  ;;  %4658 = vmatprep.subr.bf16.mxu1 %v5207_v1 }
 0x86b   :  { %4652 = vmatprep.mubr.msk.bf16.mxu0 %vm5208_vm0, %v5207_v1  ;;  %4672 = vmatprep.mubr.msk.bf16.mxu1 %vm5208_vm0, %v5207_v1 }
 0x86d   :  { %4639 = vmatpush3.bf16.msra.mxu0 %v5640_v30  ;;  %4659 = vmatpush3.bf16.msra.mxu1 %v5642_v31 }
 0x86e   :  { %4640 = vmatprep.subr.bf16.mxu0 %v5207_v1  ;;  %4660 = vmatprep.subr.bf16.mxu1 %v5207_v1 }
 0x871   :  { %4641 = vmatpush3.bf16.msra.mxu0 %v5652_v32  ;;  %4661 = vmatpush3.bf16.msra.mxu1 %v5654_v33 }
 0x872   :  { %4642 = vmatprep.subr.bf16.mxu0 %v5207_v1  ;;  %4662 = vmatprep.subr.bf16.mxu1 %v5207_v1 }
 0x875   :  { %4643 = vmatpush3.bf16.msra.mxu0 %v5660_v34  ;;  %4663 = vmatpush3.bf16.msra.mxu1 %v5662_v35 }
 0x876   :  { %4644 = vmatprep.subr.bf16.mxu0 %v5207_v1  ;;  %4664 = vmatprep.subr.bf16.mxu1 %v5207_v1 }
 0x879   :  { %4645 = vmatpush3.bf16.msra.mxu0 %v5115_v36  ;;  %4665 = vmatpush3.bf16.msra.mxu1 %v5116_v37 }
 0x87a   :  { %4646 = vmatprep.subr.bf16.mxu0 %v5207_v1  ;;  %4666 = vmatprep.subr.bf16.mxu1 %v5207_v1 }
 0x87d   :  { %4647 = vmatpush3.bf16.msra.mxu0 %v5117_v38  ;;  %4667 = vmatpush3.bf16.msra.mxu1 %v5118_v39 }
 0x87e   :  { %4648 = vmatprep.subr.bf16.mxu0 %v5207_v1  ;;  %4668 = vmatprep.subr.bf16.mxu1 %v5207_v1 }
 0x881   :  { %4649 = vmatpush3.bf16.msra.mxu0 %v5119_v40  ;;  %4669 = vmatpush3.bf16.msra.mxu1 %v5120_v41 }
 0x882   :  { %4650 = vmatprep.subr.bf16.mxu0 %v5207_v1  ;;  %4670 = vmatprep.subr.bf16.mxu1 %v5207_v1 }
 0x885   :  { %4651 = vmatpush3.bf16.msra.mxu0 %v5676_v42  ;;  %4671 = vmatpush3.bf16.msra.mxu1 %v5678_v43 }
 0x886   :  { %4676 = vmatprep.subr.bf16.mxu0 %v5207_v1  ;;  %4696 = vmatprep.subr.bf16.mxu1 %v5207_v1 }
 0x91b   :  { %v1888_v46 = vpop.f32.mrb[44].mxu0  ;;  %v2002_v47 = vpop.f32.mrb[44].mxu1 }
 0x91c   :  { %v1889_v48 = vadd.f32 %v3613_v44, %v1888_v46  ;;  %v2003_v49 = vadd.f32 %v3623_v45, %v2002_v47  ;;  %v4574_v50 = vpop.f32.mrb[45].mxu0  ;;  %v4594_v51 = vpop.f32.mrb[45].mxu1 }
 0x91d   :  { %v1891_v52 = vpop.f32.mrb[46].mxu0  ;;  %v2005_v53 = vpop.f32.mrb[46].mxu1  ;;  %v5137_v50 = vld [vmem:[#allocation2 + $0x430] sm:$0xff]   ;;  %v5138_v51 = vld [vmem:[#allocation2 + $0x438] sm:$0xff]  }
 0x91e   :  { %v1894_v54 = vmax.f32 %v1889_v48, 0.0  ;;  %v2008_v55 = vmax.f32 %v2003_v49, 0.0  ;;  %v4575_v56 = vpop.f32.mrb[47].mxu0  ;;  %v4595_v57 = vpop.f32.mrb[47].mxu1  ;;  %v3651_v52 = vld [vmem:[%s5891_s3 + $0xe] ss:$0 sm:$0xff] }
 0x920   :  { %v2092_v58 = vpack.c.bf16 %v1894_v54, %v1894_v54  ;;  %v2093_v59 = vpack.c.bf16 %v2008_v55, %v2008_v55 }
 0x922   :  { %4653 = vmatmul.mubr.bf16.vlgmr.msra.gmra.mrb[52].mxu0 %v2093_v59  ;;  %4673 = vmatmul.mubr.bf16.vlgmr.msra.gmra.mrb[52].mxu1 %v2092_v58  ;;  %v5139_v59 = vld [vmem:[#allocation2 + $0x440] sm:$0xff]  }
 0x923   :  { %4677 = vmatpush3.bf16.msra.mxu0 %v5632_v27  ;;  %4697 = vmatpush3.bf16.msra.mxu1 %v5634_v28 }
 0x924   :  { %4678 = vmatprep.subr.bf16.mxu0 %v5207_v1  ;;  %4698 = vmatprep.subr.bf16.mxu1 %v5207_v1 }
 0x925   :  { %4692 = vmatprep.mubr.msk.bf16.mxu0 %vm5208_vm0, %v5207_v1  ;;  %4712 = vmatprep.mubr.msk.bf16.mxu1 %vm5208_vm0, %v5207_v1 }
 0x927   :  { %4679 = vmatpush3.bf16.msra.mxu0 %v5640_v30  ;;  %4699 = vmatpush3.bf16.msra.mxu1 %v5642_v31  ;;  %v5131_v31 = vld [vmem:[#allocation2 + $0x400] sm:$0xff]  }
 0x928   :  { %4680 = vmatprep.subr.bf16.mxu0 %v5207_v1  ;;  %4700 = vmatprep.subr.bf16.mxu1 %v5207_v1 }
 0x92b   :  { %4681 = vmatpush3.bf16.msra.mxu0 %v5652_v32  ;;  %4701 = vmatpush3.bf16.msra.mxu1 %v5654_v33  ;;  %v5132_v33 = vld [vmem:[#allocation2 + $0x408] sm:$0xff]  }
 0x92c   :  { %4682 = vmatprep.subr.bf16.mxu0 %v5207_v1  ;;  %4702 = vmatprep.subr.bf16.mxu1 %v5207_v1 }
 0x92f   :  { %4683 = vmatpush3.bf16.msra.mxu0 %v5660_v34  ;;  %4703 = vmatpush3.bf16.msra.mxu1 %v5662_v35  ;;  %v5133_v34 = vld [vmem:[#allocation2 + $0x410] sm:$0xff]   ;;  %v5134_v35 = vld [vmem:[#allocation2 + $0x418] sm:$0xff]  }
 0x930   :  { %4684 = vmatprep.subr.bf16.mxu0 %v5207_v1  ;;  %4704 = vmatprep.subr.bf16.mxu1 %v5207_v1 }
 0x933   :  { %4685 = vmatpush3.bf16.msra.mxu0 %v5115_v36  ;;  %4705 = vmatpush3.bf16.msra.mxu1 %v5116_v37  ;;  %v5135_v36 = vld [vmem:[#allocation2 + $0x420] sm:$0xff]   ;;  %v5136_v37 = vld [vmem:[#allocation2 + $0x428] sm:$0xff]  }
 0x934   :  { %4686 = vmatprep.subr.bf16.mxu0 %v5207_v1  ;;  %4706 = vmatprep.subr.bf16.mxu1 %v5207_v1 }
 0x937   :  { %4687 = vmatpush3.bf16.msra.mxu0 %v5117_v38  ;;  %4707 = vmatpush3.bf16.msra.mxu1 %v5118_v39 }
 0x938   :  { %4688 = vmatprep.subr.bf16.mxu0 %v5207_v1  ;;  %4708 = vmatprep.subr.bf16.mxu1 %v5207_v1 }
 0x93b   :  { %v2044_v60 = vpop.f32.mrb[48].mxu0  ;;  %v2085_v61 = vpop.f32.mrb[48].mxu1  ;;  %4689 = vmatpush3.bf16.msra.mxu0 %v5119_v40  ;;  %4709 = vmatpush3.bf16.msra.mxu1 %v5120_v41 }
 0x93c   :  { %v2045_v62 = vadd.f32 %v3613_v44, %v2044_v60  ;;  %v2086_v63 = vadd.f32 %v3623_v45, %v2085_v61  ;;  %v4614_v0 = vpop.f32.mrb[49].mxu0  ;;  %v4634_v2 = vpop.f32.mrb[49].mxu1  ;;  %4690 = vmatprep.subr.bf16.mxu0 %v5207_v1  ;;  %4710 = vmatprep.subr.bf16.mxu1 %v5207_v1  ;;  %v5140_v61 = vld [vmem:[#allocation2 + $0x448] sm:$0xff]  }
 0x93d   :  { %v2047_v3 = vpop.f32.mrb[50].mxu0  ;;  %v2088_v4 = vpop.f32.mrb[50].mxu1  ;;  %v5143_v0 = vld [vmem:[#allocation2 + $0x460] sm:$0xff]   ;;  %v5144_v2 = vld [vmem:[#allocation2 + $0x468] sm:$0xff]  }
 0x93e   :  { %v2050_v5 = vmax.f32 %v2045_v62, 0.0  ;;  %v2091_v6 = vmax.f32 %v2086_v63, 0.0  ;;  %v4615_v7 = vpop.f32.mrb[51].mxu0  ;;  %v4635_v8 = vpop.f32.mrb[51].mxu1  ;;  %v5141_v62 = vld [vmem:[#allocation2 + $0x450] sm:$0xff]   ;;  %v5142_v63 = vld [vmem:[#allocation2 + $0x458] sm:$0xff]  }
 0x93f   :  { %4691 = vmatpush3.bf16.msra.mxu0 %v5676_v42  ;;  %4711 = vmatpush3.bf16.msra.mxu1 %v5678_v43 }
 0x940   :  { %v2314_v10 = vpack.c.bf16 %v2050_v5, %v2050_v5  ;;  %v2315_v11 = vpack.c.bf16 %v2091_v6, %v2091_v6  ;;  %4716 = vmatprep.subr.bf16.mxu0 %v5207_v1  ;;  %4736 = vmatprep.subr.bf16.mxu1 %v5207_v1 }
 0x942   :  { %4693 = vmatmul.mubr.bf16.vlgmr.msra.gmra.mrb[56].mxu0 %v2315_v11  ;;  %4713 = vmatmul.mubr.bf16.vlgmr.msra.gmra.mrb[56].mxu1 %v2314_v10  ;;  %v5145_v10 = vld [vmem:[#allocation2 + $0x470] sm:$0xff]   ;;  %v5146_v11 = vld [vmem:[#allocation2 + $0x478] sm:$0xff]  }
 0x943   :  { %4717 = vmatpush3.bf16.msra.mxu0 %v5123_v9  ;;  %4732 = vmatprep.mubr.msk.bf16.mxu0 %vm5208_vm0, %v5207_v1 }
 0x944   :  { %4718 = vmatprep.subr.bf16.mxu0 %v5207_v1  ;;  %4737 = vmatpush3.bf16.msra.mxu1 %v5123_v9 }
 0x945   :  { %4738 = vmatprep.subr.bf16.mxu1 %v5207_v1  ;;  %4752 = vmatprep.mubr.msk.bf16.mxu1 %vm5208_vm0, %v5207_v1 }
 0x947   :  { %4719 = vmatpush3.bf16.msra.mxu0 %v5124_v12 }
 0x948   :  { %4720 = vmatprep.subr.bf16.mxu0 %v5207_v1  ;;  %4739 = vmatpush3.bf16.msra.mxu1 %v5124_v12  ;;  %v3661_v12 = vld [vmem:[%s5891_s3 + $0xf] ss:$0 sm:$0xff] }
 0x949   :  { %4740 = vmatprep.subr.bf16.mxu1 %v5207_v1 }
 0x94b   :  { %4721 = vmatpush3.bf16.msra.mxu0 %v5125_v13 }
 0x94c   :  { %4722 = vmatprep.subr.bf16.mxu0 %v5207_v1  ;;  %4741 = vmatpush3.bf16.msra.mxu1 %v5125_v13 }
 0x94d   :  { %4742 = vmatprep.subr.bf16.mxu1 %v5207_v1 }
 0x94f   :  { %4723 = vmatpush3.bf16.msra.mxu0 %v5126_v14 }
 0x950   :  { %4724 = vmatprep.subr.bf16.mxu0 %v5207_v1  ;;  %4743 = vmatpush3.bf16.msra.mxu1 %v5126_v14 }
 0x951   :  { %4744 = vmatprep.subr.bf16.mxu1 %v5207_v1 }
 0x953   :  { %4725 = vmatpush3.bf16.msra.mxu0 %v5127_v15 }
 0x954   :  { %4726 = vmatprep.subr.bf16.mxu0 %v5207_v1  ;;  %4745 = vmatpush3.bf16.msra.mxu1 %v5127_v15 }
 0x955   :  { %4746 = vmatprep.subr.bf16.mxu1 %v5207_v1 }
 0x957   :  { %4727 = vmatpush3.bf16.msra.mxu0 %v5128_v16 }
 0x958   :  { %4728 = vmatprep.subr.bf16.mxu0 %v5207_v1  ;;  %4747 = vmatpush3.bf16.msra.mxu1 %v5128_v16 }
 0x959   :  { %4748 = vmatprep.subr.bf16.mxu1 %v5207_v1 }
 0x95b   :  { %4729 = vmatpush3.bf16.msra.mxu0 %v5129_v17 }
 0x95c   :  { %4749 = vmatpush3.bf16.msra.mxu1 %v5129_v17  ;;  %4730 = vmatprep.subr.bf16.mxu0 %v5207_v1 }
 0x95d   :  { %4750 = vmatprep.subr.bf16.mxu1 %v5207_v1 }
 0x95f   :  { %4731 = vmatpush3.bf16.msra.mxu0 %v5130_v18 }
 0x960   :  { %4751 = vmatpush3.bf16.msra.mxu1 %v5130_v18  ;;  %4756 = vmatprep.subr.bf16.mxu0 %v5207_v1 }
 0x961   :  { %4776 = vmatprep.subr.bf16.mxu1 %v5207_v1 }
 0x9f5   :  { %v2210_v19 = vpop.f32.mrb[52].mxu0  ;;  %v2298_v20 = vpop.f32.mrb[52].mxu1 }
 0x9f6   :  { %v2299_v22 = vadd.f32 %v2298_v20, %v2210_v19  ;;  %v4654_v23 = vpop.f32.mrb[53].mxu0  ;;  %v4674_v24 = vpop.f32.mrb[53].mxu1  ;;  %v5147_v19 = vld [vmem:[#allocation2 + $0x480] sm:$0xff]  }
 0x9f7   :  { %v2213_v25 = vpop.f32.mrb[54].mxu0  ;;  %v2301_v26 = vpop.f32.mrb[54].mxu1  ;;  %v5150_v23 = vld [vmem:[#allocation2 + $0x498] sm:$0xff]   ;;  %v5151_v24 = vld [vmem:[#allocation2 + $0x4a0] sm:$0xff]  }
 0x9f8   :  { %v2312_v27 = vadd.f32 %v3649_v21, %v2299_v22  ;;  %v4655_v28 = vpop.f32.mrb[55].mxu0  ;;  %v4675_v29 = vpop.f32.mrb[55].mxu1  ;;  %v5149_v22 = vld [vmem:[#allocation2 + $0x490] sm:$0xff]   ;;  %v5152_v25 = vld [vmem:[#allocation2 + $0x4a8] sm:$0xff]  }
 0x9fa   :  { %v2313_v30 = vmax.f32 %v2312_v27, 0.0 }
 0x9fc   :  { %v2398_v32 = vpack.c.bf16 %v2313_v30, %v2313_v30 }
 0x9fe   :  { %4733 = vmatmul.mubr.bf16.vlgmr.msra.gmra.mrb[60].mxu0 %v2398_v32 }
 0x9ff   :  { %4757 = vmatpush3.bf16.msra.mxu0 %v5131_v31  ;;  %4772 = vmatprep.mubr.msk.bf16.mxu0 %vm5208_vm0, %v5207_v1 }
 0xa00   :  { %4758 = vmatprep.subr.bf16.mxu0 %v5207_v1 }
 0xa03   :  { %4759 = vmatpush3.bf16.msra.mxu0 %v5132_v33 }
 0xa04   :  { %4760 = vmatprep.subr.bf16.mxu0 %v5207_v1 }
 0xa07   :  { %4761 = vmatpush3.bf16.msra.mxu0 %v5133_v34 }
 0xa08   :  { %4762 = vmatprep.subr.bf16.mxu0 %v5207_v1 }
 0xa0b   :  { %4763 = vmatpush3.bf16.msra.mxu0 %v5134_v35 }
 0xa0c   :  { %4764 = vmatprep.subr.bf16.mxu0 %v5207_v1 }
 0xa0f   :  { %4765 = vmatpush3.bf16.msra.mxu0 %v5135_v36 }
 0xa10   :  { %4766 = vmatprep.subr.bf16.mxu0 %v5207_v1 }
 0xa13   :  { %4767 = vmatpush3.bf16.msra.mxu0 %v5136_v37 }
 0xa14   :  { %4768 = vmatprep.subr.bf16.mxu0 %v5207_v1 }
 0xa15   :  { %v2350_v38 = vpop.f32.mrb[56].mxu0  ;;  %v2390_v39 = vpop.f32.mrb[56].mxu1 }
 0xa16   :  { %v2391_v40 = vadd.f32 %v2390_v39, %v2350_v38  ;;  %v4694_v41 = vpop.f32.mrb[57].mxu0  ;;  %v4714_v42 = vpop.f32.mrb[57].mxu1 }
 0xa17   :  { %v2353_v43 = vpop.f32.mrb[58].mxu0  ;;  %v2393_v44 = vpop.f32.mrb[58].mxu1  ;;  %4769 = vmatpush3.bf16.msra.mxu0 %v5137_v50  ;;  %v5155_v42 = vld [vmem:[#allocation2 + $0x4c0] sm:$0xff]  }
 0xa18   :  { %v2396_v45 = vadd.f32 %v3649_v21, %v2391_v40  ;;  %v4695_v46 = vpop.f32.mrb[59].mxu0  ;;  %v4715_v47 = vpop.f32.mrb[59].mxu1  ;;  %4770 = vmatprep.subr.bf16.mxu0 %v5207_v1  ;;  %v5148_v21 = vld [vmem:[#allocation2 + $0x488] sm:$0xff]  }
 0xa19   :  { %v5156_v44 = vld [vmem:[#allocation2 + $0x4c8] sm:$0xff]   ;;  %v5158_v46 = vld [vmem:[#allocation2 + $0x4d8] sm:$0xff]   ;;  %v5159_v47 = vld [vmem:[#allocation2 + $0x4e0] sm:$0xff]  }
 0xa1a   :  { %v2397_v48 = vmax.f32 %v2396_v45, 0.0  ;;  %v5157_v45 = vld [vmem:[#allocation2 + $0x4d0] sm:$0xff]  }
 0xa1b   :  { %4771 = vmatpush3.bf16.msra.mxu0 %v5138_v51 }
 0xa1c   :  { %v2513_v49 = vpack.c.bf16 %v2397_v48, %v2397_v48  ;;  %4796 = vmatprep.subr.bf16.mxu0 %v5207_v1  ;;  %v5160_v48 = vld [vmem:[#allocation2 + $0x4e8] sm:$0xff]  }
 0xa1e   :  { %4753 = vmatmul.mubr.bf16.vlgmr.msra.gmra.mrb[60].mxu1 %v2513_v49 }
 0xa1f   :  { %4777 = vmatpush3.bf16.msra.mxu1 %v5131_v31  ;;  %4792 = vmatprep.mubr.msk.bf16.mxu1 %vm5208_vm0, %v5207_v1 }
 0xa20   :  { %4778 = vmatprep.subr.bf16.mxu1 %v5207_v1 }
 0xa23   :  { %4779 = vmatpush3.bf16.msra.mxu1 %v5132_v33  ;;  %v5153_v33 = vld [vmem:[#allocation2 + $0x4b0] sm:$0xff]  }
 0xa24   :  { %4780 = vmatprep.subr.bf16.mxu1 %v5207_v1 }
 0xa27   :  { %4781 = vmatpush3.bf16.msra.mxu1 %v5133_v34  ;;  %v5154_v34 = vld [vmem:[#allocation2 + $0x4b8] sm:$0xff]  }
 0xa28   :  { %4782 = vmatprep.subr.bf16.mxu1 %v5207_v1 }
 0xa2b   :  { %4783 = vmatpush3.bf16.msra.mxu1 %v5134_v35  ;;  %v3671_v35 = vld [vmem:[%s5891_s3 + $0x10] ss:$0 sm:$0xff] }
 0xa2c   :  { %4784 = vmatprep.subr.bf16.mxu1 %v5207_v1 }
 0xa2f   :  { %4785 = vmatpush3.bf16.msra.mxu1 %v5135_v36 }
 0xa30   :  { %4786 = vmatprep.subr.bf16.mxu1 %v5207_v1 }
 0xa33   :  { %4787 = vmatpush3.bf16.msra.mxu1 %v5136_v37 }
 0xa34   :  { %4788 = vmatprep.subr.bf16.mxu1 %v5207_v1 }
 0xa37   :  { %4789 = vmatpush3.bf16.msra.mxu1 %v5137_v50 }
 0xa38   :  { %4790 = vmatprep.subr.bf16.mxu1 %v5207_v1 }
 0xa3b   :  { %4791 = vmatpush3.bf16.msra.mxu1 %v5138_v51 }
 0xa3c   :  { %4816 = vmatprep.subr.bf16.mxu1 %v5207_v1 }
 0xad1   :  { %v2506_v53 = vpop.f32.mrb[60].mxu0 }
 0xad2   :  { %v2507_v54 = vadd.f32 %v3651_v52, %v2506_v53  ;;  %v4734_v55 = vpop.f32.mrb[61].mxu0 }
 0xad3   :  { %v2509_v56 = vpop.f32.mrb[62].mxu0 }
 0xad4   :  { %v2512_v57 = vmax.f32 %v2507_v54, 0.0  ;;  %v4735_v58 = vpop.f32.mrb[63].mxu0  ;;  %v5161_v56 = vld [vmem:[#allocation2 + $0x4f0] sm:$0xff]  }
 0xad5   :  { %v3681_v58 = vld [vmem:[%s5891_s3 + $0x11] ss:$0 sm:$0xff] }
 0xad6   :  { %v2555_v60 = vpack.c.bf16 %v2512_v57, %v2512_v57  ;;  %v5162_v57 = vld [vmem:[#allocation2 + $0x4f8] sm:$0xff]  }
 0xad8   :  { %4773 = vmatmul.mubr.bf16.vlgmr.msra.gmra.mrb[64].mxu0 %v2555_v60 }
 0xad9   :  { %4797 = vmatpush3.bf16.msra.mxu0 %v5139_v59  ;;  %4812 = vmatprep.mubr.msk.bf16.mxu0 %vm5208_vm0, %v5207_v1 }
 0xada   :  { %4798 = vmatprep.subr.bf16.mxu0 %v5207_v1 }
 0xadd   :  { %4799 = vmatpush3.bf16.msra.mxu0 %v5140_v61 }
 0xade   :  { %4800 = vmatprep.subr.bf16.mxu0 %v5207_v1 }
 0xae1   :  { %4801 = vmatpush3.bf16.msra.mxu0 %v5141_v62 }
 0xae2   :  { %4802 = vmatprep.subr.bf16.mxu0 %v5207_v1 }
 0xae5   :  { %4803 = vmatpush3.bf16.msra.mxu0 %v5142_v63 }
 0xae6   :  { %4804 = vmatprep.subr.bf16.mxu0 %v5207_v1 }
 0xae9   :  { %4805 = vmatpush3.bf16.msra.mxu0 %v5143_v0 }
 0xaea   :  { %4806 = vmatprep.subr.bf16.mxu0 %v5207_v1 }
 0xaed   :  { %4807 = vmatpush3.bf16.msra.mxu0 %v5144_v2 }
 0xaee   :  { %4808 = vmatprep.subr.bf16.mxu0 %v5207_v1 }
 0xaf1   :  { %v2548_v3 = vpop.f32.mrb[60].mxu1  ;;  %4809 = vmatpush3.bf16.msra.mxu0 %v5145_v10 }
 0xaf2   :  { %v2549_v4 = vadd.f32 %v3651_v52, %v2548_v3  ;;  %v4754_v5 = vpop.f32.mrb[61].mxu1  ;;  %4810 = vmatprep.subr.bf16.mxu0 %v5207_v1 }
 0xaf3   :  { %v2551_v6 = vpop.f32.mrb[62].mxu1  ;;  %v5165_v5 = vld [vmem:[#allocation2 + $0x510] sm:$0xff]  }
 0xaf4   :  { %v2554_v7 = vmax.f32 %v2549_v4, 0.0  ;;  %v4755_v8 = vpop.f32.mrb[63].mxu1  ;;  %v5164_v4 = vld [vmem:[#allocation2 + $0x508] sm:$0xff]   ;;  %v5166_v6 = vld [vmem:[#allocation2 + $0x518] sm:$0xff]  }
 0xaf5   :  { %4811 = vmatpush3.bf16.msra.mxu0 %v5146_v11  ;;  %v5168_v8 = vld [vmem:[#allocation2 + $0x528] sm:$0xff]  }
 0xaf6   :  { %v2670_v9 = vpack.c.bf16 %v2554_v7, %v2554_v7  ;;  %4836 = vmatprep.subr.bf16.mxu0 %v5207_v1  ;;  %v5167_v7 = vld [vmem:[#allocation2 + $0x520] sm:$0xff]  }
 0xaf8   :  { %4793 = vmatmul.mubr.bf16.vlgmr.msra.gmra.mrb[64].mxu1 %v2670_v9 }
 0xaf9   :  { %4817 = vmatpush3.bf16.msra.mxu1 %v5139_v59  ;;  %4832 = vmatprep.mubr.msk.bf16.mxu1 %vm5208_vm0, %v5207_v1 }
 0xafa   :  { %4818 = vmatprep.subr.bf16.mxu1 %v5207_v1 }
 0xafd   :  { %4819 = vmatpush3.bf16.msra.mxu1 %v5140_v61 }
 0xafe   :  { %4820 = vmatprep.subr.bf16.mxu1 %v5207_v1 }
 0xb01   :  { %4821 = vmatpush3.bf16.msra.mxu1 %v5141_v62 }
 0xb02   :  { %4822 = vmatprep.subr.bf16.mxu1 %v5207_v1 }
 0xb05   :  { %4823 = vmatpush3.bf16.msra.mxu1 %v5142_v63 }
 0xb06   :  { %4824 = vmatprep.subr.bf16.mxu1 %v5207_v1 }
 0xb09   :  { %4825 = vmatpush3.bf16.msra.mxu1 %v5143_v0 }
 0xb0a   :  { %4826 = vmatprep.subr.bf16.mxu1 %v5207_v1 }
 0xb0d   :  { %4827 = vmatpush3.bf16.msra.mxu1 %v5144_v2  ;;  %v5163_v2 = vld [vmem:[#allocation2 + $0x500] sm:$0xff]  }
 0xb0e   :  { %4828 = vmatprep.subr.bf16.mxu1 %v5207_v1 }
 0xb11   :  { %4829 = vmatpush3.bf16.msra.mxu1 %v5145_v10 }
 0xb12   :  { %4830 = vmatprep.subr.bf16.mxu1 %v5207_v1 }
 0xb15   :  { %4831 = vmatpush3.bf16.msra.mxu1 %v5146_v11 }
 0xb16   :  { %4856 = vmatprep.subr.bf16.mxu1 %v5207_v1 }
 0xbab   :  { %v2663_v13 = vpop.f32.mrb[64].mxu0 }
 0xbac   :  { %v2664_v14 = vadd.f32 %v3661_v12, %v2663_v13  ;;  %v4774_v15 = vpop.f32.mrb[65].mxu0 }
 0xbad   :  { %v2666_v16 = vpop.f32.mrb[66].mxu0 }
 0xbae   :  { %v2669_v17 = vmax.f32 %v2664_v14, 0.0  ;;  %v4775_v18 = vpop.f32.mrb[67].mxu0  ;;  %v5169_v16 = vld [vmem:[#allocation2 + $0x530] sm:$0xff]  }
 0xbaf   :  { %v3691_v18 = vld [vmem:[%s5891_s3 + $0x12] ss:$0 sm:$0xff] }
 0xbb0   :  { %v2712_v20 = vpack.c.bf16 %v2669_v17, %v2669_v17  ;;  %v5170_v17 = vld [vmem:[#allocation2 + $0x538] sm:$0xff]  }
 0xbb2   :  { %4813 = vmatmul.mubr.bf16.vlgmr.msra.gmra.mrb[68].mxu0 %v2712_v20 }
 0xbb3   :  { %4837 = vmatpush3.bf16.msra.mxu0 %v5147_v19  ;;  %4852 = vmatprep.mubr.msk.bf16.mxu0 %vm5208_vm0, %v5207_v1 }
 0xbb4   :  { %4838 = vmatprep.subr.bf16.mxu0 %v5207_v1 }
 0xbb7   :  { %4839 = vmatpush3.bf16.msra.mxu0 %v5148_v21 }
 0xbb8   :  { %4840 = vmatprep.subr.bf16.mxu0 %v5207_v1 }
 0xbbb   :  { %4841 = vmatpush3.bf16.msra.mxu0 %v5149_v22 }
 0xbbc   :  { %4842 = vmatprep.subr.bf16.mxu0 %v5207_v1 }
 0xbbf   :  { %4843 = vmatpush3.bf16.msra.mxu0 %v5150_v23 }
 0xbc0   :  { %4844 = vmatprep.subr.bf16.mxu0 %v5207_v1 }
 0xbc3   :  { %4845 = vmatpush3.bf16.msra.mxu0 %v5151_v24 }
 0xbc4   :  { %4846 = vmatprep.subr.bf16.mxu0 %v5207_v1 }
 0xbc7   :  { %4847 = vmatpush3.bf16.msra.mxu0 %v5152_v25 }
 0xbc8   :  { %4848 = vmatprep.subr.bf16.mxu0 %v5207_v1 }
 0xbcb   :  { %v2705_v26 = vpop.f32.mrb[64].mxu1  ;;  %4849 = vmatpush3.bf16.msra.mxu0 %v5153_v33 }
 0xbcc   :  { %v2706_v27 = vadd.f32 %v3661_v12, %v2705_v26  ;;  %v4794_v28 = vpop.f32.mrb[65].mxu1  ;;  %4850 = vmatprep.subr.bf16.mxu0 %v5207_v1 }
 0xbcd   :  { %v2708_v29 = vpop.f32.mrb[66].mxu1  ;;  %v5173_v28 = vld [vmem:[#allocation2 + $0x550] sm:$0xff]  }
 0xbce   :  { %v2711_v30 = vmax.f32 %v2706_v27, 0.0  ;;  %v4795_v31 = vpop.f32.mrb[67].mxu1  ;;  %v5172_v27 = vld [vmem:[#allocation2 + $0x548] sm:$0xff]   ;;  %v5174_v29 = vld [vmem:[#allocation2 + $0x558] sm:$0xff]  }
 0xbcf   :  { %4851 = vmatpush3.bf16.msra.mxu0 %v5154_v34  ;;  %v5176_v31 = vld [vmem:[#allocation2 + $0x568] sm:$0xff]  }
 0xbd0   :  { %v2827_v32 = vpack.c.bf16 %v2711_v30, %v2711_v30  ;;  %4876 = vmatprep.subr.bf16.mxu0 %v5207_v1  ;;  %v5175_v30 = vld [vmem:[#allocation2 + $0x560] sm:$0xff]  }
 0xbd2   :  { %4833 = vmatmul.mubr.bf16.vlgmr.msra.gmra.mrb[68].mxu1 %v2827_v32 }
 0xbd3   :  { %4857 = vmatpush3.bf16.msra.mxu1 %v5147_v19  ;;  %4872 = vmatprep.mubr.msk.bf16.mxu1 %vm5208_vm0, %v5207_v1 }
 0xbd4   :  { %4858 = vmatprep.subr.bf16.mxu1 %v5207_v1 }
 0xbd7   :  { %4859 = vmatpush3.bf16.msra.mxu1 %v5148_v21 }
 0xbd8   :  { %4860 = vmatprep.subr.bf16.mxu1 %v5207_v1 }
 0xbdb   :  { %4861 = vmatpush3.bf16.msra.mxu1 %v5149_v22 }
 0xbdc   :  { %4862 = vmatprep.subr.bf16.mxu1 %v5207_v1 }
 0xbdf   :  { %4863 = vmatpush3.bf16.msra.mxu1 %v5150_v23 }
 0xbe0   :  { %4864 = vmatprep.subr.bf16.mxu1 %v5207_v1 }
 0xbe3   :  { %4865 = vmatpush3.bf16.msra.mxu1 %v5151_v24 }
 0xbe4   :  { %4866 = vmatprep.subr.bf16.mxu1 %v5207_v1 }
 0xbe7   :  { %4867 = vmatpush3.bf16.msra.mxu1 %v5152_v25  ;;  %v5171_v25 = vld [vmem:[#allocation2 + $0x540] sm:$0xff]  }
 0xbe8   :  { %4868 = vmatprep.subr.bf16.mxu1 %v5207_v1 }
 0xbeb   :  { %4869 = vmatpush3.bf16.msra.mxu1 %v5153_v33 }
 0xbec   :  { %4870 = vmatprep.subr.bf16.mxu1 %v5207_v1 }
 0xbef   :  { %4871 = vmatpush3.bf16.msra.mxu1 %v5154_v34 }
 0xbf0   :  { %4896 = vmatprep.subr.bf16.mxu1 %v5207_v1 }
 0xc85   :  { %v2820_v36 = vpop.f32.mrb[68].mxu0 }
 0xc86   :  { %v2821_v37 = vadd.f32 %v3671_v35, %v2820_v36  ;;  %v4814_v38 = vpop.f32.mrb[69].mxu0 }
 0xc87   :  { %v2823_v39 = vpop.f32.mrb[70].mxu0 }
 0xc88   :  { %v2826_v40 = vmax.f32 %v2821_v37, 0.0  ;;  %v4815_v41 = vpop.f32.mrb[71].mxu0  ;;  %v5177_v39 = vld [vmem:[#allocation2 + $0x570] sm:$0xff]  }
 0xc89   :  { %v3701_v41 = vld [vmem:[%s5891_s3 + $0x13] ss:$0 sm:$0xff] }
 0xc8a   :  { %v2869_v43 = vpack.c.bf16 %v2826_v40, %v2826_v40  ;;  %v5178_v40 = vld [vmem:[#allocation2 + $0x578] sm:$0xff]  }
 0xc8c   :  { %4853 = vmatmul.mubr.bf16.vlgmr.msra.gmra.mrb[72].mxu0 %v2869_v43 }
 0xc8d   :  { %4877 = vmatpush3.bf16.msra.mxu0 %v5155_v42  ;;  %4892 = vmatprep.mubr.msk.bf16.mxu0 %vm5208_vm0, %v5207_v1 }
 0xc8e   :  { %4878 = vmatprep.subr.bf16.mxu0 %v5207_v1 }
 0xc91   :  { %4879 = vmatpush3.bf16.msra.mxu0 %v5156_v44 }
 0xc92   :  { %4880 = vmatprep.subr.bf16.mxu0 %v5207_v1 }
 0xc95   :  { %4881 = vmatpush3.bf16.msra.mxu0 %v5157_v45 }
 0xc96   :  { %4882 = vmatprep.subr.bf16.mxu0 %v5207_v1 }
 0xc99   :  { %4883 = vmatpush3.bf16.msra.mxu0 %v5158_v46 }
 0xc9a   :  { %4884 = vmatprep.subr.bf16.mxu0 %v5207_v1 }
 0xc9d   :  { %4885 = vmatpush3.bf16.msra.mxu0 %v5159_v47 }
 0xc9e   :  { %4886 = vmatprep.subr.bf16.mxu0 %v5207_v1 }
 0xca1   :  { %4887 = vmatpush3.bf16.msra.mxu0 %v5160_v48 }
 0xca2   :  { %4888 = vmatprep.subr.bf16.mxu0 %v5207_v1 }
 0xca5   :  { %v2862_v49 = vpop.f32.mrb[68].mxu1  ;;  %4889 = vmatpush3.bf16.msra.mxu0 %v5161_v56 }
 0xca6   :  { %v2863_v50 = vadd.f32 %v3671_v35, %v2862_v49  ;;  %v4834_v51 = vpop.f32.mrb[69].mxu1  ;;  %4890 = vmatprep.subr.bf16.mxu0 %v5207_v1 }
 0xca7   :  { %v2865_v52 = vpop.f32.mrb[70].mxu1 }
 0xca8   :  { %v2868_v53 = vmax.f32 %v2863_v50, 0.0  ;;  %v4835_v54 = vpop.f32.mrb[71].mxu1 }
 0xca9   :  { %4891 = vmatpush3.bf16.msra.mxu0 %v5162_v57 }
 0xcaa   :  { %v2984_v55 = vpack.c.bf16 %v2868_v53, %v2868_v53  ;;  %4916 = vmatprep.subr.bf16.mxu0 %v5207_v1 }
 0xcac   :  { %4873 = vmatmul.mubr.bf16.vlgmr.msra.gmra.mrb[72].mxu1 %v2984_v55  ;;  %v3711_v55 = vld [vmem:[%s5891_s3 + $0x14] ss:$0 sm:$0xff] }
 0xcad   :  { %4897 = vmatpush3.bf16.msra.mxu1 %v5155_v42  ;;  %4912 = vmatprep.mubr.msk.bf16.mxu1 %vm5208_vm0, %v5207_v1 }
 0xcae   :  { %4898 = vmatprep.subr.bf16.mxu1 %v5207_v1 }
 0xcb1   :  { %4899 = vmatpush3.bf16.msra.mxu1 %v5156_v44 }
 0xcb2   :  { %4900 = vmatprep.subr.bf16.mxu1 %v5207_v1 }
 0xcb5   :  { %4901 = vmatpush3.bf16.msra.mxu1 %v5157_v45 }
 0xcb6   :  { %4902 = vmatprep.subr.bf16.mxu1 %v5207_v1 }
 0xcb9   :  { %4903 = vmatpush3.bf16.msra.mxu1 %v5158_v46 }
 0xcba   :  { %4904 = vmatprep.subr.bf16.mxu1 %v5207_v1 }
 0xcbd   :  { %4905 = vmatpush3.bf16.msra.mxu1 %v5159_v47 }
 0xcbe   :  { %4906 = vmatprep.subr.bf16.mxu1 %v5207_v1 }
 0xcc1   :  { %4907 = vmatpush3.bf16.msra.mxu1 %v5160_v48 }
 0xcc2   :  { %4908 = vmatprep.subr.bf16.mxu1 %v5207_v1 }
 0xcc5   :  { %4909 = vmatpush3.bf16.msra.mxu1 %v5161_v56 }
 0xcc6   :  { %4910 = vmatprep.subr.bf16.mxu1 %v5207_v1 }
 0xcc9   :  { %4911 = vmatpush3.bf16.msra.mxu1 %v5162_v57 }
 0xcca   :  { %4936 = vmatprep.subr.bf16.mxu1 %v5207_v1 }
 0xd5f   :  { %v2977_v59 = vpop.f32.mrb[72].mxu0 }
 0xd60   :  { %v2978_v60 = vadd.f32 %v3681_v58, %v2977_v59  ;;  %v4854_v61 = vpop.f32.mrb[73].mxu0 }
 0xd61   :  { %v2980_v62 = vpop.f32.mrb[74].mxu0 }
 0xd62   :  { %v2983_v63 = vmax.f32 %v2978_v60, 0.0  ;;  %v4855_v0 = vpop.f32.mrb[75].mxu0 }
 0xd64   :  { %v3026_v3 = vpack.c.bf16 %v2983_v63, %v2983_v63 }
 0xd66   :  { %4893 = vmatmul.mubr.bf16.vlgmr.msra.gmra.mrb[76].mxu0 %v3026_v3 }
 0xd67   :  { %4917 = vmatpush3.bf16.msra.mxu0 %v5163_v2  ;;  %4932 = vmatprep.mubr.msk.bf16.mxu0 %vm5208_vm0, %v5207_v1 }
 0xd68   :  { %4918 = vmatprep.subr.bf16.mxu0 %v5207_v1 }
 0xd6b   :  { %4919 = vmatpush3.bf16.msra.mxu0 %v5164_v4 }
 0xd6c   :  { %4920 = vmatprep.subr.bf16.mxu0 %v5207_v1 }
 0xd6f   :  { %4921 = vmatpush3.bf16.msra.mxu0 %v5165_v5 }
 0xd70   :  { %4922 = vmatprep.subr.bf16.mxu0 %v5207_v1 }
 0xd73   :  { %4923 = vmatpush3.bf16.msra.mxu0 %v5166_v6 }
 0xd74   :  { %4924 = vmatprep.subr.bf16.mxu0 %v5207_v1 }
 0xd77   :  { %4925 = vmatpush3.bf16.msra.mxu0 %v5167_v7 }
 0xd78   :  { %4926 = vmatprep.subr.bf16.mxu0 %v5207_v1 }
 0xd7b   :  { %4927 = vmatpush3.bf16.msra.mxu0 %v5168_v8 }
 0xd7c   :  { %4928 = vmatprep.subr.bf16.mxu0 %v5207_v1 }
 0xd7f   :  { %v3019_v9 = vpop.f32.mrb[72].mxu1  ;;  %4929 = vmatpush3.bf16.msra.mxu0 %v5169_v16 }
 0xd80   :  { %v3020_v10 = vadd.f32 %v3681_v58, %v3019_v9  ;;  %v4874_v11 = vpop.f32.mrb[73].mxu1  ;;  %4930 = vmatprep.subr.bf16.mxu0 %v5207_v1 }
 0xd81   :  { %v3022_v12 = vpop.f32.mrb[74].mxu1 }
 0xd82   :  { %v3025_v13 = vmax.f32 %v3020_v10, 0.0  ;;  %v4875_v14 = vpop.f32.mrb[75].mxu1 }
 0xd83   :  { %4931 = vmatpush3.bf16.msra.mxu0 %v5170_v17 }
 0xd84   :  { %v3141_v15 = vpack.c.bf16 %v3025_v13, %v3025_v13  ;;  %4956 = vmatprep.subr.bf16.mxu0 %v5207_v1 }
 0xd86   :  { %4913 = vmatmul.mubr.bf16.vlgmr.msra.gmra.mrb[76].mxu1 %v3141_v15 }
 0xd87   :  { %4937 = vmatpush3.bf16.msra.mxu1 %v5163_v2  ;;  %4952 = vmatprep.mubr.msk.bf16.mxu1 %vm5208_vm0, %v5207_v1 }
 0xd88   :  { %4938 = vmatprep.subr.bf16.mxu1 %v5207_v1 }
 0xd8b   :  { %4939 = vmatpush3.bf16.msra.mxu1 %v5164_v4 }
 0xd8c   :  { %4940 = vmatprep.subr.bf16.mxu1 %v5207_v1 }
 0xd8f   :  { %4941 = vmatpush3.bf16.msra.mxu1 %v5165_v5 }
 0xd90   :  { %4942 = vmatprep.subr.bf16.mxu1 %v5207_v1 }
 0xd93   :  { %4943 = vmatpush3.bf16.msra.mxu1 %v5166_v6 }
 0xd94   :  { %4944 = vmatprep.subr.bf16.mxu1 %v5207_v1 }
 0xd97   :  { %4945 = vmatpush3.bf16.msra.mxu1 %v5167_v7 }
 0xd98   :  { %4946 = vmatprep.subr.bf16.mxu1 %v5207_v1 }
 0xd9b   :  { %4947 = vmatpush3.bf16.msra.mxu1 %v5168_v8 }
 0xd9c   :  { %4948 = vmatprep.subr.bf16.mxu1 %v5207_v1 }
 0xd9f   :  { %4949 = vmatpush3.bf16.msra.mxu1 %v5169_v16 }
 0xda0   :  { %4950 = vmatprep.subr.bf16.mxu1 %v5207_v1 }
 0xda3   :  { %4951 = vmatpush3.bf16.msra.mxu1 %v5170_v17 }
 0xda4   :  { %4976 = vmatprep.subr.bf16.mxu1 %v5207_v1 }
 0xe39   :  { %v3134_v19 = vpop.f32.mrb[76].mxu0 }
 0xe3a   :  { %v3135_v20 = vadd.f32 %v3691_v18, %v3134_v19  ;;  %v4894_v21 = vpop.f32.mrb[77].mxu0 }
 0xe3b   :  { %v3137_v22 = vpop.f32.mrb[78].mxu0 }
 0xe3c   :  { %v3140_v23 = vmax.f32 %v3135_v20, 0.0  ;;  %v4895_v24 = vpop.f32.mrb[79].mxu0 }
 0xe3e   :  { %v3183_v26 = vpack.c.bf16 %v3140_v23, %v3140_v23 }
 0xe40   :  { %4933 = vmatmul.mubr.bf16.vlgmr.msra.gmra.mrb[80].mxu0 %v3183_v26 }
 0xe41   :  { %4957 = vmatpush3.bf16.msra.mxu0 %v5171_v25  ;;  %4972 = vmatprep.mubr.msk.bf16.mxu0 %vm5208_vm0, %v5207_v1 }
 0xe42   :  { %4958 = vmatprep.subr.bf16.mxu0 %v5207_v1 }
 0xe45   :  { %4959 = vmatpush3.bf16.msra.mxu0 %v5172_v27 }
 0xe46   :  { %4960 = vmatprep.subr.bf16.mxu0 %v5207_v1 }
 0xe49   :  { %4961 = vmatpush3.bf16.msra.mxu0 %v5173_v28 }
 0xe4a   :  { %4962 = vmatprep.subr.bf16.mxu0 %v5207_v1 }
 0xe4d   :  { %4963 = vmatpush3.bf16.msra.mxu0 %v5174_v29 }
 0xe4e   :  { %4964 = vmatprep.subr.bf16.mxu0 %v5207_v1 }
 0xe51   :  { %4965 = vmatpush3.bf16.msra.mxu0 %v5175_v30 }
 0xe52   :  { %4966 = vmatprep.subr.bf16.mxu0 %v5207_v1 }
 0xe55   :  { %4967 = vmatpush3.bf16.msra.mxu0 %v5176_v31 }
 0xe56   :  { %4968 = vmatprep.subr.bf16.mxu0 %v5207_v1 }
 0xe59   :  { %v3176_v32 = vpop.f32.mrb[76].mxu1  ;;  %4969 = vmatpush3.bf16.msra.mxu0 %v5177_v39 }
 0xe5a   :  { %v3177_v33 = vadd.f32 %v3691_v18, %v3176_v32  ;;  %v4914_v34 = vpop.f32.mrb[77].mxu1  ;;  %4970 = vmatprep.subr.bf16.mxu0 %v5207_v1 }
 0xe5b   :  { %v3179_v35 = vpop.f32.mrb[78].mxu1 }
 0xe5c   :  { %v3182_v36 = vmax.f32 %v3177_v33, 0.0  ;;  %v4915_v37 = vpop.f32.mrb[79].mxu1 }
 0xe5d   :  { %4971 = vmatpush3.bf16.msra.mxu0 %v5178_v40 }
 0xe5e   :  { %v3298_v38 = vpack.c.bf16 %v3182_v36, %v3182_v36 }
 0xe60   :  { %4953 = vmatmul.mubr.bf16.vlgmr.msra.gmra.mrb[80].mxu1 %v3298_v38 }
 0xe61   :  { %4977 = vmatpush3.bf16.msra.mxu1 %v5171_v25  ;;  %4992 = vmatprep.mubr.msk.bf16.mxu1 %vm5208_vm0, %v5207_v1 }
 0xe62   :  { %4978 = vmatprep.subr.bf16.mxu1 %v5207_v1 }
 0xe65   :  { %4979 = vmatpush3.bf16.msra.mxu1 %v5172_v27 }
 0xe66   :  { %4980 = vmatprep.subr.bf16.mxu1 %v5207_v1 }
 0xe69   :  { %4981 = vmatpush3.bf16.msra.mxu1 %v5173_v28 }
 0xe6a   :  { %4982 = vmatprep.subr.bf16.mxu1 %v5207_v1 }
 0xe6d   :  { %4983 = vmatpush3.bf16.msra.mxu1 %v5174_v29 }
 0xe6e   :  { %4984 = vmatprep.subr.bf16.mxu1 %v5207_v1 }
 0xe71   :  { %4985 = vmatpush3.bf16.msra.mxu1 %v5175_v30 }
 0xe72   :  { %4986 = vmatprep.subr.bf16.mxu1 %v5207_v1 }
 0xe75   :  { %4987 = vmatpush3.bf16.msra.mxu1 %v5176_v31 }
 0xe76   :  { %4988 = vmatprep.subr.bf16.mxu1 %v5207_v1 }
 0xe79   :  { %4989 = vmatpush3.bf16.msra.mxu1 %v5177_v39 }
 0xe7a   :  { %4990 = vmatprep.subr.bf16.mxu1 %v5207_v1 }
 0xe7d   :  { %4991 = vmatpush3.bf16.msra.mxu1 %v5178_v40 }
 0xf13   :  { %v3291_v42 = vpop.f32.mrb[80].mxu0 }
 0xf14   :  { %v3292_v43 = vadd.f32 %v3701_v41, %v3291_v42  ;;  %v4934_v44 = vpop.f32.mrb[81].mxu0 }
 0xf15   :  { %v3294_v45 = vpop.f32.mrb[82].mxu0 }
 0xf16   :  { %v3297_v46 = vmax.f32 %v3292_v43, 0.0  ;;  %v4935_v47 = vpop.f32.mrb[83].mxu0 }
 0xf18   :  { %v3340_v48 = vpack.c.bf16 %v3297_v46, %v3297_v46 }
 0xf1a   :  { %4973 = vmatmul.mubr.bf16.vlgmr.msra.gmra.mrb[84].mxu0 %v3340_v48 }
 0xf33   :  { %v3333_v49 = vpop.f32.mrb[80].mxu1 }
 0xf34   :  { %v3334_v50 = vadd.f32 %v3701_v41, %v3333_v49  ;;  %v4954_v51 = vpop.f32.mrb[81].mxu1 }
 0xf35   :  { %v3336_v52 = vpop.f32.mrb[82].mxu1 }
 0xf36   :  { %v3339_v1 = vmax.f32 %v3334_v50, 0.0  ;;  %v4955_v53 = vpop.f32.mrb[83].mxu1 }
 0xf38   :  { %v3454_v54 = vpack.c.bf16 %v3339_v1, %v3339_v1 }
 0xf3a   :  { %4993 = vmatmul.mubr.bf16.vlgmr.msra.gmra.mrb[84].mxu1 %v3454_v54 }
 0xfed   :  { %v3448_v56 = vpop.f32.mrb[84].mxu0 }
 0xfee   :  { %v3449_v57 = vadd.f32 %v3711_v55, %v3448_v56  ;;  %v4974_v58 = vpop.f32.mrb[85].mxu0 }
 0xfef   :  { %v3451_v59 = vpop.f32.mrb[86].mxu0 }
 0xff0   :  { %3495 = vst [vmem:[%s5892_s4] sm:$0xff] %v3449_v57  ;;  %v4975_v60 = vpop.f32.mrb[87].mxu0 }
0x100d   :  { %v3489_v61 = vpop.f32.mrb[84].mxu1 }
0x100e   :  { %v3490_v62 = vadd.f32 %v3711_v55, %v3489_v61  ;;  %v4994_v63 = vpop.f32.mrb[85].mxu1 }
0x100f   :  { %v3492_v0 = vpop.f32.mrb[86].mxu1 }
0x1010   :  { %3496 = vst [vmem:[%s5892_s4 + $0x8] sm:$0xff] %v3490_v62  ;;  %v4995_v2 = vpop.f32.mrb[87].mxu1 }
0x1011   :  { %3501 = vsyncpa [#allocation3], 1 }

</bundles_post_ra>
